<compile_context>
chip_gen: v7x
topology: tpu7x:2x2x1
jax: 0.10.0
libtpu: 0.0.40
codegen_flags: <defaults>
</compile_context>

<pallas_src>
import jax
import jax.numpy as jnp
from jax.experimental import pallas as pl
from jax.experimental.pallas import tpu as pltpu

_VMEM_LIMIT = 32 * 1024 * 1024   # <= physical VMEM on v5e/v6e/v7x


# ----------------------------------------------------------------------------
# Fused conv3x3 + bias + ReLU + 2x2 maxpool (+ optional fused 1x1 score head)
# ----------------------------------------------------------------------------
def _make_conv_pool_kernel(H, W, with_score):
    Ho, Wo = H // 2, W // 2

    def kernel(*refs):
        if with_score:
            (x_ref, w_ref, b_ref, ws_ref, bs_ref, out_ref, score_ref,
             conv_buf, wmax_buf, pool_buf) = refs
        else:
            (x_ref, w_ref, b_ref, out_ref,
             conv_buf, wmax_buf, pool_buf) = refs

        # 3x3 conv as ONE matmul: im2col'd activation (H*W, 9*Cin) bf16 x
        # packed weight (9*Cin, Cout) bf16, f32 accumulation on the MXU.
        acc = jnp.dot(x_ref[...], w_ref[...], preferred_element_type=jnp.float32)
        conv_buf[...] = jnp.maximum(acc + b_ref[...], 0.0)     # bias + ReLU

        # 2x2/2 max-pool.  Rows of conv_buf are W-major, so the W direction is
        # one pair of stride-2 loads covering the whole image.  The H direction
        # only touches the needed even row pairs (Ho tiny contiguous maxima).
        wmax_buf[...] = jnp.maximum(conv_buf[pl.ds(0, H * Wo, 2), :],
                                    conv_buf[pl.ds(1, H * Wo, 2), :])
        for pi in range(Ho):
            pool_buf[pl.ds(pi * Wo, Wo), :] = jnp.maximum(
                wmax_buf[pl.ds(2 * pi * Wo, Wo), :],
                wmax_buf[pl.ds((2 * pi + 1) * Wo, Wo), :])

        out_ref[...] = pool_buf[...].astype(out_ref.dtype)

        if with_score:
            # Fused 1x1 score head on the pooled activation (stays in VMEM).
            score_ref[...] = (
                jnp.dot(pool_buf[...].astype(jnp.bfloat16), ws_ref[...],
                        preferred_element_type=jnp.float32) + bs_ref[...])

    return kernel


def _im2col_3x3(x):
    """(N,H,W,Cin) -> (N, H*W, 9*Cin) bf16, taps (di,dj)-major, cin-minor."""
    N, H, W, Cin = x.shape
    xp = jnp.pad(x, ((0, 0), (1, 1), (1, 1), (0, 0)))
    cols = [xp[:, di:di + H, dj:dj + W, :] for di in range(3) for dj in range(3)]
    return jnp.concatenate(cols, axis=-1).reshape(N, H * W, 9 * Cin).astype(jnp.bfloat16)


def conv3x3_relu_pool(x, w, b, ws=None, bs=None):
    """3x3 SAME conv + bias + ReLU + 2x2/2 maxpool, optional fused 1x1 score.

    x: (N,H,W,Cin);  w: (3,3,Cin,Cout);  ws: (1,1,Cout,ncls) or None.
    Returns pooled (N,H//2,W//2,Cout) bf16 [, score (N,H//2,W//2,ncls) f32].
    """
    N, H, W, Cin = x.shape
    Cout = w.shape[-1]
    Ho, Wo = H // 2, W // 2
    K9 = 9 * Cin
    with_score = ws is not None

    xcol = _im2col_3x3(x)                                    # (N, H*W, 9*Cin) bf16
    wp = w.reshape(K9, Cout).astype(jnp.bfloat16)            # matches im2col tap order
    b2 = b.reshape(1, Cout).astype(jnp.float32)

    in_specs = [pl.BlockSpec((None, H * W, K9), lambda n: (n, 0, 0)),
                pl.BlockSpec((K9, Cout), lambda n: (0, 0)),
                pl.BlockSpec((1, Cout), lambda n: (0, 0))]
    operands = [xcol, wp, b2]
    out_shape = [jax.ShapeDtypeStruct((N, Ho * Wo, Cout), jnp.bfloat16)]
    out_specs = [pl.BlockSpec((None, Ho * Wo, Cout), lambda n: (n, 0, 0))]
    if with_score:
        ncls = ws.shape[-1]
        operands += [ws.reshape(Cout, ncls).astype(jnp.bfloat16),
                     bs.reshape(1, ncls).astype(jnp.float32)]
        in_specs += [pl.BlockSpec((Cout, ncls), lambda n: (0, 0)),
                     pl.BlockSpec((1, ncls), lambda n: (0, 0))]
        out_shape.append(jax.ShapeDtypeStruct((N, Ho * Wo, ncls), jnp.float32))
        out_specs.append(pl.BlockSpec((None, Ho * Wo, ncls), lambda n: (n, 0, 0)))

    cost = pl.CostEstimate(
        flops=2 * N * H * W * K9 * Cout,
        transcendentals=0,
        bytes_accessed=(N * H * W * K9 * 2 + K9 * Cout * 2
                        + N * Ho * Wo * Cout * 2))

    outs = pl.pallas_call(
        _make_conv_pool_kernel(H, W, with_score),
        out_shape=tuple(out_shape),
        grid=(N,),
        in_specs=in_specs,
        out_specs=tuple(out_specs),
        scratch_shapes=[pltpu.VMEM((H * W, Cout), jnp.float32),     # conv+relu
                        pltpu.VMEM((H * Wo, Cout), jnp.float32),    # W-pooled
                        pltpu.VMEM((Ho * Wo, Cout), jnp.float32)],  # pooled
        compiler_params=pltpu.CompilerParams(
            dimension_semantics=("parallel",),
            vmem_limit_bytes=_VMEM_LIMIT),
        cost_estimate=cost,
    )(*operands)

    if with_score:
        pooled, score = outs
        return (pooled.reshape(N, Ho, Wo, Cout),
                score.reshape(N, Ho, Wo, ws.shape[-1]))
    (pooled,) = outs
    return pooled.reshape(N, Ho, Wo, Cout)


# ----------------------------------------------------------------------------
# Single fused decoder kernel:
#   fc6 -> fc7 -> (score_pool5 ∘ up5) -> +score_pool4 -> up4 -> +score_pool3 -> up3
# All deconvs have kernel == stride, so they are per-pixel linear expansions;
# the nested 2x2x(2x2)x(8x8) sub-pixel structure is carried in the LANE axis
# (block-diagonal composed weights), giving a lane-dense (M5, 2048) output.
# ----------------------------------------------------------------------------
def _decoder_kernel(x_ref, w1_ref, b1_ref, w2_ref, b2_ref, w5_ref, b5_ref,
                    s4_ref, d4_ref, b4_ref, s3_ref, d3_ref, b3_ref, o_ref):
    h = jnp.dot(x_ref[...], w1_ref[...],
                preferred_element_type=jnp.float32) + b1_ref[...]
    h = jnp.maximum(h, 0.0)                                     # fc6 + ReLU
    h = jnp.dot(h.astype(jnp.bfloat16), w2_ref[...],
                preferred_element_type=jnp.float32) + b2_ref[...]
    h = jnp.maximum(h, 0.0)                                     # fc7 + ReLU
    t4 = (jnp.dot(h.astype(jnp.bfloat16), w5_ref[...],
                  preferred_element_type=jnp.float32)
          + b5_ref[...] + s4_ref[...])                          # up5(score5) + s4
    t3 = (jnp.dot(t4.astype(jnp.bfloat16), d4_ref[...],
                  preferred_element_type=jnp.float32)
          + b4_ref[...] + s3_ref[...])                          # up4(.) + s3
    o_ref[...] = (jnp.dot(t3.astype(jnp.bfloat16), d3_ref[...],
                          preferred_element_type=jnp.float32)
                  + b3_ref[...])                                # up3(.)


def _full_spec(shape):
    return pl.BlockSpec(shape, lambda *_: (0,) * len(shape))


def fused_decoder(pool5, s4, s3, fc1, fc2, score5, up5, up4, up3):
    N, H5, W5, C5 = pool5.shape
    (w1, b1), (w2, b2) = fc1, fc2
    ws5, bs5 = score5
    wu5, bu5 = up5
    wu4, bu4 = up4
    wu3, bu3 = up3
    C = ws5.shape[-1]                       # num classes (2)
    C1, C2 = w1.shape[-1], w2.shape[-1]
    s5u, s4u, s3u = wu5.shape[1], wu4.shape[1], wu3.shape[1]    # 2, 2, 8
    G5 = s5u * s5u                          # sub-pixels per pool5 cell after up5
    G4 = G5 * s4u * s4u                     # ... after up4
    Kd = G4 * s3u * s3u * C                 # 2048 output lanes per pool5 cell
    M5 = N * H5 * W5

    # score_pool5 ∘ upsample_pool5 composed into one (C2 -> G5*C) weight.
    Wu5f = wu5.reshape(C, G5 * C)
    W5c = ws5.reshape(C2, C) @ Wu5f
    b5c = (bs5 @ Wu5f + jnp.tile(bu5, G5)).reshape(1, G5 * C)

    # Block-diagonal composed deconv weights: each sub-pixel of a pool5 cell
    # expands independently through up4 / up3 (kernel == stride, no overlap).
    D4 = jnp.kron(jnp.eye(G5, dtype=jnp.float32), wu4.reshape(C, s4u * s4u * C))
    b4 = jnp.tile(bu4, G4).reshape(1, G4 * C)
    D3 = jnp.kron(jnp.eye(G4, dtype=jnp.float32), wu3.reshape(C, s3u * s3u * C))
    b3 = jnp.tile(bu3, G4 * s3u * s3u).reshape(1, Kd)

    # Skip tensors re-laid out so each pool5 row carries its own sub-pixels.
    s4_blk = (s4.reshape(N, H5, s5u, W5, s5u, C)
              .transpose(0, 1, 3, 2, 4, 5).reshape(M5, G5 * C))
    s3_blk = (s3.reshape(N, H5, s5u, s4u, W5, s5u, s4u, C)
              .transpose(0, 1, 4, 2, 5, 3, 6, 7).reshape(M5, G4 * C))

    out = pl.pallas_call(
        _decoder_kernel,
        out_shape=jax.ShapeDtypeStruct((M5, Kd), jnp.float32),
        grid=(1,),
        in_specs=[_full_spec((M5, C5)),
                  _full_spec((C5, C1)), _full_spec((1, C1)),
                  _full_spec((C1, C2)), _full_spec((1, C2)),
                  _full_spec((C2, G5 * C)), _full_spec((1, G5 * C)),
                  _full_spec((M5, G5 * C)),
                  _full_spec((G5 * C, G4 * C)), _full_spec((1, G4 * C)),
                  _full_spec((M5, G4 * C)),
                  _full_spec((G4 * C, Kd)), _full_spec((1, Kd))],
        out_specs=_full_spec((M5, Kd)),
        compiler_params=pltpu.CompilerParams(
            dimension_semantics=("arbitrary",),
            vmem_limit_bytes=_VMEM_LIMIT),
    )(pool5.reshape(M5, C5).astype(jnp.bfloat16),
      w1.reshape(C5, C1).astype(jnp.bfloat16), b1.reshape(1, C1).astype(jnp.float32),
      w2.reshape(C1, C2).astype(jnp.bfloat16), b2.reshape(1, C2).astype(jnp.float32),
      W5c.astype(jnp.bfloat16), b5c.astype(jnp.float32),
      s4_blk.astype(jnp.float32),
      D4.astype(jnp.bfloat16), b4.astype(jnp.float32),
      s3_blk.astype(jnp.float32),
      D3.astype(jnp.bfloat16), b3.astype(jnp.float32))

    # Un-block: column = (((a*s5u+b)*s4u^2 + a'*s4u + b') * s3u^2 + u*s3u + v)*C + c
    out = out.reshape(N, H5, W5, s5u, s5u, s4u, s4u, s3u, s3u, C)
    out = out.transpose(0, 1, 3, 5, 7, 2, 4, 6, 8, 9)
    return out.reshape(N, H5 * s5u * s4u * s3u, W5 * s5u * s4u * s3u, C)


# ----------------------------------------------------------------------------
# Deterministic parameter construction (stands in for 'FCN8_net.pth')
# ----------------------------------------------------------------------------
def _conv_params(key, kh, kw, cin, cout):
    kw_key, kb_key = jax.random.split(key)
    w = jax.random.normal(kw_key, (kh, kw, cin, cout), jnp.float32) * 0.1
    b = jax.random.normal(kb_key, (cout,), jnp.float32) * 0.01
    return w, b


def _deconv_params(key, s, cin, cout):
    kw_key, kb_key = jax.random.split(key)
    w = jax.random.normal(kw_key, (cin, s, s, cout), jnp.float32) * 0.1
    b = jax.random.normal(kb_key, (cout,), jnp.float32) * 0.01
    return w, b


def make_params(seed=0):
    keys = jax.random.split(jax.random.PRNGKey(seed), 16)
    p = {}
    p["f3_c1"] = _conv_params(keys[0], 3, 3, 3, 8)
    p["f3_c2"] = _conv_params(keys[1], 3, 3, 8, 8)
    p["f3_c3"] = _conv_params(keys[2], 3, 3, 8, 16)
    p["f4_c1"] = _conv_params(keys[3], 3, 3, 16, 16)
    p["f5_c1"] = _conv_params(keys[4], 3, 3, 16, 16)
    p["fc1"] = _conv_params(keys[5], 1, 1, 16, 32)
    p["fc2"] = _conv_params(keys[6], 1, 1, 32, 32)
    p["score3"] = _conv_params(keys[7], 1, 1, 16, 2)
    p["score4"] = _conv_params(keys[8], 1, 1, 16, 2)
    p["score5"] = _conv_params(keys[9], 1, 1, 32, 2)
    p["up5"] = _deconv_params(keys[10], 2, 2, 2)
    p["up4"] = _deconv_params(keys[11], 2, 2, 2)
    p["up3"] = _deconv_params(keys[12], 8, 2, 2)
    return p


# ----------------------------------------------------------------------------
# FCN8_gb forward (Pallas path)
# ----------------------------------------------------------------------------
def fcn8_gb_forward(x_nchw, p):
    x = jnp.transpose(x_nchw, (0, 2, 3, 1)).astype(jnp.float32)   # NCHW -> NHWC

    h = conv3x3_relu_pool(x, *p["f3_c1"])
    h = conv3x3_relu_pool(h, *p["f3_c2"])
    pool3, score_pool3 = conv3x3_relu_pool(
        h, *p["f3_c3"], ws=p["score3"][0], bs=p["score3"][1])
    pool4, score_pool4 = conv3x3_relu_pool(
        pool3, *p["f4_c1"], ws=p["score4"][0], bs=p["score4"][1])
    pool5 = conv3x3_relu_pool(pool4, *p["f5_c1"])

    out = fused_decoder(pool5, score_pool4, score_pool3,
                        p["fc1"], p["fc2"], p["score5"],
                        p["up5"], p["up4"], p["up3"])

    # PyTorch epilogue: permute(1,0,2,3) -> view(2,-1) -> permute(1,0)
    # i.e. final[(n*H + h)*W + w, c] = out[n, c, h, w]; the NHWC reshape matches.
    N, H, W, C = out.shape
    return out.reshape(N * H * W, C)


# ----------------------------------------------------------------------------
# Pure-JAX reference (mirrors the encoder's bf16 cast points) for validation
# ----------------------------------------------------------------------------
def _ref_conv(x, w, b, relu, padding):
    N, H, W, Cin = x.shape
    kh, kw, _, Cout = w.shape
    xp = jnp.pad(x, ((0, 0), (padding, padding), (padding, padding), (0, 0)))
    Ho, Wo = H + 2 * padding - kh + 1, W + 2 * padding - kw + 1
    cols = [xp[:, di:di + Ho, dj:dj + Wo, :]
            for di in range(kh) for dj in range(kw)]
    x2 = jnp.concatenate(cols, axis=-1).reshape(N * Ho * Wo, kh * kw * Cin)
    o = jnp.dot(x2.astype(jnp.bfloat16),
                w.reshape(kh * kw * Cin, Cout).astype(jnp.bfloat16),
                preferred_element_type=jnp.float32) + b
    if relu:
        o = jnp.maximum(o, 0.0)
    return o.reshape(N, Ho, Wo, Cout)


def _ref_pool(x):
    N, H, W, C = x.shape
    return jnp.max(x.reshape(N, H // 2, 2, W // 2, 2, C), axis=(2, 4))


def _ref_deconv(x, wu, bu):
    N, H, W, Cin = x.shape
    s, Cout = wu.shape[1], wu.shape[-1]
    o = x.reshape(N * H * W, Cin) @ wu.reshape(Cin, s * s * Cout) + jnp.tile(bu, s * s)
    o = o.reshape(N, H, W, s, s, Cout).transpose(0, 1, 3, 2, 4, 5)
    return o.reshape(N, H * s, W * s, Cout)


def fcn8_gb_reference(x_nchw, p):
    x = jnp.transpose(x_nchw, (0, 2, 3, 1)).astype(jnp.float32)

    def block(h, wp):
        c = _ref_conv(h, *wp, relu=True, padding=1)
        return _ref_pool(c).astype(jnp.bfloat16).astype(jnp.float32)

    h = block(x, p["f3_c1"]); h = block(h, p["f3_c2"]); pool3 = block(h, p["f3_c3"])
    pool4 = block(pool3, p["f4_c1"]); pool5 = block(pool4, p["f5_c1"])
    fc = _ref_conv(pool5, *p["fc1"], relu=True, padding=0)
    fc = _ref_conv(fc, *p["fc2"], relu=True, padding=0)
    s5 = _ref_conv(fc, *p["score5"], relu=False, padding=0)
    s4 = _ref_conv(pool4, *p["score4"], relu=False, padding=0)
    s3 = _ref_conv(pool3, *p["score3"], relu=False, padding=0)
    out = _ref_deconv(s5, *p["up5"]) + s4
    out = _ref_deconv(out, *p["up4"]) + s3
    out = _ref_deconv(out, *p["up3"])
    N, H, W, C = out.shape
    return out.reshape(N * H * W, C)


if __name__ == "__main__":
    # Input spatial size must be divisible by 32 (FCN8 stride); 32x32, N=2.
    key = jax.random.PRNGKey(0)
    x = jax.random.normal(key, (2, 3, 32, 32), jnp.float32)   # NCHW like PyTorch
    params = make_params(seed=0)

    out = jax.block_until_ready(jax.jit(fcn8_gb_forward)(x, params))

    assert out.shape == (2 * 32 * 32, 2), out.shape
    assert bool(jnp.all(jnp.isfinite(out)))

    ref = jax.block_until_ready(jax.jit(fcn8_gb_reference)(x, params))
    max_err = float(jnp.max(jnp.abs(out - ref)))
    assert bool(jnp.allclose(out, ref, rtol=2e-2, atol=2e-2)), max_err

    print("KERNEL_OK")
</pallas_src>

<mosaic_0001>
module attributes {stable_mosaic.version = 11 : i64} {
  func.func @kernel(%arg0: i32, %arg1: memref<1x1024x27xbf16, #tpu.memory_space<vmem>>, %arg2: memref<27x8xbf16, #tpu.memory_space<vmem>>, %arg3: memref<1x8xf32, #tpu.memory_space<vmem>>, %arg4: memref<1x256x8xbf16, #tpu.memory_space<vmem>>, %arg5: memref<1024x8xf32, #tpu.memory_space<vmem>>, %arg6: memref<512x8xf32, #tpu.memory_space<vmem>>, %arg7: memref<256x8xf32, #tpu.memory_space<vmem>>) attributes {dimension_semantics = [#tpu.dimension_semantics<parallel>], iteration_bounds = array<i64: 2>, scalar_prefetch = 0 : i64, scratch_operands = 3 : i64, tpu.core_type = #tpu.core_type<tc>, window_params = [{transform_indices = @transform_0, window_bounds = array<i64: 1, 1024, 27>}, {pipeline_mode = #tpu.pipeline_mode<synchronous>, transform_indices = @transform_1, window_bounds = array<i64: 27, 8>}, {pipeline_mode = #tpu.pipeline_mode<synchronous>, transform_indices = @transform_2, window_bounds = array<i64: 1, 8>}, {transform_indices = @transform_3, window_bounds = array<i64: 1, 256, 8>}]} {
    %c0 = arith.constant 0 : index
    %c0_0 = arith.constant 0 : index
    %c0_1 = arith.constant 0 : index
    %0 = vector.load %arg1[%c0, %c0_0, %c0_1] : memref<1x1024x27xbf16, #tpu.memory_space<vmem>>, vector<1x1024x27xbf16>
    %1 = vector.shape_cast %0 : vector<1x1024x27xbf16> to vector<1024x27xbf16>
    %c0_2 = arith.constant 0 : index
    %c0_3 = arith.constant 0 : index
    %2 = vector.load %arg2[%c0_2, %c0_3] : memref<27x8xbf16, #tpu.memory_space<vmem>>, vector<27x8xbf16>
    %cst = arith.constant dense<0.000000e+00> : vector<1024x8xf32>
    %3 = tpu.matmul %1, %2, %cst {dimension_numbers = #tpu.dot_dimension_numbers<[1], [0], [0], [1], [0, 0, 1, 1], [], []>} : vector<1024x27xbf16>, vector<27x8xbf16>, vector<1024x8xf32> -> vector<1024x8xf32>
    %c0_4 = arith.constant 0 : index
    %c0_5 = arith.constant 0 : index
    %4 = vector.load %arg3[%c0_4, %c0_5] : memref<1x8xf32, #tpu.memory_space<vmem>>, vector<1x8xf32>
    %5 = vector.broadcast %4 : vector<1x8xf32> to vector<1024x8xf32>
    %6 = arith.addf %3, %5 : vector<1024x8xf32>
    %cst_6 = arith.constant 0.000000e+00 : f32
    %7 = vector.broadcast %cst_6 : f32 to vector<1024x8xf32>
    %8 = arith.maximumf %6, %7 : vector<1024x8xf32>
    %c0_7 = arith.constant 0 : index
    %c0_8 = arith.constant 0 : index
    %9 = vector.load %arg5[%c0_7, %c0_8] : memref<1024x8xf32, #tpu.memory_space<vmem>>, vector<1024x8xf32>
    tpu.vector_store %arg5[%c0_7, %c0_8], %8 {strides = array<i32>} : memref<1024x8xf32, #tpu.memory_space<vmem>>, vector<1024x8xf32>,
    %c0_9 = arith.constant 0 : index
    %c0_10 = arith.constant 0 : index
    %10 = tpu.strided_load %arg5[%c0_9, %c0_10] {strides = array<i32: 2, 1>} : memref<1024x8xf32, #tpu.memory_space<vmem>>, vector<512x8xf32>
    %c1 = arith.constant 1 : index
    %c0_11 = arith.constant 0 : index
    %11 = tpu.strided_load %arg5[%c1, %c0_11] {strides = array<i32: 2, 1>} : memref<1024x8xf32, #tpu.memory_space<vmem>>, vector<512x8xf32>
    %12 = arith.maximumf %10, %11 : vector<512x8xf32>
    %c0_12 = arith.constant 0 : index
    %c0_13 = arith.constant 0 : index
    %13 = vector.load %arg6[%c0_12, %c0_13] : memref<512x8xf32, #tpu.memory_space<vmem>>, vector<512x8xf32>
    tpu.vector_store %arg6[%c0_12, %c0_13], %12 {strides = array<i32>} : memref<512x8xf32, #tpu.memory_space<vmem>>, vector<512x8xf32>,
    %c0_14 = arith.constant 0 : index
    %c0_15 = arith.constant 0 : index
    %14 = vector.load %arg6[%c0_14, %c0_15] : memref<512x8xf32, #tpu.memory_space<vmem>>, vector<16x8xf32>
    %c16 = arith.constant 16 : index
    %c0_16 = arith.constant 0 : index
    %15 = vector.load %arg6[%c16, %c0_16] : memref<512x8xf32, #tpu.memory_space<vmem>>, vector<16x8xf32>
    %16 = arith.maximumf %14, %15 : vector<16x8xf32>
    %c0_17 = arith.constant 0 : index
    %c0_18 = arith.constant 0 : index
    %17 = vector.load %arg7[%c0_17, %c0_18] : memref<256x8xf32, #tpu.memory_space<vmem>>, vector<16x8xf32>
    tpu.vector_store %arg7[%c0_17, %c0_18], %16 {strides = array<i32>} : memref<256x8xf32, #tpu.memory_space<vmem>>, vector<16x8xf32>,
    %c32 = arith.constant 32 : index
    %c0_19 = arith.constant 0 : index
    %18 = vector.load %arg6[%c32, %c0_19] : memref<512x8xf32, #tpu.memory_space<vmem>>, vector<16x8xf32>
    %c48 = arith.constant 48 : index
    %c0_20 = arith.constant 0 : index
    %19 = vector.load %arg6[%c48, %c0_20] : memref<512x8xf32, #tpu.memory_space<vmem>>, vector<16x8xf32>
    %20 = arith.maximumf %18, %19 : vector<16x8xf32>
    %c16_21 = arith.constant 16 : index
    %c0_22 = arith.constant 0 : index
    %21 = vector.load %arg7[%c16_21, %c0_22] : memref<256x8xf32, #tpu.memory_space<vmem>>, vector<16x8xf32>
    tpu.vector_store %arg7[%c16_21, %c0_22], %20 {strides = array<i32>} : memref<256x8xf32, #tpu.memory_space<vmem>>, vector<16x8xf32>,
    %c64 = arith.constant 64 : index
    %c0_23 = arith.constant 0 : index
    %22 = vector.load %arg6[%c64, %c0_23] : memref<512x8xf32, #tpu.memory_space<vmem>>, vector<16x8xf32>
    %c80 = arith.constant 80 : index
    %c0_24 = arith.constant 0 : index
    %23 = vector.load %arg6[%c80, %c0_24] : memref<512x8xf32, #tpu.memory_space<vmem>>, vector<16x8xf32>
    %24 = arith.maximumf %22, %23 : vector<16x8xf32>
    %c32_25 = arith.constant 32 : index
    %c0_26 = arith.constant 0 : index
    %25 = vector.load %arg7[%c32_25, %c0_26] : memref<256x8xf32, #tpu.memory_space<vmem>>, vector<16x8xf32>
    tpu.vector_store %arg7[%c32_25, %c0_26], %24 {strides = array<i32>} : memref<256x8xf32, #tpu.memory_space<vmem>>, vector<16x8xf32>,
    %c96 = arith.constant 96 : index
    %c0_27 = arith.constant 0 : index
    %26 = vector.load %arg6[%c96, %c0_27] : memref<512x8xf32, #tpu.memory_space<vmem>>, vector<16x8xf32>
    %c112 = arith.constant 112 : index
    %c0_28 = arith.constant 0 : index
    %27 = vector.load %arg6[%c112, %c0_28] : memref<512x8xf32, #tpu.memory_space<vmem>>, vector<16x8xf32>
    %28 = arith.maximumf %26, %27 : vector<16x8xf32>
    %c48_29 = arith.constant 48 : index
    %c0_30 = arith.constant 0 : index
    %29 = vector.load %arg7[%c48_29, %c0_30] : memref<256x8xf32, #tpu.memory_space<vmem>>, vector<16x8xf32>
    tpu.vector_store %arg7[%c48_29, %c0_30], %28 {strides = array<i32>} : memref<256x8xf32, #tpu.memory_space<vmem>>, vector<16x8xf32>,
    %c128 = arith.constant 128 : index
    %c0_31 = arith.constant 0 : index
    %30 = vector.load %arg6[%c128, %c0_31] : memref<512x8xf32, #tpu.memory_space<vmem>>, vector<16x8xf32>
    %c144 = arith.constant 144 : index
    %c0_32 = arith.constant 0 : index
    %31 = vector.load %arg6[%c144, %c0_32] : memref<512x8xf32, #tpu.memory_space<vmem>>, vector<16x8xf32>
    %32 = arith.maximumf %30, %31 : vector<16x8xf32>
    %c64_33 = arith.constant 64 : index
    %c0_34 = arith.constant 0 : index
    %33 = vector.load %arg7[%c64_33, %c0_34] : memref<256x8xf32, #tpu.memory_space<vmem>>, vector<16x8xf32>
    tpu.vector_store %arg7[%c64_33, %c0_34], %32 {strides = array<i32>} : memref<256x8xf32, #tpu.memory_space<vmem>>, vector<16x8xf32>,
    %c160 = arith.constant 160 : index
    %c0_35 = arith.constant 0 : index
    %34 = vector.load %arg6[%c160, %c0_35] : memref<512x8xf32, #tpu.memory_space<vmem>>, vector<16x8xf32>
    %c176 = arith.constant 176 : index
    %c0_36 = arith.constant 0 : index
    %35 = vector.load %arg6[%c176, %c0_36] : memref<512x8xf32, #tpu.memory_space<vmem>>, vector<16x8xf32>
    %36 = arith.maximumf %34, %35 : vector<16x8xf32>
    %c80_37 = arith.constant 80 : index
    %c0_38 = arith.constant 0 : index
    %37 = vector.load %arg7[%c80_37, %c0_38] : memref<256x8xf32, #tpu.memory_space<vmem>>, vector<16x8xf32>
    tpu.vector_store %arg7[%c80_37, %c0_38], %36 {strides = array<i32>} : memref<256x8xf32, #tpu.memory_space<vmem>>, vector<16x8xf32>,
    %c192 = arith.constant 192 : index
    %c0_39 = arith.constant 0 : index
    %38 = vector.load %arg6[%c192, %c0_39] : memref<512x8xf32, #tpu.memory_space<vmem>>, vector<16x8xf32>
    %c208 = arith.constant 208 : index
    %c0_40 = arith.constant 0 : index
    %39 = vector.load %arg6[%c208, %c0_40] : memref<512x8xf32, #tpu.memory_space<vmem>>, vector<16x8xf32>
    %40 = arith.maximumf %38, %39 : vector<16x8xf32>
    %c96_41 = arith.constant 96 : index
    %c0_42 = arith.constant 0 : index
    %41 = vector.load %arg7[%c96_41, %c0_42] : memref<256x8xf32, #tpu.memory_space<vmem>>, vector<16x8xf32>
    tpu.vector_store %arg7[%c96_41, %c0_42], %40 {strides = array<i32>} : memref<256x8xf32, #tpu.memory_space<vmem>>, vector<16x8xf32>,
    %c224 = arith.constant 224 : index
    %c0_43 = arith.constant 0 : index
    %42 = vector.load %arg6[%c224, %c0_43] : memref<512x8xf32, #tpu.memory_space<vmem>>, vector<16x8xf32>
    %c240 = arith.constant 240 : index
    %c0_44 = arith.constant 0 : index
    %43 = vector.load %arg6[%c240, %c0_44] : memref<512x8xf32, #tpu.memory_space<vmem>>, vector<16x8xf32>
    %44 = arith.maximumf %42, %43 : vector<16x8xf32>
    %c112_45 = arith.constant 112 : index
    %c0_46 = arith.constant 0 : index
    %45 = vector.load %arg7[%c112_45, %c0_46] : memref<256x8xf32, #tpu.memory_space<vmem>>, vector<16x8xf32>
    tpu.vector_store %arg7[%c112_45, %c0_46], %44 {strides = array<i32>} : memref<256x8xf32, #tpu.memory_space<vmem>>, vector<16x8xf32>,
    %c256 = arith.constant 256 : index
    %c0_47 = arith.constant 0 : index
    %46 = vector.load %arg6[%c256, %c0_47] : memref<512x8xf32, #tpu.memory_space<vmem>>, vector<16x8xf32>
    %c272 = arith.constant 272 : index
    %c0_48 = arith.constant 0 : index
    %47 = vector.load %arg6[%c272, %c0_48] : memref<512x8xf32, #tpu.memory_space<vmem>>, vector<16x8xf32>
    %48 = arith.maximumf %46, %47 : vector<16x8xf32>
    %c128_49 = arith.constant 128 : index
    %c0_50 = arith.constant 0 : index
    %49 = vector.load %arg7[%c128_49, %c0_50] : memref<256x8xf32, #tpu.memory_space<vmem>>, vector<16x8xf32>
    tpu.vector_store %arg7[%c128_49, %c0_50], %48 {strides = array<i32>} : memref<256x8xf32, #tpu.memory_space<vmem>>, vector<16x8xf32>,
    %c288 = arith.constant 288 : index
    %c0_51 = arith.constant 0 : index
    %50 = vector.load %arg6[%c288, %c0_51] : memref<512x8xf32, #tpu.memory_space<vmem>>, vector<16x8xf32>
    %c304 = arith.constant 304 : index
    %c0_52 = arith.constant 0 : index
    %51 = vector.load %arg6[%c304, %c0_52] : memref<512x8xf32, #tpu.memory_space<vmem>>, vector<16x8xf32>
    %52 = arith.maximumf %50, %51 : vector<16x8xf32>
    %c144_53 = arith.constant 144 : index
    %c0_54 = arith.constant 0 : index
    %53 = vector.load %arg7[%c144_53, %c0_54] : memref<256x8xf32, #tpu.memory_space<vmem>>, vector<16x8xf32>
    tpu.vector_store %arg7[%c144_53, %c0_54], %52 {strides = array<i32>} : memref<256x8xf32, #tpu.memory_space<vmem>>, vector<16x8xf32>,
    %c320 = arith.constant 320 : index
    %c0_55 = arith.constant 0 : index
    %54 = vector.load %arg6[%c320, %c0_55] : memref<512x8xf32, #tpu.memory_space<vmem>>, vector<16x8xf32>
    %c336 = arith.constant 336 : index
    %c0_56 = arith.constant 0 : index
    %55 = vector.load %arg6[%c336, %c0_56] : memref<512x8xf32, #tpu.memory_space<vmem>>, vector<16x8xf32>
    %56 = arith.maximumf %54, %55 : vector<16x8xf32>
    %c160_57 = arith.constant 160 : index
    %c0_58 = arith.constant 0 : index
    %57 = vector.load %arg7[%c160_57, %c0_58] : memref<256x8xf32, #tpu.memory_space<vmem>>, vector<16x8xf32>
    tpu.vector_store %arg7[%c160_57, %c0_58], %56 {strides = array<i32>} : memref<256x8xf32, #tpu.memory_space<vmem>>, vector<16x8xf32>,
    %c352 = arith.constant 352 : index
    %c0_59 = arith.constant 0 : index
    %58 = vector.load %arg6[%c352, %c0_59] : memref<512x8xf32, #tpu.memory_space<vmem>>, vector<16x8xf32>
    %c368 = arith.constant 368 : index
    %c0_60 = arith.constant 0 : index
    %59 = vector.load %arg6[%c368, %c0_60] : memref<512x8xf32, #tpu.memory_space<vmem>>, vector<16x8xf32>
    %60 = arith.maximumf %58, %59 : vector<16x8xf32>
    %c176_61 = arith.constant 176 : index
    %c0_62 = arith.constant 0 : index
    %61 = vector.load %arg7[%c176_61, %c0_62] : memref<256x8xf32, #tpu.memory_space<vmem>>, vector<16x8xf32>
    tpu.vector_store %arg7[%c176_61, %c0_62], %60 {strides = array<i32>} : memref<256x8xf32, #tpu.memory_space<vmem>>, vector<16x8xf32>,
    %c384 = arith.constant 384 : index
    %c0_63 = arith.constant 0 : index
    %62 = vector.load %arg6[%c384, %c0_63] : memref<512x8xf32, #tpu.memory_space<vmem>>, vector<16x8xf32>
    %c400 = arith.constant 400 : index
    %c0_64 = arith.constant 0 : index
    %63 = vector.load %arg6[%c400, %c0_64] : memref<512x8xf32, #tpu.memory_space<vmem>>, vector<16x8xf32>
    %64 = arith.maximumf %62, %63 : vector<16x8xf32>
    %c192_65 = arith.constant 192 : index
    %c0_66 = arith.constant 0 : index
    %65 = vector.load %arg7[%c192_65, %c0_66] : memref<256x8xf32, #tpu.memory_space<vmem>>, vector<16x8xf32>
    tpu.vector_store %arg7[%c192_65, %c0_66], %64 {strides = array<i32>} : memref<256x8xf32, #tpu.memory_space<vmem>>, vector<16x8xf32>,
    %c416 = arith.constant 416 : index
    %c0_67 = arith.constant 0 : index
    %66 = vector.load %arg6[%c416, %c0_67] : memref<512x8xf32, #tpu.memory_space<vmem>>, vector<16x8xf32>
    %c432 = arith.constant 432 : index
    %c0_68 = arith.constant 0 : index
    %67 = vector.load %arg6[%c432, %c0_68] : memref<512x8xf32, #tpu.memory_space<vmem>>, vector<16x8xf32>
    %68 = arith.maximumf %66, %67 : vector<16x8xf32>
    %c208_69 = arith.constant 208 : index
    %c0_70 = arith.constant 0 : index
    %69 = vector.load %arg7[%c208_69, %c0_70] : memref<256x8xf32, #tpu.memory_space<vmem>>, vector<16x8xf32>
    tpu.vector_store %arg7[%c208_69, %c0_70], %68 {strides = array<i32>} : memref<256x8xf32, #tpu.memory_space<vmem>>, vector<16x8xf32>,
    %c448 = arith.constant 448 : index
    %c0_71 = arith.constant 0 : index
    %70 = vector.load %arg6[%c448, %c0_71] : memref<512x8xf32, #tpu.memory_space<vmem>>, vector<16x8xf32>
    %c464 = arith.constant 464 : index
    %c0_72 = arith.constant 0 : index
    %71 = vector.load %arg6[%c464, %c0_72] : memref<512x8xf32, #tpu.memory_space<vmem>>, vector<16x8xf32>
    %72 = arith.maximumf %70, %71 : vector<16x8xf32>
    %c224_73 = arith.constant 224 : index
    %c0_74 = arith.constant 0 : index
    %73 = vector.load %arg7[%c224_73, %c0_74] : memref<256x8xf32, #tpu.memory_space<vmem>>, vector<16x8xf32>
    tpu.vector_store %arg7[%c224_73, %c0_74], %72 {strides = array<i32>} : memref<256x8xf32, #tpu.memory_space<vmem>>, vector<16x8xf32>,
    %c480 = arith.constant 480 : index
    %c0_75 = arith.constant 0 : index
    %74 = vector.load %arg6[%c480, %c0_75] : memref<512x8xf32, #tpu.memory_space<vmem>>, vector<16x8xf32>
    %c496 = arith.constant 496 : index
    %c0_76 = arith.constant 0 : index
    %75 = vector.load %arg6[%c496, %c0_76] : memref<512x8xf32, #tpu.memory_space<vmem>>, vector<16x8xf32>
    %76 = arith.maximumf %74, %75 : vector<16x8xf32>
    %c240_77 = arith.constant 240 : index
    %c0_78 = arith.constant 0 : index
    %77 = vector.load %arg7[%c240_77, %c0_78] : memref<256x8xf32, #tpu.memory_space<vmem>>, vector<16x8xf32>
    tpu.vector_store %arg7[%c240_77, %c0_78], %76 {strides = array<i32>} : memref<256x8xf32, #tpu.memory_space<vmem>>, vector<16x8xf32>,
    %c0_79 = arith.constant 0 : index
    %c0_80 = arith.constant 0 : index
    %78 = vector.load %arg7[%c0_79, %c0_80] : memref<256x8xf32, #tpu.memory_space<vmem>>, vector<256x8xf32>
    %79 = arith.truncf %78 : vector<256x8xf32> to vector<256x8xbf16>
    %c0_81 = arith.constant 0 : index
    %c0_82 = arith.constant 0 : index
    %c0_83 = arith.constant 0 : index
    %80 = vector.load %arg4[%c0_81, %c0_82, %c0_83] : memref<1x256x8xbf16, #tpu.memory_space<vmem>>, vector<1x256x8xbf16>
    %81 = vector.shape_cast %80 : vector<1x256x8xbf16> to vector<256x8xbf16>
    %82 = vector.shape_cast %79 : vector<256x8xbf16> to vector<1x256x8xbf16>
    tpu.vector_store %arg4[%c0_81, %c0_82, %c0_83], %82 {strides = array<i32>} : memref<1x256x8xbf16, #tpu.memory_space<vmem>>, vector<1x256x8xbf16>,
    return
  }
  func.func @transform_0(%arg0: i32) -> (i32, i32, i32) {
    %c0_i32 = arith.constant 0 : i32
    %c0_i32_0 = arith.constant 0 : i32
    %c0_i32_1 = arith.constant 0 : i32
    return %arg0, %c0_i32, %c0_i32_0 : i32, i32, i32
  }
  func.func @transform_1(%arg0: i32) -> (i32, i32) {
    %c0_i32 = arith.constant 0 : i32
    %c0_i32_0 = arith.constant 0 : i32
    %c0_i32_1 = arith.constant 0 : i32
    return %c0_i32, %c0_i32_0 : i32, i32
  }
  func.func @transform_2(%arg0: i32) -> (i32, i32) {
    %c0_i32 = arith.constant 0 : i32
    %c0_i32_0 = arith.constant 0 : i32
    %c0_i32_1 = arith.constant 0 : i32
    return %c0_i32, %c0_i32_0 : i32, i32
  }
  func.func @transform_3(%arg0: i32) -> (i32, i32, i32) {
    %c0_i32 = arith.constant 0 : i32
    %c0_i32_0 = arith.constant 0 : i32
    %c0_i32_1 = arith.constant 0 : i32
    return %arg0, %c0_i32, %c0_i32_0 : i32, i32, i32
  }
}

module attributes {stable_mosaic.version = 11 : i64} {
  func.func @kernel(%arg0: i32, %arg1: memref<1x256x72xbf16, #tpu.memory_space<vmem>>, %arg2: memref<72x8xbf16, #tpu.memory_space<vmem>>, %arg3: memref<1x8xf32, #tpu.memory_space<vmem>>, %arg4: memref<1x64x8xbf16, #tpu.memory_space<vmem>>, %arg5: memref<256x8xf32, #tpu.memory_space<vmem>>, %arg6: memref<128x8xf32, #tpu.memory_space<vmem>>, %arg7: memref<64x8xf32, #tpu.memory_space<vmem>>) attributes {dimension_semantics = [#tpu.dimension_semantics<parallel>], iteration_bounds = array<i64: 2>, scalar_prefetch = 0 : i64, scratch_operands = 3 : i64, tpu.core_type = #tpu.core_type<tc>, window_params = [{transform_indices = @transform_0, window_bounds = array<i64: 1, 256, 72>}, {pipeline_mode = #tpu.pipeline_mode<synchronous>, transform_indices = @transform_1, window_bounds = array<i64: 72, 8>}, {pipeline_mode = #tpu.pipeline_mode<synchronous>, transform_indices = @transform_2, window_bounds = array<i64: 1, 8>}, {transform_indices = @transform_3, window_bounds = array<i64: 1, 64, 8>}]} {
    %c0 = arith.constant 0 : index
    %c0_0 = arith.constant 0 : index
    %c0_1 = arith.constant 0 : index
    %0 = vector.load %arg1[%c0, %c0_0, %c0_1] : memref<1x256x72xbf16, #tpu.memory_space<vmem>>, vector<1x256x72xbf16>
    %1 = vector.shape_cast %0 : vector<1x256x72xbf16> to vector<256x72xbf16>
    %c0_2 = arith.constant 0 : index
    %c0_3 = arith.constant 0 : index
    %2 = vector.load %arg2[%c0_2, %c0_3] : memref<72x8xbf16, #tpu.memory_space<vmem>>, vector<72x8xbf16>
    %cst = arith.constant dense<0.000000e+00> : vector<256x8xf32>
    %3 = tpu.matmul %1, %2, %cst {dimension_numbers = #tpu.dot_dimension_numbers<[1], [0], [0], [1], [0, 0, 1, 1], [], []>} : vector<256x72xbf16>, vector<72x8xbf16>, vector<256x8xf32> -> vector<256x8xf32>
    %c0_4 = arith.constant 0 : index
    %c0_5 = arith.constant 0 : index
    %4 = vector.load %arg3[%c0_4, %c0_5] : memref<1x8xf32, #tpu.memory_space<vmem>>, vector<1x8xf32>
    %5 = vector.broadcast %4 : vector<1x8xf32> to vector<256x8xf32>
    %6 = arith.addf %3, %5 : vector<256x8xf32>
    %cst_6 = arith.constant 0.000000e+00 : f32
    %7 = vector.broadcast %cst_6 : f32 to vector<256x8xf32>
    %8 = arith.maximumf %6, %7 : vector<256x8xf32>
    %c0_7 = arith.constant 0 : index
    %c0_8 = arith.constant 0 : index
    %9 = vector.load %arg5[%c0_7, %c0_8] : memref<256x8xf32, #tpu.memory_space<vmem>>, vector<256x8xf32>
    tpu.vector_store %arg5[%c0_7, %c0_8], %8 {strides = array<i32>} : memref<256x8xf32, #tpu.memory_space<vmem>>, vector<256x8xf32>,
    %c0_9 = arith.constant 0 : index
    %c0_10 = arith.constant 0 : index
    %10 = tpu.strided_load %arg5[%c0_9, %c0_10] {strides = array<i32: 2, 1>} : memref<256x8xf32, #tpu.memory_space<vmem>>, vector<128x8xf32>
    %c1 = arith.constant 1 : index
    %c0_11 = arith.constant 0 : index
    %11 = tpu.strided_load %arg5[%c1, %c0_11] {strides = array<i32: 2, 1>} : memref<256x8xf32, #tpu.memory_space<vmem>>, vector<128x8xf32>
    %12 = arith.maximumf %10, %11 : vector<128x8xf32>
    %c0_12 = arith.constant 0 : index
    %c0_13 = arith.constant 0 : index
    %13 = vector.load %arg6[%c0_12, %c0_13] : memref<128x8xf32, #tpu.memory_space<vmem>>, vector<128x8xf32>
    tpu.vector_store %arg6[%c0_12, %c0_13], %12 {strides = array<i32>} : memref<128x8xf32, #tpu.memory_space<vmem>>, vector<128x8xf32>,
    %c0_14 = arith.constant 0 : index
    %c0_15 = arith.constant 0 : index
    %14 = vector.load %arg6[%c0_14, %c0_15] : memref<128x8xf32, #tpu.memory_space<vmem>>, vector<8x8xf32>
    %c8 = arith.constant 8 : index
    %c0_16 = arith.constant 0 : index
    %15 = vector.load %arg6[%c8, %c0_16] : memref<128x8xf32, #tpu.memory_space<vmem>>, vector<8x8xf32>
    %16 = arith.maximumf %14, %15 : vector<8x8xf32>
    %c0_17 = arith.constant 0 : index
    %c0_18 = arith.constant 0 : index
    %17 = vector.load %arg7[%c0_17, %c0_18] : memref<64x8xf32, #tpu.memory_space<vmem>>, vector<8x8xf32>
    tpu.vector_store %arg7[%c0_17, %c0_18], %16 {strides = array<i32>} : memref<64x8xf32, #tpu.memory_space<vmem>>, vector<8x8xf32>,
    %c16 = arith.constant 16 : index
    %c0_19 = arith.constant 0 : index
    %18 = vector.load %arg6[%c16, %c0_19] : memref<128x8xf32, #tpu.memory_space<vmem>>, vector<8x8xf32>
    %c24 = arith.constant 24 : index
    %c0_20 = arith.constant 0 : index
    %19 = vector.load %arg6[%c24, %c0_20] : memref<128x8xf32, #tpu.memory_space<vmem>>, vector<8x8xf32>
    %20 = arith.maximumf %18, %19 : vector<8x8xf32>
    %c8_21 = arith.constant 8 : index
    %c0_22 = arith.constant 0 : index
    %21 = vector.load %arg7[%c8_21, %c0_22] : memref<64x8xf32, #tpu.memory_space<vmem>>, vector<8x8xf32>
    tpu.vector_store %arg7[%c8_21, %c0_22], %20 {strides = array<i32>} : memref<64x8xf32, #tpu.memory_space<vmem>>, vector<8x8xf32>,
    %c32 = arith.constant 32 : index
    %c0_23 = arith.constant 0 : index
    %22 = vector.load %arg6[%c32, %c0_23] : memref<128x8xf32, #tpu.memory_space<vmem>>, vector<8x8xf32>
    %c40 = arith.constant 40 : index
    %c0_24 = arith.constant 0 : index
    %23 = vector.load %arg6[%c40, %c0_24] : memref<128x8xf32, #tpu.memory_space<vmem>>, vector<8x8xf32>
    %24 = arith.maximumf %22, %23 : vector<8x8xf32>
    %c16_25 = arith.constant 16 : index
    %c0_26 = arith.constant 0 : index
    %25 = vector.load %arg7[%c16_25, %c0_26] : memref<64x8xf32, #tpu.memory_space<vmem>>, vector<8x8xf32>
    tpu.vector_store %arg7[%c16_25, %c0_26], %24 {strides = array<i32>} : memref<64x8xf32, #tpu.memory_space<vmem>>, vector<8x8xf32>,
    %c48 = arith.constant 48 : index
    %c0_27 = arith.constant 0 : index
    %26 = vector.load %arg6[%c48, %c0_27] : memref<128x8xf32, #tpu.memory_space<vmem>>, vector<8x8xf32>
    %c56 = arith.constant 56 : index
    %c0_28 = arith.constant 0 : index
    %27 = vector.load %arg6[%c56, %c0_28] : memref<128x8xf32, #tpu.memory_space<vmem>>, vector<8x8xf32>
    %28 = arith.maximumf %26, %27 : vector<8x8xf32>
    %c24_29 = arith.constant 24 : index
    %c0_30 = arith.constant 0 : index
    %29 = vector.load %arg7[%c24_29, %c0_30] : memref<64x8xf32, #tpu.memory_space<vmem>>, vector<8x8xf32>
    tpu.vector_store %arg7[%c24_29, %c0_30], %28 {strides = array<i32>} : memref<64x8xf32, #tpu.memory_space<vmem>>, vector<8x8xf32>,
    %c64 = arith.constant 64 : index
    %c0_31 = arith.constant 0 : index
    %30 = vector.load %arg6[%c64, %c0_31] : memref<128x8xf32, #tpu.memory_space<vmem>>, vector<8x8xf32>
    %c72 = arith.constant 72 : index
    %c0_32 = arith.constant 0 : index
    %31 = vector.load %arg6[%c72, %c0_32] : memref<128x8xf32, #tpu.memory_space<vmem>>, vector<8x8xf32>
    %32 = arith.maximumf %30, %31 : vector<8x8xf32>
    %c32_33 = arith.constant 32 : index
    %c0_34 = arith.constant 0 : index
    %33 = vector.load %arg7[%c32_33, %c0_34] : memref<64x8xf32, #tpu.memory_space<vmem>>, vector<8x8xf32>
    tpu.vector_store %arg7[%c32_33, %c0_34], %32 {strides = array<i32>} : memref<64x8xf32, #tpu.memory_space<vmem>>, vector<8x8xf32>,
    %c80 = arith.constant 80 : index
    %c0_35 = arith.constant 0 : index
    %34 = vector.load %arg6[%c80, %c0_35] : memref<128x8xf32, #tpu.memory_space<vmem>>, vector<8x8xf32>
    %c88 = arith.constant 88 : index
    %c0_36 = arith.constant 0 : index
    %35 = vector.load %arg6[%c88, %c0_36] : memref<128x8xf32, #tpu.memory_space<vmem>>, vector<8x8xf32>
    %36 = arith.maximumf %34, %35 : vector<8x8xf32>
    %c40_37 = arith.constant 40 : index
    %c0_38 = arith.constant 0 : index
    %37 = vector.load %arg7[%c40_37, %c0_38] : memref<64x8xf32, #tpu.memory_space<vmem>>, vector<8x8xf32>
    tpu.vector_store %arg7[%c40_37, %c0_38], %36 {strides = array<i32>} : memref<64x8xf32, #tpu.memory_space<vmem>>, vector<8x8xf32>,
    %c96 = arith.constant 96 : index
    %c0_39 = arith.constant 0 : index
    %38 = vector.load %arg6[%c96, %c0_39] : memref<128x8xf32, #tpu.memory_space<vmem>>, vector<8x8xf32>
    %c104 = arith.constant 104 : index
    %c0_40 = arith.constant 0 : index
    %39 = vector.load %arg6[%c104, %c0_40] : memref<128x8xf32, #tpu.memory_space<vmem>>, vector<8x8xf32>
    %40 = arith.maximumf %38, %39 : vector<8x8xf32>
    %c48_41 = arith.constant 48 : index
    %c0_42 = arith.constant 0 : index
    %41 = vector.load %arg7[%c48_41, %c0_42] : memref<64x8xf32, #tpu.memory_space<vmem>>, vector<8x8xf32>
    tpu.vector_store %arg7[%c48_41, %c0_42], %40 {strides = array<i32>} : memref<64x8xf32, #tpu.memory_space<vmem>>, vector<8x8xf32>,
    %c112 = arith.constant 112 : index
    %c0_43 = arith.constant 0 : index
    %42 = vector.load %arg6[%c112, %c0_43] : memref<128x8xf32, #tpu.memory_space<vmem>>, vector<8x8xf32>
    %c120 = arith.constant 120 : index
    %c0_44 = arith.constant 0 : index
    %43 = vector.load %arg6[%c120, %c0_44] : memref<128x8xf32, #tpu.memory_space<vmem>>, vector<8x8xf32>
    %44 = arith.maximumf %42, %43 : vector<8x8xf32>
    %c56_45 = arith.constant 56 : index
    %c0_46 = arith.constant 0 : index
    %45 = vector.load %arg7[%c56_45, %c0_46] : memref<64x8xf32, #tpu.memory_space<vmem>>, vector<8x8xf32>
    tpu.vector_store %arg7[%c56_45, %c0_46], %44 {strides = array<i32>} : memref<64x8xf32, #tpu.memory_space<vmem>>, vector<8x8xf32>,
    %c0_47 = arith.constant 0 : index
    %c0_48 = arith.constant 0 : index
    %46 = vector.load %arg7[%c0_47, %c0_48] : memref<64x8xf32, #tpu.memory_space<vmem>>, vector<64x8xf32>
    %47 = arith.truncf %46 : vector<64x8xf32> to vector<64x8xbf16>
    %c0_49 = arith.constant 0 : index
    %c0_50 = arith.constant 0 : index
    %c0_51 = arith.constant 0 : index
    %48 = vector.load %arg4[%c0_49, %c0_50, %c0_51] : memref<1x64x8xbf16, #tpu.memory_space<vmem>>, vector<1x64x8xbf16>
    %49 = vector.shape_cast %48 : vector<1x64x8xbf16> to vector<64x8xbf16>
    %50 = vector.shape_cast %47 : vector<64x8xbf16> to vector<1x64x8xbf16>
    tpu.vector_store %arg4[%c0_49, %c0_50, %c0_51], %50 {strides = array<i32>} : memref<1x64x8xbf16, #tpu.memory_space<vmem>>, vector<1x64x8xbf16>,
    return
  }
  func.func @transform_0(%arg0: i32) -> (i32, i32, i32) {
    %c0_i32 = arith.constant 0 : i32
    %c0_i32_0 = arith.constant 0 : i32
    %c0_i32_1 = arith.constant 0 : i32
    return %arg0, %c0_i32, %c0_i32_0 : i32, i32, i32
  }
  func.func @transform_1(%arg0: i32) -> (i32, i32) {
    %c0_i32 = arith.constant 0 : i32
    %c0_i32_0 = arith.constant 0 : i32
    %c0_i32_1 = arith.constant 0 : i32
    return %c0_i32, %c0_i32_0 : i32, i32
  }
  func.func @transform_2(%arg0: i32) -> (i32, i32) {
    %c0_i32 = arith.constant 0 : i32
    %c0_i32_0 = arith.constant 0 : i32
    %c0_i32_1 = arith.constant 0 : i32
    return %c0_i32, %c0_i32_0 : i32, i32
  }
  func.func @transform_3(%arg0: i32) -> (i32, i32, i32) {
    %c0_i32 = arith.constant 0 : i32
    %c0_i32_0 = arith.constant 0 : i32
    %c0_i32_1 = arith.constant 0 : i32
    return %arg0, %c0_i32, %c0_i32_0 : i32, i32, i32
  }
}

module attributes {stable_mosaic.version = 11 : i64} {
  func.func @kernel(%arg0: i32, %arg1: memref<1x64x72xbf16, #tpu.memory_space<vmem>>, %arg2: memref<72x16xbf16, #tpu.memory_space<vmem>>, %arg3: memref<1x16xf32, #tpu.memory_space<vmem>>, %arg4: memref<16x2xbf16, #tpu.memory_space<vmem>>, %arg5: memref<1x2xf32, #tpu.memory_space<vmem>>, %arg6: memref<1x16x16xbf16, #tpu.memory_space<vmem>>, %arg7: memref<1x16x2xf32, #tpu.memory_space<vmem>>, %arg8: memref<64x16xf32, #tpu.memory_space<vmem>>, %arg9: memref<32x16xf32, #tpu.memory_space<vmem>>, %arg10: memref<16x16xf32, #tpu.memory_space<vmem>>) attributes {dimension_semantics = [#tpu.dimension_semantics<parallel>], iteration_bounds = array<i64: 2>, scalar_prefetch = 0 : i64, scratch_operands = 3 : i64, tpu.core_type = #tpu.core_type<tc>, window_params = [{transform_indices = @transform_0, window_bounds = array<i64: 1, 64, 72>}, {pipeline_mode = #tpu.pipeline_mode<synchronous>, transform_indices = @transform_1, window_bounds = array<i64: 72, 16>}, {pipeline_mode = #tpu.pipeline_mode<synchronous>, transform_indices = @transform_2, window_bounds = array<i64: 1, 16>}, {pipeline_mode = #tpu.pipeline_mode<synchronous>, transform_indices = @transform_3, window_bounds = array<i64: 16, 2>}, {pipeline_mode = #tpu.pipeline_mode<synchronous>, transform_indices = @transform_4, window_bounds = array<i64: 1, 2>}, {transform_indices = @transform_5, window_bounds = array<i64: 1, 16, 16>}, {transform_indices = @transform_6, window_bounds = array<i64: 1, 16, 2>}]} {
    %c0 = arith.constant 0 : index
    %c0_0 = arith.constant 0 : index
    %c0_1 = arith.constant 0 : index
    %0 = vector.load %arg1[%c0, %c0_0, %c0_1] : memref<1x64x72xbf16, #tpu.memory_space<vmem>>, vector<1x64x72xbf16>
    %1 = vector.shape_cast %0 : vector<1x64x72xbf16> to vector<64x72xbf16>
    %c0_2 = arith.constant 0 : index
    %c0_3 = arith.constant 0 : index
    %2 = vector.load %arg2[%c0_2, %c0_3] : memref<72x16xbf16, #tpu.memory_space<vmem>>, vector<72x16xbf16>
    %cst = arith.constant dense<0.000000e+00> : vector<64x16xf32>
    %3 = tpu.matmul %1, %2, %cst {dimension_numbers = #tpu.dot_dimension_numbers<[1], [0], [0], [1], [0, 0, 1, 1], [], []>} : vector<64x72xbf16>, vector<72x16xbf16>, vector<64x16xf32> -> vector<64x16xf32>
    %c0_4 = arith.constant 0 : index
    %c0_5 = arith.constant 0 : index
    %4 = vector.load %arg3[%c0_4, %c0_5] : memref<1x16xf32, #tpu.memory_space<vmem>>, vector<1x16xf32>
    %5 = vector.broadcast %4 : vector<1x16xf32> to vector<64x16xf32>
    %6 = arith.addf %3, %5 : vector<64x16xf32>
    %cst_6 = arith.constant 0.000000e+00 : f32
    %7 = vector.broadcast %cst_6 : f32 to vector<64x16xf32>
    %8 = arith.maximumf %6, %7 : vector<64x16xf32>
    %c0_7 = arith.constant 0 : index
    %c0_8 = arith.constant 0 : index
    %9 = vector.load %arg8[%c0_7, %c0_8] : memref<64x16xf32, #tpu.memory_space<vmem>>, vector<64x16xf32>
    tpu.vector_store %arg8[%c0_7, %c0_8], %8 {strides = array<i32>} : memref<64x16xf32, #tpu.memory_space<vmem>>, vector<64x16xf32>,
    %c0_9 = arith.constant 0 : index
    %c0_10 = arith.constant 0 : index
    %10 = tpu.strided_load %arg8[%c0_9, %c0_10] {strides = array<i32: 2, 1>} : memref<64x16xf32, #tpu.memory_space<vmem>>, vector<32x16xf32>
    %c1 = arith.constant 1 : index
    %c0_11 = arith.constant 0 : index
    %11 = tpu.strided_load %arg8[%c1, %c0_11] {strides = array<i32: 2, 1>} : memref<64x16xf32, #tpu.memory_space<vmem>>, vector<32x16xf32>
    %12 = arith.maximumf %10, %11 : vector<32x16xf32>
    %c0_12 = arith.constant 0 : index
    %c0_13 = arith.constant 0 : index
    %13 = vector.load %arg9[%c0_12, %c0_13] : memref<32x16xf32, #tpu.memory_space<vmem>>, vector<32x16xf32>
    tpu.vector_store %arg9[%c0_12, %c0_13], %12 {strides = array<i32>} : memref<32x16xf32, #tpu.memory_space<vmem>>, vector<32x16xf32>,
    %c0_14 = arith.constant 0 : index
    %c0_15 = arith.constant 0 : index
    %14 = vector.load %arg9[%c0_14, %c0_15] : memref<32x16xf32, #tpu.memory_space<vmem>>, vector<4x16xf32>
    %c4 = arith.constant 4 : index
    %c0_16 = arith.constant 0 : index
    %15 = vector.load %arg9[%c4, %c0_16] : memref<32x16xf32, #tpu.memory_space<vmem>>, vector<4x16xf32>
    %16 = arith.maximumf %14, %15 : vector<4x16xf32>
    %c0_17 = arith.constant 0 : index
    %c0_18 = arith.constant 0 : index
    %17 = vector.load %arg10[%c0_17, %c0_18] : memref<16x16xf32, #tpu.memory_space<vmem>>, vector<4x16xf32>
    tpu.vector_store %arg10[%c0_17, %c0_18], %16 {strides = array<i32>} : memref<16x16xf32, #tpu.memory_space<vmem>>, vector<4x16xf32>,
    %c8 = arith.constant 8 : index
    %c0_19 = arith.constant 0 : index
    %18 = vector.load %arg9[%c8, %c0_19] : memref<32x16xf32, #tpu.memory_space<vmem>>, vector<4x16xf32>
    %c12 = arith.constant 12 : index
    %c0_20 = arith.constant 0 : index
    %19 = vector.load %arg9[%c12, %c0_20] : memref<32x16xf32, #tpu.memory_space<vmem>>, vector<4x16xf32>
    %20 = arith.maximumf %18, %19 : vector<4x16xf32>
    %c4_21 = arith.constant 4 : index
    %c0_22 = arith.constant 0 : index
    %21 = vector.load %arg10[%c4_21, %c0_22] : memref<16x16xf32, #tpu.memory_space<vmem>>, vector<4x16xf32>
    tpu.vector_store %arg10[%c4_21, %c0_22], %20 {strides = array<i32>} : memref<16x16xf32, #tpu.memory_space<vmem>>, vector<4x16xf32>,
    %c16 = arith.constant 16 : index
    %c0_23 = arith.constant 0 : index
    %22 = vector.load %arg9[%c16, %c0_23] : memref<32x16xf32, #tpu.memory_space<vmem>>, vector<4x16xf32>
    %c20 = arith.constant 20 : index
    %c0_24 = arith.constant 0 : index
    %23 = vector.load %arg9[%c20, %c0_24] : memref<32x16xf32, #tpu.memory_space<vmem>>, vector<4x16xf32>
    %24 = arith.maximumf %22, %23 : vector<4x16xf32>
    %c8_25 = arith.constant 8 : index
    %c0_26 = arith.constant 0 : index
    %25 = vector.load %arg10[%c8_25, %c0_26] : memref<16x16xf32, #tpu.memory_space<vmem>>, vector<4x16xf32>
    tpu.vector_store %arg10[%c8_25, %c0_26], %24 {strides = array<i32>} : memref<16x16xf32, #tpu.memory_space<vmem>>, vector<4x16xf32>,
    %c24 = arith.constant 24 : index
    %c0_27 = arith.constant 0 : index
    %26 = vector.load %arg9[%c24, %c0_27] : memref<32x16xf32, #tpu.memory_space<vmem>>, vector<4x16xf32>
    %c28 = arith.constant 28 : index
    %c0_28 = arith.constant 0 : index
    %27 = vector.load %arg9[%c28, %c0_28] : memref<32x16xf32, #tpu.memory_space<vmem>>, vector<4x16xf32>
    %28 = arith.maximumf %26, %27 : vector<4x16xf32>
    %c12_29 = arith.constant 12 : index
    %c0_30 = arith.constant 0 : index
    %29 = vector.load %arg10[%c12_29, %c0_30] : memref<16x16xf32, #tpu.memory_space<vmem>>, vector<4x16xf32>
    tpu.vector_store %arg10[%c12_29, %c0_30], %28 {strides = array<i32>} : memref<16x16xf32, #tpu.memory_space<vmem>>, vector<4x16xf32>,
    %c0_31 = arith.constant 0 : index
    %c0_32 = arith.constant 0 : index
    %30 = vector.load %arg10[%c0_31, %c0_32] : memref<16x16xf32, #tpu.memory_space<vmem>>, vector<16x16xf32>
    %31 = arith.truncf %30 : vector<16x16xf32> to vector<16x16xbf16>
    %c0_33 = arith.constant 0 : index
    %c0_34 = arith.constant 0 : index
    %c0_35 = arith.constant 0 : index
    %32 = vector.load %arg6[%c0_33, %c0_34, %c0_35] : memref<1x16x16xbf16, #tpu.memory_space<vmem>>, vector<1x16x16xbf16>
    %33 = vector.shape_cast %32 : vector<1x16x16xbf16> to vector<16x16xbf16>
    %34 = vector.shape_cast %31 : vector<16x16xbf16> to vector<1x16x16xbf16>
    tpu.vector_store %arg6[%c0_33, %c0_34, %c0_35], %34 {strides = array<i32>} : memref<1x16x16xbf16, #tpu.memory_space<vmem>>, vector<1x16x16xbf16>,
    %c0_36 = arith.constant 0 : index
    %c0_37 = arith.constant 0 : index
    %35 = vector.load %arg10[%c0_36, %c0_37] : memref<16x16xf32, #tpu.memory_space<vmem>>, vector<16x16xf32>
    %36 = arith.truncf %35 : vector<16x16xf32> to vector<16x16xbf16>
    %c0_38 = arith.constant 0 : index
    %c0_39 = arith.constant 0 : index
    %37 = vector.load %arg4[%c0_38, %c0_39] : memref<16x2xbf16, #tpu.memory_space<vmem>>, vector<16x2xbf16>
    %cst_40 = arith.constant dense<0.000000e+00> : vector<16x2xf32>
    %38 = tpu.matmul %36, %37, %cst_40 {dimension_numbers = #tpu.dot_dimension_numbers<[1], [0], [0], [1], [0, 0, 1, 1], [], []>} : vector<16x16xbf16>, vector<16x2xbf16>, vector<16x2xf32> -> vector<16x2xf32>
    %c0_41 = arith.constant 0 : index
    %c0_42 = arith.constant 0 : index
    %39 = vector.load %arg5[%c0_41, %c0_42] : memref<1x2xf32, #tpu.memory_space<vmem>>, vector<1x2xf32>
    %40 = vector.broadcast %39 : vector<1x2xf32> to vector<16x2xf32>
    %41 = arith.addf %38, %40 : vector<16x2xf32>
    %c0_43 = arith.constant 0 : index
    %c0_44 = arith.constant 0 : index
    %c0_45 = arith.constant 0 : index
    %42 = vector.load %arg7[%c0_43, %c0_44, %c0_45] : memref<1x16x2xf32, #tpu.memory_space<vmem>>, vector<1x16x2xf32>
    %43 = vector.shape_cast %42 : vector<1x16x2xf32> to vector<16x2xf32>
    %44 = vector.shape_cast %41 : vector<16x2xf32> to vector<1x16x2xf32>
    tpu.vector_store %arg7[%c0_43, %c0_44, %c0_45], %44 {strides = array<i32>} : memref<1x16x2xf32, #tpu.memory_space<vmem>>, vector<1x16x2xf32>,
    return
  }
  func.func @transform_0(%arg0: i32) -> (i32, i32, i32) {
    %c0_i32 = arith.constant 0 : i32
    %c0_i32_0 = arith.constant 0 : i32
    %c0_i32_1 = arith.constant 0 : i32
    return %arg0, %c0_i32, %c0_i32_0 : i32, i32, i32
  }
  func.func @transform_1(%arg0: i32) -> (i32, i32) {
    %c0_i32 = arith.constant 0 : i32
    %c0_i32_0 = arith.constant 0 : i32
    %c0_i32_1 = arith.constant 0 : i32
    return %c0_i32, %c0_i32_0 : i32, i32
  }
  func.func @transform_2(%arg0: i32) -> (i32, i32) {
    %c0_i32 = arith.constant 0 : i32
    %c0_i32_0 = arith.constant 0 : i32
    %c0_i32_1 = arith.constant 0 : i32
    return %c0_i32, %c0_i32_0 : i32, i32
  }
  func.func @transform_3(%arg0: i32) -> (i32, i32) {
    %c0_i32 = arith.constant 0 : i32
    %c0_i32_0 = arith.constant 0 : i32
    %c0_i32_1 = arith.constant 0 : i32
    return %c0_i32, %c0_i32_0 : i32, i32
  }
  func.func @transform_4(%arg0: i32) -> (i32, i32) {
    %c0_i32 = arith.constant 0 : i32
    %c0_i32_0 = arith.constant 0 : i32
    %c0_i32_1 = arith.constant 0 : i32
    return %c0_i32, %c0_i32_0 : i32, i32
  }
  func.func @transform_5(%arg0: i32) -> (i32, i32, i32) {
    %c0_i32 = arith.constant 0 : i32
    %c0_i32_0 = arith.constant 0 : i32
    %c0_i32_1 = arith.constant 0 : i32
    return %arg0, %c0_i32, %c0_i32_0 : i32, i32, i32
  }
  func.func @transform_6(%arg0: i32) -> (i32, i32, i32) {
    %c0_i32 = arith.constant 0 : i32
    %c0_i32_0 = arith.constant 0 : i32
    %c0_i32_1 = arith.constant 0 : i32
    return %arg0, %c0_i32, %c0_i32_0 : i32, i32, i32
  }
}

module attributes {stable_mosaic.version = 11 : i64} {
  func.func @kernel(%arg0: i32, %arg1: memref<1x4x144xbf16, #tpu.memory_space<vmem>>, %arg2: memref<144x16xbf16, #tpu.memory_space<vmem>>, %arg3: memref<1x16xf32, #tpu.memory_space<vmem>>, %arg4: memref<1x1x16xbf16, #tpu.memory_space<vmem>>, %arg5: memref<4x16xf32, #tpu.memory_space<vmem>>, %arg6: memref<2x16xf32, #tpu.memory_space<vmem>>, %arg7: memref<1x16xf32, #tpu.memory_space<vmem>>) attributes {dimension_semantics = [#tpu.dimension_semantics<parallel>], iteration_bounds = array<i64: 2>, scalar_prefetch = 0 : i64, scratch_operands = 3 : i64, tpu.core_type = #tpu.core_type<tc>, window_params = [{transform_indices = @transform_0, window_bounds = array<i64: 1, 4, 144>}, {pipeline_mode = #tpu.pipeline_mode<synchronous>, transform_indices = @transform_1, window_bounds = array<i64: 144, 16>}, {pipeline_mode = #tpu.pipeline_mode<synchronous>, transform_indices = @transform_2, window_bounds = array<i64: 1, 16>}, {transform_indices = @transform_3, window_bounds = array<i64: 1, 1, 16>}]} {
    %c0 = arith.constant 0 : index
    %c0_0 = arith.constant 0 : index
    %c0_1 = arith.constant 0 : index
    %0 = vector.load %arg1[%c0, %c0_0, %c0_1] : memref<1x4x144xbf16, #tpu.memory_space<vmem>>, vector<1x4x144xbf16>
    %1 = vector.shape_cast %0 : vector<1x4x144xbf16> to vector<4x144xbf16>
    %c0_2 = arith.constant 0 : index
    %c0_3 = arith.constant 0 : index
    %2 = vector.load %arg2[%c0_2, %c0_3] : memref<144x16xbf16, #tpu.memory_space<vmem>>, vector<144x16xbf16>
    %cst = arith.constant dense<0.000000e+00> : vector<4x16xf32>
    %3 = tpu.matmul %1, %2, %cst {dimension_numbers = #tpu.dot_dimension_numbers<[1], [0], [0], [1], [0, 0, 1, 1], [], []>} : vector<4x144xbf16>, vector<144x16xbf16>, vector<4x16xf32> -> vector<4x16xf32>
    %c0_4 = arith.constant 0 : index
    %c0_5 = arith.constant 0 : index
    %4 = vector.load %arg3[%c0_4, %c0_5] : memref<1x16xf32, #tpu.memory_space<vmem>>, vector<1x16xf32>
    %5 = vector.broadcast %4 : vector<1x16xf32> to vector<4x16xf32>
    %6 = arith.addf %3, %5 : vector<4x16xf32>
    %cst_6 = arith.constant 0.000000e+00 : f32
    %7 = vector.broadcast %cst_6 : f32 to vector<4x16xf32>
    %8 = arith.maximumf %6, %7 : vector<4x16xf32>
    %c0_7 = arith.constant 0 : index
    %c0_8 = arith.constant 0 : index
    %9 = vector.load %arg5[%c0_7, %c0_8] : memref<4x16xf32, #tpu.memory_space<vmem>>, vector<4x16xf32>
    tpu.vector_store %arg5[%c0_7, %c0_8], %8 {strides = array<i32>} : memref<4x16xf32, #tpu.memory_space<vmem>>, vector<4x16xf32>,
    %c0_9 = arith.constant 0 : index
    %c0_10 = arith.constant 0 : index
    %10 = tpu.strided_load %arg5[%c0_9, %c0_10] {strides = array<i32: 2, 1>} : memref<4x16xf32, #tpu.memory_space<vmem>>, vector<2x16xf32>
    %c1 = arith.constant 1 : index
    %c0_11 = arith.constant 0 : index
    %11 = tpu.strided_load %arg5[%c1, %c0_11] {strides = array<i32: 2, 1>} : memref<4x16xf32, #tpu.memory_space<vmem>>, vector<2x16xf32>
    %12 = arith.maximumf %10, %11 : vector<2x16xf32>
    %c0_12 = arith.constant 0 : index
    %c0_13 = arith.constant 0 : index
    %13 = vector.load %arg6[%c0_12, %c0_13] : memref<2x16xf32, #tpu.memory_space<vmem>>, vector<2x16xf32>
    tpu.vector_store %arg6[%c0_12, %c0_13], %12 {strides = array<i32>} : memref<2x16xf32, #tpu.memory_space<vmem>>, vector<2x16xf32>,
    %c0_14 = arith.constant 0 : index
    %c0_15 = arith.constant 0 : index
    %14 = vector.load %arg6[%c0_14, %c0_15] : memref<2x16xf32, #tpu.memory_space<vmem>>, vector<1x16xf32>
    %c1_16 = arith.constant 1 : index
    %c0_17 = arith.constant 0 : index
    %15 = vector.load %arg6[%c1_16, %c0_17] : memref<2x16xf32, #tpu.memory_space<vmem>>, vector<1x16xf32>
    %16 = arith.maximumf %14, %15 : vector<1x16xf32>
    %c0_18 = arith.constant 0 : index
    %c0_19 = arith.constant 0 : index
    %17 = vector.load %arg7[%c0_18, %c0_19] : memref<1x16xf32, #tpu.memory_space<vmem>>, vector<1x16xf32>
    tpu.vector_store %arg7[%c0_18, %c0_19], %16 {strides = array<i32>} : memref<1x16xf32, #tpu.memory_space<vmem>>, vector<1x16xf32>,
    %c0_20 = arith.constant 0 : index
    %c0_21 = arith.constant 0 : index
    %18 = vector.load %arg7[%c0_20, %c0_21] : memref<1x16xf32, #tpu.memory_space<vmem>>, vector<1x16xf32>
    %19 = arith.truncf %18 : vector<1x16xf32> to vector<1x16xbf16>
    %c0_22 = arith.constant 0 : index
    %c0_23 = arith.constant 0 : index
    %c0_24 = arith.constant 0 : index
    %20 = vector.load %arg4[%c0_22, %c0_23, %c0_24] : memref<1x1x16xbf16, #tpu.memory_space<vmem>>, vector<1x1x16xbf16>
    %21 = vector.shape_cast %20 : vector<1x1x16xbf16> to vector<1x16xbf16>
    %22 = vector.shape_cast %19 : vector<1x16xbf16> to vector<1x1x16xbf16>
    tpu.vector_store %arg4[%c0_22, %c0_23, %c0_24], %22 {strides = array<i32>} : memref<1x1x16xbf16, #tpu.memory_space<vmem>>, vector<1x1x16xbf16>,
    return
  }
  func.func @transform_0(%arg0: i32) -> (i32, i32, i32) {
    %c0_i32 = arith.constant 0 : i32
    %c0_i32_0 = arith.constant 0 : i32
    %c0_i32_1 = arith.constant 0 : i32
    return %arg0, %c0_i32, %c0_i32_0 : i32, i32, i32
  }
  func.func @transform_1(%arg0: i32) -> (i32, i32) {
    %c0_i32 = arith.constant 0 : i32
    %c0_i32_0 = arith.constant 0 : i32
    %c0_i32_1 = arith.constant 0 : i32
    return %c0_i32, %c0_i32_0 : i32, i32
  }
  func.func @transform_2(%arg0: i32) -> (i32, i32) {
    %c0_i32 = arith.constant 0 : i32
    %c0_i32_0 = arith.constant 0 : i32
    %c0_i32_1 = arith.constant 0 : i32
    return %c0_i32, %c0_i32_0 : i32, i32
  }
  func.func @transform_3(%arg0: i32) -> (i32, i32, i32) {
    %c0_i32 = arith.constant 0 : i32
    %c0_i32_0 = arith.constant 0 : i32
    %c0_i32_1 = arith.constant 0 : i32
    return %arg0, %c0_i32, %c0_i32_0 : i32, i32, i32
  }
}

module attributes {stable_mosaic.version = 11 : i64} {
  func.func @kernel(%arg0: i32, %arg1: memref<1x16x144xbf16, #tpu.memory_space<vmem>>, %arg2: memref<144x16xbf16, #tpu.memory_space<vmem>>, %arg3: memref<1x16xf32, #tpu.memory_space<vmem>>, %arg4: memref<16x2xbf16, #tpu.memory_space<vmem>>, %arg5: memref<1x2xf32, #tpu.memory_space<vmem>>, %arg6: memref<1x4x16xbf16, #tpu.memory_space<vmem>>, %arg7: memref<1x4x2xf32, #tpu.memory_space<vmem>>, %arg8: memref<16x16xf32, #tpu.memory_space<vmem>>, %arg9: memref<8x16xf32, #tpu.memory_space<vmem>>, %arg10: memref<4x16xf32, #tpu.memory_space<vmem>>) attributes {dimension_semantics = [#tpu.dimension_semantics<parallel>], iteration_bounds = array<i64: 2>, scalar_prefetch = 0 : i64, scratch_operands = 3 : i64, tpu.core_type = #tpu.core_type<tc>, window_params = [{transform_indices = @transform_0, window_bounds = array<i64: 1, 16, 144>}, {pipeline_mode = #tpu.pipeline_mode<synchronous>, transform_indices = @transform_1, window_bounds = array<i64: 144, 16>}, {pipeline_mode = #tpu.pipeline_mode<synchronous>, transform_indices = @transform_2, window_bounds = array<i64: 1, 16>}, {pipeline_mode = #tpu.pipeline_mode<synchronous>, transform_indices = @transform_3, window_bounds = array<i64: 16, 2>}, {pipeline_mode = #tpu.pipeline_mode<synchronous>, transform_indices = @transform_4, window_bounds = array<i64: 1, 2>}, {transform_indices = @transform_5, window_bounds = array<i64: 1, 4, 16>}, {transform_indices = @transform_6, window_bounds = array<i64: 1, 4, 2>}]} {
    %c0 = arith.constant 0 : index
    %c0_0 = arith.constant 0 : index
    %c0_1 = arith.constant 0 : index
    %0 = vector.load %arg1[%c0, %c0_0, %c0_1] : memref<1x16x144xbf16, #tpu.memory_space<vmem>>, vector<1x16x144xbf16>
    %1 = vector.shape_cast %0 : vector<1x16x144xbf16> to vector<16x144xbf16>
    %c0_2 = arith.constant 0 : index
    %c0_3 = arith.constant 0 : index
    %2 = vector.load %arg2[%c0_2, %c0_3] : memref<144x16xbf16, #tpu.memory_space<vmem>>, vector<144x16xbf16>
    %cst = arith.constant dense<0.000000e+00> : vector<16x16xf32>
    %3 = tpu.matmul %1, %2, %cst {dimension_numbers = #tpu.dot_dimension_numbers<[1], [0], [0], [1], [0, 0, 1, 1], [], []>} : vector<16x144xbf16>, vector<144x16xbf16>, vector<16x16xf32> -> vector<16x16xf32>
    %c0_4 = arith.constant 0 : index
    %c0_5 = arith.constant 0 : index
    %4 = vector.load %arg3[%c0_4, %c0_5] : memref<1x16xf32, #tpu.memory_space<vmem>>, vector<1x16xf32>
    %5 = vector.broadcast %4 : vector<1x16xf32> to vector<16x16xf32>
    %6 = arith.addf %3, %5 : vector<16x16xf32>
    %cst_6 = arith.constant 0.000000e+00 : f32
    %7 = vector.broadcast %cst_6 : f32 to vector<16x16xf32>
    %8 = arith.maximumf %6, %7 : vector<16x16xf32>
    %c0_7 = arith.constant 0 : index
    %c0_8 = arith.constant 0 : index
    %9 = vector.load %arg8[%c0_7, %c0_8] : memref<16x16xf32, #tpu.memory_space<vmem>>, vector<16x16xf32>
    tpu.vector_store %arg8[%c0_7, %c0_8], %8 {strides = array<i32>} : memref<16x16xf32, #tpu.memory_space<vmem>>, vector<16x16xf32>,
    %c0_9 = arith.constant 0 : index
    %c0_10 = arith.constant 0 : index
    %10 = tpu.strided_load %arg8[%c0_9, %c0_10] {strides = array<i32: 2, 1>} : memref<16x16xf32, #tpu.memory_space<vmem>>, vector<8x16xf32>
    %c1 = arith.constant 1 : index
    %c0_11 = arith.constant 0 : index
    %11 = tpu.strided_load %arg8[%c1, %c0_11] {strides = array<i32: 2, 1>} : memref<16x16xf32, #tpu.memory_space<vmem>>, vector<8x16xf32>
    %12 = arith.maximumf %10, %11 : vector<8x16xf32>
    %c0_12 = arith.constant 0 : index
    %c0_13 = arith.constant 0 : index
    %13 = vector.load %arg9[%c0_12, %c0_13] : memref<8x16xf32, #tpu.memory_space<vmem>>, vector<8x16xf32>
    tpu.vector_store %arg9[%c0_12, %c0_13], %12 {strides = array<i32>} : memref<8x16xf32, #tpu.memory_space<vmem>>, vector<8x16xf32>,
    %c0_14 = arith.constant 0 : index
    %c0_15 = arith.constant 0 : index
    %14 = vector.load %arg9[%c0_14, %c0_15] : memref<8x16xf32, #tpu.memory_space<vmem>>, vector<2x16xf32>
    %c2 = arith.constant 2 : index
    %c0_16 = arith.constant 0 : index
    %15 = vector.load %arg9[%c2, %c0_16] : memref<8x16xf32, #tpu.memory_space<vmem>>, vector<2x16xf32>
    %16 = arith.maximumf %14, %15 : vector<2x16xf32>
    %c0_17 = arith.constant 0 : index
    %c0_18 = arith.constant 0 : index
    %17 = vector.load %arg10[%c0_17, %c0_18] : memref<4x16xf32, #tpu.memory_space<vmem>>, vector<2x16xf32>
    tpu.vector_store %arg10[%c0_17, %c0_18], %16 {strides = array<i32>} : memref<4x16xf32, #tpu.memory_space<vmem>>, vector<2x16xf32>,
    %c4 = arith.constant 4 : index
    %c0_19 = arith.constant 0 : index
    %18 = vector.load %arg9[%c4, %c0_19] : memref<8x16xf32, #tpu.memory_space<vmem>>, vector<2x16xf32>
    %c6 = arith.constant 6 : index
    %c0_20 = arith.constant 0 : index
    %19 = vector.load %arg9[%c6, %c0_20] : memref<8x16xf32, #tpu.memory_space<vmem>>, vector<2x16xf32>
    %20 = arith.maximumf %18, %19 : vector<2x16xf32>
    %c2_21 = arith.constant 2 : index
    %c0_22 = arith.constant 0 : index
    %21 = vector.load %arg10[%c2_21, %c0_22] : memref<4x16xf32, #tpu.memory_space<vmem>>, vector<2x16xf32>
    tpu.vector_store %arg10[%c2_21, %c0_22], %20 {strides = array<i32>} : memref<4x16xf32, #tpu.memory_space<vmem>>, vector<2x16xf32>,
    %c0_23 = arith.constant 0 : index
    %c0_24 = arith.constant 0 : index
    %22 = vector.load %arg10[%c0_23, %c0_24] : memref<4x16xf32, #tpu.memory_space<vmem>>, vector<4x16xf32>
    %23 = arith.truncf %22 : vector<4x16xf32> to vector<4x16xbf16>
    %c0_25 = arith.constant 0 : index
    %c0_26 = arith.constant 0 : index
    %c0_27 = arith.constant 0 : index
    %24 = vector.load %arg6[%c0_25, %c0_26, %c0_27] : memref<1x4x16xbf16, #tpu.memory_space<vmem>>, vector<1x4x16xbf16>
    %25 = vector.shape_cast %24 : vector<1x4x16xbf16> to vector<4x16xbf16>
    %26 = vector.shape_cast %23 : vector<4x16xbf16> to vector<1x4x16xbf16>
    tpu.vector_store %arg6[%c0_25, %c0_26, %c0_27], %26 {strides = array<i32>} : memref<1x4x16xbf16, #tpu.memory_space<vmem>>, vector<1x4x16xbf16>,
    %c0_28 = arith.constant 0 : index
    %c0_29 = arith.constant 0 : index
    %27 = vector.load %arg10[%c0_28, %c0_29] : memref<4x16xf32, #tpu.memory_space<vmem>>, vector<4x16xf32>
    %28 = arith.truncf %27 : vector<4x16xf32> to vector<4x16xbf16>
    %c0_30 = arith.constant 0 : index
    %c0_31 = arith.constant 0 : index
    %29 = vector.load %arg4[%c0_30, %c0_31] : memref<16x2xbf16, #tpu.memory_space<vmem>>, vector<16x2xbf16>
    %cst_32 = arith.constant dense<0.000000e+00> : vector<4x2xf32>
    %30 = tpu.matmul %28, %29, %cst_32 {dimension_numbers = #tpu.dot_dimension_numbers<[1], [0], [0], [1], [0, 0, 1, 1], [], []>} : vector<4x16xbf16>, vector<16x2xbf16>, vector<4x2xf32> -> vector<4x2xf32>
    %c0_33 = arith.constant 0 : index
    %c0_34 = arith.constant 0 : index
    %31 = vector.load %arg5[%c0_33, %c0_34] : memref<1x2xf32, #tpu.memory_space<vmem>>, vector<1x2xf32>
    %32 = vector.broadcast %31 : vector<1x2xf32> to vector<4x2xf32>
    %33 = arith.addf %30, %32 : vector<4x2xf32>
    %c0_35 = arith.constant 0 : index
    %c0_36 = arith.constant 0 : index
    %c0_37 = arith.constant 0 : index
    %34 = vector.load %arg7[%c0_35, %c0_36, %c0_37] : memref<1x4x2xf32, #tpu.memory_space<vmem>>, vector<1x4x2xf32>
    %35 = vector.shape_cast %34 : vector<1x4x2xf32> to vector<4x2xf32>
    %36 = vector.shape_cast %33 : vector<4x2xf32> to vector<1x4x2xf32>
    tpu.vector_store %arg7[%c0_35, %c0_36, %c0_37], %36 {strides = array<i32>} : memref<1x4x2xf32, #tpu.memory_space<vmem>>, vector<1x4x2xf32>,
    return
  }
  func.func @transform_0(%arg0: i32) -> (i32, i32, i32) {
    %c0_i32 = arith.constant 0 : i32
    %c0_i32_0 = arith.constant 0 : i32
    %c0_i32_1 = arith.constant 0 : i32
    return %arg0, %c0_i32, %c0_i32_0 : i32, i32, i32
  }
  func.func @transform_1(%arg0: i32) -> (i32, i32) {
    %c0_i32 = arith.constant 0 : i32
    %c0_i32_0 = arith.constant 0 : i32
    %c0_i32_1 = arith.constant 0 : i32
    return %c0_i32, %c0_i32_0 : i32, i32
  }
  func.func @transform_2(%arg0: i32) -> (i32, i32) {
    %c0_i32 = arith.constant 0 : i32
    %c0_i32_0 = arith.constant 0 : i32
    %c0_i32_1 = arith.constant 0 : i32
    return %c0_i32, %c0_i32_0 : i32, i32
  }
  func.func @transform_3(%arg0: i32) -> (i32, i32) {
    %c0_i32 = arith.constant 0 : i32
    %c0_i32_0 = arith.constant 0 : i32
    %c0_i32_1 = arith.constant 0 : i32
    return %c0_i32, %c0_i32_0 : i32, i32
  }
  func.func @transform_4(%arg0: i32) -> (i32, i32) {
    %c0_i32 = arith.constant 0 : i32
    %c0_i32_0 = arith.constant 0 : i32
    %c0_i32_1 = arith.constant 0 : i32
    return %c0_i32, %c0_i32_0 : i32, i32
  }
  func.func @transform_5(%arg0: i32) -> (i32, i32, i32) {
    %c0_i32 = arith.constant 0 : i32
    %c0_i32_0 = arith.constant 0 : i32
    %c0_i32_1 = arith.constant 0 : i32
    return %arg0, %c0_i32, %c0_i32_0 : i32, i32, i32
  }
  func.func @transform_6(%arg0: i32) -> (i32, i32, i32) {
    %c0_i32 = arith.constant 0 : i32
    %c0_i32_0 = arith.constant 0 : i32
    %c0_i32_1 = arith.constant 0 : i32
    return %arg0, %c0_i32, %c0_i32_0 : i32, i32, i32
  }
}

module attributes {stable_mosaic.version = 11 : i64} {
  func.func @_decoder_kernel(%arg0: i32, %arg1: memref<2x16xbf16, #tpu.memory_space<vmem>>, %arg2: memref<16x32xbf16, #tpu.memory_space<vmem>>, %arg3: memref<1x32xf32, #tpu.memory_space<vmem>>, %arg4: memref<32x32xbf16, #tpu.memory_space<vmem>>, %arg5: memref<1x32xf32, #tpu.memory_space<vmem>>, %arg6: memref<32x8xbf16, #tpu.memory_space<vmem>>, %arg7: memref<1x8xf32, #tpu.memory_space<vmem>>, %arg8: memref<2x8xf32, #tpu.memory_space<vmem>>, %arg9: memref<8x32xbf16, #tpu.memory_space<vmem>>, %arg10: memref<1x32xf32, #tpu.memory_space<vmem>>, %arg11: memref<2x32xf32, #tpu.memory_space<vmem>>, %arg12: memref<32x2048xbf16, #tpu.memory_space<vmem>>, %arg13: memref<1x2048xf32, #tpu.memory_space<vmem>>, %arg14: memref<2x2048xf32, #tpu.memory_space<vmem>>) attributes {dimension_semantics = [#tpu.dimension_semantics<arbitrary>], iteration_bounds = array<i64: 1>, scalar_prefetch = 0 : i64, scratch_operands = 0 : i64, tpu.core_type = #tpu.core_type<tc>, window_params = [{pipeline_mode = #tpu.pipeline_mode<synchronous>, transform_indices = @transform_0, window_bounds = array<i64: 2, 16>}, {pipeline_mode = #tpu.pipeline_mode<synchronous>, transform_indices = @transform_1, window_bounds = array<i64: 16, 32>}, {pipeline_mode = #tpu.pipeline_mode<synchronous>, transform_indices = @transform_2, window_bounds = array<i64: 1, 32>}, {pipeline_mode = #tpu.pipeline_mode<synchronous>, transform_indices = @transform_3, window_bounds = array<i64: 32, 32>}, {pipeline_mode = #tpu.pipeline_mode<synchronous>, transform_indices = @transform_4, window_bounds = array<i64: 1, 32>}, {pipeline_mode = #tpu.pipeline_mode<synchronous>, transform_indices = @transform_5, window_bounds = array<i64: 32, 8>}, {pipeline_mode = #tpu.pipeline_mode<synchronous>, transform_indices = @transform_6, window_bounds = array<i64: 1, 8>}, {pipeline_mode = #tpu.pipeline_mode<synchronous>, transform_indices = @transform_7, window_bounds = array<i64: 2, 8>}, {pipeline_mode = #tpu.pipeline_mode<synchronous>, transform_indices = @transform_8, window_bounds = array<i64: 8, 32>}, {pipeline_mode = #tpu.pipeline_mode<synchronous>, transform_indices = @transform_9, window_bounds = array<i64: 1, 32>}, {pipeline_mode = #tpu.pipeline_mode<synchronous>, transform_indices = @transform_10, window_bounds = array<i64: 2, 32>}, {pipeline_mode = #tpu.pipeline_mode<synchronous>, transform_indices = @transform_11, window_bounds = array<i64: 32, 2048>}, {pipeline_mode = #tpu.pipeline_mode<synchronous>, transform_indices = @transform_12, window_bounds = array<i64: 1, 2048>}, {pipeline_mode = #tpu.pipeline_mode<synchronous>, transform_indices = @transform_13, window_bounds = array<i64: 2, 2048>}]} {
    %c0 = arith.constant 0 : index
    %c0_0 = arith.constant 0 : index
    %0 = vector.load %arg1[%c0, %c0_0] : memref<2x16xbf16, #tpu.memory_space<vmem>>, vector<2x16xbf16>
    %c0_1 = arith.constant 0 : index
    %c0_2 = arith.constant 0 : index
    %1 = vector.load %arg2[%c0_1, %c0_2] : memref<16x32xbf16, #tpu.memory_space<vmem>>, vector<16x32xbf16>
    %cst = arith.constant dense<0.000000e+00> : vector<2x32xf32>
    %2 = tpu.matmul %0, %1, %cst {dimension_numbers = #tpu.dot_dimension_numbers<[1], [0], [0], [1], [0, 0, 1, 1], [], []>} : vector<2x16xbf16>, vector<16x32xbf16>, vector<2x32xf32> -> vector<2x32xf32>
    %c0_3 = arith.constant 0 : index
    %c0_4 = arith.constant 0 : index
    %3 = vector.load %arg3[%c0_3, %c0_4] : memref<1x32xf32, #tpu.memory_space<vmem>>, vector<1x32xf32>
    %4 = vector.broadcast %3 : vector<1x32xf32> to vector<2x32xf32>
    %5 = arith.addf %2, %4 : vector<2x32xf32>
    %cst_5 = arith.constant 0.000000e+00 : f32
    %6 = vector.broadcast %cst_5 : f32 to vector<2x32xf32>
    %7 = arith.maximumf %5, %6 : vector<2x32xf32>
    %8 = arith.truncf %7 : vector<2x32xf32> to vector<2x32xbf16>
    %c0_6 = arith.constant 0 : index
    %c0_7 = arith.constant 0 : index
    %9 = vector.load %arg4[%c0_6, %c0_7] : memref<32x32xbf16, #tpu.memory_space<vmem>>, vector<32x32xbf16>
    %cst_8 = arith.constant dense<0.000000e+00> : vector<2x32xf32>
    %10 = tpu.matmul %8, %9, %cst_8 {dimension_numbers = #tpu.dot_dimension_numbers<[1], [0], [0], [1], [0, 0, 1, 1], [], []>} : vector<2x32xbf16>, vector<32x32xbf16>, vector<2x32xf32> -> vector<2x32xf32>
    %c0_9 = arith.constant 0 : index
    %c0_10 = arith.constant 0 : index
    %11 = vector.load %arg5[%c0_9, %c0_10] : memref<1x32xf32, #tpu.memory_space<vmem>>, vector<1x32xf32>
    %12 = vector.broadcast %11 : vector<1x32xf32> to vector<2x32xf32>
    %13 = arith.addf %10, %12 : vector<2x32xf32>
    %cst_11 = arith.constant 0.000000e+00 : f32
    %14 = vector.broadcast %cst_11 : f32 to vector<2x32xf32>
    %15 = arith.maximumf %13, %14 : vector<2x32xf32>
    %16 = arith.truncf %15 : vector<2x32xf32> to vector<2x32xbf16>
    %c0_12 = arith.constant 0 : index
    %c0_13 = arith.constant 0 : index
    %17 = vector.load %arg6[%c0_12, %c0_13] : memref<32x8xbf16, #tpu.memory_space<vmem>>, vector<32x8xbf16>
    %cst_14 = arith.constant dense<0.000000e+00> : vector<2x8xf32>
    %18 = tpu.matmul %16, %17, %cst_14 {dimension_numbers = #tpu.dot_dimension_numbers<[1], [0], [0], [1], [0, 0, 1, 1], [], []>} : vector<2x32xbf16>, vector<32x8xbf16>, vector<2x8xf32> -> vector<2x8xf32>
    %c0_15 = arith.constant 0 : index
    %c0_16 = arith.constant 0 : index
    %19 = vector.load %arg7[%c0_15, %c0_16] : memref<1x8xf32, #tpu.memory_space<vmem>>, vector<1x8xf32>
    %20 = vector.broadcast %19 : vector<1x8xf32> to vector<2x8xf32>
    %21 = arith.addf %18, %20 : vector<2x8xf32>
    %c0_17 = arith.constant 0 : index
    %c0_18 = arith.constant 0 : index
    %22 = vector.load %arg8[%c0_17, %c0_18] : memref<2x8xf32, #tpu.memory_space<vmem>>, vector<2x8xf32>
    %23 = arith.addf %21, %22 : vector<2x8xf32>
    %24 = arith.truncf %23 : vector<2x8xf32> to vector<2x8xbf16>
    %c0_19 = arith.constant 0 : index
    %c0_20 = arith.constant 0 : index
    %25 = vector.load %arg9[%c0_19, %c0_20] : memref<8x32xbf16, #tpu.memory_space<vmem>>, vector<8x32xbf16>
    %cst_21 = arith.constant dense<0.000000e+00> : vector<2x32xf32>
    %26 = tpu.matmul %24, %25, %cst_21 {dimension_numbers = #tpu.dot_dimension_numbers<[1], [0], [0], [1], [0, 0, 1, 1], [], []>} : vector<2x8xbf16>, vector<8x32xbf16>, vector<2x32xf32> -> vector<2x32xf32>
    %c0_22 = arith.constant 0 : index
    %c0_23 = arith.constant 0 : index
    %27 = vector.load %arg10[%c0_22, %c0_23] : memref<1x32xf32, #tpu.memory_space<vmem>>, vector<1x32xf32>
    %28 = vector.broadcast %27 : vector<1x32xf32> to vector<2x32xf32>
    %29 = arith.addf %26, %28 : vector<2x32xf32>
    %c0_24 = arith.constant 0 : index
    %c0_25 = arith.constant 0 : index
    %30 = vector.load %arg11[%c0_24, %c0_25] : memref<2x32xf32, #tpu.memory_space<vmem>>, vector<2x32xf32>
    %31 = arith.addf %29, %30 : vector<2x32xf32>
    %32 = arith.truncf %31 : vector<2x32xf32> to vector<2x32xbf16>
    %c0_26 = arith.constant 0 : index
    %c0_27 = arith.constant 0 : index
    %33 = vector.load %arg12[%c0_26, %c0_27] : memref<32x2048xbf16, #tpu.memory_space<vmem>>, vector<32x2048xbf16>
    %cst_28 = arith.constant dense<0.000000e+00> : vector<2x2048xf32>
    %34 = tpu.matmul %32, %33, %cst_28 {dimension_numbers = #tpu.dot_dimension_numbers<[1], [0], [0], [1], [0, 0, 1, 1], [], []>} : vector<2x32xbf16>, vector<32x2048xbf16>, vector<2x2048xf32> -> vector<2x2048xf32>
    %c0_29 = arith.constant 0 : index
    %c0_30 = arith.constant 0 : index
    %35 = vector.load %arg13[%c0_29, %c0_30] : memref<1x2048xf32, #tpu.memory_space<vmem>>, vector<1x2048xf32>
    %36 = vector.broadcast %35 : vector<1x2048xf32> to vector<2x2048xf32>
    %37 = arith.addf %34, %36 : vector<2x2048xf32>
    %c0_31 = arith.constant 0 : index
    %c0_32 = arith.constant 0 : index
    %38 = vector.load %arg14[%c0_31, %c0_32] : memref<2x2048xf32, #tpu.memory_space<vmem>>, vector<2x2048xf32>
    tpu.vector_store %arg14[%c0_31, %c0_32], %37 {strides = array<i32>} : memref<2x2048xf32, #tpu.memory_space<vmem>>, vector<2x2048xf32>,
    return
  }
  func.func @transform_0(%arg0: i32) -> (i32, i32) {
    %c0_i32 = arith.constant 0 : i32
    %c0_i32_0 = arith.constant 0 : i32
    %c0_i32_1 = arith.constant 0 : i32
    return %c0_i32, %c0_i32_0 : i32, i32
  }
  func.func @transform_1(%arg0: i32) -> (i32, i32) {
    %c0_i32 = arith.constant 0 : i32
    %c0_i32_0 = arith.constant 0 : i32
    %c0_i32_1 = arith.constant 0 : i32
    return %c0_i32, %c0_i32_0 : i32, i32
  }
  func.func @transform_2(%arg0: i32) -> (i32, i32) {
    %c0_i32 = arith.constant 0 : i32
    %c0_i32_0 = arith.constant 0 : i32
    %c0_i32_1 = arith.constant 0 : i32
    return %c0_i32, %c0_i32_0 : i32, i32
  }
  func.func @transform_3(%arg0: i32) -> (i32, i32) {
    %c0_i32 = arith.constant 0 : i32
    %c0_i32_0 = arith.constant 0 : i32
    %c0_i32_1 = arith.constant 0 : i32
    return %c0_i32, %c0_i32_0 : i32, i32
  }
  func.func @transform_4(%arg0: i32) -> (i32, i32) {
    %c0_i32 = arith.constant 0 : i32
    %c0_i32_0 = arith.constant 0 : i32
    %c0_i32_1 = arith.constant 0 : i32
    return %c0_i32, %c0_i32_0 : i32, i32
  }
  func.func @transform_5(%arg0: i32) -> (i32, i32) {
    %c0_i32 = arith.constant 0 : i32
    %c0_i32_0 = arith.constant 0 : i32
    %c0_i32_1 = arith.constant 0 : i32
    return %c0_i32, %c0_i32_0 : i32, i32
  }
  func.func @transform_6(%arg0: i32) -> (i32, i32) {
    %c0_i32 = arith.constant 0 : i32
    %c0_i32_0 = arith.constant 0 : i32
    %c0_i32_1 = arith.constant 0 : i32
    return %c0_i32, %c0_i32_0 : i32, i32
  }
  func.func @transform_7(%arg0: i32) -> (i32, i32) {
    %c0_i32 = arith.constant 0 : i32
    %c0_i32_0 = arith.constant 0 : i32
    %c0_i32_1 = arith.constant 0 : i32
    return %c0_i32, %c0_i32_0 : i32, i32
  }
  func.func @transform_8(%arg0: i32) -> (i32, i32) {
    %c0_i32 = arith.constant 0 : i32
    %c0_i32_0 = arith.constant 0 : i32
    %c0_i32_1 = arith.constant 0 : i32
    return %c0_i32, %c0_i32_0 : i32, i32
  }
  func.func @transform_9(%arg0: i32) -> (i32, i32) {
    %c0_i32 = arith.constant 0 : i32
    %c0_i32_0 = arith.constant 0 : i32
    %c0_i32_1 = arith.constant 0 : i32
    return %c0_i32, %c0_i32_0 : i32, i32
  }
  func.func @transform_10(%arg0: i32) -> (i32, i32) {
    %c0_i32 = arith.constant 0 : i32
    %c0_i32_0 = arith.constant 0 : i32
    %c0_i32_1 = arith.constant 0 : i32
    return %c0_i32, %c0_i32_0 : i32, i32
  }
  func.func @transform_11(%arg0: i32) -> (i32, i32) {
    %c0_i32 = arith.constant 0 : i32
    %c0_i32_0 = arith.constant 0 : i32
    %c0_i32_1 = arith.constant 0 : i32
    return %c0_i32, %c0_i32_0 : i32, i32
  }
  func.func @transform_12(%arg0: i32) -> (i32, i32) {
    %c0_i32 = arith.constant 0 : i32
    %c0_i32_0 = arith.constant 0 : i32
    %c0_i32_1 = arith.constant 0 : i32
    return %c0_i32, %c0_i32_0 : i32, i32
  }
  func.func @transform_13(%arg0: i32) -> (i32, i32) {
    %c0_i32 = arith.constant 0 : i32
    %c0_i32_0 = arith.constant 0 : i32
    %c0_i32_1 = arith.constant 0 : i32
    return %c0_i32, %c0_i32_0 : i32, i32
  }
}

</mosaic_0001>

<bundles_post_ra>
// kernel: fcn8_gb_forward.7
= control target key start
LH: loop header
LB: loop body
LE: loop exit
PB: predicated region body
PF: predicated region fallthrough
CT: control target
= control target key end

     0   :  { %s1036_s12 = smov 0   ;;  %s1217_s0 = inlined_call_operand.vmem [shape: bf16[2,256,72], index: 0, kind: input, shape index: {}]   ;;  %s1218_s1 = inlined_call_operand.vmem [shape: bf16[72,8], index: 1, kind: input, shape index: {}]   ;;  %s1219_s2 = inlined_call_operand.vmem [shape: f32[1,8], index: 2, kind: input, shape index: {}]   ;;  %s1220_s3 = inlined_call_operand.vmem [shape: bf16[2,64,8], index: 3, kind: output, shape index: {}]  }
   0x1 LB: > { %s837_s13 = sadd.s32 4294967295, %s1014_s12   ;;  %p841_p0 = scmp.ge.s32.totalorder %s1014_s12, 1  ;;  %s1014_s12 = sphi %s1036_s12, %s13_s12  }
   0x2   : > { %p137_p1 = scmp.lt.s32.totalorder %s1014_s12, 3 }
   0x4   : > { %p138_p2 = pnand %p841_p0, %p137_p1 }
   0x5   : > { %v987_v0 = vld [vmem:[%s1218_s1] sm:$0xff] (!%p138_p2)   ;;  %v988_v1 = vld [vmem:[%s1218_s1 + $0x8] sm:$0xff] (!%p138_p2)   ;;  %p161_p3 = scmp.lt.s32.totalorder (!%p138_p2), %s837_s13, 1  ;;  %v989_v2 = vld [vmem:[%s1218_s1 + $0x10] sm:$0xff] (!%p138_p2)   ;;  %vm327_vm0 = vcmask (!%p138_p2), 588800   ;;  %vm376_vm1 = vcmask (!%p138_p2), 1043456  }
   0x6   : > { %141 = sbr.rel (%p138_p2) target bundleno = 304 (0x130), region = 32  ;;  %925 = vmatprep.subr.bf16.mxu0 (!%p138_p2), %v987_v0  ;;  %967 = vmatprep.subr.bf16.mxu1 (!%p138_p2), %v987_v0  ;;  %v990_v3 = vld [vmem:[%s1218_s1 + $0x18] sm:$0xff] (!%p138_p2)   ;;  %v991_v6 = vld [vmem:[%s1218_s1 + $0x20] ss:$0 sps:$4 sm:$0xff] (!%p138_p2)   ;;  %vm573_vm2 = vcmask (!%p138_p2), 64512   ;;  %vm773_vm3 = vcmask (!%p138_p2), 60416  }
   0x7   : > { %926 = vmatpush3.bf16.msra.mxu0 (!%p138_p2), %v987_v0  ;;  %972 = vmatpush3.bf16.msra.mxu1 (!%p138_p2), %v987_v0  ;;  %v378_v7 = vsel (!%p138_p2), %vm376_vm1, %v991_v6, 0  ;;  %v1102_v22 = vld [vmem:[%s1219_s2] ss:$0 sm:$0xff] (!%p138_p2) }
   0x8   : > { %927 = vmatprep.subr.bf16.mxu0 (!%p138_p2), %v988_v1  ;;  %968 = vmatprep.subr.bf16.mxu1 (!%p138_p2), %v988_v1 }
   0xb   : > { %928 = vmatpush3.bf16.msra.mxu0 (!%p138_p2), %v988_v1  ;;  %973 = vmatpush3.bf16.msra.mxu1 (!%p138_p2), %v988_v1 }
   0xc   : > { %929 = vmatprep.subr.bf16.mxu0 (!%p138_p2), %v989_v2  ;;  %969 = vmatprep.subr.bf16.mxu1 (!%p138_p2), %v989_v2 }
   0xd   : > { %s1222_s13 = smov (!%p161_p3, %s837_s13), 1 }
   0xe   : > { %s894_s20 = sshll.u32 %s1222_s13, 7  ;;  %s895_s30 = sshll.u32 %s1222_s13, 5 }
   0xf   : > { %s1062_s25 = scalar_lea.vmem %s1217_s0, %s894_s20  ;;  %930 = vmatpush3.bf16.msra.mxu0 %v989_v2  ;;  %974 = vmatpush3.bf16.msra.mxu1 %v989_v2  ;;  %s1182_s6 = scalar_lea.vmem %s1220_s3, %s895_s30 }
  0x10   : > { %v992_v4 = vld [vmem:[%s1062_s25] sm:$0xff]   ;;  %931 = vmatprep.subr.bf16.mxu0 %v990_v3  ;;  %970 = vmatprep.subr.bf16.mxu1 %v990_v3  ;;  %v994_v8 = vld [vmem:[%s1062_s25 + $0x8] sm:$0xff]   ;;  %v996_v10 = vld [vmem:[%s1062_s25 + $0x10] sm:$0xff]  }
  0x11   : > { %v993_v5 = vld [vmem:[%s1062_s25 + $0x40] sm:$0xff]   ;;  %935 = vmatprep.mubr.msk.bf16.mxu0 %vm327_vm0, %v992_v4  ;;  %v995_v9 = vld [vmem:[%s1062_s25 + $0x48] sm:$0xff]   ;;  %v997_v11 = vld [vmem:[%s1062_s25 + $0x50] sm:$0xff]  }
  0x12   : > { %951 = vmatprep.mubr.msk.bf16.mxu1 %vm327_vm0, %v993_v5  ;;  %v998_v12 = vld [vmem:[%s1062_s25 + $0x18] sm:$0xff]   ;;  %v1000_v14 = vld [vmem:[%s1062_s25 + $0x20] sm:$0xff]   ;;  %v1002_v16 = vld [vmem:[%s1062_s25 + $0x28] sm:$0xff]  }
  0x13   : > { %932 = vmatpush3.bf16.msra.mxu0 %v990_v3  ;;  %975 = vmatpush3.bf16.msra.mxu1 %v990_v3  ;;  %v999_v13 = vld [vmem:[%s1062_s25 + $0x58] sm:$0xff]   ;;  %v1001_v15 = vld [vmem:[%s1062_s25 + $0x60] sm:$0xff]   ;;  %v1003_v17 = vld [vmem:[%s1062_s25 + $0x68] sm:$0xff]  }
  0x14   : > { %977 = vmatprep.subr.msk.bf16.mxu0 %vm376_vm1, %v991_v6  ;;  %978 = vmatprep.subr.msk.bf16.mxu1 %vm376_vm1, %v991_v6  ;;  %v1004_v18 = vld [vmem:[%s1062_s25 + $0x30] sm:$0xff]   ;;  %v1006_v20 = vld [vmem:[%s1062_s25 + $0x38] sm:$0xff]  }
  0x15   : > { %v1005_v19 = vld [vmem:[%s1062_s25 + $0x70] sm:$0xff]   ;;  %v1007_v21 = vld [vmem:[%s1062_s25 + $0x78] sm:$0xff]  }
  0x17   : > { %934 = vmatpush3.bf16.msra.mxu0 %v378_v7  ;;  %976 = vmatpush3.bf16.msra.mxu1 %v378_v7 }
  0x1a   : > { %936 = vmatmul.mubr.msk.bf16.vlgmr.msra.gmra.mrb[0].mxu0 %vm327_vm0, %v994_v8  ;;  %952 = vmatmul.mubr.msk.bf16.vlgmr.msra.gmra.mrb[0].mxu1 %vm327_vm0, %v995_v9 }
  0x1b   : > { %939 = vmatprep.mubr.msk.bf16.mxu0 %vm327_vm0, %v996_v10  ;;  %955 = vmatprep.mubr.msk.bf16.mxu1 %vm327_vm0, %v997_v11 }
  0x22   : > { %940 = vmatmul.mubr.msk.bf16.gmra.mrb[4].mxu0 %vm327_vm0, %v998_v12  ;;  %956 = vmatmul.mubr.msk.bf16.gmra.mrb[4].mxu1 %vm327_vm0, %v999_v13 }
  0x23   : > { %943 = vmatprep.mubr.msk.bf16.mxu0 %vm327_vm0, %v1000_v14  ;;  %959 = vmatprep.mubr.msk.bf16.mxu1 %vm327_vm0, %v1001_v15 }
  0x2a   : > { %944 = vmatmul.mubr.msk.bf16.gmra.mrb[8].mxu0 %vm327_vm0, %v1002_v16  ;;  %960 = vmatmul.mubr.msk.bf16.gmra.mrb[8].mxu1 %vm327_vm0, %v1003_v17 }
  0x2b   : > { %947 = vmatprep.mubr.msk.bf16.mxu0 %vm327_vm0, %v1004_v18  ;;  %963 = vmatprep.mubr.msk.bf16.mxu1 %vm327_vm0, %v1005_v19 }
  0x32   : > { %948 = vmatmul.mubr.msk.bf16.gmra.mrb[12].mxu0 %vm327_vm0, %v1006_v20  ;;  %964 = vmatmul.mubr.msk.bf16.gmra.mrb[12].mxu1 %vm327_vm0, %v1007_v21 }
  0xed   : > { %v937_v23 = vpop.f32.mrb[0].mxu0  ;;  %v953_v24 = vpop.f32.mrb[0].mxu1 }
  0xee   : > { %v423_v25 = vadd.f32 %v937_v23, %v1102_v22  ;;  %v487_v26 = vadd.f32 %v953_v24, %v1102_v22  ;;  %v414_v27 = vpop.f32.mrb[1].mxu0  ;;  %v478_v28 = vpop.f32.mrb[1].mxu1 }
  0xef   : > { %v415_v29 = vadd.f32 %v1102_v22, %v414_v27  ;;  %v479_v30 = vadd.f32 %v1102_v22, %v478_v28  ;;  %v938_v31 = vpop.f32.mrb[2].mxu0  ;;  %v954_v32 = vpop.f32.mrb[2].mxu1 }
  0xf0   : > { %v543_v33 = vmax.f32 %v423_v25, 0.0  ;;  %v559_v34 = vmax.f32 %v487_v26, 0.0  ;;  %v426_v35 = vadd.f32 %v938_v31, %v1102_v22  ;;  %v490_v36 = vadd.f32 %v954_v32, %v1102_v22  ;;  %v417_v37 = vpop.f32.mrb[3].mxu0  ;;  %v481_v38 = vpop.f32.mrb[3].mxu1 }
  0xf1   : > { %v541_v39 = vmax.f32 %v415_v29, 0.0  ;;  %v557_v40 = vmax.f32 %v479_v30, 0.0  ;;  %v418_v41 = vadd.f32 %v1102_v22, %v417_v37  ;;  %v482_v42 = vadd.f32 %v1102_v22, %v481_v38 }
  0xf2   : > { %576 = vst.msk [vmem:[#allocation2 + $0x10] sm:$0xff] %vm573_vm2, %v543_v33  ;;  %592 = vst.msk [vmem:[#allocation2 + $0x90] sm:$0xff] %vm573_vm2, %v559_v34  ;;  %v544_v43 = vmax.f32 %v426_v35, 0.0  ;;  %v560_v44 = vmax.f32 %v490_v36, 0.0 }
  0xf3   : > { %574 = vst.msk [vmem:[#allocation2] sm:$0xff] %vm573_vm2, %v541_v39  ;;  %590 = vst.msk [vmem:[#allocation2 + $0x80] sm:$0xff] %vm573_vm2, %v557_v40  ;;  %v542_v45 = vmax.f32 %v418_v41, 0.0  ;;  %v558_v46 = vmax.f32 %v482_v42, 0.0 }
  0xf4   : > { %577 = vst.msk [vmem:[#allocation2 + $0x18] sm:$0xff] %vm573_vm2, %v544_v43  ;;  %593 = vst.msk [vmem:[#allocation2 + $0x98] sm:$0xff] %vm573_vm2, %v560_v44 }
  0xf5   : > { %575 = vst.msk [vmem:[#allocation2 + $0x8] sm:$0xff] %vm573_vm2, %v542_v45  ;;  %591 = vst.msk [vmem:[#allocation2 + $0x88] sm:$0xff] %vm573_vm2, %v558_v46  ;;  %v941_v47 = vpop.f32.mrb[4].mxu0  ;;  %v957_v48 = vpop.f32.mrb[4].mxu1 }
  0xf6   : > { %v439_v49 = vadd.f32 %v941_v47, %v1102_v22  ;;  %v503_v50 = vadd.f32 %v957_v48, %v1102_v22  ;;  %v430_v51 = vpop.f32.mrb[5].mxu0  ;;  %v494_v52 = vpop.f32.mrb[5].mxu1 }
  0xf7   : > { %v431_v53 = vadd.f32 %v1102_v22, %v430_v51  ;;  %v495_v54 = vadd.f32 %v1102_v22, %v494_v52  ;;  %v942_v55 = vpop.f32.mrb[6].mxu0  ;;  %v958_v56 = vpop.f32.mrb[6].mxu1 }
  0xf8   : > { %v547_v57 = vmax.f32 %v439_v49, 0.0  ;;  %v563_v58 = vmax.f32 %v503_v50, 0.0  ;;  %v442_v59 = vadd.f32 %v942_v55, %v1102_v22  ;;  %v506_v60 = vadd.f32 %v958_v56, %v1102_v22  ;;  %v433_v61 = vpop.f32.mrb[7].mxu0  ;;  %v497_v62 = vpop.f32.mrb[7].mxu1 }
  0xf9   : > { %v545_v63 = vmax.f32 %v431_v53, 0.0  ;;  %v561_v0 = vmax.f32 %v495_v54, 0.0  ;;  %v434_v1 = vadd.f32 %v1102_v22, %v433_v61  ;;  %v498_v2 = vadd.f32 %v1102_v22, %v497_v62 }
  0xfa   : > { %580 = vst.msk [vmem:[#allocation2 + $0x30] sm:$0xff] %vm573_vm2, %v547_v57  ;;  %596 = vst.msk [vmem:[#allocation2 + $0xb0] sm:$0xff] %vm573_vm2, %v563_v58  ;;  %v548_v3 = vmax.f32 %v442_v59, 0.0  ;;  %v564_v4 = vmax.f32 %v506_v60, 0.0 }
  0xfb   : > { %v608_v5 = vld [vmem:[#allocation2 + $0x10] ss:$2 sm:$0xff]  ;;  %v640_v6 = vld [vmem:[#allocation2 + $0x11] ss:$2 sm:$0xff]  ;;  %578 = vst.msk [vmem:[#allocation2 + $0x20] sm:$0xff] %vm573_vm2, %v545_v63  ;;  %594 = vst.msk [vmem:[#allocation2 + $0xa0] sm:$0xff] %vm573_vm2, %v561_v0 }
  0xfc   : > { %v624_v7 = vld [vmem:[#allocation2 + $0x90] ss:$2 sm:$0xff]  ;;  %v670_v8 = vmax.f32 %v608_v5, %v640_v6  ;;  %v656_v9 = vld [vmem:[#allocation2 + $0x91] ss:$2 sm:$0xff]  ;;  %v606_v10 = vld [vmem:[#allocation2] ss:$2 sm:$0xff] }
  0xfd   : > { %v638_v11 = vld [vmem:[#allocation2 + $0x1] ss:$2 sm:$0xff]  ;;  %581 = vst.msk [vmem:[#allocation2 + $0x38] sm:$0xff] %vm573_vm2, %v548_v3  ;;  %597 = vst.msk [vmem:[#allocation2 + $0xb8] sm:$0xff] %vm573_vm2, %v564_v4  ;;  %v678_v12 = vmax.f32 %v624_v7, %v656_v9  ;;  %v622_v14 = vld [vmem:[#allocation2 + $0x80] ss:$2 sm:$0xff] }
  0xfe   : > { %v669_v13 = vmax.f32 %v606_v10, %v638_v11  ;;  %v654_v15 = vld [vmem:[#allocation2 + $0x81] ss:$2 sm:$0xff]  ;;  %v546_v16 = vmax.f32 %v434_v1, 0.0  ;;  %v562_v17 = vmax.f32 %v498_v2, 0.0  ;;  %686 = vst.msk [vmem:[#allocation3 + $0x8] sm:$0xff] %vm573_vm2, %v670_v8  ;;  %v945_v19 = vpop.f32.mrb[8].mxu0 }
  0xff   : > { %v677_v18 = vmax.f32 %v622_v14, %v654_v15  ;;  %v961_v20 = vpop.f32.mrb[8].mxu1  ;;  %694 = vst.msk [vmem:[#allocation3 + $0x48] sm:$0xff] %vm573_vm2, %v678_v12  ;;  %v455_v21 = vadd.f32 %v945_v19, %v1102_v22  ;;  %v446_v24 = vpop.f32.mrb[9].mxu0 }
 0x100   : > { %685 = vst.msk [vmem:[#allocation3] sm:$0xff] %vm573_vm2, %v669_v13  ;;  %579 = vst.msk [vmem:[#allocation2 + $0x28] sm:$0xff] %vm573_vm2, %v546_v16  ;;  %v519_v23 = vadd.f32 %v961_v20, %v1102_v22  ;;  %v510_v25 = vpop.f32.mrb[9].mxu1  ;;  %v447_v26 = vadd.f32 %v1102_v22, %v446_v24  ;;  %v946_v28 = vpop.f32.mrb[10].mxu0 }
 0x101   : > { %595 = vst.msk [vmem:[#allocation2 + $0xa8] sm:$0xff] %vm573_vm2, %v562_v17  ;;  %693 = vst.msk [vmem:[#allocation3 + $0x40] sm:$0xff] %vm573_vm2, %v677_v18  ;;  %v511_v27 = vadd.f32 %v1102_v22, %v510_v25  ;;  %v962_v29 = vpop.f32.mrb[10].mxu1  ;;  %v551_v30 = vmax.f32 %v455_v21, 0.0  ;;  %v458_v32 = vadd.f32 %v946_v28, %v1102_v22  ;;  %v449_v34 = vpop.f32.mrb[11].mxu0 }
 0x102   : > { %v567_v31 = vmax.f32 %v519_v23, 0.0  ;;  %v522_v33 = vadd.f32 %v962_v29, %v1102_v22  ;;  %v513_v35 = vpop.f32.mrb[11].mxu1  ;;  %v549_v36 = vmax.f32 %v447_v26, 0.0  ;;  %v450_v38 = vadd.f32 %v1102_v22, %v449_v34 }
 0x103   : > { %v565_v37 = vmax.f32 %v511_v27, 0.0  ;;  %v514_v39 = vadd.f32 %v1102_v22, %v513_v35  ;;  %584 = vst.msk [vmem:[#allocation2 + $0x50] sm:$0xff] %vm573_vm2, %v551_v30  ;;  %v552_v45 = vmax.f32 %v458_v32, 0.0 }
 0x104   : > { %v612_v40 = vld [vmem:[#allocation2 + $0x30] ss:$2 sm:$0xff]  ;;  %v644_v41 = vld [vmem:[#allocation2 + $0x31] ss:$2 sm:$0xff]  ;;  %600 = vst.msk [vmem:[#allocation2 + $0xd0] sm:$0xff] %vm573_vm2, %v567_v31  ;;  %582 = vst.msk [vmem:[#allocation2 + $0x40] sm:$0xff] %vm573_vm2, %v549_v36 }
 0x105   : > { %v628_v42 = vld [vmem:[#allocation2 + $0xb0] ss:$2 sm:$0xff]  ;;  %v672_v43 = vmax.f32 %v612_v40, %v644_v41  ;;  %v660_v44 = vld [vmem:[#allocation2 + $0xb1] ss:$2 sm:$0xff]  ;;  %598 = vst.msk [vmem:[#allocation2 + $0xc0] sm:$0xff] %vm573_vm2, %v565_v37  ;;  %v568_v46 = vmax.f32 %v522_v33, 0.0 }
 0x106   : > { %v550_v47 = vmax.f32 %v450_v38, 0.0  ;;  %v702_v48 = vld [vmem:[#allocation3 + $0x8] sm:$0xff]  ;;  %v680_v49 = vmax.f32 %v628_v42, %v660_v44  ;;  %v566_v50 = vmax.f32 %v514_v39, 0.0  ;;  %v949_v51 = vpop.f32.mrb[12].mxu0  ;;  %v965_v52 = vpop.f32.mrb[12].mxu1  ;;  %585 = vst.msk [vmem:[#allocation2 + $0x58] sm:$0xff] %vm573_vm2, %v552_v45 }
 0x107   : > { %v718_v53 = vld [vmem:[#allocation3 + $0x48] sm:$0xff]  ;;  %v701_v54 = vld [vmem:[#allocation3] sm:$0xff]  ;;  %688 = vst.msk [vmem:[#allocation3 + $0x18] sm:$0xff] %vm573_vm2, %v672_v43  ;;  %601 = vst.msk [vmem:[#allocation2 + $0xd8] sm:$0xff] %vm573_vm2, %v568_v46  ;;  %v471_v56 = vadd.f32 %v949_v51, %v1102_v22  ;;  %v535_v57 = vadd.f32 %v965_v52, %v1102_v22  ;;  %v462_v58 = vpop.f32.mrb[13].mxu0  ;;  %v526_v59 = vpop.f32.mrb[13].mxu1 }
 0x108   : > { %v610_v55 = vld [vmem:[#allocation2 + $0x20] ss:$2 sm:$0xff]  ;;  %583 = vst.msk [vmem:[#allocation2 + $0x48] sm:$0xff] %vm573_vm2, %v550_v47  ;;  %v703_v60 = vmax.f32 %v701_v54, %v702_v48  ;;  %696 = vst.msk [vmem:[#allocation3 + $0x58] sm:$0xff] %vm573_vm2, %v680_v49  ;;  %v642_v62 = vld [vmem:[#allocation2 + $0x21] ss:$2 sm:$0xff]  ;;  %v463_v0 = vadd.f32 %v1102_v22, %v462_v58  ;;  %v527_v1 = vadd.f32 %v1102_v22, %v526_v59 }
 0x109   : > { %v717_v61 = vld [vmem:[#allocation3 + $0x40] sm:$0xff]  ;;  %599 = vst.msk [vmem:[#allocation2 + $0xc8] sm:$0xff] %vm573_vm2, %v566_v50  ;;  %v950_v2 = vpop.f32.mrb[14].mxu0  ;;  %v671_v4 = vmax.f32 %v610_v55, %v642_v62  ;;  %v555_v6 = vmax.f32 %v471_v56, 0.0  ;;  %v571_v7 = vmax.f32 %v535_v57, 0.0  ;;  %v966_v8 = vpop.f32.mrb[14].mxu1 }
 0x10a   : > { %v626_v63 = vld [vmem:[#allocation2 + $0xa0] ss:$2 sm:$0xff]  ;;  %v719_v3 = vmax.f32 %v717_v61, %v718_v53  ;;  %v658_v5 = vld [vmem:[#allocation2 + $0xa1] ss:$2 sm:$0xff]  ;;  %v465_v9 = vpop.f32.mrb[15].mxu0  ;;  %704 = vst.msk [vmem:[#allocation4] sm:$0xff] %vm573_vm2, %v703_v60  ;;  %v474_v13 = vadd.f32 %v950_v2, %v1102_v22  ;;  %v538_v15 = vadd.f32 %v966_v8, %v1102_v22 }
 0x10b   : > { %v679_v10 = vmax.f32 %v626_v63, %v658_v5  ;;  %v553_v11 = vmax.f32 %v463_v0, 0.0  ;;  %v569_v12 = vmax.f32 %v527_v1, 0.0  ;;  %v529_v14 = vpop.f32.mrb[15].mxu1  ;;  %687 = vst.msk [vmem:[#allocation3 + $0x10] sm:$0xff] %vm573_vm2, %v671_v4  ;;  %588 = vst.msk [vmem:[#allocation2 + $0x70] sm:$0xff] %vm573_vm2, %v555_v6  ;;  %v466_v16 = vadd.f32 %v1102_v22, %v465_v9 }
 0x10c   : > { %720 = vst.msk [vmem:[#allocation4 + $0x20] sm:$0xff] %vm573_vm2, %v719_v3  ;;  %604 = vst.msk [vmem:[#allocation2 + $0xf0] sm:$0xff] %vm573_vm2, %v571_v7  ;;  %v530_v17 = vadd.f32 %v1102_v22, %v529_v14  ;;  %v556_v18 = vmax.f32 %v474_v13, 0.0  ;;  %v572_v19 = vmax.f32 %v538_v15, 0.0 }
 0x10d   : > { %695 = vst.msk [vmem:[#allocation3 + $0x50] sm:$0xff] %vm573_vm2, %v679_v10  ;;  %586 = vst.msk [vmem:[#allocation2 + $0x60] sm:$0xff] %vm573_vm2, %v553_v11  ;;  %v554_v20 = vmax.f32 %v466_v16, 0.0  ;;  %v616_v23 = vld [vmem:[#allocation2 + $0x50] ss:$2 sm:$0xff] }
 0x10e   : > { %602 = vst.msk [vmem:[#allocation2 + $0xe0] sm:$0xff] %vm573_vm2, %v569_v12  ;;  %v570_v21 = vmax.f32 %v530_v17, 0.0  ;;  %v648_v24 = vld [vmem:[#allocation2 + $0x51] ss:$2 sm:$0xff]  ;;  %589 = vst.msk [vmem:[#allocation2 + $0x78] sm:$0xff] %vm573_vm2, %v556_v18 }
 0x10f   : > { %v706_v25 = vld [vmem:[#allocation3 + $0x18] sm:$0xff]  ;;  %v674_v26 = vmax.f32 %v616_v23, %v648_v24  ;;  %605 = vst.msk [vmem:[#allocation2 + $0xf8] sm:$0xff] %vm573_vm2, %v572_v19  ;;  %587 = vst.msk [vmem:[#allocation2 + $0x68] sm:$0xff] %vm573_vm2, %v554_v20  ;;  %v614_v29 = vld [vmem:[#allocation2 + $0x40] ss:$2 sm:$0xff] }
 0x110   : > { %v632_v27 = vld [vmem:[#allocation2 + $0xd0] ss:$2 sm:$0xff]  ;;  %v664_v28 = vld [vmem:[#allocation2 + $0xd1] ss:$2 sm:$0xff]  ;;  %603 = vst.msk [vmem:[#allocation2 + $0xe8] sm:$0xff] %vm573_vm2, %v570_v21 }
 0x111   : > { %v682_v22 = vmax.f32 %v632_v27, %v664_v28  ;;  %v646_v30 = vld [vmem:[#allocation2 + $0x41] ss:$2 sm:$0xff]  ;;  %v630_v31 = vld [vmem:[#allocation2 + $0xc0] ss:$2 sm:$0xff]  ;;  %v722_v33 = vld [vmem:[#allocation3 + $0x58] sm:$0xff]  ;;  %690 = vst.msk [vmem:[#allocation3 + $0x28] sm:$0xff] %vm573_vm2, %v674_v26 }
 0x112   : > { %v733_v32 = vld [vmem:[#allocation4] sm:$0xff]  ;;  %v673_v34 = vmax.f32 %v614_v29, %v646_v30  ;;  %v705_v38 = vld [vmem:[#allocation3 + $0x10] sm:$0xff] }
 0x113   : > { %v662_v35 = vld [vmem:[#allocation2 + $0xc1] ss:$2 sm:$0xff]  ;;  %v896_v36 = vpack.c.bf16 %v733_v32, %v733_v32  ;;  %698 = vst.msk [vmem:[#allocation3 + $0x68] sm:$0xff] %vm573_vm2, %v682_v22  ;;  %v707_v41 = vmax.f32 %v705_v38, %v706_v25 }
 0x114   : > { %v737_v37 = vld [vmem:[#allocation4 + $0x20] sm:$0xff]  ;;  %v681_v39 = vmax.f32 %v630_v31, %v662_v35  ;;  %v721_v42 = vld [vmem:[#allocation3 + $0x50] sm:$0xff]  ;;  %689 = vst.msk [vmem:[#allocation3 + $0x20] sm:$0xff] %vm573_vm2, %v673_v34 }
 0x115   : > { %v900_v40 = vpack.c.bf16 %v737_v37, %v737_v37  ;;  %774 = vst.msk [vmem:[%s1182_s6] sm:$0xf] %vm773_vm3, %v896_v36  ;;  %v723_v43 = vmax.f32 %v721_v42, %v722_v33  ;;  %v620_v44 = vld [vmem:[#allocation2 + $0x70] ss:$2 sm:$0xff]  ;;  %v652_v45 = vld [vmem:[#allocation2 + $0x71] ss:$2 sm:$0xff] }
 0x116   : > { %697 = vst.msk [vmem:[#allocation3 + $0x60] sm:$0xff] %vm573_vm2, %v681_v39  ;;  %708 = vst.msk [vmem:[#allocation4 + $0x8] sm:$0xff] %vm573_vm2, %v707_v41  ;;  %v676_v46 = vmax.f32 %v620_v44, %v652_v45  ;;  %v636_v47 = vld [vmem:[#allocation2 + $0xf0] ss:$2 sm:$0xff]  ;;  %v668_v48 = vld [vmem:[#allocation2 + $0xf1] ss:$2 sm:$0xff] }
 0x117   : > { %778 = vst.msk [vmem:[%s1182_s6 + $0x10] sm:$0xf] %vm773_vm3, %v900_v40  ;;  %v618_v49 = vld [vmem:[#allocation2 + $0x60] ss:$2 sm:$0xff]  ;;  %v684_v50 = vmax.f32 %v636_v47, %v668_v48  ;;  %v650_v51 = vld [vmem:[#allocation2 + $0x61] ss:$2 sm:$0xff] }
 0x118   : > { %724 = vst.msk [vmem:[#allocation4 + $0x28] sm:$0xff] %vm573_vm2, %v723_v43  ;;  %v634_v52 = vld [vmem:[#allocation2 + $0xe0] ss:$2 sm:$0xff]  ;;  %v666_v53 = vld [vmem:[#allocation2 + $0xe1] ss:$2 sm:$0xff]  ;;  %692 = vst.msk [vmem:[#allocation3 + $0x38] sm:$0xff] %vm573_vm2, %v676_v46  ;;  %v675_v55 = vmax.f32 %v618_v49, %v650_v51 }
 0x119   : > { %v710_v54 = vld [vmem:[#allocation3 + $0x28] sm:$0xff]  ;;  %v683_v56 = vmax.f32 %v634_v52, %v666_v53  ;;  %700 = vst.msk [vmem:[#allocation3 + $0x78] sm:$0xff] %vm573_vm2, %v684_v50 }
 0x11a   : > { %v726_v57 = vld [vmem:[#allocation3 + $0x68] sm:$0xff]  ;;  %691 = vst.msk [vmem:[#allocation3 + $0x30] sm:$0xff] %vm573_vm2, %v675_v55 }
 0x11b   : > { %v709_v58 = vld [vmem:[#allocation3 + $0x20] sm:$0xff]  ;;  %699 = vst.msk [vmem:[#allocation3 + $0x70] sm:$0xff] %vm573_vm2, %v683_v56 }
 0x11c   : > { %v711_v59 = vmax.f32 %v709_v58, %v710_v54 }
 0x11d   : > { %v725_v60 = vld [vmem:[#allocation3 + $0x60] sm:$0xff]  ;;  %v734_v61 = vld [vmem:[#allocation4 + $0x8] sm:$0xff] }
 0x11e   : > { %v727_v62 = vmax.f32 %v725_v60, %v726_v57  ;;  %v897_v63 = vpack.c.bf16 %v734_v61, %v734_v61  ;;  %712 = vst.msk [vmem:[#allocation4 + $0x10] sm:$0xff] %vm573_vm2, %v711_v59 }
 0x11f   : > { %v738_v0 = vld [vmem:[#allocation4 + $0x28] sm:$0xff]  ;;  %v714_v2 = vld [vmem:[#allocation3 + $0x38] sm:$0xff] }
 0x120   : > { %v901_v1 = vpack.c.bf16 %v738_v0, %v738_v0  ;;  %728 = vst.msk [vmem:[#allocation4 + $0x30] sm:$0xff] %vm573_vm2, %v727_v62  ;;  %v730_v3 = vld [vmem:[#allocation3 + $0x78] sm:$0xff] }
 0x121   : > { %775 = vst.msk [vmem:[%s1182_s6 + $0x4] sm:$0xf] %vm773_vm3, %v897_v63  ;;  %v713_v4 = vld [vmem:[#allocation3 + $0x30] sm:$0xff] }
 0x122   : > { %779 = vst.msk [vmem:[%s1182_s6 + $0x14] sm:$0xf] %vm773_vm3, %v901_v1  ;;  %v729_v5 = vld [vmem:[#allocation3 + $0x70] sm:$0xff]  ;;  %v715_v6 = vmax.f32 %v713_v4, %v714_v2 }
 0x123   : > { %v731_v7 = vmax.f32 %v729_v5, %v730_v3 }
 0x124   : > { %716 = vst.msk [vmem:[#allocation4 + $0x18] sm:$0xff] %vm573_vm2, %v715_v6 }
 0x125   : > { %v735_v8 = vld [vmem:[#allocation4 + $0x10] sm:$0xff]  ;;  %732 = vst.msk [vmem:[#allocation4 + $0x38] sm:$0xff] %vm573_vm2, %v731_v7 }
 0x126   : > { %v898_v9 = vpack.c.bf16 %v735_v8, %v735_v8 }
 0x127   : > { %v739_v10 = vld [vmem:[#allocation4 + $0x30] sm:$0xff] }
 0x128   : > { %v902_v11 = vpack.c.bf16 %v739_v10, %v739_v10  ;;  %776 = vst.msk [vmem:[%s1182_s6 + $0x8] sm:$0xf] %vm773_vm3, %v898_v9 }
 0x12a   : > { %780 = vst.msk [vmem:[%s1182_s6 + $0x18] sm:$0xf] %vm773_vm3, %v902_v11 }
 0x12b   : > { %v736_v12 = vld [vmem:[#allocation4 + $0x18] sm:$0xff] }
 0x12c   : > { %v740_v13 = vld [vmem:[#allocation4 + $0x38] sm:$0xff]  ;;  %v899_v14 = vpack.c.bf16 %v736_v12, %v736_v12 }
 0x12d   : > { %v903_v15 = vpack.c.bf16 %v740_v13, %v740_v13 }
 0x12e   : > { %777 = vst.msk [vmem:[%s1182_s6 + $0xc] sm:$0xf] %vm773_vm3, %v899_v14 }
 0x12f   : > { %781 = vst.msk [vmem:[%s1182_s6 + $0x1c] sm:$0xf] %vm773_vm3, %v903_v15 }
 0x130 PF: > { %s13_s12 = sadd.s32 1, %s1014_s12  }
 0x131   : > { %p10_p4 = scmp.ge.s32.totalorder %s13_s12, 4  }
 0x133   :  { %12 = sbr.rel (!%p10_p4) target bundleno = 1 (0x1), region = 93 }

// kernel: fcn8_gb_forward.6
= control target key start
LH: loop header
LB: loop body
LE: loop exit
PB: predicated region body
PF: predicated region fallthrough
CT: control target
= control target key end

     0   :  { %s2918_s12 = smov 0   ;;  %s3505_s0 = inlined_call_operand.vmem [shape: bf16[2,1024,27], index: 0, kind: input, shape index: {}]   ;;  %s3506_s1 = inlined_call_operand.vmem [shape: bf16[27,8], index: 1, kind: input, shape index: {}]   ;;  %s3507_s2 = inlined_call_operand.vmem [shape: f32[1,8], index: 2, kind: input, shape index: {}]   ;;  %s3508_s3 = inlined_call_operand.vmem [shape: bf16[2,256,8], index: 3, kind: output, shape index: {}]  }
   0x1 LB: > { %s2403_s13 = sadd.s32 4294967295, %s2895_s12   ;;  %p2407_p0 = scmp.ge.s32.totalorder %s2895_s12, 1  ;;  %s2895_s12 = sphi %s2918_s12, %s13_s12  }
   0x2   : > { %p137_p1 = scmp.lt.s32.totalorder %s2895_s12, 3 }
   0x4   : > { %p138_p2 = pnand %p2407_p0, %p137_p1 }
   0x5   : > { %v2822_v0 = vld [vmem:[%s3506_s1] sm:$0xff] (!%p138_p2)   ;;  %vm835_vm0 = vcmask (!%p138_p2), 1044480   ;;  %v2823_v1 = vld [vmem:[%s3506_s1 + $0x8] sm:$0x3f] (!%p138_p2)   ;;  %vm836_vm1 = vcmask (!%p138_p2), 1045504   ;;  %p161_p3 = scmp.lt.s32.totalorder (!%p138_p2), %s2403_s13, 1 }
   0x6   : > { %141 = sbr.rel (%p138_p2) target bundleno = 411 (0x19b), region = 32  ;;  %2677 = vmatprep.subr.bf16.mxu0 (!%p138_p2), %v2822_v0  ;;  %2809 = vmatprep.subr.bf16.mxu1 (!%p138_p2), %v2822_v0  ;;  %v2897_v2 = vmov (!%p138_p2), 65535   ;;  %vm642_vm2 = vcmask (!%p138_p2), 220160   ;;  %vm1515_vm3 = vcmask (!%p138_p2), 64512   ;;  %vm2315_vm4 = vcmask (!%p138_p2), 60416  }
   0x7   : > { %2678 = vmatpush3.bf16.msra.mxu0 (!%p138_p2), %v2822_v0  ;;  %2811 = vmatpush3.bf16.msra.mxu1 (!%p138_p2), %v2822_v0  ;;  %v837_v3 = vsel (!%p138_p2), %vm835_vm0, 4294967295, %v2897_v2 }
   0x8   : > { %v838_v4 = vsel (!%p138_p2), %vm836_vm1, %v837_v3, 0 }
   0x9   : > { %v840_v5 = vand.u32 (!%p138_p2), %v2823_v1, %v838_v4 }
   0xb   : > { %2679 = vmatprep.subr.bf16.mxu0 (!%p138_p2), %v840_v5  ;;  %2810 = vmatprep.subr.bf16.mxu1 (!%p138_p2), %v840_v5 }
   0xc   : > { %2680 = vmatpush3.bf16.msra.mxu0 (!%p138_p2), %v840_v5  ;;  %2812 = vmatpush3.bf16.msra.mxu1 (!%p138_p2), %v840_v5 }
   0xd   : > { %s3510_s13 = smov (!%p161_p3, %s2403_s13), 1 }
   0xe   : > { %s2577_s18 = sshll.u32 %s3510_s13, 9  ;;  %s2578_s24 = sshll.u32 %s3510_s13, 7 }
   0xf   : > { %s2938_s21 = scalar_lea.vmem %s3505_s0, %s2577_s18  ;;  %s3176_s27 = scalar_lea.vmem %s3508_s3, %s2578_s24 }
  0x10   : > { %v2824_v6 = vld [vmem:[%s2938_s21] sm:$0xff]   ;;  %v2826_v8 = vld [vmem:[%s2938_s21 + $0x8] sm:$0xff]   ;;  %v2828_v10 = vld [vmem:[%s2938_s21 + $0x10] sm:$0xff]  }
  0x11   : > { %v2825_v7 = vld [vmem:[%s2938_s21 + $0x100] sm:$0xff]   ;;  %2681 = vmatprep.mubr.msk.bf16.mxu0 %vm642_vm2, %v2824_v6  ;;  %v2827_v9 = vld [vmem:[%s2938_s21 + $0x108] sm:$0xff]   ;;  %v2829_v11 = vld [vmem:[%s2938_s21 + $0x110] sm:$0xff]  }
  0x12   : > { %2745 = vmatprep.mubr.msk.bf16.mxu1 %vm642_vm2, %v2825_v7  ;;  %2682 = vmatmul.mubr.msk.bf16.vlgmr.msra.gmra.mrb[0].mxu0 %vm642_vm2, %v2826_v8  ;;  %v2830_v12 = vld [vmem:[%s2938_s21 + $0x18] sm:$0xff]   ;;  %v2832_v14 = vld [vmem:[%s2938_s21 + $0x20] sm:$0xff]   ;;  %v2834_v16 = vld [vmem:[%s2938_s21 + $0x28] sm:$0xff]  }
  0x13   : > { %2746 = vmatmul.mubr.msk.bf16.vlgmr.msra.gmra.mrb[0].mxu1 %vm642_vm2, %v2827_v9  ;;  %2685 = vmatprep.mubr.msk.bf16.mxu0 %vm642_vm2, %v2828_v10  ;;  %v2831_v13 = vld [vmem:[%s2938_s21 + $0x118] sm:$0xff]   ;;  %v2833_v15 = vld [vmem:[%s2938_s21 + $0x120] sm:$0xff]   ;;  %v2835_v17 = vld [vmem:[%s2938_s21 + $0x128] sm:$0xff]  }
  0x14   : > { %2749 = vmatprep.mubr.msk.bf16.mxu1 %vm642_vm2, %v2829_v11  ;;  %v2836_v18 = vld [vmem:[%s2938_s21 + $0x30] sm:$0xff]   ;;  %v2838_v20 = vld [vmem:[%s2938_s21 + $0x38] sm:$0xff]   ;;  %v2840_v22 = vld [vmem:[%s2938_s21 + $0x40] sm:$0xff]  }
  0x15   : > { %v2837_v19 = vld [vmem:[%s2938_s21 + $0x130] sm:$0xff]   ;;  %v2839_v21 = vld [vmem:[%s2938_s21 + $0x138] sm:$0xff]   ;;  %v2841_v23 = vld [vmem:[%s2938_s21 + $0x140] sm:$0xff]  }
  0x16   : > { %v2842_v24 = vld [vmem:[%s2938_s21 + $0x48] sm:$0xff]   ;;  %v2844_v26 = vld [vmem:[%s2938_s21 + $0x50] sm:$0xff]   ;;  %v2846_v28 = vld [vmem:[%s2938_s21 + $0x58] sm:$0xff]  }
  0x17   : > { %v2843_v25 = vld [vmem:[%s2938_s21 + $0x148] sm:$0xff]   ;;  %v2845_v27 = vld [vmem:[%s2938_s21 + $0x150] sm:$0xff]   ;;  %v2847_v29 = vld [vmem:[%s2938_s21 + $0x158] sm:$0xff]  }
  0x18   : > { %v2848_v30 = vld [vmem:[%s2938_s21 + $0x60] sm:$0xff]   ;;  %v2850_v32 = vld [vmem:[%s2938_s21 + $0x68] sm:$0xff]   ;;  %v2852_v34 = vld [vmem:[%s2938_s21 + $0x70] sm:$0xff]  }
  0x19   : > { %v2849_v31 = vld [vmem:[%s2938_s21 + $0x160] sm:$0xff]   ;;  %v2851_v33 = vld [vmem:[%s2938_s21 + $0x168] sm:$0xff]   ;;  %v2853_v35 = vld [vmem:[%s2938_s21 + $0x170] sm:$0xff]  }
  0x1a   : > { %2686 = vmatmul.mubr.msk.bf16.gmra.mrb[4].mxu0 %vm642_vm2, %v2830_v12  ;;  %v2854_v36 = vld [vmem:[%s2938_s21 + $0x78] sm:$0xff]   ;;  %v2856_v38 = vld [vmem:[%s2938_s21 + $0x80] sm:$0xff]   ;;  %v2858_v40 = vld [vmem:[%s2938_s21 + $0x88] sm:$0xff]  }
  0x1b   : > { %2750 = vmatmul.mubr.msk.bf16.gmra.mrb[4].mxu1 %vm642_vm2, %v2831_v13  ;;  %2689 = vmatprep.mubr.msk.bf16.mxu0 %vm642_vm2, %v2832_v14  ;;  %v2855_v37 = vld [vmem:[%s2938_s21 + $0x178] sm:$0xff]   ;;  %v2857_v39 = vld [vmem:[%s2938_s21 + $0x180] sm:$0xff]   ;;  %v2859_v41 = vld [vmem:[%s2938_s21 + $0x188] sm:$0xff]  }
  0x1c   : > { %2753 = vmatprep.mubr.msk.bf16.mxu1 %vm642_vm2, %v2833_v15  ;;  %v2860_v42 = vld [vmem:[%s2938_s21 + $0x90] sm:$0xff]   ;;  %v2862_v44 = vld [vmem:[%s2938_s21 + $0x98] sm:$0xff]   ;;  %v2864_v46 = vld [vmem:[%s2938_s21 + $0xa0] sm:$0xff]  }
  0x1d   : > { %v2861_v43 = vld [vmem:[%s2938_s21 + $0x190] sm:$0xff]   ;;  %v2863_v45 = vld [vmem:[%s2938_s21 + $0x198] sm:$0xff]   ;;  %v2865_v47 = vld [vmem:[%s2938_s21 + $0x1a0] sm:$0xff]  }
  0x1e   : > { %v2866_v48 = vld [vmem:[%s2938_s21 + $0xa8] sm:$0xff]   ;;  %v2868_v50 = vld [vmem:[%s2938_s21 + $0xb0] sm:$0xff]   ;;  %v2870_v52 = vld [vmem:[%s2938_s21 + $0xb8] sm:$0xff]  }
  0x1f   : > { %v2867_v49 = vld [vmem:[%s2938_s21 + $0x1a8] sm:$0xff]   ;;  %v2869_v51 = vld [vmem:[%s2938_s21 + $0x1b0] sm:$0xff]   ;;  %v2871_v53 = vld [vmem:[%s2938_s21 + $0x1b8] sm:$0xff]  }
  0x20   : > { %v2872_v54 = vld [vmem:[%s2938_s21 + $0xc0] sm:$0xff]   ;;  %v2874_v56 = vld [vmem:[%s2938_s21 + $0xc8] sm:$0xff]   ;;  %v2876_v58 = vld [vmem:[%s2938_s21 + $0xd0] sm:$0xff]  }
  0x21   : > { %v2873_v55 = vld [vmem:[%s2938_s21 + $0x1c0] sm:$0xff]   ;;  %v2875_v57 = vld [vmem:[%s2938_s21 + $0x1c8] sm:$0xff]   ;;  %v2877_v59 = vld [vmem:[%s2938_s21 + $0x1d0] sm:$0xff]  }
  0x22   : > { %2690 = vmatmul.mubr.msk.bf16.gmra.mrb[8].mxu0 %vm642_vm2, %v2834_v16  ;;  %v2878_v60 = vld [vmem:[%s2938_s21 + $0xd8] sm:$0xff]   ;;  %v2880_v62 = vld [vmem:[%s2938_s21 + $0xe0] sm:$0xff]   ;;  %v2882_v0 = vld [vmem:[%s2938_s21 + $0xe8] sm:$0xff]  }
  0x23   : > { %2754 = vmatmul.mubr.msk.bf16.gmra.mrb[8].mxu1 %vm642_vm2, %v2835_v17  ;;  %2693 = vmatprep.mubr.msk.bf16.mxu0 %vm642_vm2, %v2836_v18  ;;  %v2879_v61 = vld [vmem:[%s2938_s21 + $0x1d8] sm:$0xff]   ;;  %v2881_v63 = vld [vmem:[%s2938_s21 + $0x1e0] sm:$0xff]   ;;  %v2883_v1 = vld [vmem:[%s2938_s21 + $0x1e8] sm:$0xff]  }
  0x24   : > { %2757 = vmatprep.mubr.msk.bf16.mxu1 %vm642_vm2, %v2837_v19  ;;  %v2884_v2 = vld [vmem:[%s2938_s21 + $0xf0] sm:$0xff]   ;;  %v2886_v4 = vld [vmem:[%s2938_s21 + $0xf8] sm:$0xff]   ;;  %v3071_v6 = vld [vmem:[%s3507_s2] ss:$0 sm:$0xff] }
  0x25   : > { %v2885_v3 = vld [vmem:[%s2938_s21 + $0x1f0] sm:$0xff]   ;;  %v2887_v5 = vld [vmem:[%s2938_s21 + $0x1f8] sm:$0xff]  }
  0x2a   : > { %2694 = vmatmul.mubr.msk.bf16.gmra.mrb[12].mxu0 %vm642_vm2, %v2838_v20 }
  0x2b   : > { %2758 = vmatmul.mubr.msk.bf16.gmra.mrb[12].mxu1 %vm642_vm2, %v2839_v21  ;;  %2697 = vmatprep.mubr.msk.bf16.mxu0 %vm642_vm2, %v2840_v22 }
  0x2c   : > { %2761 = vmatprep.mubr.msk.bf16.mxu1 %vm642_vm2, %v2841_v23 }
  0x32   : > { %2698 = vmatmul.mubr.msk.bf16.gmra.mrb[16].mxu0 %vm642_vm2, %v2842_v24 }
  0x33   : > { %2762 = vmatmul.mubr.msk.bf16.gmra.mrb[16].mxu1 %vm642_vm2, %v2843_v25  ;;  %2701 = vmatprep.mubr.msk.bf16.mxu0 %vm642_vm2, %v2844_v26 }
  0x34   : > { %2765 = vmatprep.mubr.msk.bf16.mxu1 %vm642_vm2, %v2845_v27 }
  0x3a   : > { %2702 = vmatmul.mubr.msk.bf16.gmra.mrb[20].mxu0 %vm642_vm2, %v2846_v28 }
  0x3b   : > { %2766 = vmatmul.mubr.msk.bf16.gmra.mrb[20].mxu1 %vm642_vm2, %v2847_v29  ;;  %2705 = vmatprep.mubr.msk.bf16.mxu0 %vm642_vm2, %v2848_v30 }
  0x3c   : > { %2769 = vmatprep.mubr.msk.bf16.mxu1 %vm642_vm2, %v2849_v31 }
  0x42   : > { %2706 = vmatmul.mubr.msk.bf16.gmra.mrb[24].mxu0 %vm642_vm2, %v2850_v32 }
  0x43   : > { %2770 = vmatmul.mubr.msk.bf16.gmra.mrb[24].mxu1 %vm642_vm2, %v2851_v33  ;;  %2709 = vmatprep.mubr.msk.bf16.mxu0 %vm642_vm2, %v2852_v34 }
  0x44   : > { %2773 = vmatprep.mubr.msk.bf16.mxu1 %vm642_vm2, %v2853_v35 }
  0x4a   : > { %2710 = vmatmul.mubr.msk.bf16.gmra.mrb[28].mxu0 %vm642_vm2, %v2854_v36 }
  0x4b   : > { %2774 = vmatmul.mubr.msk.bf16.gmra.mrb[28].mxu1 %vm642_vm2, %v2855_v37  ;;  %2713 = vmatprep.mubr.msk.bf16.mxu0 %vm642_vm2, %v2856_v38 }
  0x4c   : > { %2777 = vmatprep.mubr.msk.bf16.mxu1 %vm642_vm2, %v2857_v39 }
  0x52   : > { %2714 = vmatmul.mubr.msk.bf16.gmra.mrb[32].mxu0 %vm642_vm2, %v2858_v40 }
  0x53   : > { %2778 = vmatmul.mubr.msk.bf16.gmra.mrb[32].mxu1 %vm642_vm2, %v2859_v41  ;;  %2717 = vmatprep.mubr.msk.bf16.mxu0 %vm642_vm2, %v2860_v42 }
  0x54   : > { %2781 = vmatprep.mubr.msk.bf16.mxu1 %vm642_vm2, %v2861_v43 }
  0x5a   : > { %2718 = vmatmul.mubr.msk.bf16.gmra.mrb[36].mxu0 %vm642_vm2, %v2862_v44 }
  0x5b   : > { %2782 = vmatmul.mubr.msk.bf16.gmra.mrb[36].mxu1 %vm642_vm2, %v2863_v45  ;;  %2721 = vmatprep.mubr.msk.bf16.mxu0 %vm642_vm2, %v2864_v46 }
  0x5c   : > { %2785 = vmatprep.mubr.msk.bf16.mxu1 %vm642_vm2, %v2865_v47 }
  0x62   : > { %2722 = vmatmul.mubr.msk.bf16.gmra.mrb[40].mxu0 %vm642_vm2, %v2866_v48 }
  0x63   : > { %2786 = vmatmul.mubr.msk.bf16.gmra.mrb[40].mxu1 %vm642_vm2, %v2867_v49  ;;  %2725 = vmatprep.mubr.msk.bf16.mxu0 %vm642_vm2, %v2868_v50 }
  0x64   : > { %2789 = vmatprep.mubr.msk.bf16.mxu1 %vm642_vm2, %v2869_v51 }
  0x6a   : > { %2726 = vmatmul.mubr.msk.bf16.gmra.mrb[44].mxu0 %vm642_vm2, %v2870_v52 }
  0x6b   : > { %2790 = vmatmul.mubr.msk.bf16.gmra.mrb[44].mxu1 %vm642_vm2, %v2871_v53  ;;  %2729 = vmatprep.mubr.msk.bf16.mxu0 %vm642_vm2, %v2872_v54 }
  0x6c   : > { %2793 = vmatprep.mubr.msk.bf16.mxu1 %vm642_vm2, %v2873_v55 }
  0x72   : > { %2730 = vmatmul.mubr.msk.bf16.gmra.mrb[48].mxu0 %vm642_vm2, %v2874_v56 }
  0x73   : > { %2794 = vmatmul.mubr.msk.bf16.gmra.mrb[48].mxu1 %vm642_vm2, %v2875_v57  ;;  %2733 = vmatprep.mubr.msk.bf16.mxu0 %vm642_vm2, %v2876_v58 }
  0x74   : > { %2797 = vmatprep.mubr.msk.bf16.mxu1 %vm642_vm2, %v2877_v59 }
  0x7a   : > { %2734 = vmatmul.mubr.msk.bf16.gmra.mrb[52].mxu0 %vm642_vm2, %v2878_v60 }
  0x7b   : > { %2798 = vmatmul.mubr.msk.bf16.gmra.mrb[52].mxu1 %vm642_vm2, %v2879_v61  ;;  %2737 = vmatprep.mubr.msk.bf16.mxu0 %vm642_vm2, %v2880_v62 }
  0x7c   : > { %2801 = vmatprep.mubr.msk.bf16.mxu1 %vm642_vm2, %v2881_v63 }
  0x82   : > { %2738 = vmatmul.mubr.msk.bf16.gmra.mrb[56].mxu0 %vm642_vm2, %v2882_v0 }
  0x83   : > { %2802 = vmatmul.mubr.msk.bf16.gmra.mrb[56].mxu1 %vm642_vm2, %v2883_v1  ;;  %2741 = vmatprep.mubr.msk.bf16.mxu0 %vm642_vm2, %v2884_v2 }
  0x84   : > { %2805 = vmatprep.mubr.msk.bf16.mxu1 %vm642_vm2, %v2885_v3 }
  0x8a   : > { %2742 = vmatmul.mubr.msk.bf16.gmra.mrb[60].mxu0 %vm642_vm2, %v2886_v4 }
  0x8b   : > { %2806 = vmatmul.mubr.msk.bf16.gmra.mrb[60].mxu1 %vm642_vm2, %v2887_v5 }
  0xe5   : > { %v2683_v7 = vpop.f32.mrb[0].mxu0 }
  0xe6   : > { %v885_v8 = vadd.f32 %v2683_v7, %v3071_v6  ;;  %v2747_v9 = vpop.f32.mrb[0].mxu1  ;;  %v876_v10 = vpop.f32.mrb[1].mxu0 }
  0xe7   : > { %v1141_v11 = vadd.f32 %v2747_v9, %v3071_v6  ;;  %v877_v12 = vadd.f32 %v3071_v6, %v876_v10  ;;  %v1132_v13 = vpop.f32.mrb[1].mxu1  ;;  %v2684_v14 = vpop.f32.mrb[2].mxu0 }
  0xe8   : > { %v1389_v15 = vmax.f32 %v885_v8, 0.0  ;;  %v1133_v16 = vadd.f32 %v3071_v6, %v1132_v13  ;;  %v888_v17 = vadd.f32 %v2684_v14, %v3071_v6  ;;  %v2748_v18 = vpop.f32.mrb[2].mxu1  ;;  %v879_v19 = vpop.f32.mrb[3].mxu0 }
  0xe9   : > { %v1453_v20 = vmax.f32 %v1141_v11, 0.0  ;;  %v1387_v21 = vmax.f32 %v877_v12, 0.0  ;;  %v1144_v22 = vadd.f32 %v2748_v18, %v3071_v6  ;;  %v880_v23 = vadd.f32 %v3071_v6, %v879_v19  ;;  %v1135_v24 = vpop.f32.mrb[3].mxu1 }
  0xea   : > { %1518 = vst.msk [vmem:[#allocation2 + $0x10] sm:$0xff] %vm1515_vm3, %v1389_v15  ;;  %v1451_v25 = vmax.f32 %v1133_v16, 0.0  ;;  %v1390_v26 = vmax.f32 %v888_v17, 0.0  ;;  %v1136_v27 = vadd.f32 %v3071_v6, %v1135_v24 }
  0xeb   : > { %1582 = vst.msk [vmem:[#allocation2 + $0x210] sm:$0xff] %vm1515_vm3, %v1453_v20  ;;  %1516 = vst.msk [vmem:[#allocation2] sm:$0xff] %vm1515_vm3, %v1387_v21  ;;  %v1454_v28 = vmax.f32 %v1144_v22, 0.0  ;;  %v1388_v29 = vmax.f32 %v880_v23, 0.0 }
  0xec   : > { %1580 = vst.msk [vmem:[#allocation2 + $0x200] sm:$0xff] %vm1515_vm3, %v1451_v25  ;;  %1519 = vst.msk [vmem:[#allocation2 + $0x18] sm:$0xff] %vm1515_vm3, %v1390_v26  ;;  %v1452_v30 = vmax.f32 %v1136_v27, 0.0 }
  0xed   : > { %1583 = vst.msk [vmem:[#allocation2 + $0x218] sm:$0xff] %vm1515_vm3, %v1454_v28  ;;  %1517 = vst.msk [vmem:[#allocation2 + $0x8] sm:$0xff] %vm1515_vm3, %v1388_v29  ;;  %v2687_v31 = vpop.f32.mrb[4].mxu0 }
  0xee   : > { %1581 = vst.msk [vmem:[#allocation2 + $0x208] sm:$0xff] %vm1515_vm3, %v1452_v30  ;;  %v901_v32 = vadd.f32 %v2687_v31, %v3071_v6  ;;  %v2751_v33 = vpop.f32.mrb[4].mxu1  ;;  %v892_v34 = vpop.f32.mrb[5].mxu0 }
  0xef   : > { %v1157_v35 = vadd.f32 %v2751_v33, %v3071_v6  ;;  %v893_v36 = vadd.f32 %v3071_v6, %v892_v34  ;;  %v1148_v37 = vpop.f32.mrb[5].mxu1  ;;  %v2688_v38 = vpop.f32.mrb[6].mxu0 }
  0xf0   : > { %v1393_v39 = vmax.f32 %v901_v32, 0.0  ;;  %v1149_v40 = vadd.f32 %v3071_v6, %v1148_v37  ;;  %v904_v41 = vadd.f32 %v2688_v38, %v3071_v6  ;;  %v2752_v42 = vpop.f32.mrb[6].mxu1  ;;  %v895_v43 = vpop.f32.mrb[7].mxu0 }
  0xf1   : > { %v1457_v44 = vmax.f32 %v1157_v35, 0.0  ;;  %v1391_v45 = vmax.f32 %v893_v36, 0.0  ;;  %v1160_v46 = vadd.f32 %v2752_v42, %v3071_v6  ;;  %v896_v47 = vadd.f32 %v3071_v6, %v895_v43  ;;  %v1151_v48 = vpop.f32.mrb[7].mxu1 }
  0xf2   : > { %1522 = vst.msk [vmem:[#allocation2 + $0x30] sm:$0xff] %vm1515_vm3, %v1393_v39  ;;  %v1455_v49 = vmax.f32 %v1149_v40, 0.0  ;;  %v1394_v50 = vmax.f32 %v904_v41, 0.0  ;;  %v1152_v51 = vadd.f32 %v3071_v6, %v1151_v48 }
  0xf3   : > { %v1646_v52 = vld [vmem:[#allocation2 + $0x10] ss:$2 sm:$0xff]  ;;  %v1774_v53 = vld [vmem:[#allocation2 + $0x11] ss:$2 sm:$0xff]  ;;  %1586 = vst.msk [vmem:[#allocation2 + $0x230] sm:$0xff] %vm1515_vm3, %v1457_v44  ;;  %1520 = vst.msk [vmem:[#allocation2 + $0x20] sm:$0xff] %vm1515_vm3, %v1391_v45 }
  0xf4   : > { %v1458_v54 = vmax.f32 %v1160_v46, 0.0  ;;  %v1392_v55 = vmax.f32 %v896_v47, 0.0  ;;  %v1900_v56 = vmax.f32 %v1646_v52, %v1774_v53  ;;  %v1710_v57 = vld [vmem:[#allocation2 + $0x210] ss:$2 sm:$0xff]  ;;  %v1838_v58 = vld [vmem:[#allocation2 + $0x211] ss:$2 sm:$0xff] }
  0xf5   : > { %v1644_v59 = vld [vmem:[#allocation2] ss:$2 sm:$0xff]  ;;  %1584 = vst.msk [vmem:[#allocation2 + $0x220] sm:$0xff] %vm1515_vm3, %v1455_v49  ;;  %1523 = vst.msk [vmem:[#allocation2 + $0x38] sm:$0xff] %vm1515_vm3, %v1394_v50  ;;  %v1932_v60 = vmax.f32 %v1710_v57, %v1838_v58  ;;  %v1772_v61 = vld [vmem:[#allocation2 + $0x1] ss:$2 sm:$0xff] }
  0xf6   : > { %v1708_v62 = vld [vmem:[#allocation2 + $0x200] ss:$2 sm:$0xff]  ;;  %v1836_v63 = vld [vmem:[#allocation2 + $0x201] ss:$2 sm:$0xff]  ;;  %1587 = vst.msk [vmem:[#allocation2 + $0x238] sm:$0xff] %vm1515_vm3, %v1458_v54  ;;  %1521 = vst.msk [vmem:[#allocation2 + $0x28] sm:$0xff] %vm1515_vm3, %v1392_v55  ;;  %v1899_v0 = vmax.f32 %v1644_v59, %v1772_v61 }
  0xf7   : > { %1964 = vst.msk [vmem:[#allocation3 + $0x8] sm:$0xff] %vm1515_vm3, %v1900_v56  ;;  %v1931_v1 = vmax.f32 %v1708_v62, %v1836_v63  ;;  %v1456_v2 = vmax.f32 %v1152_v51, 0.0  ;;  %v2691_v3 = vpop.f32.mrb[8].mxu0  ;;  %v2755_v4 = vpop.f32.mrb[8].mxu1  ;;  %1996 = vst.msk [vmem:[#allocation3 + $0x108] sm:$0xff] %vm1515_vm3, %v1932_v60 }
  0xf8   : > { %v917_v5 = vadd.f32 %v2691_v3, %v3071_v6  ;;  %v1173_v7 = vadd.f32 %v2755_v4, %v3071_v6  ;;  %v908_v8 = vpop.f32.mrb[9].mxu0  ;;  %v1164_v9 = vpop.f32.mrb[9].mxu1  ;;  %1963 = vst.msk [vmem:[#allocation3] sm:$0xff] %vm1515_vm3, %v1899_v0 }
  0xf9   : > { %1995 = vst.msk [vmem:[#allocation3 + $0x100] sm:$0xff] %vm1515_vm3, %v1931_v1  ;;  %1585 = vst.msk [vmem:[#allocation2 + $0x228] sm:$0xff] %vm1515_vm3, %v1456_v2  ;;  %v909_v10 = vadd.f32 %v3071_v6, %v908_v8  ;;  %v1165_v11 = vadd.f32 %v3071_v6, %v1164_v9  ;;  %v2692_v12 = vpop.f32.mrb[10].mxu0  ;;  %v2756_v13 = vpop.f32.mrb[10].mxu1 }
  0xfa   : > { %v1397_v14 = vmax.f32 %v917_v5, 0.0  ;;  %v1461_v15 = vmax.f32 %v1173_v7, 0.0  ;;  %v920_v16 = vadd.f32 %v2692_v12, %v3071_v6  ;;  %v1176_v17 = vadd.f32 %v2756_v13, %v3071_v6  ;;  %v911_v18 = vpop.f32.mrb[11].mxu0  ;;  %v1167_v19 = vpop.f32.mrb[11].mxu1 }
  0xfb   : > { %v1395_v20 = vmax.f32 %v909_v10, 0.0  ;;  %v1459_v21 = vmax.f32 %v1165_v11, 0.0  ;;  %v912_v22 = vadd.f32 %v3071_v6, %v911_v18  ;;  %v1168_v23 = vadd.f32 %v3071_v6, %v1167_v19 }
  0xfc   : > { %v1650_v24 = vld [vmem:[#allocation2 + $0x30] ss:$2 sm:$0xff]  ;;  %v1778_v25 = vld [vmem:[#allocation2 + $0x31] ss:$2 sm:$0xff]  ;;  %1526 = vst.msk [vmem:[#allocation2 + $0x50] sm:$0xff] %vm1515_vm3, %v1397_v14  ;;  %1590 = vst.msk [vmem:[#allocation2 + $0x250] sm:$0xff] %vm1515_vm3, %v1461_v15 }
  0xfd   : > { %v1398_v26 = vmax.f32 %v920_v16, 0.0  ;;  %v1462_v27 = vmax.f32 %v1176_v17, 0.0  ;;  %v1902_v28 = vmax.f32 %v1650_v24, %v1778_v25  ;;  %v1714_v29 = vld [vmem:[#allocation2 + $0x230] ss:$2 sm:$0xff]  ;;  %v1842_v30 = vld [vmem:[#allocation2 + $0x231] ss:$2 sm:$0xff] }
  0xfe   : > { %v1648_v31 = vld [vmem:[#allocation2 + $0x20] ss:$2 sm:$0xff]  ;;  %1524 = vst.msk [vmem:[#allocation2 + $0x40] sm:$0xff] %vm1515_vm3, %v1395_v20  ;;  %1588 = vst.msk [vmem:[#allocation2 + $0x240] sm:$0xff] %vm1515_vm3, %v1459_v21  ;;  %v1934_v32 = vmax.f32 %v1714_v29, %v1842_v30  ;;  %v1776_v33 = vld [vmem:[#allocation2 + $0x21] ss:$2 sm:$0xff] }
  0xff   : > { %1527 = vst.msk [vmem:[#allocation2 + $0x58] sm:$0xff] %vm1515_vm3, %v1398_v26  ;;  %1591 = vst.msk [vmem:[#allocation2 + $0x258] sm:$0xff] %vm1515_vm3, %v1462_v27  ;;  %v1396_v34 = vmax.f32 %v912_v22, 0.0  ;;  %v1460_v35 = vmax.f32 %v1168_v23, 0.0  ;;  %v2695_v36 = vpop.f32.mrb[12].mxu0  ;;  %v1901_v37 = vmax.f32 %v1648_v31, %v1776_v33  ;;  %v2759_v39 = vpop.f32.mrb[12].mxu1 }
 0x100   : > { %1966 = vst.msk [vmem:[#allocation3 + $0x18] sm:$0xff] %vm1515_vm3, %v1902_v28  ;;  %v933_v38 = vadd.f32 %v2695_v36, %v3071_v6  ;;  %v924_v40 = vpop.f32.mrb[13].mxu0  ;;  %1998 = vst.msk [vmem:[#allocation3 + $0x118] sm:$0xff] %vm1515_vm3, %v1934_v32  ;;  %v1712_v41 = vld [vmem:[#allocation2 + $0x220] ss:$2 sm:$0xff]  ;;  %v1189_v42 = vadd.f32 %v2759_v39, %v3071_v6  ;;  %v1180_v44 = vpop.f32.mrb[13].mxu1 }
 0x101   : > { %1525 = vst.msk [vmem:[#allocation2 + $0x48] sm:$0xff] %vm1515_vm3, %v1396_v34  ;;  %1589 = vst.msk [vmem:[#allocation2 + $0x248] sm:$0xff] %vm1515_vm3, %v1460_v35  ;;  %v925_v43 = vadd.f32 %v3071_v6, %v924_v40  ;;  %v2696_v45 = vpop.f32.mrb[14].mxu0  ;;  %v1840_v46 = vld [vmem:[#allocation2 + $0x221] ss:$2 sm:$0xff]  ;;  %v1181_v48 = vadd.f32 %v3071_v6, %v1180_v44  ;;  %v2760_v50 = vpop.f32.mrb[14].mxu1 }
 0x102   : > { %1965 = vst.msk [vmem:[#allocation3 + $0x10] sm:$0xff] %vm1515_vm3, %v1901_v37  ;;  %v1401_v47 = vmax.f32 %v933_v38, 0.0  ;;  %v936_v49 = vadd.f32 %v2696_v45, %v3071_v6  ;;  %v927_v51 = vpop.f32.mrb[15].mxu0  ;;  %v1933_v52 = vmax.f32 %v1712_v41, %v1840_v46  ;;  %v1465_v53 = vmax.f32 %v1189_v42, 0.0  ;;  %v1183_v56 = vpop.f32.mrb[15].mxu1  ;;  %v2028_v61 = vld [vmem:[#allocation3 + $0x8] sm:$0xff] }
 0x103   : > { %v1399_v54 = vmax.f32 %v925_v43, 0.0  ;;  %v1192_v55 = vadd.f32 %v2760_v50, %v3071_v6  ;;  %v1463_v57 = vmax.f32 %v1181_v48, 0.0  ;;  %v928_v59 = vadd.f32 %v3071_v6, %v927_v51  ;;  %v2092_v63 = vld [vmem:[#allocation3 + $0x108] sm:$0xff]  ;;  %v2027_v3 = vld [vmem:[#allocation3] sm:$0xff] }
 0x104   : > { %1530 = vst.msk [vmem:[#allocation2 + $0x70] sm:$0xff] %vm1515_vm3, %v1401_v47  ;;  %v1402_v58 = vmax.f32 %v936_v49, 0.0  ;;  %v1184_v60 = vadd.f32 %v3071_v6, %v1183_v56  ;;  %1997 = vst.msk [vmem:[#allocation3 + $0x110] sm:$0xff] %vm1515_vm3, %v1933_v52  ;;  %v2091_v36 = vld [vmem:[#allocation3 + $0x100] sm:$0xff] }
 0x105   : > { %1594 = vst.msk [vmem:[#allocation2 + $0x270] sm:$0xff] %vm1515_vm3, %v1465_v53  ;;  %1528 = vst.msk [vmem:[#allocation2 + $0x60] sm:$0xff] %vm1515_vm3, %v1399_v54  ;;  %v1466_v62 = vmax.f32 %v1192_v55, 0.0  ;;  %v1400_v8 = vmax.f32 %v928_v59, 0.0  ;;  %v2699_v10 = vpop.f32.mrb[16].mxu0 }
 0x106   : > { %v1654_v0 = vld [vmem:[#allocation2 + $0x50] ss:$2 sm:$0xff]  ;;  %v1782_v1 = vld [vmem:[#allocation2 + $0x51] ss:$2 sm:$0xff]  ;;  %1592 = vst.msk [vmem:[#allocation2 + $0x260] sm:$0xff] %vm1515_vm3, %v1463_v57  ;;  %1531 = vst.msk [vmem:[#allocation2 + $0x78] sm:$0xff] %vm1515_vm3, %v1402_v58  ;;  %v949_v16 = vadd.f32 %v2699_v10, %v3071_v6 }
 0x107   : > { %v1718_v2 = vld [vmem:[#allocation2 + $0x250] ss:$2 sm:$0xff]  ;;  %v1904_v5 = vmax.f32 %v1654_v0, %v1782_v1  ;;  %v1846_v7 = vld [vmem:[#allocation2 + $0x251] ss:$2 sm:$0xff]  ;;  %1595 = vst.msk [vmem:[#allocation2 + $0x278] sm:$0xff] %vm1515_vm3, %v1466_v62  ;;  %v1464_v9 = vmax.f32 %v1184_v60, 0.0 }
 0x108   : > { %v2030_v4 = vld [vmem:[#allocation3 + $0x18] sm:$0xff]  ;;  %v1936_v13 = vmax.f32 %v1718_v2, %v1846_v7  ;;  %v1652_v14 = vld [vmem:[#allocation2 + $0x40] ss:$2 sm:$0xff]  ;;  %v1780_v15 = vld [vmem:[#allocation2 + $0x41] ss:$2 sm:$0xff]  ;;  %v2763_v17 = vpop.f32.mrb[16].mxu1 }
 0x109   : > { %v2032_v11 = vmax.f32 %v2028_v61, %v2030_v4  ;;  %v2094_v12 = vld [vmem:[#allocation3 + $0x118] sm:$0xff]  ;;  %v2029_v19 = vld [vmem:[#allocation3 + $0x10] sm:$0xff]  ;;  %1968 = vst.msk [vmem:[#allocation3 + $0x28] sm:$0xff] %vm1515_vm3, %v1904_v5  ;;  %v1903_v20 = vmax.f32 %v1652_v14, %v1780_v15  ;;  %v1716_v21 = vld [vmem:[#allocation2 + $0x240] ss:$2 sm:$0xff]  ;;  %v1205_v23 = vadd.f32 %v2763_v17, %v3071_v6  ;;  %v940_v24 = vpop.f32.mrb[17].mxu0 }
 0x10a   : > { %v2096_v18 = vmax.f32 %v2092_v63, %v2094_v12  ;;  %v1844_v22 = vld [vmem:[#allocation2 + $0x241] ss:$2 sm:$0xff]  ;;  %1529 = vst.msk [vmem:[#allocation2 + $0x68] sm:$0xff] %vm1515_vm3, %v1400_v8  ;;  %1593 = vst.msk [vmem:[#allocation2 + $0x268] sm:$0xff] %vm1515_vm3, %v1464_v9  ;;  %v2031_v25 = vmax.f32 %v2027_v3, %v2029_v19  ;;  %v1405_v27 = vmax.f32 %v949_v16, 0.0  ;;  %v941_v28 = vadd.f32 %v3071_v6, %v940_v24  ;;  %v1196_v29 = vpop.f32.mrb[17].mxu1 }
 0x10b   : > { %2034 = vst.msk [vmem:[#allocation4 + $0x8] sm:$0xff] %vm1515_vm3, %v2032_v11  ;;  %2000 = vst.msk [vmem:[#allocation3 + $0x128] sm:$0xff] %vm1515_vm3, %v1936_v13  ;;  %v1935_v26 = vmax.f32 %v1716_v21, %v1844_v22  ;;  %v2700_v30 = vpop.f32.mrb[18].mxu0  ;;  %v1469_v31 = vmax.f32 %v1205_v23, 0.0  ;;  %v1197_v32 = vadd.f32 %v3071_v6, %v1196_v29  ;;  %v2764_v34 = vpop.f32.mrb[18].mxu1  ;;  %v2093_v37 = vld [vmem:[#allocation3 + $0x110] sm:$0xff] }
 0x10c   : > { %2098 = vst.msk [vmem:[#allocation4 + $0x88] sm:$0xff] %vm1515_vm3, %v2096_v18  ;;  %1967 = vst.msk [vmem:[#allocation3 + $0x20] sm:$0xff] %vm1515_vm3, %v1903_v20  ;;  %v952_v33 = vadd.f32 %v2700_v30, %v3071_v6  ;;  %v943_v35 = vpop.f32.mrb[19].mxu0  ;;  %v1403_v38 = vmax.f32 %v941_v28, 0.0  ;;  %v1208_v39 = vadd.f32 %v2764_v34, %v3071_v6  ;;  %v1199_v41 = vpop.f32.mrb[19].mxu1  ;;  %v2095_v42 = vmax.f32 %v2091_v36, %v2093_v37 }
 0x10d   : > { %2033 = vst.msk [vmem:[#allocation4] sm:$0xff] %vm1515_vm3, %v2031_v25  ;;  %1999 = vst.msk [vmem:[#allocation3 + $0x120] sm:$0xff] %vm1515_vm3, %v1935_v26  ;;  %v944_v40 = vadd.f32 %v3071_v6, %v943_v35  ;;  %v1658_v43 = vld [vmem:[#allocation2 + $0x70] ss:$2 sm:$0xff]  ;;  %v1786_v44 = vld [vmem:[#allocation2 + $0x71] ss:$2 sm:$0xff]  ;;  %v1200_v47 = vadd.f32 %v3071_v6, %v1199_v41 }
 0x10e   : > { %1534 = vst.msk [vmem:[#allocation2 + $0x90] sm:$0xff] %vm1515_vm3, %v1405_v27  ;;  %1598 = vst.msk [vmem:[#allocation2 + $0x290] sm:$0xff] %vm1515_vm3, %v1469_v31  ;;  %v1467_v45 = vmax.f32 %v1197_v32, 0.0  ;;  %v1406_v46 = vmax.f32 %v952_v33, 0.0  ;;  %v1906_v48 = vmax.f32 %v1658_v43, %v1786_v44  ;;  %v1722_v49 = vld [vmem:[#allocation2 + $0x270] ss:$2 sm:$0xff] }
 0x10f   : > { %v1850_v50 = vld [vmem:[#allocation2 + $0x271] ss:$2 sm:$0xff]  ;;  %1532 = vst.msk [vmem:[#allocation2 + $0x80] sm:$0xff] %vm1515_vm3, %v1403_v38  ;;  %v1470_v51 = vmax.f32 %v1208_v39, 0.0  ;;  %v1404_v52 = vmax.f32 %v944_v40, 0.0  ;;  %2097 = vst.msk [vmem:[#allocation4 + $0x80] sm:$0xff] %vm1515_vm3, %v2095_v42 }
 0x110   : > { %v1938_v53 = vmax.f32 %v1722_v49, %v1850_v50  ;;  %1596 = vst.msk [vmem:[#allocation2 + $0x280] sm:$0xff] %vm1515_vm3, %v1467_v45  ;;  %1535 = vst.msk [vmem:[#allocation2 + $0x98] sm:$0xff] %vm1515_vm3, %v1406_v46  ;;  %v1468_v54 = vmax.f32 %v1200_v47, 0.0  ;;  %v2703_v55 = vpop.f32.mrb[20].mxu0  ;;  %v2767_v59 = vpop.f32.mrb[20].mxu1  ;;  %v2036_v22 = vld [vmem:[#allocation3 + $0x28] sm:$0xff] }
 0x111   : > { %1970 = vst.msk [vmem:[#allocation3 + $0x38] sm:$0xff] %vm1515_vm3, %v1906_v48  ;;  %v1656_v56 = vld [vmem:[#allocation2 + $0x60] ss:$2 sm:$0xff]  ;;  %v1784_v57 = vld [vmem:[#allocation2 + $0x61] ss:$2 sm:$0xff]  ;;  %1599 = vst.msk [vmem:[#allocation2 + $0x298] sm:$0xff] %vm1515_vm3, %v1470_v51  ;;  %v965_v58 = vadd.f32 %v2703_v55, %v3071_v6  ;;  %v1221_v63 = vadd.f32 %v2767_v59, %v3071_v6 }
 0x112   : > { %1533 = vst.msk [vmem:[#allocation2 + $0x88] sm:$0xff] %vm1515_vm3, %v1404_v52  ;;  %v2156_v60 = vld [vmem:[#allocation4 + $0x8] sm:$0xff]  ;;  %2002 = vst.msk [vmem:[#allocation3 + $0x138] sm:$0xff] %vm1515_vm3, %v1938_v53  ;;  %v1905_v61 = vmax.f32 %v1656_v56, %v1784_v57  ;;  %v956_v0 = vpop.f32.mrb[21].mxu0  ;;  %v1212_v1 = vpop.f32.mrb[21].mxu1 }
 0x113   : > { %v1720_v62 = vld [vmem:[#allocation2 + $0x260] ss:$2 sm:$0xff]  ;;  %1597 = vst.msk [vmem:[#allocation2 + $0x288] sm:$0xff] %vm1515_vm3, %v1468_v54  ;;  %v2580_v2 = vpack.c.bf16 %v2156_v60, %v2156_v60  ;;  %v1848_v4 = vld [vmem:[#allocation2 + $0x261] ss:$2 sm:$0xff]  ;;  %v1409_v5 = vmax.f32 %v965_v58, 0.0  ;;  %v957_v7 = vadd.f32 %v3071_v6, %v956_v0  ;;  %v1213_v8 = vadd.f32 %v3071_v6, %v1212_v1 }
 0x114   : > { %v2172_v3 = vld [vmem:[#allocation4 + $0x88] sm:$0xff]  ;;  %v2704_v9 = vpop.f32.mrb[22].mxu0  ;;  %v2155_v11 = vld [vmem:[#allocation4] sm:$0xff]  ;;  %1969 = vst.msk [vmem:[#allocation3 + $0x30] sm:$0xff] %vm1515_vm3, %v1905_v61  ;;  %v1937_v12 = vmax.f32 %v1720_v62, %v1848_v4  ;;  %v1473_v13 = vmax.f32 %v1221_v63, 0.0  ;;  %v2768_v15 = vpop.f32.mrb[22].mxu1 }
 0x115   : > { %v2596_v10 = vpack.c.bf16 %v2172_v3, %v2172_v3  ;;  %v968_v14 = vadd.f32 %v2704_v9, %v3071_v6  ;;  %v959_v16 = vpop.f32.mrb[23].mxu0  ;;  %2317 = vst.msk [vmem:[%s3176_s27 + $0x4] sm:$0xf] %vm2315_vm4, %v2580_v2  ;;  %v2579_v17 = vpack.c.bf16 %v2155_v11, %v2155_v11  ;;  %v1407_v18 = vmax.f32 %v957_v7, 0.0  ;;  %v1215_v21 = vpop.f32.mrb[23].mxu1  ;;  %v2100_v27 = vld [vmem:[#allocation3 + $0x128] sm:$0xff] }
 0x116   : > { %1538 = vst.msk [vmem:[#allocation2 + $0xb0] sm:$0xff] %vm1515_vm3, %v1409_v5  ;;  %v1471_v19 = vmax.f32 %v1213_v8, 0.0  ;;  %v1224_v20 = vadd.f32 %v2768_v15, %v3071_v6  ;;  %2001 = vst.msk [vmem:[#allocation3 + $0x130] sm:$0xff] %vm1515_vm3, %v1937_v12  ;;  %v960_v24 = vadd.f32 %v3071_v6, %v959_v16  ;;  %v1216_v25 = vadd.f32 %v3071_v6, %v1215_v21  ;;  %v2171_v26 = vld [vmem:[#allocation4 + $0x80] sm:$0xff]  ;;  %v2707_v47 = vpop.f32.mrb[24].mxu0  ;;  %v2771_v48 = vpop.f32.mrb[24].mxu1 }
 0x117   : > { %2333 = vst.msk [vmem:[%s3176_s27 + $0x44] sm:$0xf] %vm2315_vm4, %v2596_v10  ;;  %v1410_v23 = vmax.f32 %v968_v14, 0.0  ;;  %2316 = vst.msk [vmem:[%s3176_s27] sm:$0xf] %vm2315_vm4, %v2579_v17  ;;  %v2595_v31 = vpack.c.bf16 %v2171_v26, %v2171_v26  ;;  %v2035_v49 = vld [vmem:[#allocation3 + $0x20] sm:$0xff]  ;;  %v981_v52 = vadd.f32 %v2707_v47, %v3071_v6  ;;  %v1237_v53 = vadd.f32 %v2771_v48, %v3071_v6 }
 0x118   : > { %1602 = vst.msk [vmem:[#allocation2 + $0x2b0] sm:$0xff] %vm1515_vm3, %v1473_v13  ;;  %v1662_v28 = vld [vmem:[#allocation2 + $0x90] ss:$2 sm:$0xff]  ;;  %v1790_v29 = vld [vmem:[#allocation2 + $0x91] ss:$2 sm:$0xff]  ;;  %1536 = vst.msk [vmem:[#allocation2 + $0xa0] sm:$0xff] %vm1515_vm3, %v1407_v18 }
 0x119   : > { %1600 = vst.msk [vmem:[#allocation2 + $0x2a0] sm:$0xff] %vm1515_vm3, %v1471_v19  ;;  %v1474_v30 = vmax.f32 %v1224_v20, 0.0  ;;  %v2038_v32 = vld [vmem:[#allocation3 + $0x38] sm:$0xff]  ;;  %v1908_v33 = vmax.f32 %v1662_v28, %v1790_v29  ;;  %1539 = vst.msk [vmem:[#allocation2 + $0xb8] sm:$0xff] %vm1515_vm3, %v1410_v23  ;;  %v1408_v36 = vmax.f32 %v960_v24, 0.0  ;;  %v1472_v42 = vmax.f32 %v1216_v25, 0.0 }
 0x11a   : > { %v1726_v34 = vld [vmem:[#allocation2 + $0x290] ss:$2 sm:$0xff]  ;;  %v1854_v35 = vld [vmem:[#allocation2 + $0x291] ss:$2 sm:$0xff]  ;;  %v2040_v37 = vmax.f32 %v2036_v22, %v2038_v32  ;;  %v1660_v40 = vld [vmem:[#allocation2 + $0x80] ss:$2 sm:$0xff] }
 0x11b   : > { %v2102_v38 = vld [vmem:[#allocation3 + $0x138] sm:$0xff]  ;;  %v1940_v39 = vmax.f32 %v1726_v34, %v1854_v35  ;;  %v1788_v41 = vld [vmem:[#allocation2 + $0x81] ss:$2 sm:$0xff]  ;;  %1603 = vst.msk [vmem:[#allocation2 + $0x2b8] sm:$0xff] %vm1515_vm3, %v1474_v30  ;;  %1972 = vst.msk [vmem:[#allocation3 + $0x48] sm:$0xff] %vm1515_vm3, %v1908_v33  ;;  %v972_v54 = vpop.f32.mrb[25].mxu0 }
 0x11c   : > { %2332 = vst.msk [vmem:[%s3176_s27 + $0x40] sm:$0xf] %vm2315_vm4, %v2595_v31  ;;  %v2104_v43 = vmax.f32 %v2100_v27, %v2102_v38  ;;  %v1907_v44 = vmax.f32 %v1660_v40, %v1788_v41  ;;  %v1724_v45 = vld [vmem:[#allocation2 + $0x280] ss:$2 sm:$0xff]  ;;  %v1852_v46 = vld [vmem:[#allocation2 + $0x281] ss:$2 sm:$0xff]  ;;  %v973_v57 = vadd.f32 %v3071_v6, %v972_v54 }
 0x11d   : > { %1537 = vst.msk [vmem:[#allocation2 + $0xa8] sm:$0xff] %vm1515_vm3, %v1408_v36  ;;  %2042 = vst.msk [vmem:[#allocation4 + $0x18] sm:$0xff] %vm1515_vm3, %v2040_v37  ;;  %v2037_v50 = vld [vmem:[#allocation3 + $0x30] sm:$0xff]  ;;  %v1939_v51 = vmax.f32 %v1724_v45, %v1852_v46  ;;  %v1228_v55 = vpop.f32.mrb[25].mxu1  ;;  %v2708_v59 = vpop.f32.mrb[26].mxu0  ;;  %v2099_v61 = vld [vmem:[#allocation3 + $0x120] sm:$0xff] }
 0x11e   : > { %2004 = vst.msk [vmem:[#allocation3 + $0x148] sm:$0xff] %vm1515_vm3, %v1940_v39  ;;  %1601 = vst.msk [vmem:[#allocation2 + $0x2a8] sm:$0xff] %vm1515_vm3, %v1472_v42  ;;  %v2039_v56 = vmax.f32 %v2035_v49, %v2037_v50  ;;  %v1229_v58 = vadd.f32 %v3071_v6, %v1228_v55  ;;  %v2772_v60 = vpop.f32.mrb[26].mxu1  ;;  %v2101_v62 = vld [vmem:[#allocation3 + $0x130] sm:$0xff]  ;;  %v1413_v63 = vmax.f32 %v981_v52, 0.0  ;;  %v1477_v0 = vmax.f32 %v1237_v53, 0.0 }
 0x11f   : > { %2106 = vst.msk [vmem:[#allocation4 + $0x98] sm:$0xff] %vm1515_vm3, %v2104_v43  ;;  %1971 = vst.msk [vmem:[#allocation3 + $0x40] sm:$0xff] %vm1515_vm3, %v1907_v44  ;;  %v984_v1 = vadd.f32 %v2708_v59, %v3071_v6  ;;  %v1240_v2 = vadd.f32 %v2772_v60, %v3071_v6  ;;  %v975_v3 = vpop.f32.mrb[27].mxu0  ;;  %v1231_v4 = vpop.f32.mrb[27].mxu1  ;;  %v2103_v5 = vmax.f32 %v2099_v61, %v2101_v62  ;;  %v1411_v7 = vmax.f32 %v973_v57, 0.0 }
 0x120   : > { %2003 = vst.msk [vmem:[#allocation3 + $0x140] sm:$0xff] %vm1515_vm3, %v1939_v51  ;;  %2041 = vst.msk [vmem:[#allocation4 + $0x10] sm:$0xff] %vm1515_vm3, %v2039_v56  ;;  %v1475_v8 = vmax.f32 %v1229_v58, 0.0  ;;  %v976_v9 = vadd.f32 %v3071_v6, %v975_v3  ;;  %v1666_v10 = vld [vmem:[#allocation2 + $0xb0] ss:$2 sm:$0xff]  ;;  %v1232_v14 = vadd.f32 %v3071_v6, %v1231_v4  ;;  %v2711_v19 = vpop.f32.mrb[28].mxu0 }
 0x121   : > { %v1794_v11 = vld [vmem:[#allocation2 + $0xb1] ss:$2 sm:$0xff]  ;;  %1542 = vst.msk [vmem:[#allocation2 + $0xd0] sm:$0xff] %vm1515_vm3, %v1413_v63  ;;  %1606 = vst.msk [vmem:[#allocation2 + $0x2d0] sm:$0xff] %vm1515_vm3, %v1477_v0  ;;  %v1414_v12 = vmax.f32 %v984_v1, 0.0  ;;  %v1478_v13 = vmax.f32 %v1240_v2, 0.0  ;;  %v997_v24 = vadd.f32 %v2711_v19, %v3071_v6 }
 0x122   : > { %2105 = vst.msk [vmem:[#allocation4 + $0x90] sm:$0xff] %vm1515_vm3, %v2103_v5  ;;  %v1910_v15 = vmax.f32 %v1666_v10, %v1794_v11  ;;  %v1730_v16 = vld [vmem:[#allocation2 + $0x2b0] ss:$2 sm:$0xff]  ;;  %v1858_v17 = vld [vmem:[#allocation2 + $0x2b1] ss:$2 sm:$0xff]  ;;  %1540 = vst.msk [vmem:[#allocation2 + $0xc0] sm:$0xff] %vm1515_vm3, %v1411_v7 }
 0x123   : > { %1604 = vst.msk [vmem:[#allocation2 + $0x2c0] sm:$0xff] %vm1515_vm3, %v1475_v8  ;;  %v1412_v18 = vmax.f32 %v976_v9, 0.0  ;;  %v1942_v20 = vmax.f32 %v1730_v16, %v1858_v17  ;;  %1543 = vst.msk [vmem:[#allocation2 + $0xd8] sm:$0xff] %vm1515_vm3, %v1414_v12  ;;  %v1476_v23 = vmax.f32 %v1232_v14, 0.0  ;;  %v2775_v28 = vpop.f32.mrb[28].mxu1  ;;  %v988_v29 = vpop.f32.mrb[29].mxu0 }
 0x124   : > { %v1664_v21 = vld [vmem:[#allocation2 + $0xa0] ss:$2 sm:$0xff]  ;;  %v1792_v22 = vld [vmem:[#allocation2 + $0xa1] ss:$2 sm:$0xff]  ;;  %1607 = vst.msk [vmem:[#allocation2 + $0x2d8] sm:$0xff] %vm1515_vm3, %v1478_v13  ;;  %v2158_v25 = vld [vmem:[#allocation4 + $0x18] sm:$0xff]  ;;  %v1253_v34 = vadd.f32 %v2775_v28, %v3071_v6  ;;  %v989_v35 = vadd.f32 %v3071_v6, %v988_v29 }
 0x125   : > { %1974 = vst.msk [vmem:[#allocation3 + $0x58] sm:$0xff] %vm1515_vm3, %v1910_v15  ;;  %v1909_v26 = vmax.f32 %v1664_v21, %v1792_v22  ;;  %v1728_v27 = vld [vmem:[#allocation2 + $0x2a0] ss:$2 sm:$0xff]  ;;  %1541 = vst.msk [vmem:[#allocation2 + $0xc8] sm:$0xff] %vm1515_vm3, %v1412_v18  ;;  %v2582_v30 = vpack.c.bf16 %v2158_v25, %v2158_v25  ;;  %v1856_v32 = vld [vmem:[#allocation2 + $0x2a1] ss:$2 sm:$0xff] }
 0x126   : > { %v2174_v31 = vld [vmem:[#allocation4 + $0x98] sm:$0xff]  ;;  %2006 = vst.msk [vmem:[#allocation3 + $0x158] sm:$0xff] %vm1515_vm3, %v1942_v20  ;;  %1605 = vst.msk [vmem:[#allocation2 + $0x2c8] sm:$0xff] %vm1515_vm3, %v1476_v23  ;;  %v1417_v33 = vmax.f32 %v997_v24, 0.0  ;;  %v1244_v36 = vpop.f32.mrb[29].mxu1  ;;  %v1941_v38 = vmax.f32 %v1728_v27, %v1856_v32  ;;  %v2712_v40 = vpop.f32.mrb[30].mxu0 }
 0x127   : > { %v2598_v37 = vpack.c.bf16 %v2174_v31, %v2174_v31  ;;  %1973 = vst.msk [vmem:[#allocation3 + $0x50] sm:$0xff] %vm1515_vm3, %v1909_v26  ;;  %v1245_v39 = vadd.f32 %v3071_v6, %v1244_v36  ;;  %v2776_v41 = vpop.f32.mrb[30].mxu1  ;;  %v2157_v42 = vld [vmem:[#allocation4 + $0x10] sm:$0xff]  ;;  %v1481_v43 = vmax.f32 %v1253_v34, 0.0  ;;  %v1415_v44 = vmax.f32 %v989_v35, 0.0  ;;  %v991_v47 = vpop.f32.mrb[31].mxu0 }
 0x128   : > { %2319 = vst.msk [vmem:[%s3176_s27 + $0xc] sm:$0xf] %vm2315_vm4, %v2582_v30  ;;  %v1000_v45 = vadd.f32 %v2712_v40, %v3071_v6  ;;  %v1256_v46 = vadd.f32 %v2776_v41, %v3071_v6  ;;  %v1247_v48 = vpop.f32.mrb[31].mxu1  ;;  %v2581_v49 = vpack.c.bf16 %v2157_v42, %v2157_v42  ;;  %v992_v51 = vadd.f32 %v3071_v6, %v991_v47  ;;  %v2044_v54 = vld [vmem:[#allocation3 + $0x48] sm:$0xff]  ;;  %v2043_v10 = vld [vmem:[#allocation3 + $0x40] sm:$0xff]  ;;  %v2715_v15 = vpop.f32.mrb[32].mxu0 }
 0x129   : > { %1546 = vst.msk [vmem:[#allocation2 + $0xf0] sm:$0xff] %vm1515_vm3, %v1417_v33  ;;  %2005 = vst.msk [vmem:[#allocation3 + $0x150] sm:$0xff] %vm1515_vm3, %v1941_v38  ;;  %v1479_v50 = vmax.f32 %v1245_v39, 0.0  ;;  %v1248_v52 = vadd.f32 %v3071_v6, %v1247_v48  ;;  %v2173_v53 = vld [vmem:[#allocation4 + $0x90] sm:$0xff]  ;;  %v2108_v58 = vld [vmem:[#allocation3 + $0x148] sm:$0xff]  ;;  %v2779_v16 = vpop.f32.mrb[32].mxu1  ;;  %v1013_v19 = vadd.f32 %v2715_v15, %v3071_v6 }
 0x12a   : > { %2335 = vst.msk [vmem:[%s3176_s27 + $0x4c] sm:$0xf] %vm2315_vm4, %v2598_v37  ;;  %v1418_v55 = vmax.f32 %v1000_v45, 0.0  ;;  %v1482_v56 = vmax.f32 %v1256_v46, 0.0  ;;  %2318 = vst.msk [vmem:[%s3176_s27 + $0x8] sm:$0xf] %vm2315_vm4, %v2581_v49  ;;  %v2597_v57 = vpack.c.bf16 %v2173_v53, %v2173_v53  ;;  %v1269_v20 = vadd.f32 %v2779_v16, %v3071_v6 }
 0x12b   : > { %1610 = vst.msk [vmem:[#allocation2 + $0x2f0] sm:$0xff] %vm1515_vm3, %v1481_v43  ;;  %1544 = vst.msk [vmem:[#allocation2 + $0xe0] sm:$0xff] %vm1515_vm3, %v1415_v44  ;;  %v1670_v59 = vld [vmem:[#allocation2 + $0xd0] ss:$2 sm:$0xff]  ;;  %v1798_v60 = vld [vmem:[#allocation2 + $0xd1] ss:$2 sm:$0xff] }
 0x12c   : > { %v1734_v61 = vld [vmem:[#allocation2 + $0x2d0] ss:$2 sm:$0xff]  ;;  %1608 = vst.msk [vmem:[#allocation2 + $0x2e0] sm:$0xff] %vm1515_vm3, %v1479_v50  ;;  %v1912_v63 = vmax.f32 %v1670_v59, %v1798_v60  ;;  %v1862_v0 = vld [vmem:[#allocation2 + $0x2d1] ss:$2 sm:$0xff]  ;;  %1547 = vst.msk [vmem:[#allocation2 + $0xf8] sm:$0xff] %vm1515_vm3, %v1418_v55 }
 0x12d   : > { %v2046_v62 = vld [vmem:[#allocation3 + $0x58] sm:$0xff]  ;;  %v1668_v1 = vld [vmem:[#allocation2 + $0xc0] ss:$2 sm:$0xff]  ;;  %1611 = vst.msk [vmem:[#allocation2 + $0x2f8] sm:$0xff] %vm1515_vm3, %v1482_v56  ;;  %v1416_v2 = vmax.f32 %v992_v51, 0.0  ;;  %v1944_v5 = vmax.f32 %v1734_v61, %v1862_v0  ;;  %v1480_v9 = vmax.f32 %v1248_v52, 0.0 }
 0x12e   : > { %2334 = vst.msk [vmem:[%s3176_s27 + $0x48] sm:$0xf] %vm2315_vm4, %v2597_v57  ;;  %v2048_v3 = vmax.f32 %v2044_v54, %v2046_v62  ;;  %v2110_v4 = vld [vmem:[#allocation3 + $0x158] sm:$0xff]  ;;  %v1796_v7 = vld [vmem:[#allocation2 + $0xc1] ss:$2 sm:$0xff]  ;;  %v2045_v12 = vld [vmem:[#allocation3 + $0x50] sm:$0xff] }
 0x12f   : > { %v1732_v8 = vld [vmem:[#allocation2 + $0x2c0] ss:$2 sm:$0xff]  ;;  %v2112_v11 = vmax.f32 %v2108_v58, %v2110_v4  ;;  %1976 = vst.msk [vmem:[#allocation3 + $0x68] sm:$0xff] %vm1515_vm3, %v1912_v63  ;;  %v1911_v13 = vmax.f32 %v1668_v1, %v1796_v7  ;;  %v1860_v14 = vld [vmem:[#allocation2 + $0x2c1] ss:$2 sm:$0xff]  ;;  %1545 = vst.msk [vmem:[#allocation2 + $0xe8] sm:$0xff] %vm1515_vm3, %v1416_v2  ;;  %v2047_v17 = vmax.f32 %v2043_v10, %v2045_v12 }
 0x130   : > { %2050 = vst.msk [vmem:[#allocation4 + $0x28] sm:$0xff] %vm1515_vm3, %v2048_v3  ;;  %2008 = vst.msk [vmem:[#allocation3 + $0x168] sm:$0xff] %vm1515_vm3, %v1944_v5  ;;  %v1943_v18 = vmax.f32 %v1732_v8, %v1860_v14  ;;  %v1004_v21 = vpop.f32.mrb[33].mxu0  ;;  %v1260_v22 = vpop.f32.mrb[33].mxu1  ;;  %v2107_v23 = vld [vmem:[#allocation3 + $0x140] sm:$0xff]  ;;  %v2109_v24 = vld [vmem:[#allocation3 + $0x150] sm:$0xff] }
 0x131   : > { %1609 = vst.msk [vmem:[#allocation2 + $0x2e8] sm:$0xff] %vm1515_vm3, %v1480_v9  ;;  %2114 = vst.msk [vmem:[#allocation4 + $0xa8] sm:$0xff] %vm1515_vm3, %v2112_v11  ;;  %v1005_v25 = vadd.f32 %v3071_v6, %v1004_v21  ;;  %v1261_v26 = vadd.f32 %v3071_v6, %v1260_v22  ;;  %v2716_v27 = vpop.f32.mrb[34].mxu0  ;;  %v2780_v28 = vpop.f32.mrb[34].mxu1  ;;  %v2111_v29 = vmax.f32 %v2107_v23, %v2109_v24  ;;  %v1421_v30 = vmax.f32 %v1013_v19, 0.0 }
 0x132   : > { %1975 = vst.msk [vmem:[#allocation3 + $0x60] sm:$0xff] %vm1515_vm3, %v1911_v13  ;;  %2049 = vst.msk [vmem:[#allocation4 + $0x20] sm:$0xff] %vm1515_vm3, %v2047_v17  ;;  %v1485_v31 = vmax.f32 %v1269_v20, 0.0  ;;  %v1016_v32 = vadd.f32 %v2716_v27, %v3071_v6  ;;  %v1007_v33 = vpop.f32.mrb[35].mxu0  ;;  %v1263_v34 = vpop.f32.mrb[35].mxu1  ;;  %v1272_v37 = vadd.f32 %v2780_v28, %v3071_v6 }
 0x133   : > { %2007 = vst.msk [vmem:[#allocation3 + $0x160] sm:$0xff] %vm1515_vm3, %v1943_v18  ;;  %v1419_v35 = vmax.f32 %v1005_v25, 0.0  ;;  %v1483_v36 = vmax.f32 %v1261_v26, 0.0  ;;  %v1008_v38 = vadd.f32 %v3071_v6, %v1007_v33  ;;  %2113 = vst.msk [vmem:[#allocation4 + $0xa0] sm:$0xff] %vm1515_vm3, %v2111_v29  ;;  %v1674_v39 = vld [vmem:[#allocation2 + $0xf0] ss:$2 sm:$0xff]  ;;  %v1264_v42 = vadd.f32 %v3071_v6, %v1263_v34 }
 0x134   : > { %v1802_v40 = vld [vmem:[#allocation2 + $0xf1] ss:$2 sm:$0xff]  ;;  %v1738_v41 = vld [vmem:[#allocation2 + $0x2f0] ss:$2 sm:$0xff]  ;;  %1550 = vst.msk [vmem:[#allocation2 + $0x110] sm:$0xff] %vm1515_vm3, %v1421_v30  ;;  %1614 = vst.msk [vmem:[#allocation2 + $0x310] sm:$0xff] %vm1515_vm3, %v1485_v31 }
 0x135   : > { %v1914_v43 = vmax.f32 %v1674_v39, %v1802_v40  ;;  %v1866_v44 = vld [vmem:[#allocation2 + $0x2f1] ss:$2 sm:$0xff]  ;;  %1548 = vst.msk [vmem:[#allocation2 + $0x100] sm:$0xff] %vm1515_vm3, %v1419_v35  ;;  %1612 = vst.msk [vmem:[#allocation2 + $0x300] sm:$0xff] %vm1515_vm3, %v1483_v36  ;;  %v1422_v45 = vmax.f32 %v1016_v32, 0.0  ;;  %v1486_v46 = vmax.f32 %v1272_v37, 0.0 }
 0x136   : > { %v1420_v47 = vmax.f32 %v1008_v38, 0.0  ;;  %v2719_v48 = vpop.f32.mrb[36].mxu0  ;;  %v1946_v49 = vmax.f32 %v1738_v41, %v1866_v44  ;;  %v1672_v50 = vld [vmem:[#allocation2 + $0xe0] ss:$2 sm:$0xff]  ;;  %v1800_v51 = vld [vmem:[#allocation2 + $0xe1] ss:$2 sm:$0xff] }
 0x137   : > { %v1484_v52 = vmax.f32 %v1264_v42, 0.0  ;;  %v1029_v53 = vadd.f32 %v2719_v48, %v3071_v6  ;;  %v2160_v54 = vld [vmem:[#allocation4 + $0x28] sm:$0xff]  ;;  %1978 = vst.msk [vmem:[#allocation3 + $0x78] sm:$0xff] %vm1515_vm3, %v1914_v43  ;;  %v1913_v55 = vmax.f32 %v1672_v50, %v1800_v51  ;;  %1551 = vst.msk [vmem:[#allocation2 + $0x118] sm:$0xff] %vm1515_vm3, %v1422_v45  ;;  %v2783_v57 = vpop.f32.mrb[36].mxu1  ;;  %v1020_v58 = vpop.f32.mrb[37].mxu0 }
 0x138   : > { %v1736_v56 = vld [vmem:[#allocation2 + $0x2e0] ss:$2 sm:$0xff]  ;;  %1615 = vst.msk [vmem:[#allocation2 + $0x318] sm:$0xff] %vm1515_vm3, %v1486_v46  ;;  %1549 = vst.msk [vmem:[#allocation2 + $0x108] sm:$0xff] %vm1515_vm3, %v1420_v47  ;;  %v2584_v59 = vpack.c.bf16 %v2160_v54, %v2160_v54  ;;  %v1864_v61 = vld [vmem:[#allocation2 + $0x2e1] ss:$2 sm:$0xff]  ;;  %v1285_v63 = vadd.f32 %v2783_v57, %v3071_v6  ;;  %v1021_v0 = vadd.f32 %v3071_v6, %v1020_v58 }
 0x139   : > { %v2176_v60 = vld [vmem:[#allocation4 + $0xa8] sm:$0xff]  ;;  %2010 = vst.msk [vmem:[#allocation3 + $0x178] sm:$0xff] %vm1515_vm3, %v1946_v49  ;;  %1613 = vst.msk [vmem:[#allocation2 + $0x308] sm:$0xff] %vm1515_vm3, %v1484_v52  ;;  %v1425_v62 = vmax.f32 %v1029_v53, 0.0  ;;  %v1276_v1 = vpop.f32.mrb[37].mxu1  ;;  %v2159_v3 = vld [vmem:[#allocation4 + $0x20] sm:$0xff]  ;;  %v1945_v4 = vmax.f32 %v1736_v56, %v1864_v61 }
 0x13a   : > { %v2600_v2 = vpack.c.bf16 %v2176_v60, %v2176_v60  ;;  %1977 = vst.msk [vmem:[#allocation3 + $0x70] sm:$0xff] %vm1515_vm3, %v1913_v55  ;;  %v1277_v5 = vadd.f32 %v3071_v6, %v1276_v1  ;;  %v2720_v7 = vpop.f32.mrb[38].mxu0  ;;  %v2784_v8 = vpop.f32.mrb[38].mxu1  ;;  %v2583_v9 = vpack.c.bf16 %v2159_v3, %v2159_v3  ;;  %v1489_v10 = vmax.f32 %v1285_v63, 0.0  ;;  %v3294_v12 = vld [vmem:[%s3507_s2] ss:$0 sm:$0xff] }
 0x13b   : > { %2321 = vst.msk [vmem:[%s3176_s27 + $0x14] sm:$0xf] %vm2315_vm4, %v2584_v59  ;;  %v1423_v11 = vmax.f32 %v1021_v0, 0.0  ;;  %v1032_v13 = vadd.f32 %v3294_v12, %v2720_v7  ;;  %v1023_v14 = vpop.f32.mrb[39].mxu0  ;;  %v1279_v15 = vpop.f32.mrb[39].mxu1  ;;  %v2175_v6 = vld [vmem:[#allocation4 + $0xa0] sm:$0xff]  ;;  %v1288_v17 = vadd.f32 %v3294_v12, %v2784_v8 }
 0x13c   : > { %1554 = vst.msk [vmem:[#allocation2 + $0x130] sm:$0xff] %vm1515_vm3, %v1425_v62  ;;  %2009 = vst.msk [vmem:[#allocation3 + $0x170] sm:$0xff] %vm1515_vm3, %v1945_v4  ;;  %v1487_v16 = vmax.f32 %v1277_v5, 0.0  ;;  %v1024_v18 = vadd.f32 %v3294_v12, %v1023_v14  ;;  %v1280_v19 = vadd.f32 %v3294_v12, %v1279_v15  ;;  %v2599_v20 = vpack.c.bf16 %v2175_v6, %v2175_v6  ;;  %v2052_v21 = vld [vmem:[#allocation3 + $0x68] sm:$0xff]  ;;  %v2723_v23 = vpop.f32.mrb[40].mxu0  ;;  %v2787_v29 = vpop.f32.mrb[40].mxu1 }
 0x13d   : > { %2337 = vst.msk [vmem:[%s3176_s27 + $0x54] sm:$0xf] %vm2315_vm4, %v2600_v2  ;;  %2320 = vst.msk [vmem:[%s3176_s27 + $0x10] sm:$0xf] %vm2315_vm4, %v2583_v9  ;;  %v1426_v22 = vmax.f32 %v1032_v13, 0.0  ;;  %v2116_v24 = vld [vmem:[#allocation3 + $0x168] sm:$0xff]  ;;  %v1045_v28 = vadd.f32 %v3294_v12, %v2723_v23  ;;  %v1301_v35 = vadd.f32 %v3294_v12, %v2787_v29 }
 0x13e   : > { %1618 = vst.msk [vmem:[#allocation2 + $0x330] sm:$0xff] %vm1515_vm3, %v1489_v10  ;;  %1552 = vst.msk [vmem:[#allocation2 + $0x120] sm:$0xff] %vm1515_vm3, %v1423_v11  ;;  %v1490_v25 = vmax.f32 %v1288_v17, 0.0  ;;  %v1424_v26 = vmax.f32 %v1024_v18, 0.0  ;;  %v1488_v27 = vmax.f32 %v1280_v19, 0.0  ;;  %v1036_v30 = vpop.f32.mrb[41].mxu0 }
 0x13f   : > { %1616 = vst.msk [vmem:[#allocation2 + $0x320] sm:$0xff] %vm1515_vm3, %v1487_v16  ;;  %v2051_v31 = vld [vmem:[#allocation3 + $0x60] sm:$0xff]  ;;  %v2054_v32 = vld [vmem:[#allocation3 + $0x78] sm:$0xff]  ;;  %1555 = vst.msk [vmem:[#allocation2 + $0x138] sm:$0xff] %vm1515_vm3, %v1426_v22  ;;  %v1037_v36 = vadd.f32 %v3294_v12, %v1036_v30  ;;  %v1292_v37 = vpop.f32.mrb[41].mxu1  ;;  %v1429_v43 = vmax.f32 %v1045_v28, 0.0 }
 0x140   : > { %2336 = vst.msk [vmem:[%s3176_s27 + $0x50] sm:$0xf] %vm2315_vm4, %v2599_v20  ;;  %v1678_v33 = vld [vmem:[#allocation2 + $0x110] ss:$2 sm:$0xff]  ;;  %v1806_v34 = vld [vmem:[#allocation2 + $0x111] ss:$2 sm:$0xff]  ;;  %v2056_v38 = vmax.f32 %v2052_v21, %v2054_v32  ;;  %v1293_v44 = vadd.f32 %v3294_v12, %v1292_v37 }
 0x141   : > { %v2118_v39 = vld [vmem:[#allocation3 + $0x178] sm:$0xff]  ;;  %v1916_v40 = vmax.f32 %v1678_v33, %v1806_v34  ;;  %1619 = vst.msk [vmem:[#allocation2 + $0x338] sm:$0xff] %vm1515_vm3, %v1490_v25  ;;  %1553 = vst.msk [vmem:[#allocation2 + $0x128] sm:$0xff] %vm1515_vm3, %v1424_v26  ;;  %v2053_v46 = vld [vmem:[#allocation3 + $0x70] sm:$0xff]  ;;  %v1493_v50 = vmax.f32 %v1301_v35, 0.0  ;;  %v1427_v55 = vmax.f32 %v1037_v36, 0.0 }
 0x142   : > { %v1742_v41 = vld [vmem:[#allocation2 + $0x310] ss:$2 sm:$0xff]  ;;  %v1870_v42 = vld [vmem:[#allocation2 + $0x311] ss:$2 sm:$0xff]  ;;  %1617 = vst.msk [vmem:[#allocation2 + $0x328] sm:$0xff] %vm1515_vm3, %v1488_v27  ;;  %v2120_v45 = vmax.f32 %v2116_v24, %v2118_v39  ;;  %2058 = vst.msk [vmem:[#allocation4 + $0x38] sm:$0xff] %vm1515_vm3, %v2056_v38  ;;  %v2055_v51 = vmax.f32 %v2051_v31, %v2053_v46 }
 0x143   : > { %v1948_v47 = vmax.f32 %v1742_v41, %v1870_v42  ;;  %v1676_v48 = vld [vmem:[#allocation2 + $0x100] ss:$2 sm:$0xff]  ;;  %v1804_v49 = vld [vmem:[#allocation2 + $0x101] ss:$2 sm:$0xff]  ;;  %1980 = vst.msk [vmem:[#allocation3 + $0x88] sm:$0xff] %vm1515_vm3, %v1916_v40  ;;  %1558 = vst.msk [vmem:[#allocation2 + $0x150] sm:$0xff] %vm1515_vm3, %v1429_v43 }
 0x144   : > { %v1915_v52 = vmax.f32 %v1676_v48, %v1804_v49  ;;  %v1740_v53 = vld [vmem:[#allocation2 + $0x300] ss:$2 sm:$0xff]  ;;  %v1868_v54 = vld [vmem:[#allocation2 + $0x301] ss:$2 sm:$0xff]  ;;  %v1491_v56 = vmax.f32 %v1293_v44, 0.0  ;;  %2122 = vst.msk [vmem:[#allocation4 + $0xb8] sm:$0xff] %vm1515_vm3, %v2120_v45 }
 0x145   : > { %v2115_v57 = vld [vmem:[#allocation3 + $0x160] sm:$0xff]  ;;  %v2117_v58 = vld [vmem:[#allocation3 + $0x170] sm:$0xff]  ;;  %2012 = vst.msk [vmem:[#allocation3 + $0x188] sm:$0xff] %vm1515_vm3, %v1948_v47  ;;  %v1947_v59 = vmax.f32 %v1740_v53, %v1868_v54  ;;  %1622 = vst.msk [vmem:[#allocation2 + $0x350] sm:$0xff] %vm1515_vm3, %v1493_v50  ;;  %v2724_v60 = vpop.f32.mrb[42].mxu0  ;;  %v2788_v61 = vpop.f32.mrb[42].mxu1 }
 0x146   : > { %2057 = vst.msk [vmem:[#allocation4 + $0x30] sm:$0xff] %vm1515_vm3, %v2055_v51  ;;  %v2119_v62 = vmax.f32 %v2115_v57, %v2117_v58  ;;  %1979 = vst.msk [vmem:[#allocation3 + $0x80] sm:$0xff] %vm1515_vm3, %v1915_v52  ;;  %v1048_v63 = vadd.f32 %v3294_v12, %v2724_v60  ;;  %v1304_v0 = vadd.f32 %v3294_v12, %v2788_v61  ;;  %v1039_v1 = vpop.f32.mrb[43].mxu0  ;;  %v1295_v2 = vpop.f32.mrb[43].mxu1  ;;  %v1682_v7 = vld [vmem:[#allocation2 + $0x130] ss:$2 sm:$0xff] }
 0x147   : > { %1556 = vst.msk [vmem:[#allocation2 + $0x140] sm:$0xff] %vm1515_vm3, %v1427_v55  ;;  %1620 = vst.msk [vmem:[#allocation2 + $0x340] sm:$0xff] %vm1515_vm3, %v1491_v56  ;;  %v1040_v3 = vadd.f32 %v3294_v12, %v1039_v1  ;;  %v1296_v4 = vadd.f32 %v3294_v12, %v1295_v2  ;;  %v2727_v5 = vpop.f32.mrb[44].mxu0  ;;  %v1810_v8 = vld [vmem:[#allocation2 + $0x131] ss:$2 sm:$0xff]  ;;  %v2791_v25 = vpop.f32.mrb[44].mxu1 }
 0x148   : > { %2011 = vst.msk [vmem:[#allocation3 + $0x180] sm:$0xff] %vm1515_vm3, %v1947_v59  ;;  %2121 = vst.msk [vmem:[#allocation4 + $0xb0] sm:$0xff] %vm1515_vm3, %v2119_v62  ;;  %v1430_v9 = vmax.f32 %v1048_v63, 0.0  ;;  %v1494_v10 = vmax.f32 %v1304_v0, 0.0  ;;  %v1061_v11 = vadd.f32 %v3294_v12, %v2727_v5  ;;  %v1918_v13 = vmax.f32 %v1682_v7, %v1810_v8  ;;  %v1746_v14 = vld [vmem:[#allocation2 + $0x330] ss:$2 sm:$0xff] }
 0x149   : > { %v1874_v15 = vld [vmem:[#allocation2 + $0x331] ss:$2 sm:$0xff]  ;;  %v1680_v6 = vld [vmem:[#allocation2 + $0x120] ss:$2 sm:$0xff]  ;;  %v1808_v17 = vld [vmem:[#allocation2 + $0x121] ss:$2 sm:$0xff]  ;;  %v1317_v30 = vadd.f32 %v3294_v12, %v2791_v25 }
 0x14a   : > { %v1950_v16 = vmax.f32 %v1746_v14, %v1874_v15  ;;  %v1744_v18 = vld [vmem:[#allocation2 + $0x320] ss:$2 sm:$0xff]  ;;  %v1872_v19 = vld [vmem:[#allocation2 + $0x321] ss:$2 sm:$0xff]  ;;  %1559 = vst.msk [vmem:[#allocation2 + $0x158] sm:$0xff] %vm1515_vm3, %v1430_v9  ;;  %1623 = vst.msk [vmem:[#allocation2 + $0x358] sm:$0xff] %vm1515_vm3, %v1494_v10  ;;  %v1917_v21 = vmax.f32 %v1680_v6, %v1808_v17 }
 0x14b   : > { %v2162_v20 = vld [vmem:[#allocation4 + $0x38] sm:$0xff]  ;;  %1982 = vst.msk [vmem:[#allocation3 + $0x98] sm:$0xff] %vm1515_vm3, %v1918_v13  ;;  %v1949_v22 = vmax.f32 %v1744_v18, %v1872_v19  ;;  %v1428_v23 = vmax.f32 %v1040_v3, 0.0  ;;  %v1492_v24 = vmax.f32 %v1296_v4, 0.0  ;;  %v1052_v26 = vpop.f32.mrb[45].mxu0  ;;  %v1433_v29 = vmax.f32 %v1061_v11, 0.0 }
 0x14c   : > { %v2586_v27 = vpack.c.bf16 %v2162_v20, %v2162_v20  ;;  %v2178_v28 = vld [vmem:[#allocation4 + $0xb8] sm:$0xff]  ;;  %2014 = vst.msk [vmem:[#allocation3 + $0x198] sm:$0xff] %vm1515_vm3, %v1950_v16  ;;  %v1053_v31 = vadd.f32 %v3294_v12, %v1052_v26  ;;  %v1308_v32 = vpop.f32.mrb[45].mxu1  ;;  %v2728_v33 = vpop.f32.mrb[46].mxu0  ;;  %1981 = vst.msk [vmem:[#allocation3 + $0x90] sm:$0xff] %vm1515_vm3, %v1917_v21  ;;  %v1497_v41 = vmax.f32 %v1317_v30, 0.0 }
 0x14d   : > { %v2602_v34 = vpack.c.bf16 %v2178_v28, %v2178_v28  ;;  %v2161_v35 = vld [vmem:[#allocation4 + $0x30] sm:$0xff]  ;;  %2013 = vst.msk [vmem:[#allocation3 + $0x190] sm:$0xff] %vm1515_vm3, %v1949_v22  ;;  %1557 = vst.msk [vmem:[#allocation2 + $0x148] sm:$0xff] %vm1515_vm3, %v1428_v23  ;;  %v1309_v36 = vadd.f32 %v3294_v12, %v1308_v32  ;;  %v1064_v37 = vadd.f32 %v3294_v12, %v2728_v33  ;;  %v2792_v38 = vpop.f32.mrb[46].mxu1  ;;  %v1055_v39 = vpop.f32.mrb[47].mxu0  ;;  %v2060_v52 = vld [vmem:[#allocation3 + $0x88] sm:$0xff] }
 0x14e   : > { %1621 = vst.msk [vmem:[#allocation2 + $0x348] sm:$0xff] %vm1515_vm3, %v1492_v24  ;;  %v2585_v40 = vpack.c.bf16 %v2161_v35, %v2161_v35  ;;  %1562 = vst.msk [vmem:[#allocation2 + $0x170] sm:$0xff] %vm1515_vm3, %v1433_v29  ;;  %v1431_v42 = vmax.f32 %v1053_v31, 0.0  ;;  %v1320_v43 = vadd.f32 %v3294_v12, %v2792_v38  ;;  %v1311_v44 = vpop.f32.mrb[47].mxu1  ;;  %v1056_v48 = vadd.f32 %v3294_v12, %v1055_v39  ;;  %v2731_v50 = vpop.f32.mrb[48].mxu0  ;;  %v2124_v57 = vld [vmem:[#allocation3 + $0x188] sm:$0xff] }
 0x14f   : > { %2323 = vst.msk [vmem:[%s3176_s27 + $0x1c] sm:$0xf] %vm2315_vm4, %v2586_v27  ;;  %2339 = vst.msk [vmem:[%s3176_s27 + $0x5c] sm:$0xf] %vm2315_vm4, %v2602_v34  ;;  %v2177_v45 = vld [vmem:[#allocation4 + $0xb0] sm:$0xff]  ;;  %v1495_v46 = vmax.f32 %v1309_v36, 0.0  ;;  %v1312_v49 = vadd.f32 %v3294_v12, %v1311_v44  ;;  %v1077_v54 = vadd.f32 %v3294_v12, %v2731_v50 }
 0x150   : > { %v1434_v47 = vmax.f32 %v1064_v37, 0.0  ;;  %2322 = vst.msk [vmem:[%s3176_s27 + $0x18] sm:$0xf] %vm2315_vm4, %v2585_v40  ;;  %v2601_v51 = vpack.c.bf16 %v2177_v45, %v2177_v45  ;;  %v1498_v53 = vmax.f32 %v1320_v43, 0.0  ;;  %v2795_v55 = vpop.f32.mrb[48].mxu1  ;;  %v1068_v56 = vpop.f32.mrb[49].mxu0 }
 0x151   : > { %1626 = vst.msk [vmem:[#allocation2 + $0x370] sm:$0xff] %vm1515_vm3, %v1497_v41  ;;  %1560 = vst.msk [vmem:[#allocation2 + $0x160] sm:$0xff] %vm1515_vm3, %v1431_v42  ;;  %v1686_v58 = vld [vmem:[#allocation2 + $0x150] ss:$2 sm:$0xff]  ;;  %v1814_v59 = vld [vmem:[#allocation2 + $0x151] ss:$2 sm:$0xff]  ;;  %v1333_v61 = vadd.f32 %v3294_v12, %v2795_v55  ;;  %v1069_v62 = vadd.f32 %v3294_v12, %v1068_v56 }
 0x152   : > { %v1750_v60 = vld [vmem:[#allocation2 + $0x350] ss:$2 sm:$0xff]  ;;  %1624 = vst.msk [vmem:[#allocation2 + $0x360] sm:$0xff] %vm1515_vm3, %v1495_v46  ;;  %1563 = vst.msk [vmem:[#allocation2 + $0x178] sm:$0xff] %vm1515_vm3, %v1434_v47  ;;  %v2059_v63 = vld [vmem:[#allocation3 + $0x80] sm:$0xff]  ;;  %v1920_v1 = vmax.f32 %v1686_v58, %v1814_v59  ;;  %v1432_v3 = vmax.f32 %v1056_v48, 0.0 }
 0x153   : > { %2338 = vst.msk [vmem:[%s3176_s27 + $0x58] sm:$0xf] %vm2315_vm4, %v2601_v51  ;;  %v2062_v0 = vld [vmem:[#allocation3 + $0x98] sm:$0xff]  ;;  %v1496_v4 = vmax.f32 %v1312_v49, 0.0  ;;  %v1437_v5 = vmax.f32 %v1077_v54, 0.0  ;;  %v2123_v7 = vld [vmem:[#allocation3 + $0x180] sm:$0xff] }
 0x154   : > { %v1878_v2 = vld [vmem:[#allocation2 + $0x351] ss:$2 sm:$0xff]  ;;  %1627 = vst.msk [vmem:[#allocation2 + $0x378] sm:$0xff] %vm1515_vm3, %v1498_v53  ;;  %v2064_v8 = vmax.f32 %v2060_v52, %v2062_v0  ;;  %v1501_v11 = vmax.f32 %v1333_v61, 0.0  ;;  %v1435_v13 = vmax.f32 %v1069_v62, 0.0  ;;  %v1324_v14 = vpop.f32.mrb[49].mxu1 }
 0x155   : > { %v2126_v9 = vld [vmem:[#allocation3 + $0x198] sm:$0xff]  ;;  %v1952_v10 = vmax.f32 %v1750_v60, %v1878_v2  ;;  %v2732_v15 = vpop.f32.mrb[50].mxu0  ;;  %v2061_v16 = vld [vmem:[#allocation3 + $0x90] sm:$0xff]  ;;  %1984 = vst.msk [vmem:[#allocation3 + $0xa8] sm:$0xff] %vm1515_vm3, %v1920_v1  ;;  %v1684_v18 = vld [vmem:[#allocation2 + $0x140] ss:$2 sm:$0xff]  ;;  %v1325_v19 = vadd.f32 %v3294_v12, %v1324_v14 }
 0x156   : > { %v2128_v6 = vmax.f32 %v2124_v57, %v2126_v9  ;;  %v2125_v17 = vld [vmem:[#allocation3 + $0x190] sm:$0xff]  ;;  %1561 = vst.msk [vmem:[#allocation2 + $0x168] sm:$0xff] %vm1515_vm3, %v1432_v3  ;;  %1625 = vst.msk [vmem:[#allocation2 + $0x368] sm:$0xff] %vm1515_vm3, %v1496_v4  ;;  %v1080_v20 = vadd.f32 %v3294_v12, %v2732_v15  ;;  %v2796_v21 = vpop.f32.mrb[50].mxu1  ;;  %v1071_v22 = vpop.f32.mrb[51].mxu0  ;;  %v2063_v23 = vmax.f32 %v2059_v63, %v2061_v16 }
 0x157   : > { %1566 = vst.msk [vmem:[#allocation2 + $0x190] sm:$0xff] %vm1515_vm3, %v1437_v5  ;;  %2066 = vst.msk [vmem:[#allocation4 + $0x48] sm:$0xff] %vm1515_vm3, %v2064_v8  ;;  %v2127_v24 = vmax.f32 %v2123_v7, %v2125_v17  ;;  %v1812_v25 = vld [vmem:[#allocation2 + $0x141] ss:$2 sm:$0xff]  ;;  %v1748_v26 = vld [vmem:[#allocation2 + $0x340] ss:$2 sm:$0xff]  ;;  %v1336_v28 = vadd.f32 %v3294_v12, %v2796_v21  ;;  %v1072_v29 = vadd.f32 %v3294_v12, %v1071_v22 }
 0x158   : > { %2016 = vst.msk [vmem:[#allocation3 + $0x1a8] sm:$0xff] %vm1515_vm3, %v1952_v10  ;;  %v1876_v27 = vld [vmem:[#allocation2 + $0x341] ss:$2 sm:$0xff]  ;;  %1630 = vst.msk [vmem:[#allocation2 + $0x390] sm:$0xff] %vm1515_vm3, %v1501_v11  ;;  %v1919_v30 = vmax.f32 %v1684_v18, %v1812_v25  ;;  %v1499_v32 = vmax.f32 %v1325_v19, 0.0  ;;  %v1438_v33 = vmax.f32 %v1080_v20, 0.0 }
 0x159   : > { %1564 = vst.msk [vmem:[#allocation2 + $0x180] sm:$0xff] %vm1515_vm3, %v1435_v13  ;;  %2130 = vst.msk [vmem:[#allocation4 + $0xc8] sm:$0xff] %vm1515_vm3, %v2128_v6  ;;  %v1951_v31 = vmax.f32 %v1748_v26, %v1876_v27  ;;  %v1327_v34 = vpop.f32.mrb[51].mxu1  ;;  %v1502_v35 = vmax.f32 %v1336_v28, 0.0  ;;  %v1436_v36 = vmax.f32 %v1072_v29, 0.0  ;;  %v2735_v38 = vpop.f32.mrb[52].mxu0 }
 0x15a   : > { %2065 = vst.msk [vmem:[#allocation4 + $0x40] sm:$0xff] %vm1515_vm3, %v2063_v23  ;;  %2129 = vst.msk [vmem:[#allocation4 + $0xc0] sm:$0xff] %vm1515_vm3, %v2127_v24  ;;  %v1328_v37 = vadd.f32 %v3294_v12, %v1327_v34  ;;  %v1690_v39 = vld [vmem:[#allocation2 + $0x170] ss:$2 sm:$0xff]  ;;  %v1818_v40 = vld [vmem:[#allocation2 + $0x171] ss:$2 sm:$0xff]  ;;  %v1093_v41 = vadd.f32 %v3294_v12, %v2735_v38 }
 0x15b   : > { %1983 = vst.msk [vmem:[#allocation3 + $0xa0] sm:$0xff] %vm1515_vm3, %v1919_v30  ;;  %2015 = vst.msk [vmem:[#allocation3 + $0x1a0] sm:$0xff] %vm1515_vm3, %v1951_v31  ;;  %v2799_v42 = vpop.f32.mrb[52].mxu1  ;;  %v1084_v43 = vpop.f32.mrb[53].mxu0  ;;  %v1922_v44 = vmax.f32 %v1690_v39, %v1818_v40  ;;  %v1754_v45 = vld [vmem:[#allocation2 + $0x370] ss:$2 sm:$0xff] }
 0x15c   : > { %1628 = vst.msk [vmem:[#allocation2 + $0x380] sm:$0xff] %vm1515_vm3, %v1499_v32  ;;  %1567 = vst.msk [vmem:[#allocation2 + $0x198] sm:$0xff] %vm1515_vm3, %v1438_v33  ;;  %v1882_v46 = vld [vmem:[#allocation2 + $0x371] ss:$2 sm:$0xff]  ;;  %v1500_v47 = vmax.f32 %v1328_v37, 0.0  ;;  %v1349_v48 = vadd.f32 %v3294_v12, %v2799_v42  ;;  %v1085_v49 = vadd.f32 %v3294_v12, %v1084_v43  ;;  %v1340_v50 = vpop.f32.mrb[53].mxu1 }
 0x15d   : > { %1631 = vst.msk [vmem:[#allocation2 + $0x398] sm:$0xff] %vm1515_vm3, %v1502_v35  ;;  %1565 = vst.msk [vmem:[#allocation2 + $0x188] sm:$0xff] %vm1515_vm3, %v1436_v36  ;;  %v1954_v51 = vmax.f32 %v1754_v45, %v1882_v46  ;;  %v1441_v52 = vmax.f32 %v1093_v41, 0.0  ;;  %v1341_v53 = vadd.f32 %v3294_v12, %v1340_v50  ;;  %v2736_v54 = vpop.f32.mrb[54].mxu0  ;;  %v2800_v55 = vpop.f32.mrb[54].mxu1  ;;  %v2068_v20 = vld [vmem:[#allocation3 + $0xa8] sm:$0xff] }
 0x15e   : > { %1986 = vst.msk [vmem:[#allocation3 + $0xb8] sm:$0xff] %vm1515_vm3, %v1922_v44  ;;  %v1688_v56 = vld [vmem:[#allocation2 + $0x160] ss:$2 sm:$0xff]  ;;  %v1816_v57 = vld [vmem:[#allocation2 + $0x161] ss:$2 sm:$0xff]  ;;  %1629 = vst.msk [vmem:[#allocation2 + $0x388] sm:$0xff] %vm1515_vm3, %v1500_v47  ;;  %v1096_v59 = vadd.f32 %v3294_v12, %v2736_v54  ;;  %v1352_v60 = vadd.f32 %v3294_v12, %v2800_v55 }
 0x15f   : > { %v1505_v58 = vmax.f32 %v1349_v48, 0.0  ;;  %v2164_v61 = vld [vmem:[#allocation4 + $0x48] sm:$0xff]  ;;  %2018 = vst.msk [vmem:[#allocation3 + $0x1b8] sm:$0xff] %vm1515_vm3, %v1954_v51  ;;  %v1921_v62 = vmax.f32 %v1688_v56, %v1816_v57  ;;  %1570 = vst.msk [vmem:[#allocation2 + $0x1b0] sm:$0xff] %vm1515_vm3, %v1441_v52  ;;  %v1439_v0 = vmax.f32 %v1085_v49, 0.0  ;;  %v1503_v1 = vmax.f32 %v1341_v53, 0.0 }
 0x160   : > { %v1752_v63 = vld [vmem:[#allocation2 + $0x360] ss:$2 sm:$0xff]  ;;  %v2588_v2 = vpack.c.bf16 %v2164_v61, %v2164_v61  ;;  %v1880_v4 = vld [vmem:[#allocation2 + $0x361] ss:$2 sm:$0xff]  ;;  %v1442_v5 = vmax.f32 %v1096_v59, 0.0  ;;  %v1506_v7 = vmax.f32 %v1352_v60, 0.0 }
 0x161   : > { %v2180_v3 = vld [vmem:[#allocation4 + $0xc8] sm:$0xff]  ;;  %1634 = vst.msk [vmem:[#allocation2 + $0x3b0] sm:$0xff] %vm1515_vm3, %v1505_v58  ;;  %v1087_v8 = vpop.f32.mrb[55].mxu0  ;;  %v2163_v10 = vld [vmem:[#allocation4 + $0x40] sm:$0xff]  ;;  %1985 = vst.msk [vmem:[#allocation3 + $0xb0] sm:$0xff] %vm1515_vm3, %v1921_v62  ;;  %v1953_v13 = vmax.f32 %v1752_v63, %v1880_v4  ;;  %v1343_v15 = vpop.f32.mrb[55].mxu1 }
 0x162   : > { %v2604_v9 = vpack.c.bf16 %v2180_v3, %v2180_v3  ;;  %v2179_v11 = vld [vmem:[#allocation4 + $0xc0] sm:$0xff]  ;;  %1568 = vst.msk [vmem:[#allocation2 + $0x1a0] sm:$0xff] %vm1515_vm3, %v1439_v0  ;;  %1632 = vst.msk [vmem:[#allocation2 + $0x3a0] sm:$0xff] %vm1515_vm3, %v1503_v1  ;;  %v1088_v14 = vadd.f32 %v3294_v12, %v1087_v8  ;;  %v2587_v6 = vpack.c.bf16 %v2163_v10, %v2163_v10  ;;  %v2739_v19 = vpop.f32.mrb[56].mxu0  ;;  %v2132_v36 = vld [vmem:[#allocation3 + $0x1a8] sm:$0xff]  ;;  %v2803_v40 = vpop.f32.mrb[56].mxu1 }
 0x163   : > { %2325 = vst.msk [vmem:[%s3176_s27 + $0x24] sm:$0xf] %vm2315_vm4, %v2588_v2  ;;  %v2603_v16 = vpack.c.bf16 %v2179_v11, %v2179_v11  ;;  %v1694_v17 = vld [vmem:[#allocation2 + $0x190] ss:$2 sm:$0xff]  ;;  %v1344_v18 = vadd.f32 %v3294_v12, %v1343_v15  ;;  %v1822_v21 = vld [vmem:[#allocation2 + $0x191] ss:$2 sm:$0xff]  ;;  %v1109_v24 = vadd.f32 %v3294_v12, %v2739_v19  ;;  %v1365_v43 = vadd.f32 %v3294_v12, %v2803_v40 }
 0x164   : > { %1571 = vst.msk [vmem:[#allocation2 + $0x1b8] sm:$0xff] %vm1515_vm3, %v1442_v5  ;;  %1635 = vst.msk [vmem:[#allocation2 + $0x3b8] sm:$0xff] %vm1515_vm3, %v1506_v7  ;;  %v1758_v22 = vld [vmem:[#allocation2 + $0x390] ss:$2 sm:$0xff]  ;;  %v1886_v23 = vld [vmem:[#allocation2 + $0x391] ss:$2 sm:$0xff]  ;;  %v1924_v25 = vmax.f32 %v1694_v17, %v1822_v21 }
 0x165   : > { %2341 = vst.msk [vmem:[%s3176_s27 + $0x64] sm:$0xf] %vm2315_vm4, %v2604_v9  ;;  %2324 = vst.msk [vmem:[%s3176_s27 + $0x20] sm:$0xf] %vm2315_vm4, %v2587_v6  ;;  %v1956_v26 = vmax.f32 %v1758_v22, %v1886_v23  ;;  %v1692_v27 = vld [vmem:[#allocation2 + $0x180] ss:$2 sm:$0xff] }
 0x166   : > { %2017 = vst.msk [vmem:[#allocation3 + $0x1b0] sm:$0xff] %vm1515_vm3, %v1953_v13  ;;  %v1820_v28 = vld [vmem:[#allocation2 + $0x181] ss:$2 sm:$0xff]  ;;  %v1440_v29 = vmax.f32 %v1088_v14, 0.0  ;;  %v1504_v30 = vmax.f32 %v1344_v18, 0.0  ;;  %v2070_v31 = vld [vmem:[#allocation3 + $0xb8] sm:$0xff] }
 0x167   : > { %2340 = vst.msk [vmem:[%s3176_s27 + $0x60] sm:$0xf] %vm2315_vm4, %v2603_v16  ;;  %v1923_v32 = vmax.f32 %v1692_v27, %v1820_v28  ;;  %v1756_v33 = vld [vmem:[#allocation2 + $0x380] ss:$2 sm:$0xff]  ;;  %v1884_v34 = vld [vmem:[#allocation2 + $0x381] ss:$2 sm:$0xff]  ;;  %v2072_v37 = vmax.f32 %v2068_v20, %v2070_v31 }
 0x168   : > { %v1445_v35 = vmax.f32 %v1109_v24, 0.0  ;;  %v2134_v38 = vld [vmem:[#allocation3 + $0x1b8] sm:$0xff]  ;;  %1988 = vst.msk [vmem:[#allocation3 + $0xc8] sm:$0xff] %vm1515_vm3, %v1924_v25  ;;  %2020 = vst.msk [vmem:[#allocation3 + $0x1c8] sm:$0xff] %vm1515_vm3, %v1956_v26  ;;  %v1955_v39 = vmax.f32 %v1756_v33, %v1884_v34  ;;  %v1100_v41 = vpop.f32.mrb[57].mxu0  ;;  %v1356_v45 = vpop.f32.mrb[57].mxu1 }
 0x169   : > { %1569 = vst.msk [vmem:[#allocation2 + $0x1a8] sm:$0xff] %vm1515_vm3, %v1440_v29  ;;  %1633 = vst.msk [vmem:[#allocation2 + $0x3a8] sm:$0xff] %vm1515_vm3, %v1504_v30  ;;  %v2136_v42 = vmax.f32 %v2132_v36, %v2134_v38  ;;  %v1101_v44 = vadd.f32 %v3294_v12, %v1100_v41  ;;  %v2740_v46 = vpop.f32.mrb[58].mxu0  ;;  %v2067_v47 = vld [vmem:[#allocation3 + $0xa0] sm:$0xff]  ;;  %v2069_v49 = vld [vmem:[#allocation3 + $0xb0] sm:$0xff]  ;;  %v1357_v50 = vadd.f32 %v3294_v12, %v1356_v45  ;;  %v2804_v52 = vpop.f32.mrb[58].mxu1 }
 0x16a   : > { %1987 = vst.msk [vmem:[#allocation3 + $0xc0] sm:$0xff] %vm1515_vm3, %v1923_v32  ;;  %1574 = vst.msk [vmem:[#allocation2 + $0x1d0] sm:$0xff] %vm1515_vm3, %v1445_v35  ;;  %v2131_v48 = vld [vmem:[#allocation3 + $0x1a0] sm:$0xff]  ;;  %v1112_v51 = vadd.f32 %v3294_v12, %v2740_v46  ;;  %v1103_v53 = vpop.f32.mrb[59].mxu0  ;;  %v2071_v54 = vmax.f32 %v2067_v47, %v2069_v49  ;;  %v1368_v58 = vadd.f32 %v3294_v12, %v2804_v52  ;;  %v1509_v63 = vmax.f32 %v1365_v43, 0.0  ;;  %v1359_v7 = vpop.f32.mrb[59].mxu1 }
 0x16b   : > { %2074 = vst.msk [vmem:[#allocation4 + $0x58] sm:$0xff] %vm1515_vm3, %v2072_v37  ;;  %2019 = vst.msk [vmem:[#allocation3 + $0x1c0] sm:$0xff] %vm1515_vm3, %v1955_v39  ;;  %v1698_v55 = vld [vmem:[#allocation2 + $0x1b0] ss:$2 sm:$0xff]  ;;  %v1826_v56 = vld [vmem:[#allocation2 + $0x1b1] ss:$2 sm:$0xff]  ;;  %v1104_v59 = vadd.f32 %v3294_v12, %v1103_v53  ;;  %v1360_v10 = vadd.f32 %v3294_v12, %v1359_v7 }
 0x16c   : > { %2138 = vst.msk [vmem:[#allocation4 + $0xd8] sm:$0xff] %vm1515_vm3, %v2136_v42  ;;  %v1762_v57 = vld [vmem:[#allocation2 + $0x3b0] ss:$2 sm:$0xff]  ;;  %v1926_v61 = vmax.f32 %v1698_v55, %v1826_v56  ;;  %v1890_v62 = vld [vmem:[#allocation2 + $0x3b1] ss:$2 sm:$0xff]  ;;  %v1443_v0 = vmax.f32 %v1101_v44, 0.0 }
 0x16d   : > { %v2133_v60 = vld [vmem:[#allocation3 + $0x1b0] sm:$0xff]  ;;  %v1507_v1 = vmax.f32 %v1357_v50, 0.0  ;;  %2073 = vst.msk [vmem:[#allocation4 + $0x50] sm:$0xff] %vm1515_vm3, %v2071_v54  ;;  %v1958_v3 = vmax.f32 %v1762_v57, %v1890_v62  ;;  %v1446_v4 = vmax.f32 %v1112_v51, 0.0  ;;  %v1510_v5 = vmax.f32 %v1368_v58, 0.0  ;;  %v2743_v8 = vpop.f32.mrb[60].mxu0 }
 0x16e   : > { %v2135_v2 = vmax.f32 %v2131_v48, %v2133_v60  ;;  %1990 = vst.msk [vmem:[#allocation3 + $0xd8] sm:$0xff] %vm1515_vm3, %v1926_v61  ;;  %1638 = vst.msk [vmem:[#allocation2 + $0x3d0] sm:$0xff] %vm1515_vm3, %v1509_v63  ;;  %v1444_v9 = vmax.f32 %v1104_v59, 0.0  ;;  %v1125_v11 = vadd.f32 %v3294_v12, %v2743_v8  ;;  %v2807_v13 = vpop.f32.mrb[60].mxu1  ;;  %v1116_v14 = vpop.f32.mrb[61].mxu0  ;;  %v1508_v21 = vmax.f32 %v1360_v10, 0.0 }
 0x16f   : > { %1572 = vst.msk [vmem:[#allocation2 + $0x1c0] sm:$0xff] %vm1515_vm3, %v1443_v0  ;;  %1636 = vst.msk [vmem:[#allocation2 + $0x3c0] sm:$0xff] %vm1515_vm3, %v1507_v1  ;;  %v1381_v6 = vadd.f32 %v3294_v12, %v2807_v13  ;;  %v1117_v16 = vadd.f32 %v3294_v12, %v1116_v14  ;;  %v1372_v17 = vpop.f32.mrb[61].mxu1  ;;  %v2744_v18 = vpop.f32.mrb[62].mxu0  ;;  %v2076_v44 = vld [vmem:[#allocation3 + $0xc8] sm:$0xff] }
 0x170   : > { %2137 = vst.msk [vmem:[#allocation4 + $0xd0] sm:$0xff] %vm1515_vm3, %v2135_v2  ;;  %2022 = vst.msk [vmem:[#allocation3 + $0x1d8] sm:$0xff] %vm1515_vm3, %v1958_v3  ;;  %v1696_v15 = vld [vmem:[#allocation2 + $0x1a0] ss:$2 sm:$0xff]  ;;  %v1824_v19 = vld [vmem:[#allocation2 + $0x1a1] ss:$2 sm:$0xff]  ;;  %v1373_v22 = vadd.f32 %v3294_v12, %v1372_v17  ;;  %v1128_v23 = vadd.f32 %v3294_v12, %v2744_v18 }
 0x171   : > { %1575 = vst.msk [vmem:[#allocation2 + $0x1d8] sm:$0xff] %vm1515_vm3, %v1446_v4  ;;  %1639 = vst.msk [vmem:[#allocation2 + $0x3d8] sm:$0xff] %vm1515_vm3, %v1510_v5  ;;  %v1760_v20 = vld [vmem:[#allocation2 + $0x3a0] ss:$2 sm:$0xff]  ;;  %v1925_v25 = vmax.f32 %v1696_v15, %v1824_v19  ;;  %v1888_v26 = vld [vmem:[#allocation2 + $0x3a1] ss:$2 sm:$0xff] }
 0x172   : > { %1573 = vst.msk [vmem:[#allocation2 + $0x1c8] sm:$0xff] %vm1515_vm3, %v1444_v9  ;;  %v2166_v24 = vld [vmem:[#allocation4 + $0x58] sm:$0xff]  ;;  %v1449_v27 = vmax.f32 %v1125_v11, 0.0  ;;  %v1513_v28 = vmax.f32 %v1381_v6, 0.0  ;;  %v1957_v31 = vmax.f32 %v1760_v20, %v1888_v26  ;;  %1637 = vst.msk [vmem:[#allocation2 + $0x3c8] sm:$0xff] %vm1515_vm3, %v1508_v21  ;;  %v1447_v32 = vmax.f32 %v1117_v16, 0.0 }
 0x173   : > { %v2590_v29 = vpack.c.bf16 %v2166_v24, %v2166_v24  ;;  %v2182_v30 = vld [vmem:[#allocation4 + $0xd8] sm:$0xff]  ;;  %v1511_v33 = vmax.f32 %v1373_v22, 0.0  ;;  %v2808_v34 = vpop.f32.mrb[62].mxu1  ;;  %v1119_v35 = vpop.f32.mrb[63].mxu0  ;;  %1989 = vst.msk [vmem:[#allocation3 + $0xd0] sm:$0xff] %vm1515_vm3, %v1925_v25  ;;  %v1450_v37 = vmax.f32 %v1128_v23, 0.0 }
 0x174   : > { %v2606_v36 = vpack.c.bf16 %v2182_v30, %v2182_v30  ;;  %1578 = vst.msk [vmem:[#allocation2 + $0x1f0] sm:$0xff] %vm1515_vm3, %v1449_v27  ;;  %1642 = vst.msk [vmem:[#allocation2 + $0x3f0] sm:$0xff] %vm1515_vm3, %v1513_v28  ;;  %v1384_v38 = vadd.f32 %v3294_v12, %v2808_v34  ;;  %v1120_v39 = vadd.f32 %v3294_v12, %v1119_v35  ;;  %v1375_v40 = vpop.f32.mrb[63].mxu1  ;;  %v2165_v41 = vld [vmem:[#allocation4 + $0x50] sm:$0xff]  ;;  %v2140_v45 = vld [vmem:[#allocation3 + $0x1c8] sm:$0xff] }
 0x175   : > { %2327 = vst.msk [vmem:[%s3176_s27 + $0x2c] sm:$0xf] %vm2315_vm4, %v2590_v29  ;;  %v1376_v42 = vadd.f32 %v3294_v12, %v1375_v40  ;;  %v2589_v43 = vpack.c.bf16 %v2165_v41, %v2165_v41  ;;  %v2078_v46 = vld [vmem:[#allocation3 + $0xd8] sm:$0xff]  ;;  %v2075_v1 = vld [vmem:[#allocation3 + $0xc0] sm:$0xff] }
 0x176   : > { %2021 = vst.msk [vmem:[#allocation3 + $0x1d0] sm:$0xff] %vm1515_vm3, %v1957_v31  ;;  %1576 = vst.msk [vmem:[#allocation2 + $0x1e0] sm:$0xff] %vm1515_vm3, %v1447_v32  ;;  %v1514_v47 = vmax.f32 %v1384_v38, 0.0  ;;  %v1448_v48 = vmax.f32 %v1120_v39, 0.0  ;;  %v2080_v50 = vmax.f32 %v2076_v44, %v2078_v46  ;;  %v2139_v4 = vld [vmem:[#allocation3 + $0x1c0] sm:$0xff] }
 0x177   : > { %1640 = vst.msk [vmem:[#allocation2 + $0x3e0] sm:$0xff] %vm1515_vm3, %v1511_v33  ;;  %1579 = vst.msk [vmem:[#allocation2 + $0x1f8] sm:$0xff] %vm1515_vm3, %v1450_v37  ;;  %v2181_v49 = vld [vmem:[#allocation4 + $0xd0] sm:$0xff]  ;;  %v2142_v51 = vld [vmem:[#allocation3 + $0x1d8] sm:$0xff]  ;;  %v1512_v53 = vmax.f32 %v1376_v42, 0.0 }
 0x178   : > { %2343 = vst.msk [vmem:[%s3176_s27 + $0x6c] sm:$0xf] %vm2315_vm4, %v2606_v36  ;;  %v1702_v52 = vld [vmem:[#allocation2 + $0x1d0] ss:$2 sm:$0xff]  ;;  %2326 = vst.msk [vmem:[%s3176_s27 + $0x28] sm:$0xf] %vm2315_vm4, %v2589_v43  ;;  %v2605_v54 = vpack.c.bf16 %v2181_v49, %v2181_v49  ;;  %v2144_v12 = vmax.f32 %v2140_v45, %v2142_v51 }
 0x179   : > { %v1830_v55 = vld [vmem:[#allocation2 + $0x1d1] ss:$2 sm:$0xff]  ;;  %v1766_v56 = vld [vmem:[#allocation2 + $0x3d0] ss:$2 sm:$0xff]  ;;  %1643 = vst.msk [vmem:[#allocation2 + $0x3f8] sm:$0xff] %vm1515_vm3, %v1514_v47  ;;  %1577 = vst.msk [vmem:[#allocation2 + $0x1e8] sm:$0xff] %vm1515_vm3, %v1448_v48 }
 0x17a   : > { %v1894_v57 = vld [vmem:[#allocation2 + $0x3d1] ss:$2 sm:$0xff]  ;;  %2082 = vst.msk [vmem:[#allocation4 + $0x68] sm:$0xff] %vm1515_vm3, %v2080_v50  ;;  %v1928_v58 = vmax.f32 %v1702_v52, %v1830_v55  ;;  %v1700_v60 = vld [vmem:[#allocation2 + $0x1c0] ss:$2 sm:$0xff]  ;;  %1641 = vst.msk [vmem:[#allocation2 + $0x3e8] sm:$0xff] %vm1515_vm3, %v1512_v53 }
 0x17b   : > { %v1960_v59 = vmax.f32 %v1766_v56, %v1894_v57  ;;  %v1828_v61 = vld [vmem:[#allocation2 + $0x1c1] ss:$2 sm:$0xff]  ;;  %2342 = vst.msk [vmem:[%s3176_s27 + $0x68] sm:$0xf] %vm2315_vm4, %v2605_v54  ;;  %v1764_v63 = vld [vmem:[#allocation2 + $0x3c0] ss:$2 sm:$0xff] }
 0x17c   : > { %2146 = vst.msk [vmem:[#allocation4 + $0xe8] sm:$0xff] %vm1515_vm3, %v2144_v12  ;;  %v1927_v62 = vmax.f32 %v1700_v60, %v1828_v61  ;;  %v1892_v0 = vld [vmem:[#allocation2 + $0x3c1] ss:$2 sm:$0xff]  ;;  %v2077_v2 = vld [vmem:[#allocation3 + $0xd0] sm:$0xff]  ;;  %1992 = vst.msk [vmem:[#allocation3 + $0xe8] sm:$0xff] %vm1515_vm3, %v1928_v58 }
 0x17d   : > { %2024 = vst.msk [vmem:[#allocation3 + $0x1e8] sm:$0xff] %vm1515_vm3, %v1960_v59  ;;  %v1959_v3 = vmax.f32 %v1764_v63, %v1892_v0  ;;  %v2079_v5 = vmax.f32 %v2075_v1, %v2077_v2  ;;  %v2141_v7 = vld [vmem:[#allocation3 + $0x1d0] sm:$0xff] }
 0x17e   : > { %1991 = vst.msk [vmem:[#allocation3 + $0xe0] sm:$0xff] %vm1515_vm3, %v1927_v62  ;;  %v2143_v8 = vmax.f32 %v2139_v4, %v2141_v7  ;;  %v1706_v9 = vld [vmem:[#allocation2 + $0x1f0] ss:$2 sm:$0xff]  ;;  %v1834_v10 = vld [vmem:[#allocation2 + $0x1f1] ss:$2 sm:$0xff] }
 0x17f   : > { %2023 = vst.msk [vmem:[#allocation3 + $0x1e0] sm:$0xff] %vm1515_vm3, %v1959_v3  ;;  %2081 = vst.msk [vmem:[#allocation4 + $0x60] sm:$0xff] %vm1515_vm3, %v2079_v5  ;;  %v1930_v11 = vmax.f32 %v1706_v9, %v1834_v10 }
 0x180   : > { %2145 = vst.msk [vmem:[#allocation4 + $0xe0] sm:$0xff] %vm1515_vm3, %v2143_v8  ;;  %v1770_v13 = vld [vmem:[#allocation2 + $0x3f0] ss:$2 sm:$0xff]  ;;  %v1898_v14 = vld [vmem:[#allocation2 + $0x3f1] ss:$2 sm:$0xff] }
 0x181   : > { %v1704_v15 = vld [vmem:[#allocation2 + $0x1e0] ss:$2 sm:$0xff]  ;;  %1994 = vst.msk [vmem:[#allocation3 + $0xf8] sm:$0xff] %vm1515_vm3, %v1930_v11  ;;  %v1962_v16 = vmax.f32 %v1770_v13, %v1898_v14  ;;  %v1832_v17 = vld [vmem:[#allocation2 + $0x1e1] ss:$2 sm:$0xff] }
 0x182   : > { %v2168_v6 = vld [vmem:[#allocation4 + $0x68] sm:$0xff]  ;;  %v1929_v21 = vmax.f32 %v1704_v15, %v1832_v17 }
 0x183   : > { %v1768_v18 = vld [vmem:[#allocation2 + $0x3e0] ss:$2 sm:$0xff]  ;;  %v2592_v19 = vpack.c.bf16 %v2168_v6, %v2168_v6  ;;  %v1896_v22 = vld [vmem:[#allocation2 + $0x3e1] ss:$2 sm:$0xff]  ;;  %2026 = vst.msk [vmem:[#allocation3 + $0x1f8] sm:$0xff] %vm1515_vm3, %v1962_v16 }
 0x184   : > { %v2184_v20 = vld [vmem:[#allocation4 + $0xe8] sm:$0xff]  ;;  %v1961_v24 = vmax.f32 %v1768_v18, %v1896_v22  ;;  %1993 = vst.msk [vmem:[#allocation3 + $0xf0] sm:$0xff] %vm1515_vm3, %v1929_v21 }
 0x185   : > { %v2608_v23 = vpack.c.bf16 %v2184_v20, %v2184_v20  ;;  %2329 = vst.msk [vmem:[%s3176_s27 + $0x34] sm:$0xf] %vm2315_vm4, %v2592_v19  ;;  %v2084_v29 = vld [vmem:[#allocation3 + $0xe8] sm:$0xff]  ;;  %v2083_v34 = vld [vmem:[#allocation3 + $0xe0] sm:$0xff] }
 0x186   : > { %2025 = vst.msk [vmem:[#allocation3 + $0x1f0] sm:$0xff] %vm1515_vm3, %v1961_v24  ;;  %v2167_v25 = vld [vmem:[#allocation4 + $0x60] sm:$0xff]  ;;  %v2148_v32 = vld [vmem:[#allocation3 + $0x1e8] sm:$0xff] }
 0x187   : > { %2345 = vst.msk [vmem:[%s3176_s27 + $0x74] sm:$0xf] %vm2315_vm4, %v2608_v23  ;;  %v2591_v26 = vpack.c.bf16 %v2167_v25, %v2167_v25  ;;  %v2183_v27 = vld [vmem:[#allocation4 + $0xe0] sm:$0xff] }
 0x188   : > { %v2607_v28 = vpack.c.bf16 %v2183_v27, %v2183_v27  ;;  %v2086_v30 = vld [vmem:[#allocation3 + $0xf8] sm:$0xff]  ;;  %v2147_v37 = vld [vmem:[#allocation3 + $0x1e0] sm:$0xff] }
 0x189   : > { %2328 = vst.msk [vmem:[%s3176_s27 + $0x30] sm:$0xf] %vm2315_vm4, %v2591_v26  ;;  %v2088_v31 = vmax.f32 %v2084_v29, %v2086_v30 }
 0x18a   : > { %2344 = vst.msk [vmem:[%s3176_s27 + $0x70] sm:$0xf] %vm2315_vm4, %v2607_v28  ;;  %v2150_v33 = vld [vmem:[#allocation3 + $0x1f8] sm:$0xff] }
 0x18b   : > { %2090 = vst.msk [vmem:[#allocation4 + $0x78] sm:$0xff] %vm1515_vm3, %v2088_v31  ;;  %v2152_v35 = vmax.f32 %v2148_v32, %v2150_v33  ;;  %v2085_v36 = vld [vmem:[#allocation3 + $0xf0] sm:$0xff] }
 0x18c   : > { %v2087_v38 = vmax.f32 %v2083_v34, %v2085_v36 }
 0x18d   : > { %v2149_v39 = vld [vmem:[#allocation3 + $0x1f0] sm:$0xff]  ;;  %2154 = vst.msk [vmem:[#allocation4 + $0xf8] sm:$0xff] %vm1515_vm3, %v2152_v35 }
 0x18e   : > { %v2151_v40 = vmax.f32 %v2147_v37, %v2149_v39  ;;  %2089 = vst.msk [vmem:[#allocation4 + $0x70] sm:$0xff] %vm1515_vm3, %v2087_v38 }
 0x190   : > { %2153 = vst.msk [vmem:[#allocation4 + $0xf0] sm:$0xff] %vm1515_vm3, %v2151_v40 }
 0x192   : > { %v2170_v41 = vld [vmem:[#allocation4 + $0x78] sm:$0xff] }
 0x193   : > { %v2594_v42 = vpack.c.bf16 %v2170_v41, %v2170_v41 }
 0x194   : > { %v2186_v43 = vld [vmem:[#allocation4 + $0xf8] sm:$0xff] }
 0x195   : > { %2331 = vst.msk [vmem:[%s3176_s27 + $0x3c] sm:$0xf] %vm2315_vm4, %v2594_v42  ;;  %v2610_v44 = vpack.c.bf16 %v2186_v43, %v2186_v43  ;;  %v2169_v45 = vld [vmem:[#allocation4 + $0x70] sm:$0xff] }
 0x196   : > { %v2593_v46 = vpack.c.bf16 %v2169_v45, %v2169_v45 }
 0x197   : > { %v2185_v47 = vld [vmem:[#allocation4 + $0xf0] sm:$0xff]  ;;  %2347 = vst.msk [vmem:[%s3176_s27 + $0x7c] sm:$0xf] %vm2315_vm4, %v2610_v44 }
 0x198   : > { %v2609_v48 = vpack.c.bf16 %v2185_v47, %v2185_v47  ;;  %2330 = vst.msk [vmem:[%s3176_s27 + $0x38] sm:$0xf] %vm2315_vm4, %v2593_v46 }
 0x19a   : > { %2346 = vst.msk [vmem:[%s3176_s27 + $0x78] sm:$0xf] %vm2315_vm4, %v2609_v48 }
 0x19b PF: > { %s13_s12 = sadd.s32 1, %s2895_s12  }
 0x19c   : > { %p10_p4 = scmp.ge.s32.totalorder %s13_s12, 4  }
 0x19e   :  { %12 = sbr.rel (!%p10_p4) target bundleno = 1 (0x1), region = 189 }

// kernel: fcn8_gb_forward.8
= control target key start
LH: loop header
LB: loop body
LE: loop exit
PB: predicated region body
PF: predicated region fallthrough
CT: control target
= control target key end

     0   :  { %s779_s21 = smov 0   ;;  %s851_s0 = inlined_call_operand.vmem [shape: bf16[2,64,72], index: 0, kind: input, shape index: {}]   ;;  %s852_s1 = inlined_call_operand.vmem [shape: bf16[72,16], index: 1, kind: input, shape index: {}]   ;;  %s853_s2 = inlined_call_operand.vmem [shape: f32[1,16], index: 2, kind: input, shape index: {}]   ;;  %s854_s3 = inlined_call_operand.vmem [shape: bf16[16,2], index: 3, kind: input, shape index: {}]   ;;  %s855_s4 = inlined_call_operand.vmem [shape: f32[1,2], index: 4, kind: input, shape index: {}]   ;;  %s856_s5 = inlined_call_operand.vmem [shape: bf16[2,16,16], index: 5, kind: output, shape index: {0}]   ;;  %s857_s6 = inlined_call_operand.vmem [shape: f32[2,16,2], index: 6, kind: output, shape index: {1}]  }
   0x1 LB: > { %s641_s22 = sadd.s32 4294967295, %s740_s21   ;;  %p645_p0 = scmp.ge.s32.totalorder %s740_s21, 1  ;;  %s740_s21 = sphi %s779_s21, %s17_s21  }
   0x2   : > { %p215_p1 = scmp.lt.s32.totalorder %s740_s21, 3 }
   0x4   : > { %p216_p2 = pnand %p645_p0, %p215_p1 }
   0x5   : > { %v724_v0 = vld [vmem:[%s852_s1] sm:$0xff] (!%p216_p2)   ;;  %v725_v1 = vld [vmem:[%s852_s1 + $0x8] sm:$0xff] (!%p216_p2)   ;;  %p250_p3 = scmp.lt.s32.totalorder (!%p216_p2), %s641_s22, 1  ;;  %v726_v2 = vld [vmem:[%s852_s1 + $0x10] sm:$0xff] (!%p216_p2)   ;;  %vm337_vm0 = vcmask (!%p216_p2), 588800   ;;  %vm350_vm1 = vcmask (!%p216_p2), 1043456  }
   0x6   : > { %219 = sbr.rel (%p216_p2) target bundleno = 500 (0x1f4), region = 40  ;;  %689 = vmatprep.subr.bf16.mxu0 (!%p216_p2), %v724_v0  ;;  %v727_v4 = vld [vmem:[%s852_s1 + $0x18] sm:$0xff] (!%p216_p2)   ;;  %v728_v5 = vld [vmem:[%s852_s1 + $0x20] ss:$0 sps:$4 sm:$0xff] (!%p216_p2)   ;;  %v742_v11 = vmov (!%p216_p2), 0.0   ;;  %vm743_vm2 = vmmov (!%p216_p2), 0  }
   0x7   : > { %690 = vmatpush3.bf16.msra.mxu0 (!%p216_p2), %v724_v0  ;;  %v352_v6 = vsel (!%p216_p2), %vm350_vm1, %v728_v5, 0  ;;  %v733_v10 = vld [vmem:[%s854_s3] sm:$0xff] (!%p216_p2)   ;;  %707 = vmatprep.subr.bf16.mxu1 (!%p216_p2), %v742_v11  ;;  %vm427_vm3 = vcmask (!%p216_p2), 130048   ;;  %vm462_vm4 = vcmask (!%p216_p2), 125952   ;;  %vm550_vm5 = vcmask (!%p216_p2), 15360  }
   0x8   : > { %691 = vmatprep.subr.bf16.mxu0 (!%p216_p2), %v725_v1  ;;  %709 = vmatprep.mubr.msk.bf16.mxu1 (!%p216_p2), %vm743_vm2, %v742_v11  ;;  %v652_v12 = vld [vmem:[%s853_s2] ss:$0 sm:$0xff] (!%p216_p2) }
   0x9   : > { %708 = vmatpush3.bf16.msra.mxu1 (!%p216_p2), %v733_v10 }
   0xb   : > { %692 = vmatpush3.bf16.msra.mxu0 (!%p216_p2), %v725_v1 }
   0xc   : > { %693 = vmatprep.subr.bf16.mxu0 (!%p216_p2), %v726_v2 }
   0xd   : > { %s859_s22 = smov (!%p250_p3, %s641_s22), 1 }
   0xe   : > { %s673_s29 = sshll.u32 %s859_s22, 5  ;;  %s674_s17 = sshll.u32 %s859_s22, 3 }
   0xf   : > { %s254_s8 = scalar_lea.vmem %s851_s0, %s673_s29  ;;  %694 = vmatpush3.bf16.msra.mxu0 %v726_v2  ;;  %s259_s20 = scalar_lea.vmem %s856_s5, %s674_s17  ;;  %v668_v2 = vld [vmem:[%s855_s4] ss:$0 sm:$0xff] }
  0x10   : > { %v729_v3 = vld [vmem:[%s254_s8] sm:$0xff]   ;;  %695 = vmatprep.subr.bf16.mxu0 %v727_v4  ;;  %v730_v7 = vld [vmem:[%s254_s8 + $0x8] sm:$0xff]   ;;  %v731_v8 = vld [vmem:[%s254_s8 + $0x10] sm:$0xff]   ;;  %s675_s23 = sshll.u32 %s859_s22, 4 }
  0x11   : > { %699 = vmatprep.mubr.msk.bf16.mxu0 %vm337_vm0, %v729_v3  ;;  %v732_v9 = vld [vmem:[%s254_s8 + $0x18] sm:$0xff]   ;;  %s264_s28 = scalar_lea.vmem %s857_s6, %s675_s23 }
  0x13   : > { %696 = vmatpush3.bf16.msra.mxu0 %v727_v4 }
  0x14   : > { %713 = vmatprep.subr.msk.bf16.mxu0 %vm350_vm1, %v728_v5 }
  0x17   : > { %698 = vmatpush3.bf16.msra.mxu0 %v352_v6 }
  0x1a   : > { %700 = vmatmul.mubr.msk.bf16.vlgmr.msra.gmra.mrb[0].mxu0 %vm337_vm0, %v730_v7 }
  0x1b   : > { %703 = vmatprep.mubr.msk.bf16.mxu0 %vm337_vm0, %v731_v8 }
  0x22   : > { %704 = vmatmul.mubr.msk.bf16.gmra.mrb[4].mxu0 %vm337_vm0, %v732_v9 }
  0xed   : > { %v701_v13 = vpop.f32.mrb[0].mxu0 }
  0xee   : > { %v397_v14 = vadd.f32 %v701_v13, %v652_v12  ;;  %v388_v15 = vpop.f32.mrb[1].mxu0 }
  0xef   : > { %v389_v16 = vadd.f32 %v652_v12, %v388_v15  ;;  %v702_v17 = vpop.f32.mrb[2].mxu0 }
  0xf0   : > { %v421_v18 = vmax.f32 %v397_v14, 0.0  ;;  %v400_v19 = vadd.f32 %v702_v17, %v652_v12  ;;  %v391_v20 = vpop.f32.mrb[3].mxu0 }
  0xf1   : > { %v419_v21 = vmax.f32 %v389_v16, 0.0  ;;  %v392_v22 = vadd.f32 %v652_v12, %v391_v20 }
  0xf2   : > { %430 = vst.msk [vmem:[#allocation2 + $0x10] sm:$0xff] %vm427_vm3, %v421_v18  ;;  %v422_v23 = vmax.f32 %v400_v19, 0.0 }
  0xf3   : > { %428 = vst.msk [vmem:[#allocation2] sm:$0xff] %vm427_vm3, %v419_v21  ;;  %v420_v24 = vmax.f32 %v392_v22, 0.0 }
  0xf4   : > { %431 = vst.msk [vmem:[#allocation2 + $0x18] sm:$0xff] %vm427_vm3, %v422_v23 }
  0xf5   : > { %429 = vst.msk [vmem:[#allocation2 + $0x8] sm:$0xff] %vm427_vm3, %v420_v24  ;;  %v705_v25 = vpop.f32.mrb[4].mxu0 }
  0xf6   : > { %v413_v26 = vadd.f32 %v705_v25, %v652_v12  ;;  %v404_v27 = vpop.f32.mrb[5].mxu0 }
  0xf7   : > { %v405_v28 = vadd.f32 %v652_v12, %v404_v27  ;;  %v706_v29 = vpop.f32.mrb[6].mxu0 }
  0xf8   : > { %v425_v30 = vmax.f32 %v413_v26, 0.0  ;;  %v416_v31 = vadd.f32 %v706_v29, %v652_v12  ;;  %v407_v32 = vpop.f32.mrb[7].mxu0 }
  0xf9   : > { %v423_v33 = vmax.f32 %v405_v28, 0.0  ;;  %v408_v34 = vadd.f32 %v652_v12, %v407_v32 }
  0xfa   : > { %434 = vst.msk [vmem:[#allocation2 + $0x30] sm:$0xff] %vm427_vm3, %v425_v30  ;;  %v426_v35 = vmax.f32 %v416_v31, 0.0 }
  0xfb   : > { %v438_v36 = vld [vmem:[#allocation2 + $0x10] ss:$2 sm:$0xff]  ;;  %v446_v37 = vld [vmem:[#allocation2 + $0x11] ss:$2 sm:$0xff]  ;;  %432 = vst.msk [vmem:[#allocation2 + $0x20] sm:$0xff] %vm427_vm3, %v423_v33  ;;  %v424_v38 = vmax.f32 %v408_v34, 0.0 }
  0xfc   : > { %v452_v39 = vmax.f32 %v438_v36, %v446_v37  ;;  %v436_v40 = vld [vmem:[#allocation2] ss:$2 sm:$0xff]  ;;  %v444_v41 = vld [vmem:[#allocation2 + $0x1] ss:$2 sm:$0xff]  ;;  %435 = vst.msk [vmem:[#allocation2 + $0x38] sm:$0xff] %vm427_vm3, %v426_v35 }
  0xfd   : > { %v451_v42 = vmax.f32 %v436_v40, %v444_v41  ;;  %433 = vst.msk [vmem:[#allocation2 + $0x28] sm:$0xff] %vm427_vm3, %v424_v38 }
  0xfe   : > { %456 = vst.msk [vmem:[#allocation3 + $0x8] sm:$0xff] %vm427_vm3, %v452_v39 }
  0xff   : > { %455 = vst.msk [vmem:[#allocation3] sm:$0xff] %vm427_vm3, %v451_v42 }
 0x103   : > { %v442_v43 = vld [vmem:[#allocation2 + $0x30] ss:$2 sm:$0xff]  ;;  %v450_v44 = vld [vmem:[#allocation2 + $0x31] ss:$2 sm:$0xff] }
 0x104   : > { %v454_v45 = vmax.f32 %v442_v43, %v450_v44  ;;  %v440_v46 = vld [vmem:[#allocation2 + $0x20] ss:$2 sm:$0xff]  ;;  %v448_v47 = vld [vmem:[#allocation2 + $0x21] ss:$2 sm:$0xff] }
 0x105   : > { %v453_v48 = vmax.f32 %v440_v46, %v448_v47  ;;  %v464_v49 = vld [vmem:[#allocation3 + $0x8] sm:$0xf]  ;;  %v465_v50 = vld [vmem:[#allocation3 + $0xc] sm:$0xf] }
 0x106   : > { %458 = vst.msk [vmem:[#allocation3 + $0x18] sm:$0xff] %vm427_vm3, %v454_v45  ;;  %v459_v51 = vld [vmem:[#allocation3] sm:$0xf]  ;;  %v460_v52 = vld [vmem:[#allocation3 + $0x4] sm:$0xf]  ;;  %v466_v53 = vmax.f32 %v464_v49, %v465_v50 }
 0x107   : > { %457 = vst.msk [vmem:[#allocation3 + $0x10] sm:$0xff] %vm427_vm3, %v453_v48  ;;  %v461_v54 = vmax.f32 %v459_v51, %v460_v52 }
 0x108   : > { %467 = vst.msk [vmem:[#allocation4 + $0x4] sm:$0xf] %vm462_vm4, %v466_v53 }
 0x109   : > { %463 = vst.msk [vmem:[#allocation4] sm:$0xf] %vm462_vm4, %v461_v54 }
 0x10d   : > { %v472_v55 = vld [vmem:[#allocation3 + $0x18] sm:$0xf]  ;;  %v473_v56 = vld [vmem:[#allocation3 + $0x1c] sm:$0xf] }
 0x10e   : > { %v468_v57 = vld [vmem:[#allocation3 + $0x10] sm:$0xf]  ;;  %v469_v58 = vld [vmem:[#allocation3 + $0x14] sm:$0xf]  ;;  %v474_v59 = vmax.f32 %v472_v55, %v473_v56 }
 0x10f   : > { %v470_v60 = vmax.f32 %v468_v57, %v469_v58 }
 0x110   : > { %475 = vst.msk [vmem:[#allocation4 + $0xc] sm:$0xf] %vm462_vm4, %v474_v59  ;;  %v476_v61 = vld [vmem:[#allocation4] sm:$0xff] }
 0x111   : > { %471 = vst.msk [vmem:[#allocation4 + $0x8] sm:$0xf] %vm462_vm4, %v470_v60  ;;  %v676_v62 = vpack.c.bf16 %v476_v61, %v476_v61 }
 0x113   : > { %486 = vst.msk [vmem:[%s259_s20] sm:$0xf] %vm462_vm4, %v676_v62 }
 0x118   : > { %v477_v63 = vld [vmem:[#allocation4 + $0x8] sm:$0xff] }
 0x119   : > { %v677_v0 = vpack.c.bf16 %v477_v63, %v477_v63  ;;  %v490_v1 = vpack.c.bf16 %v477_v63, %v476_v61 }
 0x11b   : > { %487 = vst.msk [vmem:[%s259_s20 + $0x4] sm:$0xf] %vm462_vm4, %v677_v0  ;;  %710 = vmatmul.mubr.msk.bf16.vlgmr.msra.gmra.mrb[0].mxu1 %vm427_vm3, %v490_v1 }
 0x1ee   : > { %v543_v3 = vpop.f32.mrb[0].mxu1 }
 0x1ef   : > { %v544_v4 = vadd.f32 %v668_v2, %v543_v3  ;;  %v711_v5 = vpop.f32.mrb[1].mxu1 }
 0x1f0   : > { %v546_v6 = vpop.f32.mrb[2].mxu1 }
 0x1f1   : > { %551 = vst.msk [vmem:[%s264_s28] sm:$0xff] %vm550_vm5, %v544_v4  ;;  %v547_v7 = vadd.f32 %v668_v2, %v546_v6  ;;  %v712_v8 = vpop.f32.mrb[3].mxu1 }
 0x1f3   : > { %552 = vst.msk [vmem:[%s264_s28 + $0x8] sm:$0xff] %vm550_vm5, %v547_v7 }
 0x1f4 PF: > { %s17_s21 = sadd.s32 1, %s740_s21  }
 0x1f5   : > { %p14_p4 = scmp.ge.s32.totalorder %s17_s21, 4  }
 0x1f7   :  { %16 = sbr.rel (!%p14_p4) target bundleno = 1 (0x1), region = 89 }

// kernel: fcn8_gb_forward.10
= control target key start
LH: loop header
LB: loop body
LE: loop exit
PB: predicated region body
PF: predicated region fallthrough
CT: control target
= control target key end

     0   :  { %s440_s12 = smov 0   ;;  %s491_s0 = inlined_call_operand.vmem [shape: bf16[2,4,144], index: 0, kind: input, shape index: {}]   ;;  %s492_s1 = inlined_call_operand.vmem [shape: bf16[144,16], index: 1, kind: input, shape index: {}]   ;;  %s493_s2 = inlined_call_operand.vmem [shape: f32[1,16], index: 2, kind: input, shape index: {}]   ;;  %s494_s3 = inlined_call_operand.vmem [shape: bf16[2,1,16], index: 3, kind: output, shape index: {}]  }
   0x1 LB: > { %s371_s13 = sadd.s32 4294967295, %s417_s12   ;;  %p375_p0 = scmp.ge.s32.totalorder %s417_s12, 1  ;;  %s417_s12 = sphi %s440_s12, %s13_s12  }
   0x2   : > { %p137_p1 = scmp.lt.s32.totalorder %s417_s12, 3 }
   0x4   : > { %p138_p2 = pnand %p375_p0, %p137_p1 }
   0x5   : > { %v402_v0 = vld [vmem:[%s492_s1] sm:$0xff] (!%p138_p2)   ;;  %v419_v1 = vmov (!%p138_p2), 0   ;;  %p159_p3 = scmp.lt.s32.totalorder (!%p138_p2), %s371_s13, 1  ;;  %v403_v2 = vld [vmem:[%s492_s1 + $0x8] sm:$0xff] (!%p138_p2)   ;;  %v404_v3 = vld [vmem:[%s492_s1 + $0x10] sm:$0xff] (!%p138_p2)   ;;  %vm258_vm0 = vcmask (!%p138_p2), 130048  }
   0x6   : > { %141 = sbr.rel (%p138_p2) target bundleno = 290 (0x122), region = 32  ;;  %262 = vmatprep.subr.bf16.mxu0 (!%p138_p2), %v419_v1  ;;  %v405_v5 = vld [vmem:[%s492_s1 + $0x18] sm:$0xff] (!%p138_p2)   ;;  %v406_v7 = vld [vmem:[%s492_s1 + $0x20] sm:$0xff] (!%p138_p2)   ;;  %v407_v8 = vld [vmem:[%s492_s1 + $0x28] sm:$0xff] (!%p138_p2)   ;;  %vm303_vm1 = vcmask (!%p138_p2), 125952   ;;  %vm309_vm2 = vcmask (!%p138_p2), 123904  }
   0x7   : > { %263 = vmatpush1.bf16.msra.mxu0 (!%p138_p2), %v402_v0  ;;  %v408_v9 = vld [vmem:[%s492_s1 + $0x30] sm:$0xff] (!%p138_p2)   ;;  %v409_v10 = vld [vmem:[%s492_s1 + $0x38] sm:$0xff] (!%p138_p2)   ;;  %v410_v11 = vld [vmem:[%s492_s1 + $0x40] sm:$0xff] (!%p138_p2)   ;;  %vm314_vm3 = vcmask (!%p138_p2), 122880   ;;  %vm319_vm4 = vsmask.f32 (!%p138_p2), 256 }
   0x8   : > { %264 = vmatprep.subr.bf16.mxu0 (!%p138_p2), %v419_v1  ;;  %v378_v12 = vld [vmem:[%s493_s2] ss:$0 sm:$0xff] (!%p138_p2)  ;;  %vm320_vm5 = vmand (!%p138_p2), %vm314_vm3, %vm319_vm4 }
   0xb   : > { %265 = vmatpush1.bf16.msra.mxu0 (!%p138_p2), %v403_v2 }
   0xc   : > { %266 = vmatprep.subr.bf16.mxu0 (!%p138_p2), %v419_v1 }
   0xd   : > { %s496_s13 = smov (!%p159_p3, %s371_s13), 1 }
   0xe   : > { %s392_s18 = sshll.u32 %s496_s13, 2  ;;  %s166_s15 = scalar_lea.vmem %s494_s3, %s496_s13 }
   0xf   : > { %s163_s23 = scalar_lea.vmem %s491_s0, %s392_s18  ;;  %267 = vmatpush1.bf16.msra.mxu0 %v404_v3  ;;  %v321_v25 = vld [vmem:[%s166_s15] sm:$0x1] }
  0x10   : > { %v379_v4 = vld.sshfl [vmem:[%s163_s23] sm:$0x33 pattern:$0x76325410]  ;;  %268 = vmatprep.subr.bf16.mxu0 %v419_v1 }
  0x11   : > { %v202_v6 = vcombine.high %v379_v4, %v379_v4 }
  0x13   : > { %389 = vmatprep.mubr.msk.bf16.mxu0 %vm258_vm0, %v202_v6  ;;  %269 = vmatpush1.bf16.msra.mxu0 %v405_v5 }
  0x14   : > { %270 = vmatprep.subr.bf16.mxu0 %v419_v1 }
  0x17   : > { %271 = vmatpush1.bf16.msra.mxu0 %v406_v7 }
  0x18   : > { %272 = vmatprep.subr.bf16.mxu0 %v419_v1 }
  0x1b   : > { %273 = vmatpush1.bf16.msra.mxu0 %v407_v8 }
  0x1c   : > { %274 = vmatprep.subr.bf16.mxu0 %v419_v1 }
  0x1f   : > { %275 = vmatpush1.bf16.msra.mxu0 %v408_v9 }
  0x20   : > { %276 = vmatprep.subr.bf16.mxu0 %v419_v1 }
  0x23   : > { %277 = vmatpush1.bf16.msra.mxu0 %v409_v10 }
  0x24   : > { %278 = vmatprep.subr.bf16.mxu0 %v419_v1 }
  0x27   : > { %279 = vmatpush1.bf16.msra.mxu0 %v410_v11 }
  0x2a   : > { %295 = vmatmul.mubr.bf16.vlgmr.msra.gmra.mrb[0].mxu0 %v379_v4 }
  0xfd   : > { %v296_v13 = vpop.f32.mrb[0].mxu0 }
  0xfe   : > { %v297_v14 = vadd.f32 %v378_v12, %v296_v13  ;;  %v298_v15 = vpop.f32.mrb[1].mxu0 }
  0xff   : > { %v299_v16 = vpop.f32.mrb[2].mxu0 }
 0x100   : > { %v302_v17 = vmax.f32 %v297_v14, 0.0  ;;  %v300_v18 = vpop.f32.mrb[3].mxu0 }
 0x102   : > { %304 = vst.msk [vmem:[#allocation2] sm:$0xf] %vm303_vm1, %v302_v17 }
 0x109   : > { %v305_v19 = vld [vmem:[#allocation2] ss:$2 sm:$0x3]  ;;  %v307_v20 = vld [vmem:[#allocation2 + $0x1] ss:$2 sm:$0x3] }
 0x10a   : > { %v308_v21 = vmax.f32 %v305_v19, %v307_v20 }
 0x10c   : > { %310 = vst.msk [vmem:[#allocation3] sm:$0x3] %vm309_vm2, %v308_v21 }
 0x113   : > { %v311_v22 = vld [vmem:[#allocation3] sm:$0x1]  ;;  %v312_v23 = vld [vmem:[#allocation3 + $0x1] sm:$0x1] }
 0x114   : > { %v313_v24 = vmax.f32 %v311_v22, %v312_v23 }
 0x116   : > { %315 = vst.msk [vmem:[#allocation4] sm:$0x1] %vm314_vm3, %v313_v24 }
 0x11d   : > { %v316_v26 = vld [vmem:[#allocation4] sm:$0x1] }
 0x11e   : > { %v317_v27 = vpack.c.bf16 %v316_v26, %v316_v26 }
 0x120   : > { %v322_v28 = vsel %vm320_vm5, %v317_v27, %v321_v25 }
 0x121   : > { %323 = vst [vmem:[%s166_s15] sm:$0x1] %v322_v28 }
 0x122 PF: > { %s13_s12 = sadd.s32 1, %s417_s12  }
 0x123   : > { %p10_p4 = scmp.ge.s32.totalorder %s13_s12, 4  }
 0x125   :  { %12 = sbr.rel (!%p10_p4) target bundleno = 1 (0x1), region = 63 }

// kernel: tile.18
= control target key start
LH: loop header
LB: loop body
LE: loop exit
PB: predicated region body
PF: predicated region fallthrough
CT: control target
= control target key end

     0   :  { %s22_s0 = inlined_call_operand.vmem [shape: f32[2], index: 0, kind: input, shape index: {}]   ;;  %s23_s1 = inlined_call_operand.vmem [shape: f32[4,2], index: 1, kind: output, shape index: {}]  }
   0x1   :  { %v4_v0 = vld [vmem:[%s22_s0] ss:$0 sm:$0xff] }
   0x2   :  { %5 = vst [vmem:[%s23_s1] sm:$0xf] %v4_v0 }

// kernel: tile.28
= control target key start
LH: loop header
LB: loop body
LE: loop exit
PB: predicated region body
PF: predicated region fallthrough
CT: control target
= control target key end

     0   :  { %s914_s0 = inlined_call_operand.vmem [shape: f32[2], index: 0, kind: input, shape index: {}]   ;;  %s915_s1 = inlined_call_operand.vmem [shape: f32[1024,2], index: 1, kind: output, shape index: {}]  }
   0x1   :  { %v400_v0 = vld [vmem:[%s914_s0] ss:$0 sm:$0xff] }
   0x2   :  { %5 = vst [vmem:[%s915_s1] sm:$0xff] %v400_v0  ;;  %260 = vst [vmem:[%s915_s1 + $0x8] sm:$0xff] %v400_v0 }
   0x3   :  { %261 = vst [vmem:[%s915_s1 + $0x10] sm:$0xff] %v400_v0  ;;  %262 = vst [vmem:[%s915_s1 + $0x18] sm:$0xff] %v400_v0 }
   0x4   :  { %263 = vst [vmem:[%s915_s1 + $0x20] sm:$0xff] %v400_v0  ;;  %264 = vst [vmem:[%s915_s1 + $0x28] sm:$0xff] %v400_v0 }
   0x5   :  { %265 = vst [vmem:[%s915_s1 + $0x30] sm:$0xff] %v400_v0  ;;  %266 = vst [vmem:[%s915_s1 + $0x38] sm:$0xff] %v400_v0 }
   0x6   :  { %267 = vst [vmem:[%s915_s1 + $0x40] sm:$0xff] %v400_v0  ;;  %268 = vst [vmem:[%s915_s1 + $0x48] sm:$0xff] %v400_v0 }
   0x7   :  { %269 = vst [vmem:[%s915_s1 + $0x50] sm:$0xff] %v400_v0  ;;  %270 = vst [vmem:[%s915_s1 + $0x58] sm:$0xff] %v400_v0 }
   0x8   :  { %271 = vst [vmem:[%s915_s1 + $0x60] sm:$0xff] %v400_v0  ;;  %272 = vst [vmem:[%s915_s1 + $0x68] sm:$0xff] %v400_v0 }
   0x9   :  { %273 = vst [vmem:[%s915_s1 + $0x70] sm:$0xff] %v400_v0  ;;  %274 = vst [vmem:[%s915_s1 + $0x78] sm:$0xff] %v400_v0 }
   0xa   :  { %275 = vst [vmem:[%s915_s1 + $0x80] sm:$0xff] %v400_v0  ;;  %276 = vst [vmem:[%s915_s1 + $0x88] sm:$0xff] %v400_v0 }
   0xb   :  { %277 = vst [vmem:[%s915_s1 + $0x90] sm:$0xff] %v400_v0  ;;  %278 = vst [vmem:[%s915_s1 + $0x98] sm:$0xff] %v400_v0 }
   0xc   :  { %279 = vst [vmem:[%s915_s1 + $0xa0] sm:$0xff] %v400_v0  ;;  %280 = vst [vmem:[%s915_s1 + $0xa8] sm:$0xff] %v400_v0 }
   0xd   :  { %281 = vst [vmem:[%s915_s1 + $0xb0] sm:$0xff] %v400_v0  ;;  %282 = vst [vmem:[%s915_s1 + $0xb8] sm:$0xff] %v400_v0 }
   0xe   :  { %283 = vst [vmem:[%s915_s1 + $0xc0] sm:$0xff] %v400_v0  ;;  %284 = vst [vmem:[%s915_s1 + $0xc8] sm:$0xff] %v400_v0 }
   0xf   :  { %285 = vst [vmem:[%s915_s1 + $0xd0] sm:$0xff] %v400_v0  ;;  %286 = vst [vmem:[%s915_s1 + $0xd8] sm:$0xff] %v400_v0 }
  0x10   :  { %287 = vst [vmem:[%s915_s1 + $0xe0] sm:$0xff] %v400_v0  ;;  %288 = vst [vmem:[%s915_s1 + $0xe8] sm:$0xff] %v400_v0 }
  0x11   :  { %289 = vst [vmem:[%s915_s1 + $0xf0] sm:$0xff] %v400_v0  ;;  %290 = vst [vmem:[%s915_s1 + $0xf8] sm:$0xff] %v400_v0 }
  0x12   :  { %291 = vst [vmem:[%s915_s1 + $0x100] sm:$0xff] %v400_v0  ;;  %292 = vst [vmem:[%s915_s1 + $0x108] sm:$0xff] %v400_v0 }
  0x13   :  { %293 = vst [vmem:[%s915_s1 + $0x110] sm:$0xff] %v400_v0  ;;  %294 = vst [vmem:[%s915_s1 + $0x118] sm:$0xff] %v400_v0 }
  0x14   :  { %295 = vst [vmem:[%s915_s1 + $0x120] sm:$0xff] %v400_v0  ;;  %296 = vst [vmem:[%s915_s1 + $0x128] sm:$0xff] %v400_v0 }
  0x15   :  { %297 = vst [vmem:[%s915_s1 + $0x130] sm:$0xff] %v400_v0  ;;  %298 = vst [vmem:[%s915_s1 + $0x138] sm:$0xff] %v400_v0 }
  0x16   :  { %299 = vst [vmem:[%s915_s1 + $0x140] sm:$0xff] %v400_v0  ;;  %300 = vst [vmem:[%s915_s1 + $0x148] sm:$0xff] %v400_v0 }
  0x17   :  { %301 = vst [vmem:[%s915_s1 + $0x150] sm:$0xff] %v400_v0  ;;  %302 = vst [vmem:[%s915_s1 + $0x158] sm:$0xff] %v400_v0 }
  0x18   :  { %303 = vst [vmem:[%s915_s1 + $0x160] sm:$0xff] %v400_v0  ;;  %304 = vst [vmem:[%s915_s1 + $0x168] sm:$0xff] %v400_v0 }
  0x19   :  { %305 = vst [vmem:[%s915_s1 + $0x170] sm:$0xff] %v400_v0  ;;  %306 = vst [vmem:[%s915_s1 + $0x178] sm:$0xff] %v400_v0 }
  0x1a   :  { %307 = vst [vmem:[%s915_s1 + $0x180] sm:$0xff] %v400_v0  ;;  %308 = vst [vmem:[%s915_s1 + $0x188] sm:$0xff] %v400_v0 }
  0x1b   :  { %309 = vst [vmem:[%s915_s1 + $0x190] sm:$0xff] %v400_v0  ;;  %310 = vst [vmem:[%s915_s1 + $0x198] sm:$0xff] %v400_v0 }
  0x1c   :  { %311 = vst [vmem:[%s915_s1 + $0x1a0] sm:$0xff] %v400_v0  ;;  %312 = vst [vmem:[%s915_s1 + $0x1a8] sm:$0xff] %v400_v0 }
  0x1d   :  { %313 = vst [vmem:[%s915_s1 + $0x1b0] sm:$0xff] %v400_v0  ;;  %314 = vst [vmem:[%s915_s1 + $0x1b8] sm:$0xff] %v400_v0 }
  0x1e   :  { %315 = vst [vmem:[%s915_s1 + $0x1c0] sm:$0xff] %v400_v0  ;;  %316 = vst [vmem:[%s915_s1 + $0x1c8] sm:$0xff] %v400_v0 }
  0x1f   :  { %317 = vst [vmem:[%s915_s1 + $0x1d0] sm:$0xff] %v400_v0  ;;  %318 = vst [vmem:[%s915_s1 + $0x1d8] sm:$0xff] %v400_v0 }
  0x20   :  { %319 = vst [vmem:[%s915_s1 + $0x1e0] sm:$0xff] %v400_v0  ;;  %320 = vst [vmem:[%s915_s1 + $0x1e8] sm:$0xff] %v400_v0 }
  0x21   :  { %321 = vst [vmem:[%s915_s1 + $0x1f0] sm:$0xff] %v400_v0  ;;  %322 = vst [vmem:[%s915_s1 + $0x1f8] sm:$0xff] %v400_v0 }
  0x22   :  { %323 = vst [vmem:[%s915_s1 + $0x200] sm:$0xff] %v400_v0  ;;  %324 = vst [vmem:[%s915_s1 + $0x208] sm:$0xff] %v400_v0 }
  0x23   :  { %325 = vst [vmem:[%s915_s1 + $0x210] sm:$0xff] %v400_v0  ;;  %326 = vst [vmem:[%s915_s1 + $0x218] sm:$0xff] %v400_v0 }
  0x24   :  { %327 = vst [vmem:[%s915_s1 + $0x220] sm:$0xff] %v400_v0  ;;  %328 = vst [vmem:[%s915_s1 + $0x228] sm:$0xff] %v400_v0 }
  0x25   :  { %329 = vst [vmem:[%s915_s1 + $0x230] sm:$0xff] %v400_v0  ;;  %330 = vst [vmem:[%s915_s1 + $0x238] sm:$0xff] %v400_v0 }
  0x26   :  { %331 = vst [vmem:[%s915_s1 + $0x240] sm:$0xff] %v400_v0  ;;  %332 = vst [vmem:[%s915_s1 + $0x248] sm:$0xff] %v400_v0 }
  0x27   :  { %333 = vst [vmem:[%s915_s1 + $0x250] sm:$0xff] %v400_v0  ;;  %334 = vst [vmem:[%s915_s1 + $0x258] sm:$0xff] %v400_v0 }
  0x28   :  { %335 = vst [vmem:[%s915_s1 + $0x260] sm:$0xff] %v400_v0  ;;  %336 = vst [vmem:[%s915_s1 + $0x268] sm:$0xff] %v400_v0 }
  0x29   :  { %337 = vst [vmem:[%s915_s1 + $0x270] sm:$0xff] %v400_v0  ;;  %338 = vst [vmem:[%s915_s1 + $0x278] sm:$0xff] %v400_v0 }
  0x2a   :  { %339 = vst [vmem:[%s915_s1 + $0x280] sm:$0xff] %v400_v0  ;;  %340 = vst [vmem:[%s915_s1 + $0x288] sm:$0xff] %v400_v0 }
  0x2b   :  { %341 = vst [vmem:[%s915_s1 + $0x290] sm:$0xff] %v400_v0  ;;  %342 = vst [vmem:[%s915_s1 + $0x298] sm:$0xff] %v400_v0 }
  0x2c   :  { %343 = vst [vmem:[%s915_s1 + $0x2a0] sm:$0xff] %v400_v0  ;;  %344 = vst [vmem:[%s915_s1 + $0x2a8] sm:$0xff] %v400_v0 }
  0x2d   :  { %345 = vst [vmem:[%s915_s1 + $0x2b0] sm:$0xff] %v400_v0  ;;  %346 = vst [vmem:[%s915_s1 + $0x2b8] sm:$0xff] %v400_v0 }
  0x2e   :  { %347 = vst [vmem:[%s915_s1 + $0x2c0] sm:$0xff] %v400_v0  ;;  %348 = vst [vmem:[%s915_s1 + $0x2c8] sm:$0xff] %v400_v0 }
  0x2f   :  { %349 = vst [vmem:[%s915_s1 + $0x2d0] sm:$0xff] %v400_v0  ;;  %350 = vst [vmem:[%s915_s1 + $0x2d8] sm:$0xff] %v400_v0 }
  0x30   :  { %351 = vst [vmem:[%s915_s1 + $0x2e0] sm:$0xff] %v400_v0  ;;  %352 = vst [vmem:[%s915_s1 + $0x2e8] sm:$0xff] %v400_v0 }
  0x31   :  { %353 = vst [vmem:[%s915_s1 + $0x2f0] sm:$0xff] %v400_v0  ;;  %354 = vst [vmem:[%s915_s1 + $0x2f8] sm:$0xff] %v400_v0 }
  0x32   :  { %355 = vst [vmem:[%s915_s1 + $0x300] sm:$0xff] %v400_v0  ;;  %356 = vst [vmem:[%s915_s1 + $0x308] sm:$0xff] %v400_v0 }
  0x33   :  { %357 = vst [vmem:[%s915_s1 + $0x310] sm:$0xff] %v400_v0  ;;  %358 = vst [vmem:[%s915_s1 + $0x318] sm:$0xff] %v400_v0 }
  0x34   :  { %359 = vst [vmem:[%s915_s1 + $0x320] sm:$0xff] %v400_v0  ;;  %360 = vst [vmem:[%s915_s1 + $0x328] sm:$0xff] %v400_v0 }
  0x35   :  { %361 = vst [vmem:[%s915_s1 + $0x330] sm:$0xff] %v400_v0  ;;  %362 = vst [vmem:[%s915_s1 + $0x338] sm:$0xff] %v400_v0 }
  0x36   :  { %363 = vst [vmem:[%s915_s1 + $0x340] sm:$0xff] %v400_v0  ;;  %364 = vst [vmem:[%s915_s1 + $0x348] sm:$0xff] %v400_v0 }
  0x37   :  { %365 = vst [vmem:[%s915_s1 + $0x350] sm:$0xff] %v400_v0  ;;  %366 = vst [vmem:[%s915_s1 + $0x358] sm:$0xff] %v400_v0 }
  0x38   :  { %367 = vst [vmem:[%s915_s1 + $0x360] sm:$0xff] %v400_v0  ;;  %368 = vst [vmem:[%s915_s1 + $0x368] sm:$0xff] %v400_v0 }
  0x39   :  { %369 = vst [vmem:[%s915_s1 + $0x370] sm:$0xff] %v400_v0  ;;  %370 = vst [vmem:[%s915_s1 + $0x378] sm:$0xff] %v400_v0 }
  0x3a   :  { %371 = vst [vmem:[%s915_s1 + $0x380] sm:$0xff] %v400_v0  ;;  %372 = vst [vmem:[%s915_s1 + $0x388] sm:$0xff] %v400_v0 }
  0x3b   :  { %373 = vst [vmem:[%s915_s1 + $0x390] sm:$0xff] %v400_v0  ;;  %374 = vst [vmem:[%s915_s1 + $0x398] sm:$0xff] %v400_v0 }
  0x3c   :  { %375 = vst [vmem:[%s915_s1 + $0x3a0] sm:$0xff] %v400_v0  ;;  %376 = vst [vmem:[%s915_s1 + $0x3a8] sm:$0xff] %v400_v0 }
  0x3d   :  { %377 = vst [vmem:[%s915_s1 + $0x3b0] sm:$0xff] %v400_v0  ;;  %378 = vst [vmem:[%s915_s1 + $0x3b8] sm:$0xff] %v400_v0 }
  0x3e   :  { %379 = vst [vmem:[%s915_s1 + $0x3c0] sm:$0xff] %v400_v0  ;;  %380 = vst [vmem:[%s915_s1 + $0x3c8] sm:$0xff] %v400_v0 }
  0x3f   :  { %381 = vst [vmem:[%s915_s1 + $0x3d0] sm:$0xff] %v400_v0  ;;  %382 = vst [vmem:[%s915_s1 + $0x3d8] sm:$0xff] %v400_v0 }
  0x40   :  { %383 = vst [vmem:[%s915_s1 + $0x3e0] sm:$0xff] %v400_v0  ;;  %384 = vst [vmem:[%s915_s1 + $0x3e8] sm:$0xff] %v400_v0 }
  0x41   :  { %385 = vst [vmem:[%s915_s1 + $0x3f0] sm:$0xff] %v400_v0  ;;  %386 = vst [vmem:[%s915_s1 + $0x3f8] sm:$0xff] %v400_v0 }

// kernel: fcn8_gb_forward.9
= control target key start
LH: loop header
LB: loop body
LE: loop exit
PB: predicated region body
PF: predicated region fallthrough
CT: control target
= control target key end

     0   :  { %s670_s21 = smov 0   ;;  %s736_s0 = inlined_call_operand.vmem [shape: bf16[2,16,144], index: 0, kind: input, shape index: {}]   ;;  %s737_s1 = inlined_call_operand.vmem [shape: bf16[144,16], index: 1, kind: input, shape index: {}]   ;;  %s738_s2 = inlined_call_operand.vmem [shape: f32[1,16], index: 2, kind: input, shape index: {}]   ;;  %s739_s3 = inlined_call_operand.vmem [shape: bf16[16,2], index: 3, kind: input, shape index: {}]   ;;  %s740_s4 = inlined_call_operand.vmem [shape: f32[1,2], index: 4, kind: input, shape index: {}]   ;;  %s741_s5 = inlined_call_operand.vmem [shape: bf16[2,4,16], index: 5, kind: output, shape index: {0}]   ;;  %s742_s6 = inlined_call_operand.vmem [shape: f32[2,4,2], index: 6, kind: output, shape index: {1}]  }
   0x1 LB: > { %s564_s22 = sadd.s32 4294967295, %s630_s21   ;;  %p568_p0 = scmp.ge.s32.totalorder %s630_s21, 1  ;;  %s630_s21 = sphi %s670_s21, %s17_s21  }
   0x2   : > { %p215_p1 = scmp.lt.s32.totalorder %s630_s21, 3 }
   0x4   : > { %p216_p2 = pnand %p568_p0, %p215_p1 }
   0x5   : > { %v611_v0 = vld [vmem:[%s737_s1] sm:$0xff] (!%p216_p2)   ;;  %v632_v1 = vmov (!%p216_p2), 0   ;;  %p248_p3 = scmp.lt.s32.totalorder (!%p216_p2), %s564_s22, 1  ;;  %v612_v2 = vld [vmem:[%s737_s1 + $0x8] sm:$0xff] (!%p216_p2)   ;;  %v613_v3 = vld [vmem:[%s737_s1 + $0x10] sm:$0xff] (!%p216_p2)   ;;  %vm352_vm0 = vcmask (!%p216_p2), 130048  }
   0x6   : > { %219 = sbr.rel (%p216_p2) target bundleno = 507 (0x1fb), region = 40  ;;  %356 = vmatprep.subr.bf16.mxu0 (!%p216_p2), %v632_v1  ;;  %v614_v4 = vld [vmem:[%s737_s1 + $0x18] sm:$0xff] (!%p216_p2)   ;;  %v615_v6 = vld [vmem:[%s737_s1 + $0x20] sm:$0xff] (!%p216_p2)   ;;  %v616_v7 = vld [vmem:[%s737_s1 + $0x28] sm:$0xff] (!%p216_p2)   ;;  %v633_v13 = vmov (!%p216_p2), 0.0   ;;  %vm634_vm1 = vmmov (!%p216_p2), 0  }
   0x7   : > { %357 = vmatpush1.bf16.msra.mxu0 (!%p216_p2), %v611_v0  ;;  %v617_v8 = vld [vmem:[%s737_s1 + $0x30] sm:$0xff] (!%p216_p2)   ;;  %v618_v9 = vld [vmem:[%s737_s1 + $0x38] sm:$0xff] (!%p216_p2)   ;;  %v619_v10 = vld [vmem:[%s737_s1 + $0x40] sm:$0xff] (!%p216_p2)   ;;  %594 = vmatprep.subr.bf16.mxu1 (!%p216_p2), %v633_v13  ;;  %vm409_vm2 = vcmask (!%p216_p2), 123904   ;;  %vm478_vm3 = vcmask (!%p216_p2), 11264  }
   0x8   : > { %358 = vmatprep.subr.bf16.mxu0 (!%p216_p2), %v632_v1  ;;  %v623_v12 = vld [vmem:[%s739_s3] sm:$0xff] (!%p216_p2)   ;;  %596 = vmatprep.mubr.msk.bf16.mxu1 (!%p216_p2), %vm634_vm1, %v633_v13 }
   0x9   : > { %595 = vmatpush3.bf16.msra.mxu1 (!%p216_p2), %v623_v12  ;;  %v573_v14 = vld [vmem:[%s738_s2] ss:$0 sm:$0xff] (!%p216_p2) }
   0xa   : > { %v586_v36 = vld [vmem:[%s740_s4] ss:$0 sm:$0xff] (!%p216_p2) }
   0xb   : > { %359 = vmatpush1.bf16.msra.mxu0 (!%p216_p2), %v612_v2 }
   0xc   : > { %360 = vmatprep.subr.bf16.mxu0 (!%p216_p2), %v632_v1 }
   0xd   : > { %s744_s22 = smov (!%p248_p3, %s564_s22), 1 }
   0xe   : > { %s591_s27 = sshll.u32 %s744_s22, 4  ;;  %s572_s7 = sshll.u32 %s744_s22, 2 }
   0xf   : > { %s252_s8 = scalar_lea.vmem %s736_s0, %s591_s27  ;;  %361 = vmatpush1.bf16.msra.mxu0 %v613_v3  ;;  %s571_s27 = sshll.u32 %s744_s22, 1 }
  0x10   : > { %v622_v5 = vld [vmem:[%s252_s8 + $0x4] ss:$8 sps:$4 sm:$0xff]   ;;  %362 = vmatprep.subr.bf16.mxu0 %v632_v1  ;;  %v620_v11 = vld [vmem:[%s252_s8] ss:$8 sps:$4 sm:$0xff]   ;;  %s256_s30 = scalar_lea.vmem %s741_s5, %s571_s27  ;;  %s260_s12 = scalar_lea.vmem %s742_s6, %s572_s7 }
  0x11   : > { %585 = vmatprep.mubr.msk.bf16.mxu0 %vm352_vm0, %v622_v5 }
  0x13   : > { %363 = vmatpush1.bf16.msra.mxu0 %v614_v4 }
  0x14   : > { %364 = vmatprep.subr.bf16.mxu0 %v632_v1 }
  0x17   : > { %365 = vmatpush1.bf16.msra.mxu0 %v615_v6 }
  0x18   : > { %366 = vmatprep.subr.bf16.mxu0 %v632_v1 }
  0x1b   : > { %367 = vmatpush1.bf16.msra.mxu0 %v616_v7 }
  0x1c   : > { %368 = vmatprep.subr.bf16.mxu0 %v632_v1 }
  0x1f   : > { %369 = vmatpush1.bf16.msra.mxu0 %v617_v8 }
  0x20   : > { %370 = vmatprep.subr.bf16.mxu0 %v632_v1 }
  0x23   : > { %371 = vmatpush1.bf16.msra.mxu0 %v618_v9 }
  0x24   : > { %372 = vmatprep.subr.bf16.mxu0 %v632_v1 }
  0x27   : > { %373 = vmatpush1.bf16.msra.mxu0 %v619_v10 }
  0x2a   : > { %389 = vmatmul.mubr.bf16.vlgmr.msra.gmra.mrb[0].mxu0 %v620_v11 }
  0xfd   : > { %v390_v15 = vpop.f32.mrb[0].mxu0 }
  0xfe   : > { %v391_v16 = vadd.f32 %v573_v14, %v390_v15  ;;  %v392_v17 = vpop.f32.mrb[1].mxu0 }
  0xff   : > { %v393_v18 = vpop.f32.mrb[2].mxu0 }
 0x100   : > { %v397_v19 = vmax.f32 %v391_v16, 0.0  ;;  %v394_v20 = vadd.f32 %v573_v14, %v393_v18  ;;  %v395_v21 = vpop.f32.mrb[3].mxu0 }
 0x102   : > { %399 = vst.msk [vmem:[#allocation2] sm:$0xff] %vm352_vm0, %v397_v19  ;;  %v398_v22 = vmax.f32 %v394_v20, 0.0 }
 0x104   : > { %400 = vst.msk [vmem:[#allocation2 + $0x8] sm:$0xff] %vm352_vm0, %v398_v22 }
 0x10b   : > { %v401_v23 = vld [vmem:[#allocation2] ss:$2 sm:$0xff]  ;;  %v403_v24 = vld [vmem:[#allocation2 + $0x1] ss:$2 sm:$0xff] }
 0x10c   : > { %v404_v25 = vmax.f32 %v401_v23, %v403_v24 }
 0x10e   : > { %405 = vst.msk [vmem:[#allocation3] sm:$0xff] %vm352_vm0, %v404_v25 }
 0x115   : > { %v406_v26 = vld [vmem:[#allocation3] sm:$0x3]  ;;  %v407_v27 = vld [vmem:[#allocation3 + $0x2] sm:$0x3]  ;;  %v411_v28 = vld [vmem:[#allocation3 + $0x4] sm:$0x3] }
 0x116   : > { %v408_v29 = vmax.f32 %v406_v26, %v407_v27  ;;  %v412_v30 = vld [vmem:[#allocation3 + $0x6] sm:$0x3] }
 0x117   : > { %v413_v31 = vmax.f32 %v411_v28, %v412_v30 }
 0x118   : > { %410 = vst.msk [vmem:[#allocation4] sm:$0x3] %vm409_vm2, %v408_v29 }
 0x119   : > { %414 = vst.msk [vmem:[#allocation4 + $0x2] sm:$0x3] %vm409_vm2, %v413_v31 }
 0x120   : > { %v415_v32 = vld [vmem:[#allocation4] sm:$0xf] }
 0x121   : > { %v418_v33 = vld [vmem:[#allocation4] sm:$0xf]  ;;  %v416_v34 = vpack.c.bf16 %v415_v32, %v415_v32 }
 0x122   : > { %v419_v35 = vpack.c.bf16 %v418_v33, %v418_v33 }
 0x123   : > { %417 = vst.msk [vmem:[%s256_s30] sm:$0x3] %vm409_vm2, %v416_v34 }
 0x124   : > { %597 = vmatmul.mubr.msk.bf16.vlgmr.msra.gmra.mrb[0].mxu1 %vm352_vm0, %v419_v35 }
 0x1f7   : > { %v472_v37 = vpop.f32.mrb[0].mxu1 }
 0x1f8   : > { %v473_v38 = vadd.f32 %v586_v36, %v472_v37  ;;  %v598_v39 = vpop.f32.mrb[1].mxu1 }
 0x1f9   : > { %v475_v40 = vpop.f32.mrb[2].mxu1 }
 0x1fa   : > { %479 = vst.msk [vmem:[%s260_s12] sm:$0xf] %vm478_vm3, %v473_v38  ;;  %v599_v41 = vpop.f32.mrb[3].mxu1 }
 0x1fb PF: > { %s17_s21 = sadd.s32 1, %s630_s21  }
 0x1fc   : > { %p14_p4 = scmp.ge.s32.totalorder %s17_s21, 4  }
 0x1fe   :  { %16 = sbr.rel (!%p14_p4) target bundleno = 1 (0x1), region = 83 }

// kernel: mul.18
= control target key start
LH: loop header
LB: loop body
LE: loop exit
PB: predicated region body
PF: predicated region fallthrough
CT: control target
= control target key end

     0   :  { %vm5_vm0 = vcmask 1041409   ;;  %s835_s14 = smov 126   ;;  %s836_s21 = smov 122   ;;  %vm7_vm1 = vcmask 15360   ;;  %vm17_vm2 = vcmask 1048560   ;;  %vm27_vm3 = vcmask 1032160   ;;  %s1359_s0 = inlined_call_operand.vmem [shape: f32[2,8,8,2], index: 0, kind: input, shape index: {}]   ;;  %s1360_s1 = inlined_call_operand.vmem [shape: f32[2,128], index: 1, kind: output, shape index: {}]  }
   0x1   :  { %v646_v0 = vld [vmem:[%s1359_s0 + $0x3f] sm:$0x1]   ;;  %v650_v3 = vld [vmem:[%s1359_s0 + $0x3d] sm:$0x1]   ;;  %v648_v6 = vld [vmem:[%s1359_s0 + $0x3e] sm:$0x1]  }
   0x2   :  { %v647_v1 = vld [vmem:[%s1359_s0 + $0x7e] sm:$0x2]   ;;  %v651_v4 = vld [vmem:[%s1359_s0 + $0x7c] sm:$0x2]   ;;  %v649_v7 = vld [vmem:[%s1359_s0 + $0x7d] sm:$0x2]  }
   0x3   :  { %v14_v2 = vsel %vm5_vm0, %v647_v1, %v646_v0  ;;  %v34_v5 = vsel %vm5_vm0, %v651_v4, %v650_v3  ;;  %v652_v8 = vld [vmem:[%s1359_s0 + $0x3c] sm:$0x1]   ;;  %v24_v9 = vsel %vm5_vm0, %v649_v7, %v648_v6  ;;  %v654_v12 = vld [vmem:[%s1359_s0 + $0x3b] sm:$0x1]   ;;  %v656_v14 = vld [vmem:[%s1359_s0 + $0x3a] sm:$0x1]  }
   0x4   :  { %15 = vrot.lane.b32.xlu0 %v14_v2, %s835_s14  ;;  %35 = vrot.lane.b32.xlu1 %v34_v5, %s836_s21  ;;  %v653_v10 = vld [vmem:[%s1359_s0 + $0x7b] sm:$0x2]   ;;  %v655_v13 = vld [vmem:[%s1359_s0 + $0x7a] sm:$0x2]   ;;  %s837_s3 = smov 124   ;;  %s838_s4 = smov 120  }
   0x5   :  { %v44_v11 = vsel %vm5_vm0, %v653_v10, %v652_v8  ;;  %v657_v15 = vld [vmem:[%s1359_s0 + $0x79] sm:$0x2]   ;;  %v54_v16 = vsel %vm5_vm0, %v655_v13, %v654_v12  ;;  %v658_v18 = vld [vmem:[%s1359_s0 + $0x39] sm:$0x1]   ;;  %v660_v20 = vld [vmem:[%s1359_s0 + $0x38] sm:$0x1]  }
   0x6   :  { %v64_v17 = vsel %vm5_vm0, %v657_v15, %v656_v14  ;;  %v659_v19 = vld [vmem:[%s1359_s0 + $0x78] sm:$0x2]   ;;  %v661_v21 = vld [vmem:[%s1359_s0 + $0x77] sm:$0x2]   ;;  %s839_s13 = smov 118   ;;  %s840_s14 = smov 116  }
   0x7   :  { %v74_v22 = vsel %vm5_vm0, %v659_v19, %v658_v18  ;;  %v84_v23 = vsel %vm5_vm0, %v661_v21, %v660_v20  ;;  %v662_v24 = vld [vmem:[%s1359_s0 + $0x37] sm:$0x1]   ;;  %v664_v26 = vld [vmem:[%s1359_s0 + $0x36] sm:$0x1]   ;;  %s841_s23 = smov 114   ;;  %s842_s24 = smov 112  }
   0x8   :  { %25 = vrot.lane.b32.xlu0 %v24_v9, %s837_s3  ;;  %45 = vrot.lane.b32.xlu1 %v44_v11, %s838_s4  ;;  %v663_v25 = vld [vmem:[%s1359_s0 + $0x76] sm:$0x2]   ;;  %v665_v27 = vld [vmem:[%s1359_s0 + $0x75] sm:$0x2]   ;;  %s843_s4 = smov 110   ;;  %s844_s5 = smov 108  }
   0x9   :  { %v94_v28 = vsel %vm5_vm0, %v663_v25, %v662_v24  ;;  %v104_v29 = vsel %vm5_vm0, %v665_v27, %v664_v26  ;;  %v666_v30 = vld [vmem:[%s1359_s0 + $0x35] sm:$0x1]   ;;  %v668_v32 = vld [vmem:[%s1359_s0 + $0x34] sm:$0x1]   ;;  %v670_v36 = vld [vmem:[%s1359_s0 + $0x33] sm:$0x1]  }
   0xa   :  { %v667_v31 = vld [vmem:[%s1359_s0 + $0x74] sm:$0x2]   ;;  %v669_v33 = vld [vmem:[%s1359_s0 + $0x73] sm:$0x2]   ;;  %v671_v37 = vld [vmem:[%s1359_s0 + $0x72] sm:$0x2]  }
   0xb   :  { %v114_v34 = vsel %vm5_vm0, %v667_v31, %v666_v30  ;;  %v124_v35 = vsel %vm5_vm0, %v669_v33, %v668_v32  ;;  %v672_v38 = vld [vmem:[%s1359_s0 + $0x32] sm:$0x1]   ;;  %s846_s15 = smov 104   ;;  %v134_v40 = vsel %vm5_vm0, %v671_v37, %v670_v36  ;;  %v674_v42 = vld [vmem:[%s1359_s0 + $0x31] sm:$0x1]   ;;  %s848_s25 = smov 100  }
   0xc   :  { %55 = vrot.lane.b32.xlu0 %v54_v16, %s839_s13  ;;  %65 = vrot.lane.b32.xlu1 %v64_v17, %s840_s14  ;;  %v673_v39 = vld [vmem:[%s1359_s0 + $0x71] sm:$0x2]   ;;  %s845_s14 = smov 106   ;;  %v675_v43 = vld [vmem:[%s1359_s0 + $0x70] sm:$0x2]   ;;  %s850_s6 = smov 96  }
   0xd   :  { %v144_v41 = vsel %vm5_vm0, %v673_v39, %v672_v38  ;;  %v676_v44 = vld [vmem:[%s1359_s0 + $0x30] sm:$0x1]   ;;  %v154_v46 = vsel %vm5_vm0, %v675_v43, %v674_v42  ;;  %v678_v48 = vld [vmem:[%s1359_s0 + $0x2f] sm:$0x1]   ;;  %v680_v50 = vld [vmem:[%s1359_s0 + $0x2e] sm:$0x1]  }
   0xe   :  { %v677_v45 = vld [vmem:[%s1359_s0 + $0x6f] sm:$0x2]   ;;  %v679_v49 = vld [vmem:[%s1359_s0 + $0x6e] sm:$0x2]   ;;  %v681_v51 = vld [vmem:[%s1359_s0 + $0x6d] sm:$0x2]  }
   0xf   :  { %v164_v47 = vsel %vm5_vm0, %v677_v45, %v676_v44  ;;  %v174_v52 = vsel %vm5_vm0, %v679_v49, %v678_v48  ;;  %v184_v53 = vsel %vm5_vm0, %v681_v51, %v680_v50  ;;  %v682_v54 = vld [vmem:[%s1359_s0 + $0x2d] sm:$0x1]   ;;  %v684_v56 = vld [vmem:[%s1359_s0 + $0x2c] sm:$0x1]   ;;  %s852_s16 = smov 92   ;;  %s854_s26 = smov 88  }
  0x10   :  { %75 = vrot.lane.b32.xlu0 %v74_v22, %s841_s23  ;;  %85 = vrot.lane.b32.xlu1 %v84_v23, %s842_s24  ;;  %s847_s24 = smov 102   ;;  %v683_v55 = vld [vmem:[%s1359_s0 + $0x6c] sm:$0x2]   ;;  %v685_v57 = vld [vmem:[%s1359_s0 + $0x6b] sm:$0x2]   ;;  %s856_s7 = smov 84  }
  0x11   :  { %v194_v58 = vsel %vm5_vm0, %v683_v55, %v682_v54  ;;  %v204_v59 = vsel %vm5_vm0, %v685_v57, %v684_v56  ;;  %v686_v60 = vld [vmem:[%s1359_s0 + $0x2b] sm:$0x1]   ;;  %v688_v62 = vld [vmem:[%s1359_s0 + $0x2a] sm:$0x1]   ;;  %v690_v2 = vld [vmem:[%s1359_s0 + $0x29] sm:$0x1]  }
  0x12   :  { %v687_v61 = vld [vmem:[%s1359_s0 + $0x6a] sm:$0x2]   ;;  %v689_v63 = vld [vmem:[%s1359_s0 + $0x69] sm:$0x2]   ;;  %v691_v3 = vld [vmem:[%s1359_s0 + $0x68] sm:$0x2]  }
  0x13   :  { %v214_v0 = vsel %vm5_vm0, %v687_v61, %v686_v60  ;;  %v224_v1 = vsel %vm5_vm0, %v689_v63, %v688_v62  ;;  %v692_v4 = vld [vmem:[%s1359_s0 + $0x28] sm:$0x1]   ;;  %v234_v6 = vsel %vm5_vm0, %v691_v3, %v690_v2  ;;  %v694_v8 = vld [vmem:[%s1359_s0 + $0x27] sm:$0x1]   ;;  %v696_v10 = vld [vmem:[%s1359_s0 + $0x26] sm:$0x1]  }
  0x14   :  { %95 = vrot.lane.b32.xlu0 %v94_v28, %s843_s4  ;;  %105 = vrot.lane.b32.xlu1 %v104_v29, %s844_s5  ;;  %s849_s5 = smov 98   ;;  %v693_v5 = vld [vmem:[%s1359_s0 + $0x67] sm:$0x2]   ;;  %v695_v9 = vld [vmem:[%s1359_s0 + $0x66] sm:$0x2]   ;;  %s858_s17 = smov 80  }
  0x15   :  { %v244_v7 = vsel %vm5_vm0, %v693_v5, %v692_v4  ;;  %v697_v11 = vld [vmem:[%s1359_s0 + $0x65] sm:$0x2]   ;;  %v254_v12 = vsel %vm5_vm0, %v695_v9, %v694_v8  ;;  %v698_v13 = vld [vmem:[%s1359_s0 + $0x25] sm:$0x1]   ;;  %v2_v16 = vld [vmem:[%s1359_s0] sm:$0x1]  }
  0x16   :  { %v264_v14 = vsel %vm5_vm0, %v697_v11, %v696_v10  ;;  %v699_v15 = vld [vmem:[%s1359_s0 + $0x64] sm:$0x2]   ;;  %v645_v17 = vld [vmem:[%s1359_s0 + $0x3f] sm:$0x2]   ;;  %v700_v18 = vld [vmem:[%s1359_s0 + $0x24] sm:$0x1]  }
  0x17   :  { %v701_v19 = vld [vmem:[%s1359_s0 + $0x63] sm:$0x2]   ;;  %v6_v20 = vsel %vm5_vm0, %v645_v17, %v2_v16  ;;  %s859_s30 = smov 78   ;;  %s860_s2 = smov 76   ;;  %v274_v21 = vsel %vm5_vm0, %v699_v15, %v698_v13  ;;  %v702_v23 = vld [vmem:[%s1359_s0 + $0x23] sm:$0x1]  }
  0x18   :  { %115 = vrot.lane.b32.xlu0 %v114_v34, %s845_s14  ;;  %125 = vrot.lane.b32.xlu1 %v124_v35, %s846_s15  ;;  %s851_s15 = smov 94   ;;  %8 = vst.msk [vmem:[#allocation0] sm:$0x3] %vm7_vm1, %v6_v20   ;;  %v284_v22 = vsel %vm5_vm0, %v701_v19, %v700_v18  ;;  %v703_v24 = vld [vmem:[%s1359_s0 + $0x62] sm:$0x2]   ;;  %s861_s11 = smov 74  }
  0x19   :  { %v704_v25 = vld [vmem:[%s1359_s0 + $0x22] sm:$0x1]   ;;  %s862_s12 = smov 72   ;;  %v294_v27 = vsel %vm5_vm0, %v703_v24, %v702_v23  ;;  %v706_v29 = vld [vmem:[%s1359_s0 + $0x21] sm:$0x1]   ;;  %s863_s21 = smov 70  }
  0x1a   :  { %v705_v26 = vld [vmem:[%s1359_s0 + $0x61] sm:$0x2]   ;;  %v707_v30 = vld [vmem:[%s1359_s0 + $0x60] sm:$0x2]   ;;  %v708_v31 = vld [vmem:[%s1359_s0 + $0x20] sm:$0x1]  }
  0x1b   :  { %v304_v28 = vsel %vm5_vm0, %v705_v26, %v704_v25  ;;  %v709_v32 = vld [vmem:[%s1359_s0 + $0x5f] sm:$0x2]   ;;  %s864_s22 = smov 68   ;;  %v314_v33 = vsel %vm5_vm0, %v707_v30, %v706_v29  ;;  %v710_v35 = vld [vmem:[%s1359_s0 + $0x1f] sm:$0x1]   ;;  %s866_s3 = smov 64  }
  0x1c   :  { %135 = vrot.lane.b32.xlu0 %v134_v40, %s847_s24  ;;  %145 = vrot.lane.b32.xlu1 %v144_v41, %s848_s25  ;;  %s853_s25 = smov 90   ;;  %v324_v34 = vsel %vm5_vm0, %v709_v32, %v708_v31  ;;  %v711_v36 = vld [vmem:[%s1359_s0 + $0x5e] sm:$0x2]   ;;  %v712_v37 = vld [vmem:[%s1359_s0 + $0x1e] sm:$0x1]   ;;  %s868_s13 = smov 60  }
  0x1d   :  { %v713_v38 = vld [vmem:[%s1359_s0 + $0x5d] sm:$0x2]   ;;  %v334_v39 = vsel %vm5_vm0, %v711_v36, %v710_v35  ;;  %v714_v41 = vld [vmem:[%s1359_s0 + $0x1d] sm:$0x1]   ;;  %v716_v43 = vld [vmem:[%s1359_s0 + $0x1c] sm:$0x1]  }
  0x1e   :  { %v344_v40 = vsel %vm5_vm0, %v713_v38, %v712_v37  ;;  %v715_v42 = vld [vmem:[%s1359_s0 + $0x5c] sm:$0x2]   ;;  %v717_v44 = vld [vmem:[%s1359_s0 + $0x5b] sm:$0x2]   ;;  %v719_v48 = vld [vmem:[%s1359_s0 + $0x5a] sm:$0x2]  }
  0x1f   :  { %v354_v45 = vsel %vm5_vm0, %v715_v42, %v714_v41  ;;  %v720_v49 = vld [vmem:[%s1359_s0 + $0x1a] sm:$0x1]   ;;  %s870_s23 = smov 56   ;;  %v723_v54 = vld [vmem:[%s1359_s0 + $0x58] sm:$0x2]   ;;  %s872_s4 = smov 52  }
  0x20   :  { %155 = vrot.lane.b32.xlu0 %v154_v46, %s849_s5  ;;  %165 = vrot.lane.b32.xlu1 %v164_v47, %s850_s6  ;;  %s855_s6 = smov 86   ;;  %v364_v46 = vsel %vm5_vm0, %v717_v44, %v716_v43  ;;  %v718_v47 = vld [vmem:[%s1359_s0 + $0x1b] sm:$0x1]   ;;  %v721_v50 = vld [vmem:[%s1359_s0 + $0x59] sm:$0x2]   ;;  %s874_s14 = smov 48  }
  0x21   :  { %v374_v51 = vsel %vm5_vm0, %v719_v48, %v718_v47  ;;  %v724_v55 = vld [vmem:[%s1359_s0 + $0x18] sm:$0x1]   ;;  %v727_v60 = vld [vmem:[%s1359_s0 + $0x56] sm:$0x2]   ;;  %v728_v61 = vld [vmem:[%s1359_s0 + $0x16] sm:$0x1]  }
  0x22   :  { %v725_v56 = vld [vmem:[%s1359_s0 + $0x57] sm:$0x2]   ;;  %v729_v62 = vld [vmem:[%s1359_s0 + $0x55] sm:$0x2]   ;;  %v731_v2 = vld [vmem:[%s1359_s0 + $0x54] sm:$0x2]  }
  0x23   :  { %v732_v3 = vld [vmem:[%s1359_s0 + $0x14] sm:$0x1]   ;;  %s876_s24 = smov 44   ;;  %v735_v8 = vld [vmem:[%s1359_s0 + $0x52] sm:$0x2]   ;;  %s878_s5 = smov 40  }
  0x24   :  { %175 = vrot.lane.b32.xlu0 %v174_v52, %s851_s15  ;;  %185 = vrot.lane.b32.xlu1 %v184_v53, %s852_s16  ;;  %s857_s16 = smov 82   ;;  %v384_v52 = vsel %vm5_vm0, %v721_v50, %v720_v49  ;;  %v722_v53 = vld [vmem:[%s1359_s0 + $0x19] sm:$0x1]   ;;  %v733_v4 = vld [vmem:[%s1359_s0 + $0x53] sm:$0x2]   ;;  %s880_s15 = smov 36  }
  0x25   :  { %v394_v57 = vsel %vm5_vm0, %v723_v54, %v722_v53  ;;  %v736_v9 = vld [vmem:[%s1359_s0 + $0x12] sm:$0x1]   ;;  %v738_v13 = vld [vmem:[%s1359_s0 + $0x11] sm:$0x1]   ;;  %v740_v15 = vld [vmem:[%s1359_s0 + $0x10] sm:$0x1]  }
  0x26   :  { %v737_v10 = vld [vmem:[%s1359_s0 + $0x51] sm:$0x2]   ;;  %v741_v16 = vld [vmem:[%s1359_s0 + $0x4f] sm:$0x2]   ;;  %v742_v19 = vld [vmem:[%s1359_s0 + $0xf] sm:$0x1]  }
  0x27   :  { %v484_v18 = vsel %vm5_vm0, %v741_v16, %v740_v15  ;;  %v743_v20 = vld [vmem:[%s1359_s0 + $0x4e] sm:$0x2]   ;;  %v746_v25 = vld [vmem:[%s1359_s0 + $0xd] sm:$0x1]   ;;  %v750_v31 = vld [vmem:[%s1359_s0 + $0xb] sm:$0x1]  }
  0x28   :  { %195 = vrot.lane.b32.xlu0 %v194_v58, %s853_s25  ;;  %205 = vrot.lane.b32.xlu1 %v204_v59, %s854_s26  ;;  %v404_v58 = vsel %vm5_vm0, %v725_v56, %v724_v55  ;;  %v726_v59 = vld [vmem:[%s1359_s0 + $0x17] sm:$0x1]   ;;  %s882_s25 = smov 32   ;;  %v494_v23 = vsel %vm5_vm0, %v743_v20, %v742_v19  ;;  %v747_v26 = vld [vmem:[%s1359_s0 + $0x4c] sm:$0x2]   ;;  %s888_s26 = smov 20  }
  0x29   :  { %v414_v63 = vsel %vm5_vm0, %v727_v60, %v726_v59  ;;  %v514_v29 = vsel %vm5_vm0, %v747_v26, %v746_v25  ;;  %v751_v32 = vld [vmem:[%s1359_s0 + $0x4a] sm:$0x2]   ;;  %v754_v37 = vld [vmem:[%s1359_s0 + $0x9] sm:$0x1]   ;;  %v758_v43 = vld [vmem:[%s1359_s0 + $0x7] sm:$0x1]  }
  0x2a   :  { %v534_v35 = vsel %vm5_vm0, %v751_v32, %v750_v31  ;;  %v755_v38 = vld [vmem:[%s1359_s0 + $0x48] sm:$0x2]   ;;  %v759_v44 = vld [vmem:[%s1359_s0 + $0x46] sm:$0x2]   ;;  %v762_v49 = vld [vmem:[%s1359_s0 + $0x5] sm:$0x1]  }
  0x2b   :  { %v554_v41 = vsel %vm5_vm0, %v755_v38, %v754_v37  ;;  %v574_v47 = vsel %vm5_vm0, %v759_v44, %v758_v43  ;;  %v763_v50 = vld [vmem:[%s1359_s0 + $0x44] sm:$0x2]   ;;  %v766_v56 = vld [vmem:[%s1359_s0 + $0x3] sm:$0x1]   ;;  %v768_v59 = vld [vmem:[%s1359_s0 + $0x2] sm:$0x1]  }
  0x2c   :  { %215 = vrot.lane.b32.xlu0 %v214_v0, %s855_s6  ;;  %225 = vrot.lane.b32.xlu1 %v224_v1, %s856_s7  ;;  %v424_v0 = vsel %vm5_vm0, %v729_v62, %v728_v61  ;;  %v730_v1 = vld [vmem:[%s1359_s0 + $0x15] sm:$0x1]   ;;  %s884_s6 = smov 28   ;;  %s890_s7 = smov 16   ;;  %v594_v53 = vsel %vm5_vm0, %v763_v50, %v762_v49  ;;  %v769_v60 = vld [vmem:[%s1359_s0 + $0x41] sm:$0x2]  }
  0x2d   :  { %v434_v5 = vsel %vm5_vm0, %v731_v2, %v730_v1  ;;  %vm37_vm4 = vcmask 1015760   ;;  %s894_s27 = smov 8   ;;  %vm47_vm5 = vcmask 999360   ;;  %v771_v1 = vld [vmem:[%s1359_s0 + $0x40] sm:$0x2]   ;;  %vm57_vm6 = vcmask 982960  }
  0x2e   :  { %vm67_vm7 = vcmask 966560   ;;  %vm77_vm8 = vcmask 950160   ;;  %vm87_vm9 = vcmask 933760   ;;  %vm97_vm10 = vcmask 917360  }
  0x2f   :  { %vm107_vm11 = vcmask 900960   ;;  %vm117_vm12 = vcmask 884560   ;;  %vm127_vm13 = vcmask 868160   ;;  %vm137_vm14 = vcmask 851760  }
  0x30   :  { %235 = vrot.lane.b32.xlu0 %v234_v6, %s857_s16  ;;  %245 = vrot.lane.b32.xlu1 %v244_v7, %s858_s17  ;;  %v444_v6 = vsel %vm5_vm0, %v733_v4, %v732_v3  ;;  %v734_v7 = vld [vmem:[%s1359_s0 + $0x13] sm:$0x1]   ;;  %s886_s16 = smov 24   ;;  %s892_s17 = smov 12   ;;  %vm147_vm15 = vcmask 835360   ;;  %vm167_vm1 = vcmask 802560  }
  0x31   :  { %v454_v11 = vsel %vm5_vm0, %v735_v8, %v734_v7 }
  0x34   :  { %255 = vrot.lane.b32.xlu0 %v254_v12, %s859_s30  ;;  %265 = vrot.lane.b32.xlu1 %v264_v14, %s860_s2  ;;  %s865_s2 = smov 66   ;;  %v464_v12 = vsel %vm5_vm0, %v737_v10, %v736_v9  ;;  %v739_v14 = vld [vmem:[%s1359_s0 + $0x50] sm:$0x2]  }
  0x35   :  { %v474_v17 = vsel %vm5_vm0, %v739_v14, %v738_v13 }
  0x38   :  { %275 = vrot.lane.b32.xlu0 %v274_v21, %s861_s11  ;;  %285 = vrot.lane.b32.xlu1 %v284_v22, %s862_s12  ;;  %s867_s12 = smov 62   ;;  %v744_v21 = vld [vmem:[%s1359_s0 + $0xe] sm:$0x1]  }
  0x39   :  { %v745_v22 = vld [vmem:[%s1359_s0 + $0x4d] sm:$0x2]  }
  0x3a   :  { %v504_v24 = vsel %vm5_vm0, %v745_v22, %v744_v21 }
  0x3c   :  { %295 = vrot.lane.b32.xlu0 %v294_v27, %s863_s21  ;;  %305 = vrot.lane.b32.xlu1 %v304_v28, %s864_s22  ;;  %s869_s22 = smov 58   ;;  %v748_v27 = vld [vmem:[%s1359_s0 + $0xc] sm:$0x1]  }
  0x3d   :  { %v749_v28 = vld [vmem:[%s1359_s0 + $0x4b] sm:$0x2]  }
  0x3e   :  { %v524_v30 = vsel %vm5_vm0, %v749_v28, %v748_v27 }
  0x40   :  { %315 = vrot.lane.b32.xlu0 %v314_v33, %s865_s2  ;;  %325 = vrot.lane.b32.xlu1 %v324_v34, %s866_s3  ;;  %s871_s3 = smov 54   ;;  %v752_v33 = vld [vmem:[%s1359_s0 + $0xa] sm:$0x1]  }
  0x41   :  { %v753_v34 = vld [vmem:[%s1359_s0 + $0x49] sm:$0x2]  }
  0x42   :  { %v544_v36 = vsel %vm5_vm0, %v753_v34, %v752_v33 }
  0x44   :  { %335 = vrot.lane.b32.xlu0 %v334_v39, %s867_s12  ;;  %345 = vrot.lane.b32.xlu1 %v344_v40, %s868_s13  ;;  %s873_s13 = smov 50   ;;  %v756_v39 = vld [vmem:[%s1359_s0 + $0x8] sm:$0x1]  }
  0x45   :  { %v757_v40 = vld [vmem:[%s1359_s0 + $0x47] sm:$0x2]  }
  0x46   :  { %v564_v42 = vsel %vm5_vm0, %v757_v40, %v756_v39 }
  0x48   :  { %355 = vrot.lane.b32.xlu0 %v354_v45, %s869_s22  ;;  %365 = vrot.lane.b32.xlu1 %v364_v46, %s870_s23  ;;  %s875_s23 = smov 46   ;;  %v760_v45 = vld [vmem:[%s1359_s0 + $0x6] sm:$0x1]  }
  0x49   :  { %v761_v46 = vld [vmem:[%s1359_s0 + $0x45] sm:$0x2]  }
  0x4a   :  { %v584_v48 = vsel %vm5_vm0, %v761_v46, %v760_v45 }
  0x4c   :  { %375 = vrot.lane.b32.xlu0 %v374_v51, %s871_s3  ;;  %385 = vrot.lane.b32.xlu1 %v384_v52, %s872_s4  ;;  %s877_s4 = smov 42   ;;  %v764_v51 = vld [vmem:[%s1359_s0 + $0x4] sm:$0x1]   ;;  %s896_s3 = smov 4  }
  0x4d   :  { %v765_v52 = vld [vmem:[%s1359_s0 + $0x43] sm:$0x2]  }
  0x4e   :  { %v604_v55 = vsel %vm5_vm0, %v765_v52, %v764_v51 }
  0x50   :  { %395 = vrot.lane.b32.xlu0 %v394_v57, %s873_s13  ;;  %405 = vrot.lane.b32.xlu1 %v404_v58, %s874_s14  ;;  %s879_s14 = smov 38   ;;  %v767_v57 = vld [vmem:[%s1359_s0 + $0x42] sm:$0x2]  }
  0x51   :  { %v614_v61 = vsel %vm5_vm0, %v767_v57, %v766_v56 }
  0x54   :  { %415 = vrot.lane.b32.xlu0 %v414_v63, %s875_s23  ;;  %425 = vrot.lane.b32.xlu1 %v424_v0, %s876_s24  ;;  %s881_s24 = smov 34   ;;  %v624_v63 = vsel %vm5_vm0, %v769_v60, %v768_v59  ;;  %v770_v0 = vld [vmem:[%s1359_s0 + $0x1] sm:$0x1]   ;;  %s895_s0 = smov 6  }
  0x55   :  { %v634_v3 = vsel %vm5_vm0, %v771_v1, %v770_v0  ;;  %vm157_vm0 = vcmask 818960  }
  0x58   :  { %435 = vrot.lane.b32.xlu0 %v434_v5, %s877_s4  ;;  %445 = vrot.lane.b32.xlu1 %v444_v6, %s878_s5  ;;  %s883_s5 = smov 30   ;;  %s897_s4 = smov 2  }
  0x5c   :  { %455 = vrot.lane.b32.xlu0 %v454_v11, %s879_s14  ;;  %465 = vrot.lane.b32.xlu1 %v464_v12, %s880_s15  ;;  %s885_s15 = smov 26  }
  0x60   :  { %475 = vrot.lane.b32.xlu0 %v474_v17, %s881_s24  ;;  %485 = vrot.lane.b32.xlu1 %v484_v18, %s882_s25  ;;  %s887_s25 = smov 22  }
  0x64   :  { %495 = vrot.lane.b32.xlu0 %v494_v23, %s883_s5  ;;  %505 = vrot.lane.b32.xlu1 %v504_v24, %s884_s6  ;;  %s889_s6 = smov 18  }
  0x68   :  { %515 = vrot.lane.b32.xlu0 %v514_v29, %s885_s15  ;;  %525 = vrot.lane.b32.xlu1 %v524_v30, %s886_s16  ;;  %s891_s16 = smov 14  }
  0x6c   :  { %535 = vrot.lane.b32.xlu0 %v534_v35, %s887_s25  ;;  %545 = vrot.lane.b32.xlu1 %v544_v36, %s888_s26  ;;  %s893_s26 = smov 10  }
  0x70   :  { %555 = vrot.lane.b32.xlu0 %v554_v41, %s889_s6  ;;  %565 = vrot.lane.b32.xlu1 %v564_v42, %s890_s7 }
  0x74   :  { %575 = vrot.lane.b32.xlu0 %v574_v47, %s891_s16  ;;  %585 = vrot.lane.b32.xlu1 %v584_v48, %s892_s17 }
  0x76   :  { %v16_v54 = vpop.permute.xlu0 %15   ;;  %v36_v58 = vpop.permute.xlu1 %35  }
  0x77   :  { %18 = vst.msk [vmem:[#allocation0] sm:$0x3] %vm17_vm2, %v16_v54   ;;  %vm177_vm2 = vcmask 786160  }
  0x78   :  { %595 = vrot.lane.b32.xlu0 %v594_v53, %s893_s26  ;;  %605 = vrot.lane.b32.xlu1 %v604_v55, %s894_s27 }
  0x7a   :  { %v26_v62 = vpop.permute.xlu0 %25   ;;  %v46_v2 = vpop.permute.xlu1 %45  }
  0x7b   :  { %28 = vst.msk [vmem:[#allocation0] sm:$0x3] %vm27_vm3, %v26_v62   ;;  %vm187_vm3 = vcmask 769760  }
  0x7c   :  { %38 = vst.msk [vmem:[#allocation0] sm:$0x3] %vm37_vm4, %v36_v58   ;;  %615 = vrot.lane.b32.xlu0 %v614_v61, %s895_s0  ;;  %625 = vrot.lane.b32.xlu1 %v624_v63, %s896_s3  ;;  %vm197_vm4 = vcmask 753360  }
  0x7d   :  { %48 = vst.msk [vmem:[#allocation0] sm:$0x3] %vm47_vm5, %v46_v2   ;;  %vm207_vm5 = vcmask 736960  }
  0x7e   :  { %v56_v4 = vpop.permute.xlu0 %55   ;;  %v66_v5 = vpop.permute.xlu1 %65  }
  0x7f   :  { %58 = vst.msk [vmem:[#allocation0] sm:$0x3] %vm57_vm6, %v56_v4   ;;  %vm217_vm6 = vcmask 720560  }
  0x80   :  { %635 = vrot.lane.b32.xlu0 %v634_v3, %s897_s4  ;;  %68 = vst.msk [vmem:[#allocation0] sm:$0x3] %vm67_vm7, %v66_v5   ;;  %vm227_vm7 = vcmask 704160  }
  0x82   :  { %v76_v6 = vpop.permute.xlu0 %75   ;;  %v86_v7 = vpop.permute.xlu1 %85  }
  0x83   :  { %78 = vst.msk [vmem:[#allocation0] sm:$0x3] %vm77_vm8, %v76_v6   ;;  %vm237_vm8 = vcmask 687760  }
  0x84   :  { %88 = vst.msk [vmem:[#allocation0] sm:$0x3] %vm87_vm9, %v86_v7   ;;  %vm247_vm9 = vcmask 671360  }
  0x86   :  { %v96_v8 = vpop.permute.xlu0 %95   ;;  %v106_v9 = vpop.permute.xlu1 %105  }
  0x87   :  { %98 = vst.msk [vmem:[#allocation0] sm:$0x3] %vm97_vm10, %v96_v8   ;;  %vm257_vm10 = vcmask 654960  }
  0x88   :  { %108 = vst.msk [vmem:[#allocation0] sm:$0x3] %vm107_vm11, %v106_v9   ;;  %vm267_vm11 = vcmask 638560  }
  0x8a   :  { %v116_v10 = vpop.permute.xlu0 %115   ;;  %v126_v11 = vpop.permute.xlu1 %125  }
  0x8b   :  { %118 = vst.msk [vmem:[#allocation0] sm:$0x3] %vm117_vm12, %v116_v10   ;;  %vm277_vm12 = vcmask 622160  }
  0x8c   :  { %128 = vst.msk [vmem:[#allocation0] sm:$0x3] %vm127_vm13, %v126_v11   ;;  %vm287_vm13 = vcmask 605760  }
  0x8e   :  { %v136_v12 = vpop.permute.xlu0 %135   ;;  %v146_v13 = vpop.permute.xlu1 %145  }
  0x8f   :  { %138 = vst.msk [vmem:[#allocation0] sm:$0x3] %vm137_vm14, %v136_v12   ;;  %vm297_vm14 = vcmask 589360  }
  0x90   :  { %148 = vst.msk [vmem:[#allocation0] sm:$0x3] %vm147_vm15, %v146_v13   ;;  %vm307_vm15 = vcmask 572960  }
  0x92   :  { %v156_v14 = vpop.permute.xlu0 %155   ;;  %v166_v15 = vpop.permute.xlu1 %165  }
  0x93   :  { %158 = vst.msk [vmem:[#allocation0] sm:$0x3] %vm157_vm0, %v156_v14   ;;  %vm317_vm0 = vcmask 556560  }
  0x94   :  { %168 = vst.msk [vmem:[#allocation0] sm:$0x3] %vm167_vm1, %v166_v15   ;;  %vm327_vm1 = vcmask 540160  }
  0x96   :  { %v176_v16 = vpop.permute.xlu0 %175   ;;  %v186_v17 = vpop.permute.xlu1 %185  }
  0x97   :  { %178 = vst.msk [vmem:[#allocation0] sm:$0x3] %vm177_vm2, %v176_v16   ;;  %vm337_vm2 = vcmask 523760  }
  0x98   :  { %188 = vst.msk [vmem:[#allocation0] sm:$0x3] %vm187_vm3, %v186_v17   ;;  %vm347_vm3 = vcmask 507360  }
  0x9a   :  { %v196_v18 = vpop.permute.xlu0 %195   ;;  %v206_v19 = vpop.permute.xlu1 %205  }
  0x9b   :  { %198 = vst.msk [vmem:[#allocation0] sm:$0x3] %vm197_vm4, %v196_v18   ;;  %vm357_vm4 = vcmask 490960  }
  0x9c   :  { %208 = vst.msk [vmem:[#allocation0] sm:$0x3] %vm207_vm5, %v206_v19   ;;  %vm367_vm5 = vcmask 474560  }
  0x9e   :  { %v216_v20 = vpop.permute.xlu0 %215   ;;  %v226_v21 = vpop.permute.xlu1 %225  }
  0x9f   :  { %218 = vst.msk [vmem:[#allocation0] sm:$0x3] %vm217_vm6, %v216_v20   ;;  %vm377_vm6 = vcmask 458160  }
  0xa0   :  { %228 = vst.msk [vmem:[#allocation0] sm:$0x3] %vm227_vm7, %v226_v21   ;;  %vm387_vm7 = vcmask 441760  }
  0xa2   :  { %v236_v22 = vpop.permute.xlu0 %235   ;;  %v246_v23 = vpop.permute.xlu1 %245  }
  0xa3   :  { %238 = vst.msk [vmem:[#allocation0] sm:$0x3] %vm237_vm8, %v236_v22   ;;  %vm397_vm8 = vcmask 425360  }
  0xa4   :  { %248 = vst.msk [vmem:[#allocation0] sm:$0x3] %vm247_vm9, %v246_v23   ;;  %vm407_vm9 = vcmask 408960  }
  0xa6   :  { %v256_v24 = vpop.permute.xlu0 %255   ;;  %v266_v25 = vpop.permute.xlu1 %265  }
  0xa7   :  { %258 = vst.msk [vmem:[#allocation0] sm:$0x3] %vm257_vm10, %v256_v24   ;;  %vm417_vm10 = vcmask 392560  }
  0xa8   :  { %268 = vst.msk [vmem:[#allocation0] sm:$0x3] %vm267_vm11, %v266_v25   ;;  %vm427_vm11 = vcmask 376160  }
  0xaa   :  { %v276_v26 = vpop.permute.xlu0 %275   ;;  %v286_v27 = vpop.permute.xlu1 %285  }
  0xab   :  { %278 = vst.msk [vmem:[#allocation0] sm:$0x3] %vm277_vm12, %v276_v26   ;;  %vm437_vm12 = vcmask 359760  }
  0xac   :  { %288 = vst.msk [vmem:[#allocation0] sm:$0x3] %vm287_vm13, %v286_v27   ;;  %vm447_vm13 = vcmask 343360  }
  0xae   :  { %v296_v28 = vpop.permute.xlu0 %295   ;;  %v306_v29 = vpop.permute.xlu1 %305  }
  0xaf   :  { %298 = vst.msk [vmem:[#allocation0] sm:$0x3] %vm297_vm14, %v296_v28   ;;  %vm457_vm14 = vcmask 326960  }
  0xb0   :  { %308 = vst.msk [vmem:[#allocation0] sm:$0x3] %vm307_vm15, %v306_v29   ;;  %vm467_vm15 = vcmask 310560  }
  0xb2   :  { %v316_v30 = vpop.permute.xlu0 %315   ;;  %v326_v31 = vpop.permute.xlu1 %325  }
  0xb3   :  { %318 = vst.msk [vmem:[#allocation0] sm:$0x3] %vm317_vm0, %v316_v30   ;;  %vm477_vm0 = vcmask 294160  }
  0xb4   :  { %328 = vst.msk [vmem:[#allocation0] sm:$0x3] %vm327_vm1, %v326_v31   ;;  %vm487_vm1 = vcmask 277760  }
  0xb6   :  { %v336_v32 = vpop.permute.xlu0 %335   ;;  %v346_v33 = vpop.permute.xlu1 %345  }
  0xb7   :  { %338 = vst.msk [vmem:[#allocation0] sm:$0x3] %vm337_vm2, %v336_v32   ;;  %vm497_vm2 = vcmask 261360  }
  0xb8   :  { %348 = vst.msk [vmem:[#allocation0] sm:$0x3] %vm347_vm3, %v346_v33   ;;  %vm507_vm3 = vcmask 244960  }
  0xba   :  { %v356_v34 = vpop.permute.xlu0 %355   ;;  %v366_v35 = vpop.permute.xlu1 %365  }
  0xbb   :  { %358 = vst.msk [vmem:[#allocation0] sm:$0x3] %vm357_vm4, %v356_v34   ;;  %vm517_vm4 = vcmask 228560  }
  0xbc   :  { %368 = vst.msk [vmem:[#allocation0] sm:$0x3] %vm367_vm5, %v366_v35   ;;  %vm527_vm5 = vcmask 212160  }
  0xbe   :  { %v376_v36 = vpop.permute.xlu0 %375   ;;  %v386_v37 = vpop.permute.xlu1 %385  }
  0xbf   :  { %378 = vst.msk [vmem:[#allocation0] sm:$0x3] %vm377_vm6, %v376_v36   ;;  %vm537_vm6 = vcmask 195760  }
  0xc0   :  { %388 = vst.msk [vmem:[#allocation0] sm:$0x3] %vm387_vm7, %v386_v37   ;;  %vm547_vm7 = vcmask 179360  }
  0xc2   :  { %v396_v38 = vpop.permute.xlu0 %395   ;;  %v406_v39 = vpop.permute.xlu1 %405  }
  0xc3   :  { %398 = vst.msk [vmem:[#allocation0] sm:$0x3] %vm397_vm8, %v396_v38   ;;  %vm557_vm8 = vcmask 162960  }
  0xc4   :  { %408 = vst.msk [vmem:[#allocation0] sm:$0x3] %vm407_vm9, %v406_v39   ;;  %vm567_vm9 = vcmask 146560  }
  0xc6   :  { %v416_v40 = vpop.permute.xlu0 %415   ;;  %v426_v41 = vpop.permute.xlu1 %425  }
  0xc7   :  { %418 = vst.msk [vmem:[#allocation0] sm:$0x3] %vm417_vm10, %v416_v40   ;;  %vm577_vm10 = vcmask 130160  }
  0xc8   :  { %428 = vst.msk [vmem:[#allocation0] sm:$0x3] %vm427_vm11, %v426_v41   ;;  %vm587_vm11 = vcmask 113760  }
  0xca   :  { %v436_v42 = vpop.permute.xlu0 %435   ;;  %v446_v43 = vpop.permute.xlu1 %445  }
  0xcb   :  { %438 = vst.msk [vmem:[#allocation0] sm:$0x3] %vm437_vm12, %v436_v42   ;;  %vm597_vm12 = vcmask 97360  }
  0xcc   :  { %448 = vst.msk [vmem:[#allocation0] sm:$0x3] %vm447_vm13, %v446_v43   ;;  %vm607_vm13 = vcmask 80960  }
  0xce   :  { %v456_v44 = vpop.permute.xlu0 %455   ;;  %v466_v45 = vpop.permute.xlu1 %465  }
  0xcf   :  { %458 = vst.msk [vmem:[#allocation0] sm:$0x3] %vm457_vm14, %v456_v44   ;;  %vm617_vm14 = vcmask 64560  }
  0xd0   :  { %468 = vst.msk [vmem:[#allocation0] sm:$0x3] %vm467_vm15, %v466_v45   ;;  %vm627_vm15 = vcmask 48160  }
  0xd2   :  { %v476_v46 = vpop.permute.xlu0 %475   ;;  %v486_v47 = vpop.permute.xlu1 %485  }
  0xd3   :  { %478 = vst.msk [vmem:[#allocation0] sm:$0x3] %vm477_vm0, %v476_v46   ;;  %vm637_vm0 = vcmask 31760  }
  0xd4   :  { %488 = vst.msk [vmem:[#allocation0] sm:$0x3] %vm487_vm1, %v486_v47  }
  0xd6   :  { %v496_v48 = vpop.permute.xlu0 %495   ;;  %v506_v49 = vpop.permute.xlu1 %505  }
  0xd7   :  { %498 = vst.msk [vmem:[#allocation0] sm:$0x3] %vm497_vm2, %v496_v48  }
  0xd8   :  { %508 = vst.msk [vmem:[#allocation0] sm:$0x3] %vm507_vm3, %v506_v49  }
  0xda   :  { %v516_v50 = vpop.permute.xlu0 %515   ;;  %v526_v51 = vpop.permute.xlu1 %525  }
  0xdb   :  { %518 = vst.msk [vmem:[#allocation0] sm:$0x3] %vm517_vm4, %v516_v50  }
  0xdc   :  { %528 = vst.msk [vmem:[#allocation0] sm:$0x3] %vm527_vm5, %v526_v51  }
  0xde   :  { %v536_v52 = vpop.permute.xlu0 %535   ;;  %v546_v53 = vpop.permute.xlu1 %545  }
  0xdf   :  { %538 = vst.msk [vmem:[#allocation0] sm:$0x3] %vm537_vm6, %v536_v52  }
  0xe0   :  { %548 = vst.msk [vmem:[#allocation0] sm:$0x3] %vm547_vm7, %v546_v53  }
  0xe2   :  { %v556_v54 = vpop.permute.xlu0 %555   ;;  %v566_v55 = vpop.permute.xlu1 %565  }
  0xe3   :  { %558 = vst.msk [vmem:[#allocation0] sm:$0x3] %vm557_vm8, %v556_v54  }
  0xe4   :  { %568 = vst.msk [vmem:[#allocation0] sm:$0x3] %vm567_vm9, %v566_v55  }
  0xe6   :  { %v576_v56 = vpop.permute.xlu0 %575   ;;  %v586_v57 = vpop.permute.xlu1 %585  }
  0xe7   :  { %578 = vst.msk [vmem:[#allocation0] sm:$0x3] %vm577_vm10, %v576_v56  }
  0xe8   :  { %588 = vst.msk [vmem:[#allocation0] sm:$0x3] %vm587_vm11, %v586_v57  }
  0xea   :  { %v596_v58 = vpop.permute.xlu0 %595   ;;  %v606_v59 = vpop.permute.xlu1 %605  }
  0xeb   :  { %598 = vst.msk [vmem:[#allocation0] sm:$0x3] %vm597_vm12, %v596_v58  }
  0xec   :  { %608 = vst.msk [vmem:[#allocation0] sm:$0x3] %vm607_vm13, %v606_v59  }
  0xee   :  { %v616_v60 = vpop.permute.xlu0 %615   ;;  %v626_v61 = vpop.permute.xlu1 %625  }
  0xef   :  { %618 = vst.msk [vmem:[#allocation0] sm:$0x3] %vm617_vm14, %v616_v60  }
  0xf0   :  { %628 = vst.msk [vmem:[#allocation0] sm:$0x3] %vm627_vm15, %v626_v61  }
  0xf2   :  { %v636_v62 = vpop.permute.xlu0 %635  }
  0xf3   :  { %638 = vst.msk [vmem:[#allocation0] sm:$0x3] %vm637_vm0, %v636_v62  }
  0xfa   :  { %v642_v63 = vld [vmem:[#allocation0] sm:$0x3] }
  0xfb   :  { %644 = vst [vmem:[%s1360_s1] sm:$0x3] %v642_v63 }

// kernel: tile.29
= control target key start
LH: loop header
LB: loop body
LE: loop exit
PB: predicated region body
PF: predicated region fallthrough
CT: control target
= control target key end

     0   :  { %vm5_vm0 = vcmask 1041409   ;;  %vm9_vm1 = vcmask 1042434   ;;  %vm13_vm2 = vcmask 1043459   ;;  %vm17_vm3 = vcmask 1044484   ;;  %s5815_s19 = smov 124   ;;  %s5816_s9 = smov 126   ;;  %s10272_s0 = inlined_call_operand.vmem [shape: f32[1024,2], index: 0, kind: input, shape index: {}]   ;;  %s10273_s1 = inlined_call_operand.vmem [shape: f32[1,2048], index: 1, kind: output, shape index: {}]  }
   0x1   :  { %v4745_v0 = vld [vmem:[%s10272_s0 + $0x3e] sm:$0x1]   ;;  %vm21_vm4 = vcmask 1045509   ;;  %vm25_vm5 = vcmask 1046534   ;;  %vm29_vm6 = vcmask 1047559   ;;  %s5817_s28 = smov 122  }
   0x2   :  { %v4746_v1 = vld [vmem:[%s10272_s0 + $0x7d] sm:$0x2]   ;;  %v4729_v10 = vld [vmem:[%s10272_s0 + $0x3f] sm:$0x1]   ;;  %v4769_v52 = vld [vmem:[%s10272_s0 + $0x23d] sm:$0x1]  }
   0x3   :  { %v146_v2 = vsel %vm5_vm0, %v4746_v1, %v4745_v0  ;;  %v4747_v3 = vld [vmem:[%s10272_s0 + $0xbc] sm:$0x4]   ;;  %v4730_v11 = vld [vmem:[%s10272_s0 + $0x7e] sm:$0x2]   ;;  %v4770_v53 = vld [vmem:[%s10272_s0 + $0x27c] sm:$0x2]  }
   0x4   :  { %v4748_v4 = vld [vmem:[%s10272_s0 + $0xfb] sm:$0x8]   ;;  %v150_v6 = vsel %vm9_vm1, %v4747_v3, %v146_v2  ;;  %v4731_v12 = vld [vmem:[%s10272_s0 + $0xbd] sm:$0x4]   ;;  %v74_v15 = vsel %vm5_vm0, %v4730_v11, %v4729_v10  ;;  %v253_v56 = vsel %vm5_vm0, %v4770_v53, %v4769_v52  ;;  %v4771_v57 = vld [vmem:[%s10272_s0 + $0x2bb] sm:$0x4]  }
   0x5   :  { %v4749_v5 = vld [vmem:[%s10272_s0 + $0x13a] sm:$0x10]   ;;  %v154_v9 = vsel %vm13_vm2, %v4748_v4, %v150_v6  ;;  %v4732_v16 = vld [vmem:[%s10272_s0 + $0xfc] sm:$0x8]   ;;  %v78_v19 = vsel %vm9_vm1, %v4731_v12, %v74_v15  ;;  %v4772_v58 = vld [vmem:[%s10272_s0 + $0x2fa] sm:$0x8]   ;;  %v257_v63 = vsel %vm9_vm1, %v4771_v57, %v253_v56 }
   0x6   :  { %v4750_v7 = vld [vmem:[%s10272_s0 + $0x179] sm:$0x20]   ;;  %v158_v13 = vsel %vm17_vm3, %v4749_v5, %v154_v9  ;;  %v4733_v17 = vld [vmem:[%s10272_s0 + $0x13b] sm:$0x10]   ;;  %v82_v24 = vsel %vm13_vm2, %v4732_v16, %v78_v19  ;;  %v4773_v59 = vld [vmem:[%s10272_s0 + $0x339] sm:$0x10]   ;;  %v261_v3 = vsel %vm13_vm2, %v4772_v58, %v257_v63 }
   0x7   :  { %v4751_v8 = vld [vmem:[%s10272_s0 + $0x1b8] sm:$0x40]   ;;  %v162_v18 = vsel %vm21_vm4, %v4750_v7, %v158_v13  ;;  %v4734_v20 = vld [vmem:[%s10272_s0 + $0x17a] sm:$0x20]   ;;  %v86_v29 = vsel %vm17_vm3, %v4733_v17, %v82_v24  ;;  %v4774_v0 = vld [vmem:[%s10272_s0 + $0x378] sm:$0x20]  }
   0x8   :  { %v4752_v14 = vld [vmem:[%s10272_s0 + $0x1f7] sm:$0x80]   ;;  %v4735_v21 = vld [vmem:[%s10272_s0 + $0x1b9] sm:$0x40]   ;;  %v166_v23 = vsel %vm25_vm5, %v4751_v8, %v162_v18  ;;  %v90_v33 = vsel %vm21_vm4, %v4734_v20, %v86_v29  ;;  %v4775_v1 = vld [vmem:[%s10272_s0 + $0x3b7] sm:$0x40]   ;;  %v265_v8 = vsel %vm17_vm3, %v4773_v59, %v261_v3 }
   0x9   :  { %v4736_v22 = vld [vmem:[%s10272_s0 + $0x1f8] sm:$0x80]   ;;  %v4753_v25 = vld [vmem:[%s10272_s0 + $0x23e] sm:$0x1]   ;;  %v170_v28 = vsel %vm29_vm6, %v4752_v14, %v166_v23  ;;  %v94_v38 = vsel %vm25_vm5, %v4735_v21, %v90_v33  ;;  %v4761_v4 = vld [vmem:[%s10272_s0 + $0x3d] sm:$0x1]   ;;  %v269_v14 = vsel %vm21_vm4, %v4774_v0, %v265_v8 }
   0xa   :  { %v4754_v26 = vld [vmem:[%s10272_s0 + $0x27d] sm:$0x2]   ;;  %171 = vrot.lane.b32.xlu1 %v170_v28, %s5815_s19  ;;  %v4737_v37 = vld [vmem:[%s10272_s0 + $0x23f] sm:$0x1]   ;;  %v98_v43 = vsel %vm29_vm6, %v4736_v22, %v94_v38  ;;  %v4762_v5 = vld [vmem:[%s10272_s0 + $0x7c] sm:$0x2]   ;;  %v273_v19 = vsel %vm25_vm5, %v4775_v1, %v269_v14 }
   0xb   :  { %v4755_v27 = vld [vmem:[%s10272_s0 + $0x2bc] sm:$0x4]   ;;  %v181_v30 = vsel %vm5_vm0, %v4754_v26, %v4753_v25  ;;  %v4738_v40 = vld [vmem:[%s10272_s0 + $0x27e] sm:$0x2]   ;;  %99 = vrot.lane.b32.xlu0 %v98_v43, %s5816_s9  ;;  %v4763_v6 = vld [vmem:[%s10272_s0 + $0xbb] sm:$0x4]   ;;  %v218_v10 = vsel %vm5_vm0, %v4762_v5, %v4761_v4 }
   0xc   :  { %v4756_v31 = vld [vmem:[%s10272_s0 + $0x2fb] sm:$0x8]   ;;  %v185_v34 = vsel %vm9_vm1, %v4755_v27, %v181_v30  ;;  %v4739_v41 = vld [vmem:[%s10272_s0 + $0x2bd] sm:$0x4]   ;;  %v109_v46 = vsel %vm5_vm0, %v4738_v40, %v4737_v37  ;;  %v4776_v9 = vld [vmem:[%s10272_s0 + $0x3f6] sm:$0x80]   ;;  %v222_v15 = vsel %vm9_vm1, %v4763_v6, %v218_v10 }
   0xd   :  { %v4757_v32 = vld [vmem:[%s10272_s0 + $0x33a] sm:$0x10]   ;;  %v189_v39 = vsel %vm13_vm2, %v4756_v31, %v185_v34  ;;  %v4740_v42 = vld [vmem:[%s10272_s0 + $0x2fc] sm:$0x8]   ;;  %v113_v50 = vsel %vm9_vm1, %v4739_v41, %v109_v46  ;;  %v4764_v11 = vld [vmem:[%s10272_s0 + $0xfa] sm:$0x8]   ;;  %v277_v24 = vsel %vm29_vm6, %v4776_v9, %v273_v19 }
   0xe   :  { %v4758_v35 = vld [vmem:[%s10272_s0 + $0x379] sm:$0x20]   ;;  %v193_v44 = vsel %vm17_vm3, %v4757_v32, %v189_v39  ;;  %v4741_v47 = vld [vmem:[%s10272_s0 + $0x33b] sm:$0x10]   ;;  %v117_v55 = vsel %vm13_vm2, %v4740_v42, %v113_v50  ;;  %v4765_v12 = vld [vmem:[%s10272_s0 + $0x139] sm:$0x10]   ;;  %v226_v20 = vsel %vm13_vm2, %v4764_v11, %v222_v15 }
   0xf   :  { %v4759_v36 = vld [vmem:[%s10272_s0 + $0x3b8] sm:$0x40]   ;;  %v4742_v48 = vld [vmem:[%s10272_s0 + $0x37a] sm:$0x20]   ;;  %v197_v49 = vsel %vm21_vm4, %v4758_v35, %v193_v44  ;;  %v121_v61 = vsel %vm17_vm3, %v4741_v47, %v117_v55  ;;  %v4766_v16 = vld [vmem:[%s10272_s0 + $0x178] sm:$0x20]   ;;  %v230_v25 = vsel %vm17_vm3, %v4765_v12, %v226_v20 }
  0x10   :  { %v4760_v45 = vld [vmem:[%s10272_s0 + $0x3f7] sm:$0x80]   ;;  %v4743_v51 = vld [vmem:[%s10272_s0 + $0x3b9] sm:$0x40]   ;;  %v201_v54 = vsel %vm25_vm5, %v4759_v36, %v197_v49  ;;  %v125_v2 = vsel %vm21_vm4, %v4742_v48, %v121_v61  ;;  %v4767_v17 = vld [vmem:[%s10272_s0 + $0x1b7] sm:$0x40]   ;;  %v234_v29 = vsel %vm21_vm4, %v4766_v16, %v230_v25 }
  0x11   :  { %v205_v60 = vsel %vm29_vm6, %v4760_v45, %v201_v54  ;;  %v4744_v62 = vld [vmem:[%s10272_s0 + $0x3f8] sm:$0x80]   ;;  %v129_v7 = vsel %vm25_vm5, %v4743_v51, %v125_v2  ;;  %v4768_v18 = vld [vmem:[%s10272_s0 + $0x1f6] sm:$0x80]   ;;  %v4785_v21 = vld [vmem:[%s10272_s0 + $0x23c] sm:$0x1]   ;;  %v238_v34 = vsel %vm25_vm5, %v4767_v17, %v234_v29 }
  0x12   :  { %206 = vrot.lane.b32.xlu1 %v205_v60, %s5815_s19  ;;  %v133_v13 = vsel %vm29_vm6, %v4744_v62, %v129_v7  ;;  %v4786_v22 = vld [vmem:[%s10272_s0 + $0x27b] sm:$0x2]   ;;  %v242_v39 = vsel %vm29_vm6, %v4768_v18, %v238_v34  ;;  %v4801_v48 = vld [vmem:[%s10272_s0 + $0x23b] sm:$0x1]   ;;  %s5818_s6 = smov 120   ;;  %s5820_s15 = smov 116  }
  0x13   :  { %134 = vrot.lane.b32.xlu0 %v133_v13, %s5816_s9  ;;  %v4787_v23 = vld [vmem:[%s10272_s0 + $0x2ba] sm:$0x4]   ;;  %v325_v26 = vsel %vm5_vm0, %v4786_v22, %v4785_v21  ;;  %v4802_v49 = vld [vmem:[%s10272_s0 + $0x27a] sm:$0x2]   ;;  %v4817_v17 = vld [vmem:[%s10272_s0 + $0x23a] sm:$0x1]  }
  0x14   :  { %v4788_v27 = vld [vmem:[%s10272_s0 + $0x2f9] sm:$0x8]   ;;  %v329_v30 = vsel %vm9_vm1, %v4787_v23, %v325_v26  ;;  %v397_v52 = vsel %vm5_vm0, %v4802_v49, %v4801_v48  ;;  %v4803_v53 = vld [vmem:[%s10272_s0 + $0x2b9] sm:$0x4]   ;;  %v4818_v18 = vld [vmem:[%s10272_s0 + $0x279] sm:$0x2]  }
  0x15   :  { %v4789_v28 = vld [vmem:[%s10272_s0 + $0x338] sm:$0x10]   ;;  %v333_v35 = vsel %vm13_vm2, %v4788_v27, %v329_v30  ;;  %v4804_v54 = vld [vmem:[%s10272_s0 + $0x2f8] sm:$0x8]   ;;  %v401_v59 = vsel %vm9_vm1, %v4803_v53, %v397_v52  ;;  %v4819_v19 = vld [vmem:[%s10272_s0 + $0x2b8] sm:$0x4]   ;;  %v469_v22 = vsel %vm5_vm0, %v4818_v18, %v4817_v17 }
  0x16   :  { %278 = vrot.lane.b32.xlu1 %v277_v24, %s5817_s28  ;;  %v4790_v31 = vld [vmem:[%s10272_s0 + $0x377] sm:$0x20]   ;;  %v337_v40 = vsel %vm17_vm3, %v4789_v28, %v333_v35  ;;  %v4805_v55 = vld [vmem:[%s10272_s0 + $0x337] sm:$0x10]   ;;  %v405_v63 = vsel %vm13_vm2, %v4804_v54, %v401_v59  ;;  %v4820_v23 = vld [vmem:[%s10272_s0 + $0x2f7] sm:$0x8]   ;;  %v473_v26 = vsel %vm9_vm1, %v4819_v19, %v469_v22 }
  0x17   :  { %v4791_v32 = vld [vmem:[%s10272_s0 + $0x3b6] sm:$0x40]   ;;  %243 = vrot.lane.b32.xlu0 %v242_v39, %s5817_s28  ;;  %v341_v45 = vsel %vm21_vm4, %v4790_v31, %v337_v40  ;;  %v4806_v60 = vld [vmem:[%s10272_s0 + $0x376] sm:$0x20]   ;;  %v409_v4 = vsel %vm17_vm3, %v4805_v55, %v405_v63  ;;  %v4821_v24 = vld [vmem:[%s10272_s0 + $0x336] sm:$0x10]   ;;  %v477_v31 = vsel %vm13_vm2, %v4820_v23, %v473_v26 }
  0x18   :  { %v4777_v33 = vld [vmem:[%s10272_s0 + $0x3c] sm:$0x1]   ;;  %v345_v50 = vsel %vm25_vm5, %v4791_v32, %v341_v45  ;;  %v4807_v61 = vld [vmem:[%s10272_s0 + $0x3b5] sm:$0x40]   ;;  %v413_v10 = vsel %vm21_vm4, %v4806_v60, %v409_v4  ;;  %v4822_v27 = vld [vmem:[%s10272_s0 + $0x375] sm:$0x20]  }
  0x19   :  { %v4778_v36 = vld [vmem:[%s10272_s0 + $0x7b] sm:$0x2]   ;;  %v4793_v0 = vld [vmem:[%s10272_s0 + $0x3b] sm:$0x1]   ;;  %v417_v15 = vsel %vm25_vm5, %v4807_v61, %v413_v10  ;;  %v4823_v28 = vld [vmem:[%s10272_s0 + $0x3b4] sm:$0x40]  }
  0x1a   :  { %v4779_v37 = vld [vmem:[%s10272_s0 + $0xba] sm:$0x4]   ;;  %v290_v42 = vsel %vm5_vm0, %v4778_v36, %v4777_v33  ;;  %v4794_v1 = vld [vmem:[%s10272_s0 + $0x7a] sm:$0x2]   ;;  %v4809_v29 = vld [vmem:[%s10272_s0 + $0x3a] sm:$0x1]   ;;  %v481_v36 = vsel %vm17_vm3, %v4821_v24, %v477_v31 }
  0x1b   :  { %v4780_v38 = vld [vmem:[%s10272_s0 + $0xf9] sm:$0x8]   ;;  %v294_v46 = vsel %vm9_vm1, %v4779_v37, %v290_v42  ;;  %v4795_v2 = vld [vmem:[%s10272_s0 + $0xb9] sm:$0x4]   ;;  %v362_v6 = vsel %vm5_vm0, %v4794_v1, %v4793_v0  ;;  %v4810_v32 = vld [vmem:[%s10272_s0 + $0x79] sm:$0x2]  }
  0x1c   :  { %v4792_v41 = vld [vmem:[%s10272_s0 + $0x3f5] sm:$0x80]   ;;  %v298_v51 = vsel %vm13_vm2, %v4780_v38, %v294_v46  ;;  %v4808_v5 = vld [vmem:[%s10272_s0 + $0x3f4] sm:$0x80]   ;;  %v366_v11 = vsel %vm9_vm1, %v4795_v2, %v362_v6  ;;  %v4811_v33 = vld [vmem:[%s10272_s0 + $0xb8] sm:$0x4]   ;;  %v434_v38 = vsel %vm5_vm0, %v4810_v32, %v4809_v29 }
  0x1d   :  { %v4781_v43 = vld [vmem:[%s10272_s0 + $0x138] sm:$0x10]   ;;  %v349_v56 = vsel %vm29_vm6, %v4792_v41, %v345_v50  ;;  %v4796_v7 = vld [vmem:[%s10272_s0 + $0xf8] sm:$0x8]   ;;  %v421_v20 = vsel %vm29_vm6, %v4808_v5, %v417_v15  ;;  %v4812_v34 = vld [vmem:[%s10272_s0 + $0xf7] sm:$0x8]   ;;  %v485_v41 = vsel %vm21_vm4, %v4822_v27, %v481_v36  ;;  %v438_v42 = vsel %vm9_vm1, %v4811_v33, %v434_v38 }
  0x1e   :  { %v4782_v44 = vld [vmem:[%s10272_s0 + $0x177] sm:$0x20]   ;;  %v302_v57 = vsel %vm17_vm3, %v4781_v43, %v298_v51  ;;  %350 = vrot.lane.b32.xlu1 %v349_v56, %s5818_s6  ;;  %v4797_v8 = vld [vmem:[%s10272_s0 + $0x137] sm:$0x10]   ;;  %v370_v16 = vsel %vm13_vm2, %v4796_v7, %v366_v11  ;;  %v4824_v37 = vld [vmem:[%s10272_s0 + $0x3f3] sm:$0x80]   ;;  %v489_v46 = vsel %vm25_vm5, %v4823_v28, %v485_v41 }
  0x1f   :  { %v4783_v47 = vld [vmem:[%s10272_s0 + $0x1b6] sm:$0x40]   ;;  %v306_v62 = vsel %vm21_vm4, %v4782_v44, %v302_v57  ;;  %v4798_v12 = vld [vmem:[%s10272_s0 + $0x176] sm:$0x20]   ;;  %v374_v21 = vsel %vm17_vm3, %v4797_v8, %v370_v16  ;;  %v4813_v39 = vld [vmem:[%s10272_s0 + $0x136] sm:$0x10]   ;;  %v493_v52 = vsel %vm29_vm6, %v4824_v37, %v489_v46 }
  0x20   :  { %v4784_v58 = vld [vmem:[%s10272_s0 + $0x1f5] sm:$0x80]   ;;  %v310_v3 = vsel %vm25_vm5, %v4783_v47, %v306_v62  ;;  %v4799_v13 = vld [vmem:[%s10272_s0 + $0x1b5] sm:$0x40]   ;;  %v378_v25 = vsel %vm21_vm4, %v4798_v12, %v374_v21  ;;  %v4814_v40 = vld [vmem:[%s10272_s0 + $0x175] sm:$0x20]   ;;  %v442_v47 = vsel %vm13_vm2, %v4812_v34, %v438_v42 }
  0x21   :  { %v314_v9 = vsel %vm29_vm6, %v4784_v58, %v310_v3  ;;  %v4800_v14 = vld [vmem:[%s10272_s0 + $0x1f4] sm:$0x80]   ;;  %v382_v30 = vsel %vm25_vm5, %v4799_v13, %v378_v25  ;;  %v4815_v43 = vld [vmem:[%s10272_s0 + $0x1b4] sm:$0x40]   ;;  %v4833_v44 = vld [vmem:[%s10272_s0 + $0x239] sm:$0x1]   ;;  %v446_v53 = vsel %vm17_vm3, %v4813_v39, %v442_v47 }
  0x22   :  { %315 = vrot.lane.b32.xlu0 %v314_v9, %s5818_s6  ;;  %s5819_s6 = smov 118   ;;  %v386_v35 = vsel %vm29_vm6, %v4800_v14, %v382_v30  ;;  %v4834_v45 = vld [vmem:[%s10272_s0 + $0x278] sm:$0x2]   ;;  %v4816_v54 = vld [vmem:[%s10272_s0 + $0x1f3] sm:$0x80]   ;;  %v450_v58 = vsel %vm21_vm4, %v4814_v40, %v446_v53  ;;  %s5822_s23 = smov 112  }
  0x23   :  { %422 = vrot.lane.b32.xlu1 %v421_v20, %s5819_s6  ;;  %v541_v48 = vsel %vm5_vm0, %v4834_v45, %v4833_v44  ;;  %v4835_v49 = vld [vmem:[%s10272_s0 + $0x2b7] sm:$0x4]   ;;  %v454_v63 = vsel %vm25_vm5, %v4815_v43, %v450_v58  ;;  %v4849_v13 = vld [vmem:[%s10272_s0 + $0x238] sm:$0x1]   ;;  %v4865_v40 = vld [vmem:[%s10272_s0 + $0x237] sm:$0x1]  }
  0x24   :  { %v4836_v50 = vld [vmem:[%s10272_s0 + $0x2f6] sm:$0x8]   ;;  %v545_v55 = vsel %vm9_vm1, %v4835_v49, %v541_v48  ;;  %v458_v5 = vsel %vm29_vm6, %v4816_v54, %v454_v63  ;;  %v4850_v14 = vld [vmem:[%s10272_s0 + $0x277] sm:$0x2]   ;;  %v4866_v41 = vld [vmem:[%s10272_s0 + $0x276] sm:$0x2]  }
  0x25   :  { %v4837_v51 = vld [vmem:[%s10272_s0 + $0x335] sm:$0x10]   ;;  %v549_v59 = vsel %vm13_vm2, %v4836_v50, %v545_v55  ;;  %v4851_v15 = vld [vmem:[%s10272_s0 + $0x2b6] sm:$0x4]   ;;  %v613_v18 = vsel %vm5_vm0, %v4850_v14, %v4849_v13  ;;  %v685_v44 = vsel %vm5_vm0, %v4866_v41, %v4865_v40  ;;  %v4867_v45 = vld [vmem:[%s10272_s0 + $0x2b5] sm:$0x4]  }
  0x26   :  { %387 = vrot.lane.b32.xlu0 %v386_v35, %s5819_s6  ;;  %v4838_v56 = vld [vmem:[%s10272_s0 + $0x374] sm:$0x20]   ;;  %v553_v0 = vsel %vm17_vm3, %v4837_v51, %v549_v59  ;;  %v4852_v19 = vld [vmem:[%s10272_s0 + $0x2f5] sm:$0x8]   ;;  %v617_v22 = vsel %vm9_vm1, %v4851_v15, %v613_v18  ;;  %v4868_v46 = vld [vmem:[%s10272_s0 + $0x2f4] sm:$0x8]   ;;  %v689_v51 = vsel %vm9_vm1, %v4867_v45, %v685_v44 }
  0x27   :  { %v4839_v57 = vld [vmem:[%s10272_s0 + $0x3b3] sm:$0x40]   ;;  %494 = vrot.lane.b32.xlu1 %v493_v52, %s5820_s15  ;;  %v557_v6 = vsel %vm21_vm4, %v4838_v56, %v553_v0  ;;  %v4853_v20 = vld [vmem:[%s10272_s0 + $0x334] sm:$0x10]   ;;  %v621_v27 = vsel %vm13_vm2, %v4852_v19, %v617_v22  ;;  %v4869_v47 = vld [vmem:[%s10272_s0 + $0x333] sm:$0x10]   ;;  %v693_v55 = vsel %vm13_vm2, %v4868_v46, %v689_v51 }
  0x28   :  { %v4825_v60 = vld [vmem:[%s10272_s0 + $0x39] sm:$0x1]   ;;  %v561_v11 = vsel %vm25_vm5, %v4839_v57, %v557_v6  ;;  %v4854_v23 = vld [vmem:[%s10272_s0 + $0x373] sm:$0x20]   ;;  %v625_v32 = vsel %vm17_vm3, %v4853_v20, %v621_v27  ;;  %v4870_v52 = vld [vmem:[%s10272_s0 + $0x372] sm:$0x20]  }
  0x29   :  { %v4826_v61 = vld [vmem:[%s10272_s0 + $0x78] sm:$0x2]   ;;  %v4855_v24 = vld [vmem:[%s10272_s0 + $0x3b2] sm:$0x40]   ;;  %v629_v37 = vsel %vm21_vm4, %v4854_v23, %v625_v32  ;;  %v4871_v53 = vld [vmem:[%s10272_s0 + $0x3b1] sm:$0x40]  }
  0x2a   :  { %v4827_v62 = vld [vmem:[%s10272_s0 + $0xb7] sm:$0x4]   ;;  %v506_v2 = vsel %vm5_vm0, %v4826_v61, %v4825_v60  ;;  %459 = vrot.lane.b32.xlu0 %v458_v5, %s5820_s15  ;;  %s5821_s15 = smov 114   ;;  %v4841_v25 = vld [vmem:[%s10272_s0 + $0x38] sm:$0x1]   ;;  %v633_v42 = vsel %vm25_vm5, %v4855_v24, %v629_v37  ;;  %v697_v60 = vsel %vm17_vm3, %v4869_v47, %v693_v55  ;;  %s5824_s30 = smov 108  }
  0x2b   :  { %v4840_v1 = vld [vmem:[%s10272_s0 + $0x3f2] sm:$0x80]   ;;  %v510_v7 = vsel %vm9_vm1, %v4827_v62, %v506_v2  ;;  %v4842_v28 = vld [vmem:[%s10272_s0 + $0x77] sm:$0x2]   ;;  %v4857_v56 = vld [vmem:[%s10272_s0 + $0x37] sm:$0x1]   ;;  %v701_v2 = vsel %vm21_vm4, %v4870_v52, %v697_v60 }
  0x2c   :  { %v4828_v3 = vld [vmem:[%s10272_s0 + $0xf6] sm:$0x8]   ;;  %v565_v16 = vsel %vm29_vm6, %v4840_v1, %v561_v11  ;;  %v4843_v29 = vld [vmem:[%s10272_s0 + $0xb6] sm:$0x4]   ;;  %v578_v34 = vsel %vm5_vm0, %v4842_v28, %v4841_v25  ;;  %v4858_v57 = vld [vmem:[%s10272_s0 + $0x76] sm:$0x2]  }
  0x2d   :  { %v4829_v4 = vld [vmem:[%s10272_s0 + $0x135] sm:$0x10]   ;;  %v514_v12 = vsel %vm13_vm2, %v4828_v3, %v510_v7  ;;  %566 = vrot.lane.b32.xlu1 %v565_v16, %s5821_s15  ;;  %v4844_v30 = vld [vmem:[%s10272_s0 + $0xf5] sm:$0x8]   ;;  %v582_v38 = vsel %vm9_vm1, %v4843_v29, %v578_v34  ;;  %v4859_v58 = vld [vmem:[%s10272_s0 + $0xb5] sm:$0x4]   ;;  %v650_v62 = vsel %vm5_vm0, %v4858_v57, %v4857_v56  ;;  %v705_v7 = vsel %vm25_vm5, %v4871_v53, %v701_v2 }
  0x2e   :  { %v4830_v8 = vld [vmem:[%s10272_s0 + $0x174] sm:$0x20]   ;;  %v518_v17 = vsel %vm17_vm3, %v4829_v4, %v514_v12  ;;  %v4856_v33 = vld [vmem:[%s10272_s0 + $0x3f1] sm:$0x80]   ;;  %v586_v43 = vsel %vm13_vm2, %v4844_v30, %v582_v38  ;;  %v4872_v61 = vld [vmem:[%s10272_s0 + $0x3f0] sm:$0x80]   ;;  %v654_v3 = vsel %vm9_vm1, %v4859_v58, %v650_v62 }
  0x2f   :  { %v4831_v9 = vld [vmem:[%s10272_s0 + $0x1b3] sm:$0x40]   ;;  %v522_v21 = vsel %vm21_vm4, %v4830_v8, %v518_v17  ;;  %v4845_v35 = vld [vmem:[%s10272_s0 + $0x134] sm:$0x10]   ;;  %v637_v48 = vsel %vm29_vm6, %v4856_v33, %v633_v42  ;;  %v4860_v63 = vld [vmem:[%s10272_s0 + $0xf4] sm:$0x8]   ;;  %v709_v12 = vsel %vm29_vm6, %v4872_v61, %v705_v7 }
  0x30   :  { %v4832_v10 = vld [vmem:[%s10272_s0 + $0x1f2] sm:$0x80]   ;;  %v526_v26 = vsel %vm25_vm5, %v4831_v9, %v522_v21  ;;  %v4846_v36 = vld [vmem:[%s10272_s0 + $0x173] sm:$0x20]   ;;  %v590_v49 = vsel %vm17_vm3, %v4845_v35, %v586_v43  ;;  %v4861_v0 = vld [vmem:[%s10272_s0 + $0x133] sm:$0x10]   ;;  %v658_v8 = vsel %vm13_vm2, %v4860_v63, %v654_v3 }
  0x31   :  { %v530_v31 = vsel %vm29_vm6, %v4832_v10, %v526_v26  ;;  %v4847_v39 = vld [vmem:[%s10272_s0 + $0x1b2] sm:$0x40]   ;;  %638 = vrot.lane.b32.xlu1 %v637_v48, %s5822_s23  ;;  %v594_v54 = vsel %vm21_vm4, %v4846_v36, %v590_v49  ;;  %v4862_v4 = vld [vmem:[%s10272_s0 + $0x172] sm:$0x20]   ;;  %v4881_v9 = vld [vmem:[%s10272_s0 + $0x236] sm:$0x1]   ;;  %v662_v13 = vsel %vm17_vm3, %v4861_v0, %v658_v8 }
  0x32   :  { %531 = vrot.lane.b32.xlu0 %v530_v31, %s5821_s15  ;;  %v4848_v50 = vld [vmem:[%s10272_s0 + $0x1f1] sm:$0x80]   ;;  %v598_v59 = vsel %vm25_vm5, %v4847_v39, %v594_v54  ;;  %v4863_v5 = vld [vmem:[%s10272_s0 + $0x1b1] sm:$0x40]   ;;  %v4882_v10 = vld [vmem:[%s10272_s0 + $0x275] sm:$0x2]   ;;  %v666_v17 = vsel %vm21_vm4, %v4862_v4, %v662_v13 }
  0x33   :  { %v602_v1 = vsel %vm29_vm6, %v4848_v50, %v598_v59  ;;  %v4864_v6 = vld [vmem:[%s10272_s0 + $0x1f0] sm:$0x80]   ;;  %v4883_v11 = vld [vmem:[%s10272_s0 + $0x2b4] sm:$0x4]   ;;  %v757_v14 = vsel %vm5_vm0, %v4882_v10, %v4881_v9  ;;  %v670_v22 = vsel %vm25_vm5, %v4863_v5, %v666_v17  ;;  %v4897_v36 = vld [vmem:[%s10272_s0 + $0x235] sm:$0x1]  }
  0x34   :  { %v4884_v15 = vld [vmem:[%s10272_s0 + $0x2f3] sm:$0x8]   ;;  %v761_v18 = vsel %vm9_vm1, %v4883_v11, %v757_v14  ;;  %v674_v27 = vsel %vm29_vm6, %v4864_v6, %v670_v22  ;;  %v4898_v37 = vld [vmem:[%s10272_s0 + $0x274] sm:$0x2]   ;;  %v4913_v5 = vld [vmem:[%s10272_s0 + $0x234] sm:$0x1]  }
  0x35   :  { %v4885_v16 = vld [vmem:[%s10272_s0 + $0x332] sm:$0x10]   ;;  %v765_v23 = vsel %vm13_vm2, %v4884_v15, %v761_v18  ;;  %v829_v40 = vsel %vm5_vm0, %v4898_v37, %v4897_v36  ;;  %v4899_v41 = vld [vmem:[%s10272_s0 + $0x2b3] sm:$0x4]   ;;  %v4914_v6 = vld [vmem:[%s10272_s0 + $0x273] sm:$0x2]  }
  0x36   :  { %603 = vrot.lane.b32.xlu0 %v602_v1, %s5822_s23  ;;  %s5823_s23 = smov 110   ;;  %v4886_v19 = vld [vmem:[%s10272_s0 + $0x371] sm:$0x20]   ;;  %v769_v28 = vsel %vm17_vm3, %v4885_v16, %v765_v23  ;;  %v4900_v42 = vld [vmem:[%s10272_s0 + $0x2f2] sm:$0x8]   ;;  %v833_v47 = vsel %vm9_vm1, %v4899_v41, %v829_v40  ;;  %v901_v10 = vsel %vm5_vm0, %v4914_v6, %v4913_v5  ;;  %s5826_s10 = smov 104  }
  0x37   :  { %710 = vrot.lane.b32.xlu1 %v709_v12, %s5823_s23  ;;  %v4887_v20 = vld [vmem:[%s10272_s0 + $0x3b0] sm:$0x40]   ;;  %v773_v33 = vsel %vm21_vm4, %v4886_v19, %v769_v28  ;;  %v4901_v43 = vld [vmem:[%s10272_s0 + $0x331] sm:$0x10]   ;;  %v837_v51 = vsel %vm13_vm2, %v4900_v42, %v833_v47  ;;  %v4915_v7 = vld [vmem:[%s10272_s0 + $0x2b2] sm:$0x4]  }
  0x38   :  { %v4873_v21 = vld [vmem:[%s10272_s0 + $0x36] sm:$0x1]   ;;  %v777_v38 = vsel %vm25_vm5, %v4887_v20, %v773_v33  ;;  %v4902_v48 = vld [vmem:[%s10272_s0 + $0x370] sm:$0x20]   ;;  %v841_v56 = vsel %vm17_vm3, %v4901_v43, %v837_v51  ;;  %v4916_v11 = vld [vmem:[%s10272_s0 + $0x2f1] sm:$0x8]   ;;  %v905_v14 = vsel %vm9_vm1, %v4915_v7, %v901_v10 }
  0x39   :  { %v4874_v24 = vld [vmem:[%s10272_s0 + $0x75] sm:$0x2]   ;;  %v4903_v49 = vld [vmem:[%s10272_s0 + $0x3af] sm:$0x40]   ;;  %v845_v62 = vsel %vm21_vm4, %v4902_v48, %v841_v56  ;;  %v4917_v12 = vld [vmem:[%s10272_s0 + $0x330] sm:$0x10]   ;;  %v909_v19 = vsel %vm13_vm2, %v4916_v11, %v905_v14 }
  0x3a   :  { %v4875_v25 = vld [vmem:[%s10272_s0 + $0xb4] sm:$0x4]   ;;  %v722_v30 = vsel %vm5_vm0, %v4874_v24, %v4873_v21  ;;  %675 = vrot.lane.b32.xlu0 %v674_v27, %s5823_s23  ;;  %v4889_v52 = vld [vmem:[%s10272_s0 + $0x35] sm:$0x1]   ;;  %v849_v3 = vsel %vm25_vm5, %v4903_v49, %v845_v62  ;;  %v4918_v15 = vld [vmem:[%s10272_s0 + $0x36f] sm:$0x20]   ;;  %v913_v24 = vsel %vm17_vm3, %v4917_v12, %v909_v19 }
  0x3b   :  { %v4876_v26 = vld [vmem:[%s10272_s0 + $0xf3] sm:$0x8]   ;;  %v726_v34 = vsel %vm9_vm1, %v4875_v25, %v722_v30  ;;  %v4890_v53 = vld [vmem:[%s10272_s0 + $0x74] sm:$0x2]   ;;  %v4919_v16 = vld [vmem:[%s10272_s0 + $0x3ae] sm:$0x40]  }
  0x3c   :  { %v4888_v29 = vld [vmem:[%s10272_s0 + $0x3ef] sm:$0x80]   ;;  %v730_v39 = vsel %vm13_vm2, %v4876_v26, %v726_v34  ;;  %v4891_v54 = vld [vmem:[%s10272_s0 + $0xb3] sm:$0x4]   ;;  %v794_v58 = vsel %vm5_vm0, %v4890_v53, %v4889_v52  ;;  %v4905_v17 = vld [vmem:[%s10272_s0 + $0x34] sm:$0x1]  }
  0x3d   :  { %v4877_v31 = vld [vmem:[%s10272_s0 + $0x132] sm:$0x10]   ;;  %v781_v44 = vsel %vm29_vm6, %v4888_v29, %v777_v38  ;;  %v4904_v57 = vld [vmem:[%s10272_s0 + $0x3ee] sm:$0x80]   ;;  %v798_v63 = vsel %vm9_vm1, %v4891_v54, %v794_v58  ;;  %v4906_v20 = vld [vmem:[%s10272_s0 + $0x73] sm:$0x2]   ;;  %v917_v29 = vsel %vm21_vm4, %v4918_v15, %v913_v24 }
  0x3e   :  { %v4878_v32 = vld [vmem:[%s10272_s0 + $0x171] sm:$0x20]   ;;  %v734_v45 = vsel %vm17_vm3, %v4877_v31, %v730_v39  ;;  %782 = vrot.lane.b32.xlu1 %v781_v44, %s5824_s30  ;;  %v4892_v59 = vld [vmem:[%s10272_s0 + $0xf2] sm:$0x8]   ;;  %v853_v8 = vsel %vm29_vm6, %v4904_v57, %v849_v3  ;;  %v4907_v21 = vld [vmem:[%s10272_s0 + $0xb2] sm:$0x4]   ;;  %v866_v26 = vsel %vm5_vm0, %v4906_v20, %v4905_v17  ;;  %v921_v34 = vsel %vm25_vm5, %v4919_v16, %v917_v29 }
  0x3f   :  { %v4879_v35 = vld [vmem:[%s10272_s0 + $0x1b0] sm:$0x40]   ;;  %v738_v50 = vsel %vm21_vm4, %v4878_v32, %v734_v45  ;;  %v4893_v60 = vld [vmem:[%s10272_s0 + $0x131] sm:$0x10]   ;;  %v802_v4 = vsel %vm13_vm2, %v4892_v59, %v798_v63  ;;  %v4908_v22 = vld [vmem:[%s10272_s0 + $0xf1] sm:$0x8]   ;;  %v870_v30 = vsel %vm9_vm1, %v4907_v21, %v866_v26 }
  0x40   :  { %v4880_v46 = vld [vmem:[%s10272_s0 + $0x1ef] sm:$0x80]   ;;  %v742_v55 = vsel %vm25_vm5, %v4879_v35, %v738_v50  ;;  %v4894_v0 = vld [vmem:[%s10272_s0 + $0x170] sm:$0x20]   ;;  %v806_v9 = vsel %vm17_vm3, %v4893_v60, %v802_v4  ;;  %v4920_v25 = vld [vmem:[%s10272_s0 + $0x3ed] sm:$0x80]   ;;  %v874_v35 = vsel %vm13_vm2, %v4908_v22, %v870_v30 }
  0x41   :  { %v746_v61 = vsel %vm29_vm6, %v4880_v46, %v742_v55  ;;  %v4895_v1 = vld [vmem:[%s10272_s0 + $0x1af] sm:$0x40]   ;;  %v810_v13 = vsel %vm21_vm4, %v4894_v0, %v806_v9  ;;  %v4909_v27 = vld [vmem:[%s10272_s0 + $0x130] sm:$0x10]   ;;  %v4929_v32 = vld [vmem:[%s10272_s0 + $0x233] sm:$0x1]   ;;  %v925_v40 = vsel %vm29_vm6, %v4920_v25, %v921_v34 }
  0x42   :  { %v4896_v2 = vld [vmem:[%s10272_s0 + $0x1ee] sm:$0x80]   ;;  %747 = vrot.lane.b32.xlu0 %v746_v61, %s5824_s30  ;;  %s5825_s30 = smov 106   ;;  %v814_v18 = vsel %vm25_vm5, %v4895_v1, %v810_v13  ;;  %v4910_v28 = vld [vmem:[%s10272_s0 + $0x16f] sm:$0x20]   ;;  %v878_v41 = vsel %vm17_vm3, %v4909_v27, %v874_v35  ;;  %s5828_s9 = smov 100  }
  0x43   :  { %854 = vrot.lane.b32.xlu1 %v853_v8, %s5825_s30  ;;  %v818_v23 = vsel %vm29_vm6, %v4896_v2, %v814_v18  ;;  %v4911_v31 = vld [vmem:[%s10272_s0 + $0x1ae] sm:$0x40]   ;;  %v4930_v33 = vld [vmem:[%s10272_s0 + $0x272] sm:$0x2]   ;;  %v882_v46 = vsel %vm21_vm4, %v4910_v28, %v878_v41  ;;  %v4945_v1 = vld [vmem:[%s10272_s0 + $0x232] sm:$0x1]  }
  0x44   :  { %v973_v36 = vsel %vm5_vm0, %v4930_v33, %v4929_v32  ;;  %v4931_v37 = vld [vmem:[%s10272_s0 + $0x2b1] sm:$0x4]   ;;  %v4912_v42 = vld [vmem:[%s10272_s0 + $0x1ed] sm:$0x80]   ;;  %v886_v51 = vsel %vm25_vm5, %v4911_v31, %v882_v46  ;;  %v4946_v2 = vld [vmem:[%s10272_s0 + $0x271] sm:$0x2]  }
  0x45   :  { %v4932_v38 = vld [vmem:[%s10272_s0 + $0x2f0] sm:$0x8]   ;;  %v977_v43 = vsel %vm9_vm1, %v4931_v37, %v973_v36  ;;  %v890_v57 = vsel %vm29_vm6, %v4912_v42, %v886_v51  ;;  %v4947_v3 = vld [vmem:[%s10272_s0 + $0x2b0] sm:$0x4]   ;;  %v1045_v6 = vsel %vm5_vm0, %v4946_v2, %v4945_v1  ;;  %v4961_v28 = vld [vmem:[%s10272_s0 + $0x231] sm:$0x1]  }
  0x46   :  { %819 = vrot.lane.b32.xlu0 %v818_v23, %s5825_s30  ;;  %v4933_v39 = vld [vmem:[%s10272_s0 + $0x32f] sm:$0x10]   ;;  %v981_v47 = vsel %vm13_vm2, %v4932_v38, %v977_v43  ;;  %v4948_v7 = vld [vmem:[%s10272_s0 + $0x2ef] sm:$0x8]   ;;  %v1049_v10 = vsel %vm9_vm1, %v4947_v3, %v1045_v6  ;;  %v4962_v29 = vld [vmem:[%s10272_s0 + $0x270] sm:$0x2]  }
  0x47   :  { %v4934_v44 = vld [vmem:[%s10272_s0 + $0x36e] sm:$0x20]   ;;  %926 = vrot.lane.b32.xlu1 %v925_v40, %s5826_s10  ;;  %v985_v52 = vsel %vm17_vm3, %v4933_v39, %v981_v47  ;;  %v4949_v8 = vld [vmem:[%s10272_s0 + $0x32e] sm:$0x10]   ;;  %v1053_v15 = vsel %vm13_vm2, %v4948_v7, %v1049_v10  ;;  %v1117_v32 = vsel %vm5_vm0, %v4962_v29, %v4961_v28  ;;  %v4963_v33 = vld [vmem:[%s10272_s0 + $0x2af] sm:$0x4]  }
  0x48   :  { %v4935_v45 = vld [vmem:[%s10272_s0 + $0x3ad] sm:$0x40]   ;;  %v989_v58 = vsel %vm21_vm4, %v4934_v44, %v985_v52  ;;  %v4950_v11 = vld [vmem:[%s10272_s0 + $0x36d] sm:$0x20]   ;;  %v1057_v20 = vsel %vm17_vm3, %v4949_v8, %v1053_v15  ;;  %v4964_v34 = vld [vmem:[%s10272_s0 + $0x2ee] sm:$0x8]   ;;  %v1121_v39 = vsel %vm9_vm1, %v4963_v33, %v1117_v32 }
  0x49   :  { %v4921_v48 = vld [vmem:[%s10272_s0 + $0x33] sm:$0x1]   ;;  %v993_v63 = vsel %vm25_vm5, %v4935_v45, %v989_v58  ;;  %v4951_v12 = vld [vmem:[%s10272_s0 + $0x3ac] sm:$0x40]   ;;  %v1061_v25 = vsel %vm21_vm4, %v4950_v11, %v1057_v20  ;;  %v4965_v35 = vld [vmem:[%s10272_s0 + $0x32d] sm:$0x10]   ;;  %v1125_v43 = vsel %vm13_vm2, %v4964_v34, %v1121_v39 }
  0x4a   :  { %v4922_v49 = vld [vmem:[%s10272_s0 + $0x72] sm:$0x2]   ;;  %891 = vrot.lane.b32.xlu0 %v890_v57, %s5826_s10  ;;  %s5827_s10 = smov 102   ;;  %v4937_v13 = vld [vmem:[%s10272_s0 + $0x32] sm:$0x1]   ;;  %v1065_v30 = vsel %vm25_vm5, %v4951_v12, %v1061_v25  ;;  %s5830_s26 = smov 96  }
  0x4b   :  { %v4923_v50 = vld [vmem:[%s10272_s0 + $0xb1] sm:$0x4]   ;;  %v938_v54 = vsel %vm5_vm0, %v4922_v49, %v4921_v48  ;;  %v4938_v16 = vld [vmem:[%s10272_s0 + $0x71] sm:$0x2]   ;;  %v4966_v40 = vld [vmem:[%s10272_s0 + $0x36c] sm:$0x20]   ;;  %v1129_v48 = vsel %vm17_vm3, %v4965_v35, %v1125_v43 }
  0x4c   :  { %v4936_v53 = vld [vmem:[%s10272_s0 + $0x3ec] sm:$0x80]   ;;  %v942_v59 = vsel %vm9_vm1, %v4923_v50, %v938_v54  ;;  %v4939_v17 = vld [vmem:[%s10272_s0 + $0xb0] sm:$0x4]   ;;  %v1010_v22 = vsel %vm5_vm0, %v4938_v16, %v4937_v13  ;;  %v4967_v41 = vld [vmem:[%s10272_s0 + $0x3ab] sm:$0x40]   ;;  %v1133_v54 = vsel %vm21_vm4, %v4966_v40, %v1129_v48 }
  0x4d   :  { %v4924_v55 = vld [vmem:[%s10272_s0 + $0xf0] sm:$0x8]   ;;  %v997_v4 = vsel %vm29_vm6, %v4936_v53, %v993_v63  ;;  %v4940_v18 = vld [vmem:[%s10272_s0 + $0xef] sm:$0x8]   ;;  %v1014_v26 = vsel %vm9_vm1, %v4939_v17, %v1010_v22  ;;  %v4953_v44 = vld [vmem:[%s10272_s0 + $0x31] sm:$0x1]  }
  0x4e   :  { %v4925_v56 = vld [vmem:[%s10272_s0 + $0x12f] sm:$0x10]   ;;  %v946_v0 = vsel %vm13_vm2, %v4924_v55, %v942_v59  ;;  %998 = vrot.lane.b32.xlu1 %v997_v4, %s5827_s10  ;;  %v4952_v21 = vld [vmem:[%s10272_s0 + $0x3eb] sm:$0x80]   ;;  %v1018_v31 = vsel %vm13_vm2, %v4940_v18, %v1014_v26  ;;  %v4954_v45 = vld [vmem:[%s10272_s0 + $0x70] sm:$0x2]   ;;  %v1137_v59 = vsel %vm25_vm5, %v4967_v41, %v1133_v54 }
  0x4f   :  { %v4926_v60 = vld [vmem:[%s10272_s0 + $0x16e] sm:$0x20]   ;;  %v950_v5 = vsel %vm17_vm3, %v4925_v56, %v946_v0  ;;  %v4941_v23 = vld [vmem:[%s10272_s0 + $0x12e] sm:$0x10]   ;;  %v1069_v36 = vsel %vm29_vm6, %v4952_v21, %v1065_v30  ;;  %v4955_v46 = vld [vmem:[%s10272_s0 + $0xaf] sm:$0x4]   ;;  %v1082_v50 = vsel %vm5_vm0, %v4954_v45, %v4953_v44 }
  0x50   :  { %v4927_v61 = vld [vmem:[%s10272_s0 + $0x1ad] sm:$0x40]   ;;  %v954_v9 = vsel %vm21_vm4, %v4926_v60, %v950_v5  ;;  %v4942_v24 = vld [vmem:[%s10272_s0 + $0x16d] sm:$0x20]   ;;  %v1022_v37 = vsel %vm17_vm3, %v4941_v23, %v1018_v31  ;;  %v4968_v49 = vld [vmem:[%s10272_s0 + $0x3ea] sm:$0x80]   ;;  %v1086_v55 = vsel %vm9_vm1, %v4955_v46, %v1082_v50 }
  0x51   :  { %v4928_v62 = vld [vmem:[%s10272_s0 + $0x1ec] sm:$0x80]   ;;  %v958_v14 = vsel %vm25_vm5, %v4927_v61, %v954_v9  ;;  %v4943_v27 = vld [vmem:[%s10272_s0 + $0x1ac] sm:$0x40]   ;;  %v1026_v42 = vsel %vm21_vm4, %v4942_v24, %v1022_v37  ;;  %v4956_v51 = vld [vmem:[%s10272_s0 + $0xee] sm:$0x8]   ;;  %v1141_v0 = vsel %vm29_vm6, %v4968_v49, %v1137_v59 }
  0x52   :  { %v962_v19 = vsel %vm29_vm6, %v4928_v62, %v958_v14  ;;  %v4944_v38 = vld [vmem:[%s10272_s0 + $0x1eb] sm:$0x80]   ;;  %1070 = vrot.lane.b32.xlu1 %v1069_v36, %s5828_s9  ;;  %v1030_v47 = vsel %vm25_vm5, %v4943_v27, %v1026_v42  ;;  %v4957_v52 = vld [vmem:[%s10272_s0 + $0x12d] sm:$0x10]   ;;  %v1090_v60 = vsel %vm13_vm2, %v4956_v51, %v1086_v55  ;;  %v4977_v61 = vld [vmem:[%s10272_s0 + $0x230] sm:$0x1]  }
  0x53   :  { %963 = vrot.lane.b32.xlu0 %v962_v19, %s5827_s10  ;;  %v1034_v53 = vsel %vm29_vm6, %v4944_v38, %v1030_v47  ;;  %v4958_v56 = vld [vmem:[%s10272_s0 + $0x16c] sm:$0x20]   ;;  %v4978_v62 = vld [vmem:[%s10272_s0 + $0x26f] sm:$0x2]   ;;  %v1094_v1 = vsel %vm17_vm3, %v4957_v52, %v1090_v60  ;;  %v4993_v24 = vld [vmem:[%s10272_s0 + $0x22f] sm:$0x1]  }
  0x54   :  { %v4959_v57 = vld [vmem:[%s10272_s0 + $0x1ab] sm:$0x40]   ;;  %v4979_v63 = vld [vmem:[%s10272_s0 + $0x2ae] sm:$0x4]   ;;  %v1189_v2 = vsel %vm5_vm0, %v4978_v62, %v4977_v61  ;;  %v1098_v5 = vsel %vm21_vm4, %v4958_v56, %v1094_v1  ;;  %v4994_v25 = vld [vmem:[%s10272_s0 + $0x26e] sm:$0x2]  }
  0x55   :  { %v4960_v58 = vld [vmem:[%s10272_s0 + $0x1ea] sm:$0x80]   ;;  %v4980_v3 = vld [vmem:[%s10272_s0 + $0x2ed] sm:$0x8]   ;;  %v1193_v6 = vsel %vm9_vm1, %v4979_v63, %v1189_v2  ;;  %v1102_v10 = vsel %vm25_vm5, %v4959_v57, %v1098_v5  ;;  %v1261_v28 = vsel %vm5_vm0, %v4994_v25, %v4993_v24  ;;  %v4995_v29 = vld [vmem:[%s10272_s0 + $0x2ad] sm:$0x4]  }
  0x56   :  { %v4981_v4 = vld [vmem:[%s10272_s0 + $0x32c] sm:$0x10]   ;;  %v1197_v11 = vsel %vm13_vm2, %v4980_v3, %v1193_v6  ;;  %v1106_v15 = vsel %vm29_vm6, %v4960_v58, %v1102_v10  ;;  %v4996_v30 = vld [vmem:[%s10272_s0 + $0x2ec] sm:$0x8]   ;;  %v1265_v35 = vsel %vm9_vm1, %v4995_v29, %v1261_v28  ;;  %v5009_v57 = vld [vmem:[%s10272_s0 + $0x22e] sm:$0x1]  }
  0x57   :  { %1035 = vrot.lane.b32.xlu0 %v1034_v53, %s5828_s9  ;;  %s5829_s9 = smov 98   ;;  %v4982_v7 = vld [vmem:[%s10272_s0 + $0x36b] sm:$0x20]   ;;  %v1201_v16 = vsel %vm17_vm3, %v4981_v4, %v1197_v11  ;;  %v4997_v31 = vld [vmem:[%s10272_s0 + $0x32b] sm:$0x10]   ;;  %v1269_v39 = vsel %vm13_vm2, %v4996_v30, %v1265_v35  ;;  %s5832_s4 = smov 92  }
  0x58   :  { %1142 = vrot.lane.b32.xlu1 %v1141_v0, %s5829_s9  ;;  %v4983_v8 = vld [vmem:[%s10272_s0 + $0x3aa] sm:$0x40]   ;;  %v1205_v21 = vsel %vm21_vm4, %v4982_v7, %v1201_v16  ;;  %v4998_v36 = vld [vmem:[%s10272_s0 + $0x36a] sm:$0x20]   ;;  %v1273_v44 = vsel %vm17_vm3, %v4997_v31, %v1269_v39  ;;  %v5010_v58 = vld [vmem:[%s10272_s0 + $0x26d] sm:$0x2]  }
  0x59   :  { %v4969_v9 = vld [vmem:[%s10272_s0 + $0x30] sm:$0x1]   ;;  %v1209_v26 = vsel %vm25_vm5, %v4983_v8, %v1205_v21  ;;  %v4999_v37 = vld [vmem:[%s10272_s0 + $0x3a9] sm:$0x40]   ;;  %v1277_v50 = vsel %vm21_vm4, %v4998_v36, %v1273_v44  ;;  %v5011_v59 = vld [vmem:[%s10272_s0 + $0x2ac] sm:$0x4]   ;;  %v1333_v62 = vsel %vm5_vm0, %v5010_v58, %v5009_v57 }
  0x5a   :  { %v4970_v12 = vld [vmem:[%s10272_s0 + $0x6f] sm:$0x2]   ;;  %v4985_v40 = vld [vmem:[%s10272_s0 + $0x2f] sm:$0x1]   ;;  %v1281_v55 = vsel %vm25_vm5, %v4999_v37, %v1277_v50  ;;  %v5012_v63 = vld [vmem:[%s10272_s0 + $0x2eb] sm:$0x8]   ;;  %v1337_v2 = vsel %vm9_vm1, %v5011_v59, %v1333_v62 }
  0x5b   :  { %v4971_v13 = vld [vmem:[%s10272_s0 + $0xae] sm:$0x4]   ;;  %v1154_v18 = vsel %vm5_vm0, %v4970_v12, %v4969_v9  ;;  %1107 = vrot.lane.b32.xlu0 %v1106_v15, %s5829_s9  ;;  %v4986_v41 = vld [vmem:[%s10272_s0 + $0x6e] sm:$0x2]   ;;  %v5013_v0 = vld [vmem:[%s10272_s0 + $0x32a] sm:$0x10]   ;;  %v1341_v7 = vsel %vm13_vm2, %v5012_v63, %v1337_v2 }
  0x5c   :  { %v4972_v14 = vld [vmem:[%s10272_s0 + $0xed] sm:$0x8]   ;;  %v1158_v22 = vsel %vm9_vm1, %v4971_v13, %v1154_v18  ;;  %v4987_v42 = vld [vmem:[%s10272_s0 + $0xad] sm:$0x4]   ;;  %v1226_v46 = vsel %vm5_vm0, %v4986_v41, %v4985_v40  ;;  %v5014_v3 = vld [vmem:[%s10272_s0 + $0x369] sm:$0x20]   ;;  %v1345_v12 = vsel %vm17_vm3, %v5013_v0, %v1341_v7 }
  0x5d   :  { %v4984_v17 = vld [vmem:[%s10272_s0 + $0x3e9] sm:$0x80]   ;;  %v1162_v27 = vsel %vm13_vm2, %v4972_v14, %v1158_v22  ;;  %v5000_v45 = vld [vmem:[%s10272_s0 + $0x3e8] sm:$0x80]   ;;  %v1230_v51 = vsel %vm9_vm1, %v4987_v42, %v1226_v46  ;;  %v5015_v4 = vld [vmem:[%s10272_s0 + $0x3a8] sm:$0x40]  }
  0x5e   :  { %v4973_v19 = vld [vmem:[%s10272_s0 + $0x12c] sm:$0x10]   ;;  %v1213_v32 = vsel %vm29_vm6, %v4984_v17, %v1209_v26  ;;  %v4988_v47 = vld [vmem:[%s10272_s0 + $0xec] sm:$0x8]   ;;  %v1285_v60 = vsel %vm29_vm6, %v5000_v45, %v1281_v55  ;;  %v5001_v5 = vld [vmem:[%s10272_s0 + $0x2e] sm:$0x1]   ;;  %v1349_v17 = vsel %vm21_vm4, %v5014_v3, %v1345_v12 }
  0x5f   :  { %v4974_v20 = vld [vmem:[%s10272_s0 + $0x16b] sm:$0x20]   ;;  %v1166_v33 = vsel %vm17_vm3, %v4973_v19, %v1162_v27  ;;  %1214 = vrot.lane.b32.xlu1 %v1213_v32, %s5830_s26  ;;  %v4989_v48 = vld [vmem:[%s10272_s0 + $0x12b] sm:$0x10]   ;;  %v1234_v56 = vsel %vm13_vm2, %v4988_v47, %v1230_v51  ;;  %v5002_v8 = vld [vmem:[%s10272_s0 + $0x6d] sm:$0x2]   ;;  %v1353_v22 = vsel %vm25_vm5, %v5015_v4, %v1349_v17 }
  0x60   :  { %v4975_v23 = vld [vmem:[%s10272_s0 + $0x1aa] sm:$0x40]   ;;  %v1170_v38 = vsel %vm21_vm4, %v4974_v20, %v1166_v33  ;;  %v4990_v52 = vld [vmem:[%s10272_s0 + $0x16a] sm:$0x20]   ;;  %v1238_v61 = vsel %vm17_vm3, %v4989_v48, %v1234_v56  ;;  %v5003_v9 = vld [vmem:[%s10272_s0 + $0xac] sm:$0x4]   ;;  %v1298_v14 = vsel %vm5_vm0, %v5002_v8, %v5001_v5 }
  0x61   :  { %v4976_v34 = vld [vmem:[%s10272_s0 + $0x1e9] sm:$0x80]   ;;  %v1174_v43 = vsel %vm25_vm5, %v4975_v23, %v1170_v38  ;;  %v4991_v53 = vld [vmem:[%s10272_s0 + $0x1a9] sm:$0x40]   ;;  %v1242_v1 = vsel %vm21_vm4, %v4990_v52, %v1238_v61  ;;  %v5004_v10 = vld [vmem:[%s10272_s0 + $0xeb] sm:$0x8]   ;;  %v1302_v18 = vsel %vm9_vm1, %v5003_v9, %v1298_v14 }
  0x62   :  { %v1178_v49 = vsel %vm29_vm6, %v4976_v34, %v1174_v43  ;;  %v4992_v54 = vld [vmem:[%s10272_s0 + $0x1e8] sm:$0x80]   ;;  %v1246_v6 = vsel %vm25_vm5, %v4991_v53, %v1242_v1  ;;  %v5016_v13 = vld [vmem:[%s10272_s0 + $0x3e7] sm:$0x80]   ;;  %v5025_v20 = vld [vmem:[%s10272_s0 + $0x22d] sm:$0x1]   ;;  %v1306_v23 = vsel %vm13_vm2, %v5004_v10, %v1302_v18 }
  0x63   :  { %1179 = vrot.lane.b32.xlu0 %v1178_v49, %s5830_s26  ;;  %s5831_s26 = smov 94   ;;  %v1250_v11 = vsel %vm29_vm6, %v4992_v54, %v1246_v6  ;;  %v5005_v15 = vld [vmem:[%s10272_s0 + $0x12a] sm:$0x10]   ;;  %v5026_v21 = vld [vmem:[%s10272_s0 + $0x26c] sm:$0x2]   ;;  %v1357_v28 = vsel %vm29_vm6, %v5016_v13, %v1353_v22  ;;  %s5834_s13 = smov 88  }
  0x64   :  { %1286 = vrot.lane.b32.xlu1 %v1285_v60, %s5831_s26  ;;  %v5006_v16 = vld [vmem:[%s10272_s0 + $0x169] sm:$0x20]   ;;  %v1405_v24 = vsel %vm5_vm0, %v5026_v21, %v5025_v20  ;;  %v5027_v25 = vld [vmem:[%s10272_s0 + $0x2ab] sm:$0x4]   ;;  %v1310_v29 = vsel %vm17_vm3, %v5005_v15, %v1306_v23  ;;  %v5041_v53 = vld [vmem:[%s10272_s0 + $0x22c] sm:$0x1]  }
  0x65   :  { %v5007_v19 = vld [vmem:[%s10272_s0 + $0x1a8] sm:$0x40]   ;;  %v5028_v26 = vld [vmem:[%s10272_s0 + $0x2ea] sm:$0x8]   ;;  %v1409_v31 = vsel %vm9_vm1, %v5027_v25, %v1405_v24  ;;  %v1314_v34 = vsel %vm21_vm4, %v5006_v16, %v1310_v29  ;;  %v5042_v54 = vld [vmem:[%s10272_s0 + $0x26b] sm:$0x2]  }
  0x66   :  { %v5029_v27 = vld [vmem:[%s10272_s0 + $0x329] sm:$0x10]   ;;  %v5008_v30 = vld [vmem:[%s10272_s0 + $0x1e7] sm:$0x80]   ;;  %v1413_v35 = vsel %vm13_vm2, %v5028_v26, %v1409_v31  ;;  %v1318_v39 = vsel %vm25_vm5, %v5007_v19, %v1314_v34  ;;  %v5043_v55 = vld [vmem:[%s10272_s0 + $0x2aa] sm:$0x4]   ;;  %v1477_v58 = vsel %vm5_vm0, %v5042_v54, %v5041_v53 }
  0x67   :  { %1251 = vrot.lane.b32.xlu0 %v1250_v11, %s5831_s26  ;;  %v5030_v32 = vld [vmem:[%s10272_s0 + $0x368] sm:$0x20]   ;;  %v1417_v40 = vsel %vm17_vm3, %v5029_v27, %v1413_v35  ;;  %v1322_v45 = vsel %vm29_vm6, %v5008_v30, %v1318_v39  ;;  %v5044_v59 = vld [vmem:[%s10272_s0 + $0x2e9] sm:$0x8]   ;;  %v1481_v62 = vsel %vm9_vm1, %v5043_v55, %v1477_v58  ;;  %v5057_v16 = vld [vmem:[%s10272_s0 + $0x22b] sm:$0x1]  }
  0x68   :  { %v5031_v33 = vld [vmem:[%s10272_s0 + $0x3a7] sm:$0x40]   ;;  %1358 = vrot.lane.b32.xlu1 %v1357_v28, %s5832_s4  ;;  %v1421_v46 = vsel %vm21_vm4, %v5030_v32, %v1417_v40  ;;  %v5045_v60 = vld [vmem:[%s10272_s0 + $0x328] sm:$0x10]   ;;  %v1485_v3 = vsel %vm13_vm2, %v5044_v59, %v1481_v62  ;;  %v5058_v17 = vld [vmem:[%s10272_s0 + $0x26a] sm:$0x2]  }
  0x69   :  { %v5017_v36 = vld [vmem:[%s10272_s0 + $0x2d] sm:$0x1]   ;;  %v1425_v51 = vsel %vm25_vm5, %v5031_v33, %v1421_v46  ;;  %v5046_v63 = vld [vmem:[%s10272_s0 + $0x367] sm:$0x20]   ;;  %v1489_v8 = vsel %vm17_vm3, %v5045_v60, %v1485_v3  ;;  %v1549_v20 = vsel %vm5_vm0, %v5058_v17, %v5057_v16  ;;  %v5059_v21 = vld [vmem:[%s10272_s0 + $0x2a9] sm:$0x4]  }
  0x6a   :  { %v5018_v37 = vld [vmem:[%s10272_s0 + $0x6c] sm:$0x2]   ;;  %v5047_v0 = vld [vmem:[%s10272_s0 + $0x3a6] sm:$0x40]   ;;  %v1493_v13 = vsel %vm21_vm4, %v5046_v63, %v1489_v8  ;;  %v5060_v22 = vld [vmem:[%s10272_s0 + $0x2e8] sm:$0x8]   ;;  %v1553_v27 = vsel %vm9_vm1, %v5059_v21, %v1549_v20 }
  0x6b   :  { %v5019_v38 = vld [vmem:[%s10272_s0 + $0xab] sm:$0x4]   ;;  %v1370_v42 = vsel %vm5_vm0, %v5018_v37, %v5017_v36  ;;  %1323 = vrot.lane.b32.xlu0 %v1322_v45, %s5832_s4  ;;  %s5833_s4 = smov 90   ;;  %v5033_v1 = vld [vmem:[%s10272_s0 + $0x2c] sm:$0x1]   ;;  %v1497_v18 = vsel %vm25_vm5, %v5047_v0, %v1493_v13  ;;  %v1557_v31 = vsel %vm13_vm2, %v5060_v22, %v1553_v27  ;;  %s5836_s21 = smov 84  }
  0x6c   :  { %v5032_v41 = vld [vmem:[%s10272_s0 + $0x3e6] sm:$0x80]   ;;  %v1374_v47 = vsel %vm9_vm1, %v5019_v38, %v1370_v42  ;;  %v5034_v4 = vld [vmem:[%s10272_s0 + $0x6b] sm:$0x2]   ;;  %v5061_v23 = vld [vmem:[%s10272_s0 + $0x327] sm:$0x10]  }
  0x6d   :  { %v5020_v43 = vld [vmem:[%s10272_s0 + $0xea] sm:$0x8]   ;;  %v1429_v56 = vsel %vm29_vm6, %v5032_v41, %v1425_v51  ;;  %v5035_v5 = vld [vmem:[%s10272_s0 + $0xaa] sm:$0x4]   ;;  %v1442_v10 = vsel %vm5_vm0, %v5034_v4, %v5033_v1  ;;  %v5062_v28 = vld [vmem:[%s10272_s0 + $0x366] sm:$0x20]   ;;  %v1561_v36 = vsel %vm17_vm3, %v5061_v23, %v1557_v31 }
  0x6e   :  { %v5021_v44 = vld [vmem:[%s10272_s0 + $0x129] sm:$0x10]   ;;  %v1378_v52 = vsel %vm13_vm2, %v5020_v43, %v1374_v47  ;;  %1430 = vrot.lane.b32.xlu1 %v1429_v56, %s5833_s4  ;;  %v5036_v6 = vld [vmem:[%s10272_s0 + $0xe9] sm:$0x8]   ;;  %v1446_v14 = vsel %vm9_vm1, %v5035_v5, %v1442_v10  ;;  %v5063_v29 = vld [vmem:[%s10272_s0 + $0x3a5] sm:$0x40]   ;;  %v1565_v42 = vsel %vm21_vm4, %v5062_v28, %v1561_v36 }
  0x6f   :  { %v5022_v48 = vld [vmem:[%s10272_s0 + $0x168] sm:$0x20]   ;;  %v1382_v57 = vsel %vm17_vm3, %v5021_v44, %v1378_v52  ;;  %v5048_v9 = vld [vmem:[%s10272_s0 + $0x3e5] sm:$0x80]   ;;  %v1450_v19 = vsel %vm13_vm2, %v5036_v6, %v1446_v14  ;;  %v5049_v32 = vld [vmem:[%s10272_s0 + $0x2b] sm:$0x1]   ;;  %v1569_v47 = vsel %vm25_vm5, %v5063_v29, %v1565_v42 }
  0x70   :  { %v5023_v49 = vld [vmem:[%s10272_s0 + $0x1a7] sm:$0x40]   ;;  %v1386_v61 = vsel %vm21_vm4, %v5022_v48, %v1382_v57  ;;  %v5037_v11 = vld [vmem:[%s10272_s0 + $0x128] sm:$0x10]   ;;  %v1501_v24 = vsel %vm29_vm6, %v5048_v9, %v1497_v18  ;;  %v5050_v33 = vld [vmem:[%s10272_s0 + $0x6a] sm:$0x2]  }
  0x71   :  { %v5024_v50 = vld [vmem:[%s10272_s0 + $0x1e6] sm:$0x80]   ;;  %v1390_v2 = vsel %vm25_vm5, %v5023_v49, %v1386_v61  ;;  %v5038_v12 = vld [vmem:[%s10272_s0 + $0x167] sm:$0x20]   ;;  %v1454_v25 = vsel %vm17_vm3, %v5037_v11, %v1450_v19  ;;  %v5051_v34 = vld [vmem:[%s10272_s0 + $0xa9] sm:$0x4]   ;;  %v1514_v38 = vsel %vm5_vm0, %v5050_v33, %v5049_v32 }
  0x72   :  { %v1394_v7 = vsel %vm29_vm6, %v5024_v50, %v1390_v2  ;;  %v5039_v15 = vld [vmem:[%s10272_s0 + $0x1a6] sm:$0x40]   ;;  %1502 = vrot.lane.b32.xlu1 %v1501_v24, %s5834_s13  ;;  %v1458_v30 = vsel %vm21_vm4, %v5038_v12, %v1454_v25  ;;  %v5064_v37 = vld [vmem:[%s10272_s0 + $0x3e4] sm:$0x80]   ;;  %v1518_v43 = vsel %vm9_vm1, %v5051_v34, %v1514_v38  ;;  %v5073_v49 = vld [vmem:[%s10272_s0 + $0x22a] sm:$0x1]  }
  0x73   :  { %1395 = vrot.lane.b32.xlu0 %v1394_v7, %s5833_s4  ;;  %v5040_v26 = vld [vmem:[%s10272_s0 + $0x1e5] sm:$0x80]   ;;  %v1462_v35 = vsel %vm25_vm5, %v5039_v15, %v1458_v30  ;;  %v5052_v39 = vld [vmem:[%s10272_s0 + $0xe8] sm:$0x8]   ;;  %v5074_v50 = vld [vmem:[%s10272_s0 + $0x269] sm:$0x2]   ;;  %v1573_v52 = vsel %vm29_vm6, %v5064_v37, %v1569_v47 }
  0x74   :  { %v5053_v40 = vld [vmem:[%s10272_s0 + $0x127] sm:$0x10]   ;;  %v1466_v41 = vsel %vm29_vm6, %v5040_v26, %v1462_v35  ;;  %v1522_v48 = vsel %vm13_vm2, %v5052_v39, %v1518_v43  ;;  %v5075_v51 = vld [vmem:[%s10272_s0 + $0x2a8] sm:$0x4]   ;;  %v1621_v54 = vsel %vm5_vm0, %v5074_v50, %v5073_v49  ;;  %v5089_v12 = vld [vmem:[%s10272_s0 + $0x229] sm:$0x1]  }
  0x75   :  { %v5054_v44 = vld [vmem:[%s10272_s0 + $0x166] sm:$0x20]   ;;  %v1526_v53 = vsel %vm17_vm3, %v5053_v40, %v1522_v48  ;;  %v5076_v55 = vld [vmem:[%s10272_s0 + $0x2e7] sm:$0x8]   ;;  %v1625_v58 = vsel %vm9_vm1, %v5075_v51, %v1621_v54  ;;  %v5090_v13 = vld [vmem:[%s10272_s0 + $0x268] sm:$0x2]  }
  0x76   :  { %v5055_v45 = vld [vmem:[%s10272_s0 + $0x1a5] sm:$0x40]   ;;  %v5077_v56 = vld [vmem:[%s10272_s0 + $0x326] sm:$0x10]   ;;  %v1530_v57 = vsel %vm21_vm4, %v5054_v44, %v1526_v53  ;;  %v1629_v63 = vsel %vm13_vm2, %v5076_v55, %v1625_v58  ;;  %v1693_v16 = vsel %vm5_vm0, %v5090_v13, %v5089_v12  ;;  %v5091_v17 = vld [vmem:[%s10272_s0 + $0x2a7] sm:$0x4]  }
  0x77   :  { %v5056_v46 = vld [vmem:[%s10272_s0 + $0x1e4] sm:$0x80]   ;;  %1467 = vrot.lane.b32.xlu0 %v1466_v41, %s5834_s13  ;;  %s5835_s13 = smov 86   ;;  %v5078_v59 = vld [vmem:[%s10272_s0 + $0x365] sm:$0x20]   ;;  %v1534_v62 = vsel %vm25_vm5, %v5055_v45, %v1530_v57  ;;  %v1633_v4 = vsel %vm17_vm3, %v5077_v56, %v1629_v63  ;;  %v1697_v24 = vsel %vm9_vm1, %v5091_v17, %v1693_v16  ;;  %s5838_s19 = smov 80  }
  0x78   :  { %1574 = vrot.lane.b32.xlu1 %v1573_v52, %s5835_s13  ;;  %v5079_v60 = vld [vmem:[%s10272_s0 + $0x3a4] sm:$0x40]   ;;  %v1538_v3 = vsel %vm29_vm6, %v5056_v46, %v1534_v62  ;;  %v1637_v9 = vsel %vm21_vm4, %v5078_v59, %v1633_v4  ;;  %v5092_v18 = vld [vmem:[%s10272_s0 + $0x2e6] sm:$0x8]   ;;  %v5105_v47 = vld [vmem:[%s10272_s0 + $0x228] sm:$0x1]  }
  0x79   :  { %v5065_v61 = vld [vmem:[%s10272_s0 + $0x2a] sm:$0x1]   ;;  %v1641_v14 = vsel %vm25_vm5, %v5079_v60, %v1637_v9  ;;  %v5093_v19 = vld [vmem:[%s10272_s0 + $0x325] sm:$0x10]   ;;  %v1701_v28 = vsel %vm13_vm2, %v5092_v18, %v1697_v24  ;;  %v5106_v48 = vld [vmem:[%s10272_s0 + $0x267] sm:$0x2]  }
  0x7a   :  { %v5066_v0 = vld [vmem:[%s10272_s0 + $0x69] sm:$0x2]   ;;  %v5094_v25 = vld [vmem:[%s10272_s0 + $0x364] sm:$0x20]   ;;  %v1705_v33 = vsel %vm17_vm3, %v5093_v19, %v1701_v28  ;;  %v5107_v49 = vld [vmem:[%s10272_s0 + $0x2a6] sm:$0x4]   ;;  %v1765_v52 = vsel %vm5_vm0, %v5106_v48, %v5105_v47 }
  0x7b   :  { %v5067_v1 = vld [vmem:[%s10272_s0 + $0xa8] sm:$0x4]   ;;  %v1586_v6 = vsel %vm5_vm0, %v5066_v0, %v5065_v61  ;;  %1539 = vrot.lane.b32.xlu0 %v1538_v3, %s5835_s13  ;;  %v5095_v26 = vld [vmem:[%s10272_s0 + $0x3a3] sm:$0x40]   ;;  %v1709_v40 = vsel %vm21_vm4, %v5094_v25, %v1705_v33  ;;  %v5108_v53 = vld [vmem:[%s10272_s0 + $0x2e5] sm:$0x8]   ;;  %v1769_v57 = vsel %vm9_vm1, %v5107_v49, %v1765_v52 }
  0x7c   :  { %v5068_v2 = vld [vmem:[%s10272_s0 + $0xe7] sm:$0x8]   ;;  %v1590_v10 = vsel %vm9_vm1, %v5067_v1, %v1586_v6  ;;  %v7264_v20 = vpop.permute.xlu1 %171   ;;  %v5081_v29 = vld [vmem:[%s10272_s0 + $0x29] sm:$0x1]   ;;  %v1713_v45 = vsel %vm25_vm5, %v5095_v26, %v1709_v40  ;;  %v5109_v54 = vld [vmem:[%s10272_s0 + $0x324] sm:$0x10]   ;;  %v1773_v62 = vsel %vm13_vm2, %v5108_v53, %v1769_v57 }
  0x7d   :  { %v5080_v5 = vld [vmem:[%s10272_s0 + $0x3e3] sm:$0x80]   ;;  %v1594_v15 = vsel %vm13_vm2, %v5068_v2, %v1590_v10  ;;  %v5082_v30 = vld [vmem:[%s10272_s0 + $0x68] sm:$0x2]   ;;  %v7301_v38 = vpop.permute.xlu0 %99   ;;  %v5110_v58 = vld [vmem:[%s10272_s0 + $0x363] sm:$0x20]   ;;  %v1777_v3 = vsel %vm17_vm3, %v5109_v54, %v1773_v62 }
  0x7e   :  { %v5069_v7 = vld [vmem:[%s10272_s0 + $0x126] sm:$0x10]   ;;  %v1645_v21 = vsel %vm29_vm6, %v5080_v5, %v1641_v14  ;;  %v5083_v31 = vld [vmem:[%s10272_s0 + $0xa7] sm:$0x4]   ;;  %v1658_v35 = vsel %vm5_vm0, %v5082_v30, %v5081_v29  ;;  %v5111_v59 = vld [vmem:[%s10272_s0 + $0x3a2] sm:$0x40]   ;;  %v1781_v9 = vsel %vm21_vm4, %v5110_v58, %v1777_v3 }
  0x7f   :  { %v5070_v8 = vld [vmem:[%s10272_s0 + $0x165] sm:$0x20]   ;;  %v1598_v22 = vsel %vm17_vm3, %v5069_v7, %v1594_v15  ;;  %1646 = vrot.lane.b32.xlu1 %v1645_v21, %s5836_s21  ;;  %v5096_v34 = vld [vmem:[%s10272_s0 + $0x3e2] sm:$0x80]   ;;  %v1662_v41 = vsel %vm9_vm1, %v5083_v31, %v1658_v35  ;;  %v5097_v60 = vld [vmem:[%s10272_s0 + $0x28] sm:$0x1]   ;;  %v1785_v14 = vsel %vm25_vm5, %v5111_v59, %v1781_v9 }
  0x80   :  { %v5071_v11 = vld [vmem:[%s10272_s0 + $0x1a4] sm:$0x40]   ;;  %v1602_v27 = vsel %vm21_vm4, %v5070_v8, %v1598_v22  ;;  %v5084_v36 = vld [vmem:[%s10272_s0 + $0xe6] sm:$0x8]   ;;  %v1717_v50 = vsel %vm29_vm6, %v5096_v34, %v1713_v45  ;;  %v5098_v63 = vld [vmem:[%s10272_s0 + $0x67] sm:$0x2]  }
  0x81   :  { %v5072_v23 = vld [vmem:[%s10272_s0 + $0x1e3] sm:$0x80]   ;;  %v1606_v32 = vsel %vm25_vm5, %v5071_v11, %v1602_v27  ;;  %v5085_v37 = vld [vmem:[%s10272_s0 + $0x125] sm:$0x10]   ;;  %v1666_v46 = vsel %vm13_vm2, %v5084_v36, %v1662_v41  ;;  %v5099_v0 = vld [vmem:[%s10272_s0 + $0xa6] sm:$0x4]   ;;  %v1730_v5 = vsel %vm5_vm0, %v5098_v63, %v5097_v60 }
  0x82   :  { %v1610_v39 = vsel %vm29_vm6, %v5072_v23, %v1606_v32  ;;  %v5086_v42 = vld [vmem:[%s10272_s0 + $0x164] sm:$0x20]   ;;  %v1670_v51 = vsel %vm17_vm3, %v5085_v37, %v1666_v46  ;;  %v5100_v1 = vld [vmem:[%s10272_s0 + $0xe5] sm:$0x8]   ;;  %v1734_v10 = vsel %vm9_vm1, %v5099_v0, %v1730_v5  ;;  %v5121_v12 = vld [vmem:[%s10272_s0 + $0x227] sm:$0x1]  }
  0x83   :  { %v5087_v43 = vld [vmem:[%s10272_s0 + $0x1a3] sm:$0x40]   ;;  %1611 = vrot.lane.b32.xlu0 %v1610_v39, %s5836_s21  ;;  %s5837_s21 = smov 82   ;;  %v1674_v56 = vsel %vm21_vm4, %v5086_v42, %v1670_v51  ;;  %v5112_v4 = vld [vmem:[%s10272_s0 + $0x3e1] sm:$0x80]   ;;  %v1738_v15 = vsel %vm13_vm2, %v5100_v1, %v1734_v10  ;;  %s5840_s7 = smov 76  }
  0x84   :  { %v5088_v44 = vld [vmem:[%s10272_s0 + $0x1e2] sm:$0x80]   ;;  %v7335_v55 = vpop.permute.xlu1 %206   ;;  %1718 = vrot.lane.b32.xlu1 %v1717_v50, %s5837_s21  ;;  %v1678_v61 = vsel %vm25_vm5, %v5087_v43, %v1674_v56  ;;  %v5101_v6 = vld [vmem:[%s10272_s0 + $0x124] sm:$0x10]   ;;  %v5122_v13 = vld [vmem:[%s10272_s0 + $0x266] sm:$0x2]   ;;  %v1789_v22 = vsel %vm29_vm6, %v5112_v4, %v1785_v14 }
  0x85   :  { %v1682_v2 = vsel %vm29_vm6, %v5088_v44, %v1678_v61  ;;  %v5102_v7 = vld [vmem:[%s10272_s0 + $0x163] sm:$0x20]   ;;  %v7371_v8 = vpop.permute.xlu0 %134   ;;  %v1837_v16 = vsel %vm5_vm0, %v5122_v13, %v5121_v12  ;;  %v5123_v17 = vld [vmem:[%s10272_s0 + $0x2a5] sm:$0x4]   ;;  %v1742_v23 = vsel %vm17_vm3, %v5101_v6, %v1738_v15  ;;  %v5137_v49 = vld [vmem:[%s10272_s0 + $0x226] sm:$0x1]  }
  0x86   :  { %v5103_v11 = vld [vmem:[%s10272_s0 + $0x1a2] sm:$0x40]   ;;  %v5124_v18 = vld [vmem:[%s10272_s0 + $0x2e4] sm:$0x8]   ;;  %v1841_v25 = vsel %vm9_vm1, %v5123_v17, %v1837_v16  ;;  %v1746_v28 = vsel %vm21_vm4, %v5102_v7, %v1742_v23  ;;  %v5138_v50 = vld [vmem:[%s10272_s0 + $0x265] sm:$0x2]  }
  0x87   :  { %1683 = vrot.lane.b32.xlu0 %v1682_v2, %s5837_s21  ;;  %v5125_v19 = vld [vmem:[%s10272_s0 + $0x323] sm:$0x10]   ;;  %v5104_v24 = vld [vmem:[%s10272_s0 + $0x1e1] sm:$0x80]   ;;  %v1845_v29 = vsel %vm13_vm2, %v5124_v18, %v1841_v25  ;;  %v1750_v33 = vsel %vm25_vm5, %v5103_v11, %v1746_v28  ;;  %v5139_v51 = vld [vmem:[%s10272_s0 + $0x2a4] sm:$0x4]   ;;  %v1909_v54 = vsel %vm5_vm0, %v5138_v50, %v5137_v49 }
  0x88   :  { %v7396_v21 = vpop.permute.xlu1 %278   ;;  %v5126_v26 = vld [vmem:[%s10272_s0 + $0x362] sm:$0x20]   ;;  %1790 = vrot.lane.b32.xlu1 %v1789_v22, %s5838_s19  ;;  %v1849_v34 = vsel %vm17_vm3, %v5125_v19, %v1845_v29  ;;  %v1754_v41 = vsel %vm29_vm6, %v5104_v24, %v1750_v33  ;;  %v5140_v56 = vld [vmem:[%s10272_s0 + $0x2e3] sm:$0x8]   ;;  %v1913_v60 = vsel %vm9_vm1, %v5139_v51, %v1909_v54  ;;  %v5153_v16 = vld [vmem:[%s10272_s0 + $0x225] sm:$0x1]  }
  0x89   :  { %v5127_v27 = vld [vmem:[%s10272_s0 + $0x3a1] sm:$0x40]   ;;  %v7433_v40 = vpop.permute.xlu0 %243   ;;  %v1853_v42 = vsel %vm21_vm4, %v5126_v26, %v1849_v34  ;;  %v5141_v57 = vld [vmem:[%s10272_s0 + $0x322] sm:$0x10]   ;;  %v1917_v1 = vsel %vm13_vm2, %v5140_v56, %v1913_v60  ;;  %v5154_v17 = vld [vmem:[%s10272_s0 + $0x264] sm:$0x2]  }
  0x8a   :  { %v5113_v30 = vld [vmem:[%s10272_s0 + $0x27] sm:$0x1]   ;;  %v1857_v47 = vsel %vm25_vm5, %v5127_v27, %v1853_v42  ;;  %v5142_v61 = vld [vmem:[%s10272_s0 + $0x361] sm:$0x20]   ;;  %v1921_v6 = vsel %vm17_vm3, %v5141_v57, %v1917_v1  ;;  %v1981_v22 = vsel %vm5_vm0, %v5154_v17, %v5153_v16  ;;  %v5155_v23 = vld [vmem:[%s10272_s0 + $0x2a3] sm:$0x4]  }
  0x8b   :  { %v5114_v31 = vld [vmem:[%s10272_s0 + $0x66] sm:$0x2]   ;;  %1755 = vrot.lane.b32.xlu0 %v1754_v41, %s5838_s19  ;;  %s5839_s19 = smov 78   ;;  %v5143_v62 = vld [vmem:[%s10272_s0 + $0x3a0] sm:$0x40]   ;;  %v1925_v13 = vsel %vm21_vm4, %v5142_v61, %v1921_v6  ;;  %s5842_s16 = smov 72  }
  0x8c   :  { %v5115_v32 = vld [vmem:[%s10272_s0 + $0xa5] sm:$0x4]   ;;  %v1802_v36 = vsel %vm5_vm0, %v5114_v31, %v5113_v30  ;;  %v5129_v63 = vld [vmem:[%s10272_s0 + $0x26] sm:$0x1]   ;;  %v1929_v18 = vsel %vm25_vm5, %v5143_v62, %v1925_v13  ;;  %v5156_v24 = vld [vmem:[%s10272_s0 + $0x2e2] sm:$0x8]   ;;  %v1985_v30 = vsel %vm9_vm1, %v5155_v23, %v1981_v22 }
  0x8d   :  { %v5128_v35 = vld [vmem:[%s10272_s0 + $0x3e0] sm:$0x80]   ;;  %v1806_v43 = vsel %vm9_vm1, %v5115_v32, %v1802_v36  ;;  %v5130_v2 = vld [vmem:[%s10272_s0 + $0x65] sm:$0x2]   ;;  %v5157_v25 = vld [vmem:[%s10272_s0 + $0x321] sm:$0x10]   ;;  %v1989_v34 = vsel %vm13_vm2, %v5156_v24, %v1985_v30 }
  0x8e   :  { %v5116_v37 = vld [vmem:[%s10272_s0 + $0xe4] sm:$0x8]   ;;  %v1861_v52 = vsel %vm29_vm6, %v5128_v35, %v1857_v47  ;;  %v5131_v3 = vld [vmem:[%s10272_s0 + $0xa4] sm:$0x4]   ;;  %v1874_v9 = vsel %vm5_vm0, %v5130_v2, %v5129_v63  ;;  %v5158_v31 = vld [vmem:[%s10272_s0 + $0x360] sm:$0x20]   ;;  %v1993_v41 = vsel %vm17_vm3, %v5157_v25, %v1989_v34 }
  0x8f   :  { %v5117_v39 = vld [vmem:[%s10272_s0 + $0x123] sm:$0x10]   ;;  %v1810_v48 = vsel %vm13_vm2, %v5116_v37, %v1806_v43  ;;  %1862 = vrot.lane.b32.xlu1 %v1861_v52, %s5839_s19  ;;  %v5132_v4 = vld [vmem:[%s10272_s0 + $0xe3] sm:$0x8]   ;;  %v1878_v14 = vsel %vm9_vm1, %v5131_v3, %v1874_v9  ;;  %v5159_v32 = vld [vmem:[%s10272_s0 + $0x39f] sm:$0x40]  }
  0x90   :  { %v5118_v44 = vld [vmem:[%s10272_s0 + $0x162] sm:$0x20]   ;;  %v1814_v53 = vsel %vm17_vm3, %v5117_v39, %v1810_v48  ;;  %v7467_v58 = vpop.permute.xlu1 %350   ;;  %v5144_v7 = vld [vmem:[%s10272_s0 + $0x3df] sm:$0x80]   ;;  %v1882_v19 = vsel %vm13_vm2, %v5132_v4, %v1878_v14  ;;  %v5145_v35 = vld [vmem:[%s10272_s0 + $0x25] sm:$0x1]   ;;  %v1997_v48 = vsel %vm21_vm4, %v5158_v31, %v1993_v41 }
  0x91   :  { %v5119_v45 = vld [vmem:[%s10272_s0 + $0x1a1] sm:$0x40]   ;;  %v1818_v59 = vsel %vm21_vm4, %v5118_v44, %v1814_v53  ;;  %v5133_v10 = vld [vmem:[%s10272_s0 + $0x122] sm:$0x10]   ;;  %v1933_v27 = vsel %vm29_vm6, %v5144_v7, %v1929_v18  ;;  %v5146_v36 = vld [vmem:[%s10272_s0 + $0x64] sm:$0x2]   ;;  %v2001_v53 = vsel %vm25_vm5, %v5159_v32, %v1997_v48 }
  0x92   :  { %v5120_v46 = vld [vmem:[%s10272_s0 + $0x1e0] sm:$0x80]   ;;  %v1822_v0 = vsel %vm25_vm5, %v5119_v45, %v1818_v59  ;;  %v5134_v11 = vld [vmem:[%s10272_s0 + $0x161] sm:$0x20]   ;;  %v1886_v28 = vsel %vm17_vm3, %v5133_v10, %v1882_v19  ;;  %v5147_v37 = vld [vmem:[%s10272_s0 + $0xa3] sm:$0x4]   ;;  %v1946_v43 = vsel %vm5_vm0, %v5146_v36, %v5145_v35 }
  0x93   :  { %v1826_v5 = vsel %vm29_vm6, %v5120_v46, %v1822_v0  ;;  %v5135_v15 = vld [vmem:[%s10272_s0 + $0x1a0] sm:$0x40]   ;;  %1934 = vrot.lane.b32.xlu1 %v1933_v27, %s5840_s7  ;;  %v1890_v33 = vsel %vm21_vm4, %v5134_v11, %v1886_v28  ;;  %v5160_v42 = vld [vmem:[%s10272_s0 + $0x3de] sm:$0x80]   ;;  %v1950_v49 = vsel %vm9_vm1, %v5147_v37, %v1946_v43  ;;  %v5169_v56 = vld [vmem:[%s10272_s0 + $0x224] sm:$0x1]  }
  0x94   :  { %v7503_v12 = vpop.permute.xlu0 %315   ;;  %1827 = vrot.lane.b32.xlu0 %v1826_v5, %s5839_s19  ;;  %v5136_v29 = vld [vmem:[%s10272_s0 + $0x1df] sm:$0x80]   ;;  %v1894_v39 = vsel %vm25_vm5, %v5135_v15, %v1890_v33  ;;  %v5148_v44 = vld [vmem:[%s10272_s0 + $0xe2] sm:$0x8]   ;;  %v5170_v57 = vld [vmem:[%s10272_s0 + $0x263] sm:$0x2]   ;;  %v2005_v60 = vsel %vm29_vm6, %v5160_v42, %v2001_v53 }
  0x95   :  { %v7528_v26 = vpop.permute.xlu1 %422   ;;  %v5149_v45 = vld [vmem:[%s10272_s0 + $0x121] sm:$0x10]   ;;  %v1898_v47 = vsel %vm29_vm6, %v5136_v29, %v1894_v39  ;;  %v1954_v54 = vsel %vm13_vm2, %v5148_v44, %v1950_v49  ;;  %v5171_v59 = vld [vmem:[%s10272_s0 + $0x2a2] sm:$0x4]   ;;  %v2053_v62 = vsel %vm5_vm0, %v5170_v57, %v5169_v56  ;;  %v5185_v27 = vld [vmem:[%s10272_s0 + $0x223] sm:$0x1]  }
  0x96   :  { %v5150_v50 = vld [vmem:[%s10272_s0 + $0x160] sm:$0x20]   ;;  %v1958_v61 = vsel %vm17_vm3, %v5149_v45, %v1954_v54  ;;  %v5172_v63 = vld [vmem:[%s10272_s0 + $0x2e1] sm:$0x8]   ;;  %v2057_v3 = vsel %vm9_vm1, %v5171_v59, %v2053_v62  ;;  %v5186_v28 = vld [vmem:[%s10272_s0 + $0x262] sm:$0x2]  }
  0x97   :  { %v5151_v51 = vld [vmem:[%s10272_s0 + $0x19f] sm:$0x40]   ;;  %v5173_v0 = vld [vmem:[%s10272_s0 + $0x320] sm:$0x10]   ;;  %v1962_v2 = vsel %vm21_vm4, %v5150_v50, %v1958_v61  ;;  %v2061_v9 = vsel %vm13_vm2, %v5172_v63, %v2057_v3  ;;  %v2125_v31 = vsel %vm5_vm0, %v5186_v28, %v5185_v27  ;;  %v5187_v32 = vld [vmem:[%s10272_s0 + $0x2a1] sm:$0x4]  }
  0x98   :  { %v7565_v46 = vpop.permute.xlu0 %387   ;;  %v5152_v52 = vld [vmem:[%s10272_s0 + $0x1de] sm:$0x80]   ;;  %1899 = vrot.lane.b32.xlu0 %v1898_v47, %s5840_s7  ;;  %s5841_s7 = smov 74   ;;  %v5174_v4 = vld [vmem:[%s10272_s0 + $0x35f] sm:$0x20]   ;;  %v1966_v7 = vsel %vm25_vm5, %v5151_v51, %v1962_v2  ;;  %v2065_v15 = vsel %vm17_vm3, %v5173_v0, %v2061_v9  ;;  %v2129_v41 = vsel %vm9_vm1, %v5187_v32, %v2125_v31  ;;  %vm31_vm7 = vcmask 15360  }
  0x99   :  { %v7599_v1 = vpop.permute.xlu1 %494   ;;  %2006 = vrot.lane.b32.xlu1 %v2005_v60, %s5841_s7  ;;  %v5175_v5 = vld [vmem:[%s10272_s0 + $0x39e] sm:$0x40]   ;;  %v1970_v14 = vsel %vm29_vm6, %v5152_v52, %v1966_v7  ;;  %v2069_v23 = vsel %vm21_vm4, %v5174_v4, %v2065_v15  ;;  %v5188_v33 = vld [vmem:[%s10272_s0 + $0x2e0] sm:$0x8]   ;;  %v4715_v4 = vld [vmem:[%s10272_s0 + $0x7e] sm:$0x4]  }
  0x9a   :  { %v5161_v6 = vld [vmem:[%s10272_s0 + $0x24] sm:$0x1]   ;;  %v2073_v29 = vsel %vm25_vm5, %v5175_v5, %v2069_v23  ;;  %v5189_v34 = vld [vmem:[%s10272_s0 + $0x31f] sm:$0x10]   ;;  %v2133_v45 = vsel %vm13_vm2, %v5188_v33, %v2129_v41  ;;  %v4716_v7 = vld [vmem:[%s10272_s0 + $0xbd] sm:$0x8]  }
  0x9b   :  { %v5162_v10 = vld [vmem:[%s10272_s0 + $0x63] sm:$0x2]   ;;  %v5190_v42 = vld [vmem:[%s10272_s0 + $0x35e] sm:$0x20]   ;;  %v2137_v51 = vsel %vm17_vm3, %v5189_v34, %v2133_v45  ;;  %v4717_v9 = vld [vmem:[%s10272_s0 + $0xfc] sm:$0x10]  }
  0x9c   :  { %v5163_v11 = vld [vmem:[%s10272_s0 + $0xa2] sm:$0x4]   ;;  %v2018_v17 = vsel %vm5_vm0, %v5162_v10, %v5161_v6  ;;  %v7635_v22 = vpop.permute.xlu0 %459   ;;  %1971 = vrot.lane.b32.xlu0 %v1970_v14, %s5841_s7  ;;  %v5191_v43 = vld [vmem:[%s10272_s0 + $0x39d] sm:$0x40]   ;;  %v2141_v60 = vsel %vm21_vm4, %v5190_v42, %v2137_v51  ;;  %vm101_vm8 = vcmask 1048560   ;;  %s5843_s12 = smov 70  }
  0x9d   :  { %v5164_v13 = vld [vmem:[%s10272_s0 + $0xe1] sm:$0x8]   ;;  %v2022_v24 = vsel %vm9_vm1, %v5163_v11, %v2018_v17  ;;  %v5177_v47 = vld [vmem:[%s10272_s0 + $0x23] sm:$0x1]   ;;  %v2145_v63 = vsel %vm25_vm5, %v5191_v43, %v2141_v60  ;;  %v2_v14 = vld [vmem:[%s10272_s0] sm:$0x1]  }
  0x9e   :  { %v5176_v16 = vld [vmem:[%s10272_s0 + $0x3dd] sm:$0x80]   ;;  %v2026_v30 = vsel %vm13_vm2, %v5164_v13, %v2022_v24  ;;  %v5178_v48 = vld [vmem:[%s10272_s0 + $0x62] sm:$0x2]   ;;  %v4718_v13 = vld [vmem:[%s10272_s0 + $0x13b] sm:$0x20]  }
  0x9f   :  { %v5165_v18 = vld [vmem:[%s10272_s0 + $0x120] sm:$0x10]   ;;  %v7660_v35 = vpop.permute.xlu1 %566   ;;  %v2077_v36 = vsel %vm29_vm6, %v5176_v16, %v2073_v29  ;;  %v5179_v49 = vld [vmem:[%s10272_s0 + $0xa1] sm:$0x4]   ;;  %v2090_v53 = vsel %vm5_vm0, %v5178_v48, %v5177_v47  ;;  %v4714_v15 = vld [vmem:[%s10272_s0 + $0x3f] sm:$0x2]  }
  0xa0   :  { %v5166_v19 = vld [vmem:[%s10272_s0 + $0x15f] sm:$0x20]   ;;  %v2030_v37 = vsel %vm17_vm3, %v5165_v18, %v2026_v30  ;;  %2078 = vrot.lane.b32.xlu1 %v2077_v36, %s5842_s16  ;;  %v5192_v52 = vld [vmem:[%s10272_s0 + $0x3dc] sm:$0x80]   ;;  %v2094_v61 = vsel %vm9_vm1, %v5179_v49, %v2090_v53  ;;  %vm173_vm9 = vcmask 1032160   ;;  %v6_v18 = vsel %vm5_vm0, %v4714_v15, %v2_v14  ;;  %s5844_s13 = smov 68  }
  0xa1   :  { %v5167_v25 = vld [vmem:[%s10272_s0 + $0x19e] sm:$0x40]   ;;  %v2034_v44 = vsel %vm21_vm4, %v5166_v19, %v2030_v37  ;;  %v5180_v54 = vld [vmem:[%s10272_s0 + $0xe0] sm:$0x8]   ;;  %v2149_v5 = vsel %vm29_vm6, %v5192_v52, %v2145_v63  ;;  %v4719_v17 = vld [vmem:[%s10272_s0 + $0x17a] sm:$0x40]   ;;  %v10_v28 = vsel %vm9_vm1, %v4715_v4, %v6_v18 }
  0xa2   :  { %v5168_v39 = vld [vmem:[%s10272_s0 + $0x1dd] sm:$0x80]   ;;  %v2038_v50 = vsel %vm25_vm5, %v5167_v25, %v2034_v44  ;;  %v5181_v56 = vld [vmem:[%s10272_s0 + $0x11f] sm:$0x10]   ;;  %v2098_v0 = vsel %vm13_vm2, %v5180_v54, %v2094_v61  ;;  %v5201_v19 = vld [vmem:[%s10272_s0 + $0x222] sm:$0x1]   ;;  %v14_v34 = vsel %vm13_vm2, %v4716_v7, %v10_v28 }
  0xa3   :  { %v2042_v59 = vsel %vm29_vm6, %v5168_v39, %v2038_v50  ;;  %v5182_v62 = vld [vmem:[%s10272_s0 + $0x15e] sm:$0x20]   ;;  %v2102_v6 = vsel %vm17_vm3, %v5181_v56, %v2098_v0  ;;  %v7724_v10 = vpop.permute.xlu1 %638   ;;  %v5202_v23 = vld [vmem:[%s10272_s0 + $0x261] sm:$0x2]   ;;  %v4720_v27 = vld [vmem:[%s10272_s0 + $0x1b9] sm:$0x80]   ;;  %v18_v42 = vsel %vm17_vm3, %v4717_v9, %v14_v34 }
  0xa4   :  { %v7697_v57 = vpop.permute.xlu0 %531   ;;  %2043 = vrot.lane.b32.xlu0 %v2042_v59, %s5842_s16  ;;  %v5183_v2 = vld [vmem:[%s10272_s0 + $0x19d] sm:$0x40]   ;;  %2150 = vrot.lane.b32.xlu1 %v2149_v5, %s5843_s12  ;;  %v2106_v11 = vsel %vm21_vm4, %v5182_v62, %v2102_v6  ;;  %v5203_v24 = vld [vmem:[%s10272_s0 + $0x2a0] sm:$0x4]   ;;  %v2197_v29 = vsel %vm5_vm0, %v5202_v23, %v5201_v19  ;;  %v22_v49 = vsel %vm21_vm4, %v4718_v13, %v18_v42  ;;  %vm245_vm10 = vcmask 1015760   ;;  %s5845_s19 = smov 66  }
  0xa5   :  { %v5184_v3 = vld [vmem:[%s10272_s0 + $0x1dc] sm:$0x80]   ;;  %v2110_v16 = vsel %vm25_vm5, %v5183_v2, %v2106_v11  ;;  %v5204_v30 = vld [vmem:[%s10272_s0 + $0x2df] sm:$0x8]   ;;  %v2201_v36 = vsel %vm9_vm1, %v5203_v24, %v2197_v29  ;;  %v26_v56 = vsel %vm25_vm5, %v4719_v17, %v22_v49  ;;  %v4721_v62 = vld [vmem:[%s10272_s0 + $0x200] sm:$0x1]  }
  0xa6   :  { %v2114_v25 = vsel %vm29_vm6, %v5184_v3, %v2110_v16  ;;  %v5205_v31 = vld [vmem:[%s10272_s0 + $0x31e] sm:$0x10]   ;;  %v2205_v43 = vsel %vm13_vm2, %v5204_v30, %v2201_v36  ;;  %v4722_v63 = vld [vmem:[%s10272_s0 + $0x23f] sm:$0x2]   ;;  %v30_v0 = vsel %vm29_vm6, %v4720_v27, %v26_v56  ;;  %v5217_v19 = vld [vmem:[%s10272_s0 + $0x221] sm:$0x1]  }
  0xa7   :  { %v5206_v32 = vld [vmem:[%s10272_s0 + $0x35d] sm:$0x20]   ;;  %v2209_v50 = vsel %vm17_vm3, %v5205_v31, %v2205_v43  ;;  %v4723_v4 = vld [vmem:[%s10272_s0 + $0x27e] sm:$0x4]   ;;  %v39_v7 = vsel %vm5_vm0, %v4722_v63, %v4721_v62  ;;  %v5218_v23 = vld [vmem:[%s10272_s0 + $0x260] sm:$0x2]  }
  0xa8   :  { %v7765_v33 = vpop.permute.xlu0 %603   ;;  %2115 = vrot.lane.b32.xlu0 %v2114_v25, %s5843_s12  ;;  %v5207_v37 = vld [vmem:[%s10272_s0 + $0x39c] sm:$0x40]   ;;  %v2213_v59 = vsel %vm21_vm4, %v5206_v32, %v2209_v50  ;;  %v4724_v5 = vld [vmem:[%s10272_s0 + $0x2bd] sm:$0x8]   ;;  %v43_v17 = vsel %vm9_vm1, %v4723_v4, %v39_v7  ;;  %v2269_v25 = vsel %vm5_vm0, %v5218_v23, %v5217_v19  ;;  %v5219_v27 = vld [vmem:[%s10272_s0 + $0x29f] sm:$0x4]  }
  0xa9   :  { %v5208_v39 = vld [vmem:[%s10272_s0 + $0x3db] sm:$0x80]   ;;  %v7789_v48 = vpop.permute.xlu1 %710   ;;  %v2217_v2 = vsel %vm25_vm5, %v5207_v37, %v2213_v59  ;;  %v4725_v6 = vld [vmem:[%s10272_s0 + $0x2fc] sm:$0x10]   ;;  %v47_v18 = vsel %vm13_vm2, %v4724_v5, %v43_v17  ;;  %v5220_v28 = vld [vmem:[%s10272_s0 + $0x2de] sm:$0x8]   ;;  %v2273_v34 = vsel %vm9_vm1, %v5219_v27, %v2269_v25 }
  0xaa   :  { %v5193_v41 = vld [vmem:[%s10272_s0 + $0x22] sm:$0x1]   ;;  %32 = vst.msk [vmem:[#allocation0] ss:$8 sm:$0xf] %vm31_vm7, %v30_v0   ;;  %v2221_v11 = vsel %vm29_vm6, %v5208_v39, %v2217_v2  ;;  %vm317_vm11 = vcmask 999360  }
  0xab   :  { %v5194_v44 = vld [vmem:[%s10272_s0 + $0x61] sm:$0x2]   ;;  %33 = vst.msk [vmem:[#allocation0] ss:$8 sm:$0xf0] %vm31_vm7, %v30_v0   ;;  %2222 = vrot.lane.b32.xlu1 %v2221_v11, %s5844_s13  ;;  %vm389_vm12 = vcmask 982960  }
  0xac   :  { %v5195_v45 = vld [vmem:[%s10272_s0 + $0xa0] sm:$0x4]   ;;  %v2162_v51 = vsel %vm5_vm0, %v5194_v44, %v5193_v41  ;;  %v7828_v9 = vpop.permute.xlu0 %675   ;;  %v4726_v14 = vld [vmem:[%s10272_s0 + $0x33b] sm:$0x20]   ;;  %v5221_v29 = vld [vmem:[%s10272_s0 + $0x31d] sm:$0x10]   ;;  %v2277_v41 = vsel %vm13_vm2, %v5220_v28, %v2273_v34 }
  0xad   :  { %v5196_v47 = vld [vmem:[%s10272_s0 + $0xdf] sm:$0x8]   ;;  %v2166_v60 = vsel %vm9_vm1, %v5195_v45, %v2162_v51  ;;  %v4727_v15 = vld [vmem:[%s10272_s0 + $0x37a] sm:$0x40]   ;;  %v5222_v36 = vld [vmem:[%s10272_s0 + $0x35c] sm:$0x20]  }
  0xae   :  { %v5197_v52 = vld [vmem:[%s10272_s0 + $0x11e] sm:$0x10]   ;;  %v2170_v3 = vsel %vm13_vm2, %v5196_v47, %v2166_v60  ;;  %v4728_v16 = vld [vmem:[%s10272_s0 + $0x3b9] sm:$0x80]   ;;  %v5223_v37 = vld [vmem:[%s10272_s0 + $0x39b] sm:$0x40]   ;;  %v2281_v47 = vsel %vm17_vm3, %v5221_v29, %v2277_v41 }
  0xaf   :  { %v5198_v53 = vld [vmem:[%s10272_s0 + $0x15d] sm:$0x20]   ;;  %v2174_v13 = vsel %vm17_vm3, %v5197_v52, %v2170_v3  ;;  %102 = vst.msk [vmem:[#allocation0] ss:$8 sm:$0xf] %vm101_vm8, %v7301_v38   ;;  %s5846_s5 = smov 64  }
  0xb0   :  { %v5199_v54 = vld [vmem:[%s10272_s0 + $0x19c] sm:$0x40]   ;;  %103 = vst.msk [vmem:[#allocation0] ss:$8 sm:$0xf0] %vm101_vm8, %v7301_v38   ;;  %v2178_v38 = vsel %vm21_vm4, %v5198_v53, %v2174_v13  ;;  %v7872_v30 = vpop.permute.xlu1 %782   ;;  %vm461_vm13 = vcmask 966560  }
  0xb1   :  { %v5200_v61 = vld [vmem:[%s10272_s0 + $0x1db] sm:$0x80]   ;;  %v2182_v24 = vsel %vm25_vm5, %v5199_v54, %v2178_v38  ;;  %174 = vst.msk [vmem:[#allocation0] ss:$8 sm:$0xf] %vm173_vm9, %v7264_v20   ;;  %v2285_v54 = vsel %vm21_vm4, %v5222_v36, %v2281_v47  ;;  %s5847_s12 = smov 62  }
  0xb2   :  { %175 = vst.msk [vmem:[#allocation0] ss:$8 sm:$0xf0] %vm173_vm9, %v7264_v20   ;;  %v51_v20 = vsel %vm17_vm3, %v4725_v6, %v47_v18  ;;  %v2186_v31 = vsel %vm29_vm6, %v5200_v61, %v2182_v24  ;;  %v5224_v39 = vld [vmem:[%s10272_s0 + $0x3da] sm:$0x80]   ;;  %vm533_vm14 = vcmask 950160  }
  0xb3   :  { %v55_v32 = vsel %vm21_vm4, %v4726_v14, %v51_v20  ;;  %246 = vst.msk [vmem:[#allocation0] ss:$8 sm:$0xf] %vm245_vm10, %v7433_v40   ;;  %247 = vst.msk [vmem:[#allocation0] ss:$8 sm:$0xf0] %vm245_vm10, %v7433_v40   ;;  %2187 = vrot.lane.b32.xlu0 %v2186_v31, %s5844_s13 }
  0xb4   :  { %v59_v40 = vsel %vm25_vm5, %v4727_v15, %v55_v32  ;;  %v5209_v42 = vld [vmem:[%s10272_s0 + $0x21] sm:$0x1]   ;;  %v7913_v53 = vpop.permute.xlu0 %747   ;;  %v5233_v62 = vld [vmem:[%s10272_s0 + $0x220] sm:$0x1]   ;;  %v5249_v32 = vld [vmem:[%s10272_s0 + $0x21f] sm:$0x1]  }
  0xb5   :  { %v5210_v43 = vld [vmem:[%s10272_s0 + $0x60] sm:$0x2]   ;;  %v63_v45 = vsel %vm29_vm6, %v4728_v16, %v59_v40  ;;  %v5234_v63 = vld [vmem:[%s10272_s0 + $0x25f] sm:$0x2]   ;;  %v5252_v40 = vld [vmem:[%s10272_s0 + $0x2dc] sm:$0x8]  }
  0xb6   :  { %v5211_v44 = vld [vmem:[%s10272_s0 + $0x9f] sm:$0x4]   ;;  %v2234_v49 = vsel %vm5_vm0, %v5210_v43, %v5209_v42  ;;  %66 = vst.msk [vmem:[#allocation0 + $0x40] ss:$8 sm:$0xf] %vm31_vm7, %v63_v45   ;;  %v2341_v3 = vsel %vm5_vm0, %v5234_v63, %v5233_v62  ;;  %vm605_vm15 = vcmask 933760  }
  0xb7   :  { %v5212_v50 = vld [vmem:[%s10272_s0 + $0xde] sm:$0x8]   ;;  %68 = vst.msk [vmem:[#allocation0 + $0x40] ss:$8 sm:$0xf0] %vm31_vm7, %v63_v45   ;;  %v2238_v56 = vsel %vm9_vm1, %v5211_v44, %v2234_v49  ;;  %s5849_s9 = smov 58  }
  0xb8   :  { %v5213_v51 = vld [vmem:[%s10272_s0 + $0x11d] sm:$0x10]   ;;  %138 = vst.msk [vmem:[#allocation0 + $0x40] ss:$8 sm:$0xf] %vm101_vm8, %v7371_v8   ;;  %v2242_v61 = vsel %vm13_vm2, %v5212_v50, %v2238_v56  ;;  %vm677_vm7 = vcmask 917360  }
  0xb9   :  { %v5214_v52 = vld [vmem:[%s10272_s0 + $0x15c] sm:$0x20]   ;;  %140 = vst.msk [vmem:[#allocation0 + $0x40] ss:$8 sm:$0xf0] %vm101_vm8, %v7371_v8   ;;  %v2289_v8 = vsel %vm25_vm5, %v5223_v37, %v2285_v54  ;;  %v2246_v2 = vsel %vm17_vm3, %v5213_v51, %v2242_v61  ;;  %s5850_s24 = smov 56  }
  0xba   :  { %v5215_v59 = vld [vmem:[%s10272_s0 + $0x19b] sm:$0x40]   ;;  %v5235_v0 = vld [vmem:[%s10272_s0 + $0x29e] sm:$0x4]   ;;  %v2250_v7 = vsel %vm21_vm4, %v5214_v52, %v2246_v2  ;;  %v5250_v37 = vld [vmem:[%s10272_s0 + $0x25e] sm:$0x2]  }
  0xbb   :  { %v5216_v60 = vld [vmem:[%s10272_s0 + $0x1da] sm:$0x80]   ;;  %318 = vst.msk [vmem:[#allocation0] ss:$8 sm:$0xf] %vm317_vm11, %v7503_v12   ;;  %v2254_v15 = vsel %vm25_vm5, %v5215_v59, %v2250_v7  ;;  %v2413_v42 = vsel %vm5_vm0, %v5250_v37, %v5249_v32  ;;  %vm749_vm8 = vcmask 900960  }
  0xbc   :  { %319 = vst.msk [vmem:[#allocation0] ss:$8 sm:$0xf0] %vm317_vm11, %v7503_v12   ;;  %v7944_v12 = vpop.permute.xlu1 %854   ;;  %v5236_v4 = vld [vmem:[%s10272_s0 + $0x2dd] sm:$0x8]   ;;  %v2258_v19 = vsel %vm29_vm6, %v5216_v60, %v2254_v15  ;;  %s5852_s29 = smov 52  }
  0xbd   :  { %210 = vst.msk [vmem:[#allocation0 + $0x40] ss:$8 sm:$0xf] %vm173_vm9, %v7335_v55   ;;  %212 = vst.msk [vmem:[#allocation0 + $0x40] ss:$8 sm:$0xf0] %vm173_vm9, %v7335_v55   ;;  %v2293_v55 = vsel %vm29_vm6, %v5224_v39, %v2289_v8  ;;  %2259 = vrot.lane.b32.xlu0 %v2258_v19, %s5845_s19 }
  0xbe   :  { %v5237_v5 = vld [vmem:[%s10272_s0 + $0x31c] sm:$0x10]   ;;  %2294 = vrot.lane.b32.xlu1 %v2293_v55, %s5845_s19  ;;  %282 = vst.msk [vmem:[#allocation0 + $0x40] ss:$8 sm:$0xf] %vm245_vm10, %v7396_v21   ;;  %vm821_vm9 = vcmask 884560  }
  0xbf   :  { %v5238_v6 = vld [vmem:[%s10272_s0 + $0x35b] sm:$0x20]   ;;  %284 = vst.msk [vmem:[#allocation0 + $0x40] ss:$8 sm:$0xf0] %vm245_vm10, %v7396_v21   ;;  %v2345_v21 = vsel %vm9_vm1, %v5235_v0, %v2341_v3  ;;  %vm893_vm10 = vcmask 868160  }
  0xc0   :  { %v5239_v11 = vld [vmem:[%s10272_s0 + $0x39a] sm:$0x40]   ;;  %v2349_v16 = vsel %vm13_vm2, %v5236_v4, %v2345_v21  ;;  %354 = vst.msk [vmem:[#allocation0 + $0x40] ss:$8 sm:$0xf] %vm317_vm11, %v7467_v58   ;;  %s5853_s6 = smov 50  }
  0xc1   :  { %v5240_v13 = vld [vmem:[%s10272_s0 + $0x3d9] sm:$0x80]   ;;  %356 = vst.msk [vmem:[#allocation0 + $0x40] ss:$8 sm:$0xf0] %vm317_vm11, %v7467_v58   ;;  %v7992_v58 = vpop.permute.xlu0 %819   ;;  %v2353_v23 = vsel %vm17_vm3, %v5237_v5, %v2349_v16  ;;  %vm965_vm11 = vcmask 851760  }
  0xc2   :  { %v5225_v14 = vld [vmem:[%s10272_s0 + $0x20] sm:$0x1]   ;;  %v2357_v28 = vsel %vm21_vm4, %v5238_v6, %v2353_v23  ;;  %v5251_v39 = vld [vmem:[%s10272_s0 + $0x29d] sm:$0x4]   ;;  %v5265_v7 = vld [vmem:[%s10272_s0 + $0x21e] sm:$0x1]  }
  0xc3   :  { %v5226_v17 = vld [vmem:[%s10272_s0 + $0x5f] sm:$0x2]   ;;  %v2361_v34 = vsel %vm25_vm5, %v5239_v11, %v2357_v28  ;;  %426 = vst.msk [vmem:[#allocation0 + $0x40] ss:$8 sm:$0xf] %vm389_vm12, %v7528_v26   ;;  %v2417_v49 = vsel %vm9_vm1, %v5251_v39, %v2413_v42  ;;  %s5855_s13 = smov 46  }
  0xc4   :  { %v5227_v38 = vld [vmem:[%s10272_s0 + $0x9e] sm:$0x4]   ;;  %v2306_v24 = vsel %vm5_vm0, %v5226_v17, %v5225_v14  ;;  %428 = vst.msk [vmem:[#allocation0 + $0x40] ss:$8 sm:$0xf0] %vm389_vm12, %v7528_v26   ;;  %v8029_v26 = vpop.permute.xlu1 %926   ;;  %v2421_v56 = vsel %vm13_vm2, %v5252_v40, %v2417_v49  ;;  %s5856_s18 = smov 44  }
  0xc5   :  { %v5228_v18 = vld [vmem:[%s10272_s0 + $0xdd] sm:$0x8]   ;;  %v2310_v29 = vsel %vm9_vm1, %v5227_v38, %v2306_v24  ;;  %390 = vst.msk [vmem:[#allocation0] ss:$8 sm:$0xf] %vm389_vm12, %v7565_v46   ;;  %v8066_v62 = vpop.permute.xlu0 %891   ;;  %s5858_s25 = smov 40  }
  0xc6   :  { %v5229_v20 = vld [vmem:[%s10272_s0 + $0x11c] sm:$0x10]   ;;  %v2314_v36 = vsel %vm13_vm2, %v5228_v18, %v2310_v29  ;;  %391 = vst.msk [vmem:[#allocation0] ss:$8 sm:$0xf0] %vm389_vm12, %v7565_v46   ;;  %v2365_v46 = vsel %vm29_vm6, %v5240_v13, %v2361_v34  ;;  %vm1037_vm12 = vcmask 835360  }
  0xc7   :  { %v5230_v25 = vld [vmem:[%s10272_s0 + $0x15b] sm:$0x20]   ;;  %v2318_v41 = vsel %vm17_vm3, %v5229_v20, %v2314_v36  ;;  %v5253_v43 = vld [vmem:[%s10272_s0 + $0x31b] sm:$0x10]   ;;  %2366 = vrot.lane.b32.xlu1 %v2365_v46, %s5846_s5  ;;  %v5266_v21 = vld [vmem:[%s10272_s0 + $0x25d] sm:$0x2]  }
  0xc8   :  { %v5231_v27 = vld [vmem:[%s10272_s0 + $0x19a] sm:$0x40]   ;;  %v5254_v44 = vld [vmem:[%s10272_s0 + $0x35a] sm:$0x20]   ;;  %v2322_v47 = vsel %vm21_vm4, %v5230_v25, %v2318_v41  ;;  %v2425_v0 = vsel %vm17_vm3, %v5253_v43, %v2421_v56  ;;  %v8088_v11 = vpop.permute.xlu1 %998   ;;  %v2485_v15 = vsel %vm5_vm0, %v5266_v21, %v5265_v7  ;;  %v5267_v16 = vld [vmem:[%s10272_s0 + $0x29c] sm:$0x4]  }
  0xc9   :  { %v5232_v31 = vld [vmem:[%s10272_s0 + $0x1d9] sm:$0x80]   ;;  %v5255_v45 = vld [vmem:[%s10272_s0 + $0x399] sm:$0x40]   ;;  %v2326_v54 = vsel %vm25_vm5, %v5231_v27, %v2322_v47  ;;  %v2429_v5 = vsel %vm21_vm4, %v5254_v44, %v2425_v0  ;;  %v5268_v17 = vld [vmem:[%s10272_s0 + $0x2db] sm:$0x8]   ;;  %v2489_v18 = vsel %vm9_vm1, %v5267_v16, %v2485_v15 }
  0xca   :  { %v5256_v50 = vld [vmem:[%s10272_s0 + $0x3d8] sm:$0x80]   ;;  %v2330_v63 = vsel %vm29_vm6, %v5232_v31, %v2326_v54  ;;  %v2433_v13 = vsel %vm25_vm5, %v5255_v45, %v2429_v5  ;;  %v5269_v38 = vld [vmem:[%s10272_s0 + $0x31a] sm:$0x10]   ;;  %v2493_v25 = vsel %vm13_vm2, %v5268_v17, %v2489_v18  ;;  %v8129_v31 = vpop.permute.xlu0 %963   ;;  %v5281_v47 = vld [vmem:[%s10272_s0 + $0x21d] sm:$0x1]  }
  0xcb   :  { %v5241_v51 = vld [vmem:[%s10272_s0 + $0x1f] sm:$0x1]   ;;  %2331 = vrot.lane.b32.xlu0 %v2330_v63, %s5846_s5  ;;  %498 = vst.msk [vmem:[#allocation0 + $0x40] ss:$8 sm:$0xf] %vm461_vm13, %v7599_v1   ;;  %v2497_v34 = vsel %vm17_vm3, %v5269_v38, %v2493_v25  ;;  %s5859_s30 = smov 38  }
  0xcc   :  { %v5242_v52 = vld [vmem:[%s10272_s0 + $0x5e] sm:$0x2]   ;;  %500 = vst.msk [vmem:[#allocation0 + $0x40] ss:$8 sm:$0xf0] %vm461_vm13, %v7599_v1   ;;  %v2437_v1 = vsel %vm29_vm6, %v5256_v50, %v2433_v13  ;;  %s5861_s7 = smov 34  }
  0xcd   :  { %v2378_v59 = vsel %vm5_vm0, %v5242_v52, %v5241_v51  ;;  %v5243_v60 = vld [vmem:[%s10272_s0 + $0x9d] sm:$0x4]   ;;  %462 = vst.msk [vmem:[#allocation0] ss:$8 sm:$0xf] %vm461_vm13, %v7635_v22   ;;  %2438 = vrot.lane.b32.xlu1 %v2437_v1, %s5847_s12  ;;  %s5862_s14 = smov 32  }
  0xce   :  { %v5244_v8 = vld [vmem:[%s10272_s0 + $0xdc] sm:$0x8]   ;;  %v2382_v55 = vsel %vm9_vm1, %v5243_v60, %v2378_v59  ;;  %463 = vst.msk [vmem:[#allocation0] ss:$8 sm:$0xf0] %vm461_vm13, %v7635_v22   ;;  %vm1109_vm13 = vcmask 818960  }
  0xcf   :  { %v5245_v61 = vld [vmem:[%s10272_s0 + $0x11b] sm:$0x10]   ;;  %v2386_v6 = vsel %vm13_vm2, %v5244_v8, %v2382_v55  ;;  %v5270_v19 = vld [vmem:[%s10272_s0 + $0x359] sm:$0x20]   ;;  %v5282_v49 = vld [vmem:[%s10272_s0 + $0x25c] sm:$0x2]  }
  0xd0   :  { %v5246_v2 = vld [vmem:[%s10272_s0 + $0x15a] sm:$0x20]   ;;  %v2390_v14 = vsel %vm17_vm3, %v5245_v61, %v2386_v6  ;;  %v5271_v23 = vld [vmem:[%s10272_s0 + $0x398] sm:$0x40]   ;;  %v2501_v46 = vsel %vm21_vm4, %v5270_v19, %v2497_v34  ;;  %v5283_v50 = vld [vmem:[%s10272_s0 + $0x29b] sm:$0x4]   ;;  %v2557_v52 = vsel %vm5_vm0, %v5282_v49, %v5281_v47  ;;  %v8202_v6 = vpop.permute.xlu0 %1035  }
  0xd1   :  { %v5247_v3 = vld [vmem:[%s10272_s0 + $0x199] sm:$0x40]   ;;  %v2394_v22 = vsel %vm21_vm4, %v5246_v2, %v2390_v14  ;;  %v5272_v24 = vld [vmem:[%s10272_s0 + $0x3d7] sm:$0x80]   ;;  %v2505_v44 = vsel %vm25_vm5, %v5271_v23, %v2501_v46  ;;  %v5284_v54 = vld [vmem:[%s10272_s0 + $0x2da] sm:$0x8]   ;;  %v2561_v8 = vsel %vm9_vm1, %v5283_v50, %v2557_v52 }
  0xd2   :  { %v5248_v4 = vld [vmem:[%s10272_s0 + $0x1d8] sm:$0x80]   ;;  %v2398_v20 = vsel %vm25_vm5, %v5247_v3, %v2394_v22  ;;  %v5257_v27 = vld [vmem:[%s10272_s0 + $0x1e] sm:$0x1]   ;;  %v5285_v56 = vld [vmem:[%s10272_s0 + $0x319] sm:$0x10]   ;;  %v2565_v2 = vsel %vm13_vm2, %v5284_v54, %v2561_v8 }
  0xd3   :  { %v5258_v28 = vld [vmem:[%s10272_s0 + $0x5d] sm:$0x2]   ;;  %v2402_v32 = vsel %vm29_vm6, %v5248_v4, %v2398_v20  ;;  %570 = vst.msk [vmem:[#allocation0 + $0x40] ss:$8 sm:$0xf] %vm533_vm14, %v7660_v35   ;;  %v2569_v21 = vsel %vm17_vm3, %v5285_v56, %v2565_v2  ;;  %s5864_s20 = smov 28  }
  0xd4   :  { %v5259_v29 = vld [vmem:[%s10272_s0 + $0x9c] sm:$0x4]   ;;  %v2450_v36 = vsel %vm5_vm0, %v5258_v28, %v5257_v27  ;;  %2403 = vrot.lane.b32.xlu0 %v2402_v32, %s5847_s12  ;;  %572 = vst.msk [vmem:[#allocation0 + $0x40] ss:$8 sm:$0xf0] %vm533_vm14, %v7660_v35   ;;  %v8166_v35 = vpop.permute.xlu1 %1070   ;;  %s5848_s12 = smov 60   ;;  %v8264_v46 = vpop.permute.xlu0 %1107  }
  0xd5   :  { %v5260_v37 = vld [vmem:[%s10272_s0 + $0xdb] sm:$0x8]   ;;  %v2454_v41 = vsel %vm9_vm1, %v5259_v29, %v2450_v36  ;;  %534 = vst.msk [vmem:[#allocation0] ss:$8 sm:$0xf] %vm533_vm14, %v7697_v57   ;;  %s5865_s26 = smov 26  }
  0xd6   :  { %v5261_v39 = vld [vmem:[%s10272_s0 + $0x11a] sm:$0x10]   ;;  %v2458_v45 = vsel %vm13_vm2, %v5260_v37, %v2454_v41  ;;  %535 = vst.msk [vmem:[#allocation0] ss:$8 sm:$0xf0] %vm533_vm14, %v7697_v57   ;;  %v2509_v57 = vsel %vm29_vm6, %v5272_v24, %v2505_v44  ;;  %vm1181_vm14 = vcmask 802560  }
  0xd7   :  { %v5262_v40 = vld [vmem:[%s10272_s0 + $0x159] sm:$0x20]   ;;  %v2462_v51 = vsel %vm17_vm3, %v5261_v39, %v2458_v45  ;;  %v5286_v59 = vld [vmem:[%s10272_s0 + $0x358] sm:$0x20]   ;;  %2510 = vrot.lane.b32.xlu1 %v2509_v57, %s5848_s12  ;;  %v5297_v22 = vld [vmem:[%s10272_s0 + $0x21c] sm:$0x1]  }
  0xd8   :  { %v5263_v42 = vld [vmem:[%s10272_s0 + $0x198] sm:$0x40]   ;;  %v2466_v60 = vsel %vm21_vm4, %v5262_v40, %v2462_v51  ;;  %v5287_v61 = vld [vmem:[%s10272_s0 + $0x397] sm:$0x40]   ;;  %v2573_v17 = vsel %vm21_vm4, %v5286_v59, %v2569_v21  ;;  %v8224_v18 = vpop.permute.xlu1 %1142   ;;  %v5298_v24 = vld [vmem:[%s10272_s0 + $0x25b] sm:$0x2]  }
  0xd9   :  { %v5264_v43 = vld [vmem:[%s10272_s0 + $0x1d7] sm:$0x80]   ;;  %v5288_v63 = vld [vmem:[%s10272_s0 + $0x3d6] sm:$0x80]   ;;  %v2470_v55 = vsel %vm25_vm5, %v5263_v42, %v2466_v60  ;;  %v2577_v19 = vsel %vm25_vm5, %v5287_v61, %v2573_v17  ;;  %v5299_v20 = vld [vmem:[%s10272_s0 + $0x29a] sm:$0x4]   ;;  %v2629_v27 = vsel %vm5_vm0, %v5298_v24, %v5297_v22 }
  0xda   :  { %v5273_v0 = vld [vmem:[%s10272_s0 + $0x1d] sm:$0x1]   ;;  %v2474_v7 = vsel %vm29_vm6, %v5264_v43, %v2470_v55  ;;  %v5300_v25 = vld [vmem:[%s10272_s0 + $0x2d9] sm:$0x8]   ;;  %v2633_v36 = vsel %vm9_vm1, %v5299_v20, %v2629_v27  ;;  %v5313_v60 = vld [vmem:[%s10272_s0 + $0x21b] sm:$0x1]  }
  0xdb   :  { %v5274_v3 = vld [vmem:[%s10272_s0 + $0x5c] sm:$0x2]   ;;  %2475 = vrot.lane.b32.xlu0 %v2474_v7, %s5848_s12  ;;  %642 = vst.msk [vmem:[#allocation0 + $0x40] ss:$8 sm:$0xf] %vm605_vm15, %v7724_v10   ;;  %v2637_v42 = vsel %vm13_vm2, %v5300_v25, %v2633_v36  ;;  %s5867_s2 = smov 22  }
  0xdc   :  { %v5275_v4 = vld [vmem:[%s10272_s0 + $0x9b] sm:$0x4]   ;;  %v2522_v13 = vsel %vm5_vm0, %v5274_v3, %v5273_v0  ;;  %644 = vst.msk [vmem:[#allocation0 + $0x40] ss:$8 sm:$0xf0] %vm605_vm15, %v7724_v10   ;;  %v2581_v10 = vsel %vm29_vm6, %v5288_v63, %v2577_v19  ;;  %v8298_v61 = vpop.permute.xlu1 %1214   ;;  %s5868_s8 = smov 20  }
  0xdd   :  { %v5276_v5 = vld [vmem:[%s10272_s0 + $0xda] sm:$0x8]   ;;  %v2526_v38 = vsel %vm9_vm1, %v5275_v4, %v2522_v13  ;;  %606 = vst.msk [vmem:[#allocation0] ss:$8 sm:$0xf] %vm605_vm15, %v7765_v33   ;;  %2582 = vrot.lane.b32.xlu1 %v2581_v10, %s5849_s9  ;;  %s5870_s15 = smov 16  }
  0xde   :  { %v5277_v14 = vld [vmem:[%s10272_s0 + $0x119] sm:$0x10]   ;;  %v2530_v23 = vsel %vm13_vm2, %v5276_v5, %v2526_v38  ;;  %607 = vst.msk [vmem:[#allocation0] ss:$8 sm:$0xf0] %vm605_vm15, %v7765_v33   ;;  %vm1253_vm15 = vcmask 786160  }
  0xdf   :  { %v5278_v15 = vld [vmem:[%s10272_s0 + $0x158] sm:$0x20]   ;;  %v2534_v33 = vsel %vm17_vm3, %v5277_v14, %v2530_v23  ;;  %v5301_v28 = vld [vmem:[%s10272_s0 + $0x318] sm:$0x10]   ;;  %v5314_v8 = vld [vmem:[%s10272_s0 + $0x25a] sm:$0x2]  }
  0xe0   :  { %v5279_v16 = vld [vmem:[%s10272_s0 + $0x197] sm:$0x40]   ;;  %v5302_v29 = vld [vmem:[%s10272_s0 + $0x357] sm:$0x20]   ;;  %v2538_v34 = vsel %vm21_vm4, %v5278_v15, %v2534_v33  ;;  %v2641_v50 = vsel %vm17_vm3, %v5301_v28, %v2637_v42  ;;  %v2701_v55 = vsel %vm5_vm0, %v5314_v8, %v5313_v60  ;;  %v5315_v2 = vld [vmem:[%s10272_s0 + $0x299] sm:$0x4]  }
  0xe1   :  { %v5280_v1 = vld [vmem:[%s10272_s0 + $0x1d6] sm:$0x80]   ;;  %v5303_v32 = vld [vmem:[%s10272_s0 + $0x396] sm:$0x40]   ;;  %v2542_v41 = vsel %vm25_vm5, %v5279_v16, %v2538_v34  ;;  %v2645_v56 = vsel %vm21_vm4, %v5302_v29, %v2641_v50  ;;  %v5316_v3 = vld [vmem:[%s10272_s0 + $0x2d8] sm:$0x8]   ;;  %v2705_v5 = vsel %vm9_vm1, %v5315_v2, %v2701_v55  ;;  %v8361_v29 = vpop.permute.xlu1 %1286  }
  0xe2   :  { %v5304_v37 = vld [vmem:[%s10272_s0 + $0x3d5] sm:$0x80]   ;;  %v2546_v49 = vsel %vm29_vm6, %v5280_v1, %v2542_v41  ;;  %v2649_v63 = vsel %vm25_vm5, %v5303_v32, %v2645_v56  ;;  %v5317_v4 = vld [vmem:[%s10272_s0 + $0x317] sm:$0x10]   ;;  %v2709_v15 = vsel %vm13_vm2, %v5316_v3, %v2705_v5  ;;  %v8339_v1 = vpop.permute.xlu0 %1179   ;;  %v5329_v36 = vld [vmem:[%s10272_s0 + $0x21a] sm:$0x1]  }
  0xe3   :  { %v5289_v39 = vld [vmem:[%s10272_s0 + $0x1c] sm:$0x1]   ;;  %2547 = vrot.lane.b32.xlu0 %v2546_v49, %s5849_s9  ;;  %714 = vst.msk [vmem:[#allocation0 + $0x40] ss:$8 sm:$0xf] %vm677_vm7, %v7789_v48   ;;  %v2713_v19 = vsel %vm17_vm3, %v5317_v4, %v2709_v15  ;;  %s5871_s21 = smov 14  }
  0xe4   :  { %v5290_v40 = vld [vmem:[%s10272_s0 + $0x5b] sm:$0x2]   ;;  %716 = vst.msk [vmem:[#allocation0 + $0x40] ss:$8 sm:$0xf0] %vm677_vm7, %v7789_v48   ;;  %v2653_v48 = vsel %vm29_vm6, %v5304_v37, %v2649_v63  ;;  %s5873_s27 = smov 10  }
  0xe5   :  { %v2594_v43 = vsel %vm5_vm0, %v5290_v40, %v5289_v39  ;;  %v5291_v44 = vld [vmem:[%s10272_s0 + $0x9a] sm:$0x4]   ;;  %678 = vst.msk [vmem:[#allocation0] ss:$8 sm:$0xf] %vm677_vm7, %v7828_v9   ;;  %2654 = vrot.lane.b32.xlu1 %v2653_v48, %s5850_s24  ;;  %v8434_v5 = vpop.permute.xlu1 %1358  }
  0xe6   :  { %v5292_v45 = vld [vmem:[%s10272_s0 + $0xd9] sm:$0x8]   ;;  %v2598_v57 = vsel %vm9_vm1, %v5291_v44, %v2594_v43  ;;  %679 = vst.msk [vmem:[#allocation0] ss:$8 sm:$0xf0] %vm677_vm7, %v7828_v9   ;;  %vm1325_vm7 = vcmask 769760  }
  0xe7   :  { %v5293_v47 = vld [vmem:[%s10272_s0 + $0x118] sm:$0x10]   ;;  %v2602_v59 = vsel %vm13_vm2, %v5292_v45, %v2598_v57  ;;  %v5318_v7 = vld [vmem:[%s10272_s0 + $0x356] sm:$0x20]   ;;  %v5330_v37 = vld [vmem:[%s10272_s0 + $0x259] sm:$0x2]   ;;  %v8401_v57 = vpop.permute.xlu0 %1251  }
  0xe8   :  { %v5294_v51 = vld [vmem:[%s10272_s0 + $0x157] sm:$0x20]   ;;  %v2606_v0 = vsel %vm17_vm3, %v5293_v47, %v2602_v59  ;;  %v5319_v21 = vld [vmem:[%s10272_s0 + $0x395] sm:$0x40]   ;;  %v2717_v10 = vsel %vm21_vm4, %v5318_v7, %v2713_v19  ;;  %v5331_v39 = vld [vmem:[%s10272_s0 + $0x298] sm:$0x4]   ;;  %v2773_v40 = vsel %vm5_vm0, %v5330_v37, %v5329_v36 }
  0xe9   :  { %v5295_v52 = vld [vmem:[%s10272_s0 + $0x196] sm:$0x40]   ;;  %v2610_v9 = vsel %vm21_vm4, %v5294_v51, %v2606_v0  ;;  %v5320_v13 = vld [vmem:[%s10272_s0 + $0x3d4] sm:$0x80]   ;;  %v2721_v32 = vsel %vm25_vm5, %v5319_v21, %v2717_v10  ;;  %v5332_v41 = vld [vmem:[%s10272_s0 + $0x2d7] sm:$0x8]   ;;  %v2777_v45 = vsel %vm9_vm1, %v5331_v39, %v2773_v40 }
  0xea   :  { %v5296_v54 = vld [vmem:[%s10272_s0 + $0x1d5] sm:$0x80]   ;;  %v2614_v14 = vsel %vm25_vm5, %v5295_v52, %v2610_v9  ;;  %v5305_v16 = vld [vmem:[%s10272_s0 + $0x1b] sm:$0x1]   ;;  %v5333_v42 = vld [vmem:[%s10272_s0 + $0x316] sm:$0x10]   ;;  %v2781_v52 = vsel %vm13_vm2, %v5332_v41, %v2777_v45 }
  0xeb   :  { %v5306_v17 = vld [vmem:[%s10272_s0 + $0x5a] sm:$0x2]   ;;  %v2618_v22 = vsel %vm29_vm6, %v5296_v54, %v2614_v14  ;;  %786 = vst.msk [vmem:[#allocation0 + $0x40] ss:$8 sm:$0xf] %vm749_vm8, %v7872_v30   ;;  %v2785_v8 = vsel %vm17_vm3, %v5333_v42, %v2781_v52  ;;  %v8474_v10 = vpop.permute.xlu0 %1323   ;;  %v8500_v42 = vpop.permute.xlu1 %1430  }
  0xec   :  { %v5307_v38 = vld [vmem:[%s10272_s0 + $0x99] sm:$0x4]   ;;  %v2666_v23 = vsel %vm5_vm0, %v5306_v17, %v5305_v16  ;;  %2619 = vrot.lane.b32.xlu0 %v2618_v22, %s5850_s24  ;;  %788 = vst.msk [vmem:[#allocation0 + $0x40] ss:$8 sm:$0xf0] %vm749_vm8, %v7872_v30   ;;  %v2725_v30 = vsel %vm29_vm6, %v5320_v13, %v2721_v32  ;;  %s5851_s24 = smov 54  }
  0xed   :  { %v5308_v24 = vld [vmem:[%s10272_s0 + $0xd8] sm:$0x8]   ;;  %v2670_v33 = vsel %vm9_vm1, %v5307_v38, %v2666_v23  ;;  %750 = vst.msk [vmem:[#allocation0] ss:$8 sm:$0xf] %vm749_vm8, %v7913_v53   ;;  %2726 = vrot.lane.b32.xlu1 %v2725_v30, %s5851_s24 }
  0xee   :  { %v5309_v20 = vld [vmem:[%s10272_s0 + $0x117] sm:$0x10]   ;;  %v2674_v34 = vsel %vm13_vm2, %v5308_v24, %v2670_v33  ;;  %751 = vst.msk [vmem:[#allocation0] ss:$8 sm:$0xf0] %vm749_vm8, %v7913_v53   ;;  %vm1397_vm8 = vcmask 753360  }
  0xef   :  { %v5310_v25 = vld [vmem:[%s10272_s0 + $0x156] sm:$0x20]   ;;  %v2678_v53 = vsel %vm17_vm3, %v5309_v20, %v2674_v34  ;;  %v5334_v43 = vld [vmem:[%s10272_s0 + $0x355] sm:$0x20]   ;;  %v5345_v9 = vld [vmem:[%s10272_s0 + $0x219] sm:$0x1]  }
  0xf0   :  { %v5311_v27 = vld [vmem:[%s10272_s0 + $0x195] sm:$0x40]   ;;  %v2682_v44 = vsel %vm21_vm4, %v5310_v25, %v2678_v53  ;;  %v5335_v47 = vld [vmem:[%s10272_s0 + $0x394] sm:$0x40]   ;;  %v2789_v3 = vsel %vm21_vm4, %v5334_v43, %v2785_v8  ;;  %v5346_v13 = vld [vmem:[%s10272_s0 + $0x258] sm:$0x2]  }
  0xf1   :  { %v5312_v28 = vld [vmem:[%s10272_s0 + $0x1d4] sm:$0x80]   ;;  %v5336_v49 = vld [vmem:[%s10272_s0 + $0x3d3] sm:$0x80]   ;;  %v2686_v51 = vsel %vm25_vm5, %v5311_v27, %v2682_v44  ;;  %v2793_v7 = vsel %vm25_vm5, %v5335_v47, %v2789_v3  ;;  %v5347_v14 = vld [vmem:[%s10272_s0 + $0x297] sm:$0x4]   ;;  %v2845_v16 = vsel %vm5_vm0, %v5346_v13, %v5345_v9 }
  0xf2   :  { %v5321_v50 = vld [vmem:[%s10272_s0 + $0x1a] sm:$0x1]   ;;  %v2690_v60 = vsel %vm29_vm6, %v5312_v28, %v2686_v51  ;;  %v5348_v15 = vld [vmem:[%s10272_s0 + $0x2d6] sm:$0x8]   ;;  %v2849_v23 = vsel %vm9_vm1, %v5347_v14, %v2845_v16  ;;  %v5361_v45 = vld [vmem:[%s10272_s0 + $0x218] sm:$0x1]  }
  0xf3   :  { %v5322_v54 = vld [vmem:[%s10272_s0 + $0x59] sm:$0x2]   ;;  %2691 = vrot.lane.b32.xlu0 %v2690_v60, %s5851_s24  ;;  %858 = vst.msk [vmem:[#allocation0 + $0x40] ss:$8 sm:$0xf] %vm821_vm9, %v7944_v12   ;;  %v2853_v27 = vsel %vm13_vm2, %v5348_v15, %v2849_v23 }
  0xf4   :  { %v5323_v56 = vld [vmem:[%s10272_s0 + $0x98] sm:$0x4]   ;;  %v2738_v63 = vsel %vm5_vm0, %v5322_v54, %v5321_v50  ;;  %860 = vst.msk [vmem:[#allocation0 + $0x40] ss:$8 sm:$0xf0] %vm821_vm9, %v7944_v12   ;;  %v2797_v12 = vsel %vm29_vm6, %v5336_v49, %v2793_v7 }
  0xf5   :  { %v5324_v59 = vld [vmem:[%s10272_s0 + $0xd7] sm:$0x8]   ;;  %v2742_v4 = vsel %vm9_vm1, %v5323_v56, %v2738_v63  ;;  %822 = vst.msk [vmem:[#allocation0] ss:$8 sm:$0xf] %vm821_vm9, %v7992_v58   ;;  %2798 = vrot.lane.b32.xlu1 %v2797_v12, %s5852_s29 }
  0xf6   :  { %v5325_v0 = vld [vmem:[%s10272_s0 + $0x116] sm:$0x10]   ;;  %v2746_v21 = vsel %vm13_vm2, %v5324_v59, %v2742_v4  ;;  %823 = vst.msk [vmem:[#allocation0] ss:$8 sm:$0xf0] %vm821_vm9, %v7992_v58   ;;  %vm1469_vm9 = vcmask 736960  }
  0xf7   :  { %v5326_v55 = vld [vmem:[%s10272_s0 + $0x155] sm:$0x20]   ;;  %v2750_v58 = vsel %vm17_vm3, %v5325_v0, %v2746_v21  ;;  %v5349_v17 = vld [vmem:[%s10272_s0 + $0x315] sm:$0x10]   ;;  %v5362_v47 = vld [vmem:[%s10272_s0 + $0x257] sm:$0x2]   ;;  %v8538_v0 = vpop.permute.xlu0 %1395  }
  0xf8   :  { %v5327_v2 = vld [vmem:[%s10272_s0 + $0x194] sm:$0x40]   ;;  %v5350_v38 = vld [vmem:[%s10272_s0 + $0x354] sm:$0x20]   ;;  %v2754_v19 = vsel %vm21_vm4, %v5326_v55, %v2750_v58  ;;  %v2857_v39 = vsel %vm17_vm3, %v5349_v17, %v2853_v27  ;;  %v2917_v51 = vsel %vm5_vm0, %v5362_v47, %v5361_v45  ;;  %v5363_v52 = vld [vmem:[%s10272_s0 + $0x296] sm:$0x4]  }
  0xf9   :  { %v5328_v48 = vld [vmem:[%s10272_s0 + $0x1d3] sm:$0x80]   ;;  %v5351_v22 = vld [vmem:[%s10272_s0 + $0x393] sm:$0x40]   ;;  %v2758_v33 = vsel %vm25_vm5, %v5327_v2, %v2754_v19  ;;  %v2861_v43 = vsel %vm21_vm4, %v5350_v38, %v2857_v39  ;;  %v5364_v54 = vld [vmem:[%s10272_s0 + $0x2d5] sm:$0x8]   ;;  %v2921_v59 = vsel %vm9_vm1, %v5363_v52, %v2917_v51  ;;  %v8571_v38 = vpop.permute.xlu1 %1502  }
  0xfa   :  { %v5352_v24 = vld [vmem:[%s10272_s0 + $0x3d2] sm:$0x80]   ;;  %v2762_v37 = vsel %vm29_vm6, %v5328_v48, %v2758_v33  ;;  %v2865_v49 = vsel %vm25_vm5, %v5351_v22, %v2861_v43  ;;  %v5365_v56 = vld [vmem:[%s10272_s0 + $0x314] sm:$0x10]   ;;  %v2925_v2 = vsel %vm13_vm2, %v5364_v54, %v2921_v59  ;;  %v5377_v23 = vld [vmem:[%s10272_s0 + $0x217] sm:$0x1]  }
  0xfb   :  { %v5337_v20 = vld [vmem:[%s10272_s0 + $0x19] sm:$0x1]   ;;  %2763 = vrot.lane.b32.xlu0 %v2762_v37, %s5852_s29  ;;  %930 = vst.msk [vmem:[#allocation0 + $0x40] ss:$8 sm:$0xf] %vm893_vm10, %v8029_v26   ;;  %v2929_v7 = vsel %vm17_vm3, %v5365_v56, %v2925_v2 }
  0xfc   :  { %v5338_v25 = vld [vmem:[%s10272_s0 + $0x58] sm:$0x2]   ;;  %932 = vst.msk [vmem:[#allocation0 + $0x40] ss:$8 sm:$0xf0] %vm893_vm10, %v8029_v26   ;;  %v2869_v26 = vsel %vm29_vm6, %v5352_v24, %v2865_v49 }
  0xfd   :  { %v2810_v28 = vsel %vm5_vm0, %v5338_v25, %v5337_v20  ;;  %v5339_v32 = vld [vmem:[%s10272_s0 + $0x97] sm:$0x4]   ;;  %894 = vst.msk [vmem:[#allocation0] ss:$8 sm:$0xf] %vm893_vm10, %v8066_v62   ;;  %2870 = vrot.lane.b32.xlu1 %v2869_v26, %s5853_s6  ;;  %v8636_v54 = vpop.permute.xlu1 %1574  }
  0xfe   :  { %v5340_v34 = vld [vmem:[%s10272_s0 + $0xd6] sm:$0x8]   ;;  %v2814_v30 = vsel %vm9_vm1, %v5339_v32, %v2810_v28  ;;  %895 = vst.msk [vmem:[#allocation0] ss:$8 sm:$0xf0] %vm893_vm10, %v8066_v62   ;;  %vm1541_vm10 = vcmask 720560  }
  0xff   :  { %v5341_v36 = vld [vmem:[%s10272_s0 + $0x115] sm:$0x10]   ;;  %v2818_v44 = vsel %vm13_vm2, %v5340_v34, %v2814_v30  ;;  %v5366_v60 = vld [vmem:[%s10272_s0 + $0x353] sm:$0x20]   ;;  %v5378_v24 = vld [vmem:[%s10272_s0 + $0x256] sm:$0x2]   ;;  %v8611_v30 = vpop.permute.xlu0 %1467  }
 0x100   :  { %v5342_v53 = vld [vmem:[%s10272_s0 + $0x154] sm:$0x20]   ;;  %v2822_v50 = vsel %vm17_vm3, %v5341_v36, %v2818_v44  ;;  %v5367_v8 = vld [vmem:[%s10272_s0 + $0x392] sm:$0x40]   ;;  %v2933_v12 = vsel %vm21_vm4, %v5366_v60, %v2929_v7  ;;  %v5379_v20 = vld [vmem:[%s10272_s0 + $0x295] sm:$0x4]   ;;  %v2989_v25 = vsel %vm5_vm0, %v5378_v24, %v5377_v23 }
 0x101   :  { %v5343_v40 = vld [vmem:[%s10272_s0 + $0x193] sm:$0x40]   ;;  %v2826_v62 = vsel %vm21_vm4, %v5342_v53, %v2822_v50  ;;  %v5368_v63 = vld [vmem:[%s10272_s0 + $0x3d1] sm:$0x80]   ;;  %v2937_v22 = vsel %vm25_vm5, %v5367_v8, %v2933_v12  ;;  %v5380_v33 = vld [vmem:[%s10272_s0 + $0x2d4] sm:$0x8]   ;;  %v2993_v34 = vsel %vm9_vm1, %v5379_v20, %v2989_v25 }
 0x102   :  { %v5344_v41 = vld [vmem:[%s10272_s0 + $0x1d2] sm:$0x80]   ;;  %v2830_v55 = vsel %vm25_vm5, %v5343_v40, %v2826_v62  ;;  %v5353_v3 = vld [vmem:[%s10272_s0 + $0x18] sm:$0x1]   ;;  %v5381_v27 = vld [vmem:[%s10272_s0 + $0x313] sm:$0x10]   ;;  %v2997_v40 = vsel %vm13_vm2, %v5380_v33, %v2993_v34 }
 0x103   :  { %v5354_v4 = vld [vmem:[%s10272_s0 + $0x57] sm:$0x2]   ;;  %v2834_v9 = vsel %vm29_vm6, %v5344_v41, %v2830_v55  ;;  %1002 = vst.msk [vmem:[#allocation0 + $0x40] ss:$8 sm:$0xf] %vm965_vm11, %v8088_v11   ;;  %v3001_v47 = vsel %vm17_vm3, %v5381_v27, %v2997_v40  ;;  %v8673_v7 = vpop.permute.xlu0 %1539   ;;  %v8710_v27 = vpop.permute.xlu1 %1646  }
 0x104   :  { %v5355_v48 = vld [vmem:[%s10272_s0 + $0x96] sm:$0x4]   ;;  %v2882_v21 = vsel %vm5_vm0, %v5354_v4, %v5353_v3  ;;  %2835 = vrot.lane.b32.xlu0 %v2834_v9, %s5853_s6  ;;  %1004 = vst.msk [vmem:[#allocation0 + $0x40] ss:$8 sm:$0xf0] %vm965_vm11, %v8088_v11   ;;  %v2941_v11 = vsel %vm29_vm6, %v5368_v63, %v2937_v22  ;;  %s5854_s6 = smov 48  }
 0x105   :  { %v5356_v13 = vld [vmem:[%s10272_s0 + $0xd5] sm:$0x8]   ;;  %v2886_v58 = vsel %vm9_vm1, %v5355_v48, %v2882_v21  ;;  %966 = vst.msk [vmem:[#allocation0] ss:$8 sm:$0xf] %vm965_vm11, %v8129_v31   ;;  %2942 = vrot.lane.b32.xlu1 %v2941_v11, %s5854_s6 }
 0x106   :  { %v5357_v14 = vld [vmem:[%s10272_s0 + $0x114] sm:$0x10]   ;;  %v2890_v19 = vsel %vm13_vm2, %v5356_v13, %v2886_v58  ;;  %967 = vst.msk [vmem:[#allocation0] ss:$8 sm:$0xf0] %vm965_vm11, %v8129_v31   ;;  %vm1613_vm11 = vcmask 704160  }
 0x107   :  { %v5358_v15 = vld [vmem:[%s10272_s0 + $0x153] sm:$0x20]   ;;  %v2894_v31 = vsel %vm17_vm3, %v5357_v14, %v2890_v19  ;;  %v5382_v28 = vld [vmem:[%s10272_s0 + $0x352] sm:$0x20]   ;;  %v5393_v59 = vld [vmem:[%s10272_s0 + $0x216] sm:$0x1]  }
 0x108   :  { %v5359_v16 = vld [vmem:[%s10272_s0 + $0x192] sm:$0x40]   ;;  %v2898_v32 = vsel %vm21_vm4, %v5358_v15, %v2894_v31  ;;  %v5383_v36 = vld [vmem:[%s10272_s0 + $0x391] sm:$0x40]   ;;  %v3005_v56 = vsel %vm21_vm4, %v5382_v28, %v3001_v47  ;;  %v5394_v63 = vld [vmem:[%s10272_s0 + $0x255] sm:$0x2]  }
 0x109   :  { %v5360_v17 = vld [vmem:[%s10272_s0 + $0x1d1] sm:$0x80]   ;;  %v5384_v37 = vld [vmem:[%s10272_s0 + $0x3d0] sm:$0x80]   ;;  %v2902_v53 = vsel %vm25_vm5, %v5359_v16, %v2898_v32  ;;  %v3009_v60 = vsel %vm25_vm5, %v5383_v36, %v3005_v56  ;;  %v5395_v55 = vld [vmem:[%s10272_s0 + $0x294] sm:$0x4]   ;;  %v3061_v3 = vsel %vm5_vm0, %v5394_v63, %v5393_v59 }
 0x10a   :  { %v5369_v39 = vld [vmem:[%s10272_s0 + $0x17] sm:$0x1]   ;;  %v2906_v45 = vsel %vm29_vm6, %v5360_v17, %v2902_v53  ;;  %v5396_v2 = vld [vmem:[%s10272_s0 + $0x2d3] sm:$0x8]   ;;  %v3065_v13 = vsel %vm9_vm1, %v5395_v55, %v3061_v3  ;;  %v5409_v34 = vld [vmem:[%s10272_s0 + $0x215] sm:$0x1]  }
 0x10b   :  { %v5370_v41 = vld [vmem:[%s10272_s0 + $0x56] sm:$0x2]   ;;  %2907 = vrot.lane.b32.xlu0 %v2906_v45, %s5854_s6  ;;  %1074 = vst.msk [vmem:[#allocation0 + $0x40] ss:$8 sm:$0xf] %vm1037_vm12, %v8166_v35   ;;  %v3069_v16 = vsel %vm13_vm2, %v5396_v2, %v3065_v13 }
 0x10c   :  { %v5371_v43 = vld [vmem:[%s10272_s0 + $0x95] sm:$0x4]   ;;  %v2954_v49 = vsel %vm5_vm0, %v5370_v41, %v5369_v39  ;;  %1076 = vst.msk [vmem:[#allocation0 + $0x40] ss:$8 sm:$0xf0] %vm1037_vm12, %v8166_v35   ;;  %v3013_v35 = vsel %vm29_vm6, %v5384_v37, %v3009_v60 }
 0x10d   :  { %v5372_v44 = vld [vmem:[%s10272_s0 + $0xd4] sm:$0x8]   ;;  %v2958_v26 = vsel %vm9_vm1, %v5371_v43, %v2954_v49  ;;  %1038 = vst.msk [vmem:[#allocation0] ss:$8 sm:$0xf] %vm1037_vm12, %v8202_v6   ;;  %3014 = vrot.lane.b32.xlu1 %v3013_v35, %s5855_s13  ;;  %v8773_v35 = vpop.permute.xlu1 %1718  }
 0x10e   :  { %v5373_v50 = vld [vmem:[%s10272_s0 + $0x113] sm:$0x10]   ;;  %v2962_v8 = vsel %vm13_vm2, %v5372_v44, %v2958_v26  ;;  %1039 = vst.msk [vmem:[#allocation0] ss:$8 sm:$0xf0] %vm1037_vm12, %v8202_v6   ;;  %vm1685_vm12 = vcmask 687760  }
 0x10f   :  { %v5374_v51 = vld [vmem:[%s10272_s0 + $0x152] sm:$0x20]   ;;  %v2966_v6 = vsel %vm17_vm3, %v5373_v50, %v2962_v8  ;;  %v5397_v4 = vld [vmem:[%s10272_s0 + $0x312] sm:$0x10]   ;;  %v5410_v36 = vld [vmem:[%s10272_s0 + $0x254] sm:$0x2]   ;;  %v8748_v50 = vpop.permute.xlu0 %1611  }
 0x110   :  { %v5375_v52 = vld [vmem:[%s10272_s0 + $0x191] sm:$0x40]   ;;  %v5398_v48 = vld [vmem:[%s10272_s0 + $0x351] sm:$0x20]   ;;  %v2970_v21 = vsel %vm21_vm4, %v5374_v51, %v2966_v6  ;;  %v3073_v20 = vsel %vm17_vm3, %v5397_v4, %v3069_v16  ;;  %v3133_v53 = vsel %vm5_vm0, %v5410_v36, %v5409_v34  ;;  %v5411_v40 = vld [vmem:[%s10272_s0 + $0x293] sm:$0x4]  }
 0x111   :  { %v5376_v62 = vld [vmem:[%s10272_s0 + $0x1d0] sm:$0x80]   ;;  %v5399_v9 = vld [vmem:[%s10272_s0 + $0x390] sm:$0x40]   ;;  %v2974_v58 = vsel %vm25_vm5, %v5375_v52, %v2970_v21  ;;  %v3077_v28 = vsel %vm21_vm4, %v5398_v48, %v3073_v20  ;;  %v5412_v41 = vld [vmem:[%s10272_s0 + $0x2d2] sm:$0x8]   ;;  %v3137_v44 = vsel %vm9_vm1, %v5411_v40, %v3133_v53 }
 0x112   :  { %v5400_v14 = vld [vmem:[%s10272_s0 + $0x3cf] sm:$0x80]   ;;  %v2978_v24 = vsel %vm29_vm6, %v5376_v62, %v2974_v58  ;;  %v3081_v37 = vsel %vm25_vm5, %v5399_v9, %v3077_v28  ;;  %v5413_v43 = vld [vmem:[%s10272_s0 + $0x311] sm:$0x10]   ;;  %v3141_v52 = vsel %vm13_vm2, %v5412_v41, %v3137_v44  ;;  %v5425_v13 = vld [vmem:[%s10272_s0 + $0x214] sm:$0x1]   ;;  %v8846_v41 = vpop.permute.xlu1 %1790  }
 0x113   :  { %v5385_v15 = vld [vmem:[%s10272_s0 + $0x16] sm:$0x1]   ;;  %2979 = vrot.lane.b32.xlu0 %v2978_v24, %s5855_s13  ;;  %1146 = vst.msk [vmem:[#allocation0 + $0x40] ss:$8 sm:$0xf] %vm1109_vm13, %v8224_v18   ;;  %v3145_v60 = vsel %vm17_vm3, %v5413_v43, %v3141_v52 }
 0x114   :  { %v5386_v12 = vld [vmem:[%s10272_s0 + $0x55] sm:$0x2]   ;;  %1148 = vst.msk [vmem:[#allocation0 + $0x40] ss:$8 sm:$0xf0] %vm1109_vm13, %v8224_v18   ;;  %v3085_v18 = vsel %vm29_vm6, %v5400_v14, %v3081_v37 }
 0x115   :  { %v3026_v17 = vsel %vm5_vm0, %v5386_v12, %v5385_v15  ;;  %v5387_v22 = vld [vmem:[%s10272_s0 + $0x94] sm:$0x4]   ;;  %1110 = vst.msk [vmem:[#allocation0] ss:$8 sm:$0xf] %vm1109_vm13, %v8264_v46   ;;  %3086 = vrot.lane.b32.xlu1 %v3085_v18, %s5856_s18 }
 0x116   :  { %v5388_v19 = vld [vmem:[%s10272_s0 + $0xd3] sm:$0x8]   ;;  %v3030_v11 = vsel %vm9_vm1, %v5387_v22, %v3026_v17  ;;  %1111 = vst.msk [vmem:[#allocation0] ss:$8 sm:$0xf0] %vm1109_vm13, %v8264_v46   ;;  %v8810_v22 = vpop.permute.xlu0 %1683   ;;  %vm1757_vm13 = vcmask 671360  }
 0x117   :  { %v5389_v23 = vld [vmem:[%s10272_s0 + $0x112] sm:$0x10]   ;;  %v3034_v32 = vsel %vm13_vm2, %v5388_v19, %v3030_v11  ;;  %v5414_v45 = vld [vmem:[%s10272_s0 + $0x350] sm:$0x20]   ;;  %v5426_v14 = vld [vmem:[%s10272_s0 + $0x253] sm:$0x2]  }
 0x118   :  { %v5390_v31 = vld [vmem:[%s10272_s0 + $0x151] sm:$0x20]   ;;  %v3038_v39 = vsel %vm17_vm3, %v5389_v23, %v3034_v32  ;;  %v5415_v47 = vld [vmem:[%s10272_s0 + $0x38f] sm:$0x40]   ;;  %v3149_v6 = vsel %vm21_vm4, %v5414_v45, %v3145_v60  ;;  %v5427_v15 = vld [vmem:[%s10272_s0 + $0x292] sm:$0x4]   ;;  %v3205_v12 = vsel %vm5_vm0, %v5426_v14, %v5425_v13  ;;  %v8908_v14 = vpop.permute.xlu1 %1862  }
 0x119   :  { %v5391_v25 = vld [vmem:[%s10272_s0 + $0x190] sm:$0x40]   ;;  %v3042_v46 = vsel %vm21_vm4, %v5390_v31, %v3038_v39  ;;  %v5416_v49 = vld [vmem:[%s10272_s0 + $0x3ce] sm:$0x80]   ;;  %v3153_v9 = vsel %vm25_vm5, %v5415_v47, %v3149_v6  ;;  %v5428_v58 = vld [vmem:[%s10272_s0 + $0x2d1] sm:$0x8]   ;;  %v3209_v23 = vsel %vm9_vm1, %v5427_v15, %v3205_v12 }
 0x11a   :  { %v5392_v33 = vld [vmem:[%s10272_s0 + $0x1cf] sm:$0x80]   ;;  %v3046_v51 = vsel %vm25_vm5, %v5391_v25, %v3042_v46  ;;  %v5401_v56 = vld [vmem:[%s10272_s0 + $0x15] sm:$0x1]   ;;  %v5429_v16 = vld [vmem:[%s10272_s0 + $0x310] sm:$0x10]   ;;  %v3213_v25 = vsel %vm13_vm2, %v5428_v58, %v3209_v23  ;;  %v8883_v60 = vpop.permute.xlu0 %1755  }
 0x11b   :  { %v5402_v26 = vld [vmem:[%s10272_s0 + $0x54] sm:$0x2]   ;;  %v3050_v59 = vsel %vm29_vm6, %v5392_v33, %v3046_v51  ;;  %1218 = vst.msk [vmem:[#allocation0 + $0x40] ss:$8 sm:$0xf] %vm1181_vm14, %v8298_v61   ;;  %v3217_v36 = vsel %vm17_vm3, %v5429_v16, %v3213_v25 }
 0x11c   :  { %v5403_v62 = vld [vmem:[%s10272_s0 + $0x93] sm:$0x4]   ;;  %v3098_v8 = vsel %vm5_vm0, %v5402_v26, %v5401_v56  ;;  %3051 = vrot.lane.b32.xlu0 %v3050_v59, %s5856_s18  ;;  %1220 = vst.msk [vmem:[#allocation0 + $0x40] ss:$8 sm:$0xf0] %vm1181_vm14, %v8298_v61   ;;  %v3157_v61 = vsel %vm29_vm6, %v5416_v49, %v3153_v9  ;;  %s5857_s18 = smov 42  }
 0x11d   :  { %v5404_v63 = vld [vmem:[%s10272_s0 + $0xd2] sm:$0x8]   ;;  %v3102_v3 = vsel %vm9_vm1, %v5403_v62, %v3098_v8  ;;  %1182 = vst.msk [vmem:[#allocation0] ss:$8 sm:$0xf] %vm1181_vm14, %v8339_v1   ;;  %3158 = vrot.lane.b32.xlu1 %v3157_v61, %s5857_s18 }
 0x11e   :  { %v5405_v55 = vld [vmem:[%s10272_s0 + $0x111] sm:$0x10]   ;;  %v3106_v21 = vsel %vm13_vm2, %v5404_v63, %v3102_v3  ;;  %1183 = vst.msk [vmem:[#allocation0] ss:$8 sm:$0xf0] %vm1181_vm14, %v8339_v1   ;;  %vm1829_vm14 = vcmask 654960  }
 0x11f   :  { %v5406_v2 = vld [vmem:[%s10272_s0 + $0x150] sm:$0x20]   ;;  %v3110_v1 = vsel %vm17_vm3, %v5405_v55, %v3106_v21  ;;  %v5430_v17 = vld [vmem:[%s10272_s0 + $0x34f] sm:$0x20]   ;;  %v5441_v44 = vld [vmem:[%s10272_s0 + $0x213] sm:$0x1]  }
 0x120   :  { %v5407_v4 = vld [vmem:[%s10272_s0 + $0x18f] sm:$0x40]   ;;  %v3114_v19 = vsel %vm21_vm4, %v5406_v2, %v3110_v1  ;;  %v5431_v24 = vld [vmem:[%s10272_s0 + $0x38e] sm:$0x40]   ;;  %v3221_v43 = vsel %vm21_vm4, %v5430_v17, %v3217_v36  ;;  %v5442_v49 = vld [vmem:[%s10272_s0 + $0x252] sm:$0x2]  }
 0x121   :  { %v5408_v48 = vld [vmem:[%s10272_s0 + $0x1ce] sm:$0x80]   ;;  %v5432_v20 = vld [vmem:[%s10272_s0 + $0x3cd] sm:$0x80]   ;;  %v3118_v31 = vsel %vm25_vm5, %v5407_v4, %v3114_v19  ;;  %v3225_v45 = vsel %vm25_vm5, %v5431_v24, %v3221_v43  ;;  %v5443_v51 = vld [vmem:[%s10272_s0 + $0x291] sm:$0x4]   ;;  %v3277_v56 = vsel %vm5_vm0, %v5442_v49, %v5441_v44 }
 0x122   :  { %v5417_v11 = vld [vmem:[%s10272_s0 + $0x14] sm:$0x1]   ;;  %v3122_v34 = vsel %vm29_vm6, %v5408_v48, %v3118_v31  ;;  %v5444_v52 = vld [vmem:[%s10272_s0 + $0x2d0] sm:$0x8]   ;;  %v3281_v63 = vsel %vm9_vm1, %v5443_v51, %v3277_v56  ;;  %v5457_v23 = vld [vmem:[%s10272_s0 + $0x212] sm:$0x1]  }
 0x123   :  { %v5418_v33 = vld [vmem:[%s10272_s0 + $0x53] sm:$0x2]   ;;  %3123 = vrot.lane.b32.xlu0 %v3122_v34, %s5857_s18  ;;  %1290 = vst.msk [vmem:[#allocation0 + $0x40] ss:$8 sm:$0xf] %vm1253_vm15, %v8361_v29   ;;  %v3285_v4 = vsel %vm13_vm2, %v5444_v52, %v3281_v63 }
 0x124   :  { %v5419_v28 = vld [vmem:[%s10272_s0 + $0x92] sm:$0x4]   ;;  %v3170_v37 = vsel %vm5_vm0, %v5418_v33, %v5417_v11  ;;  %1292 = vst.msk [vmem:[#allocation0 + $0x40] ss:$8 sm:$0xf0] %vm1253_vm15, %v8361_v29   ;;  %v3229_v29 = vsel %vm29_vm6, %v5432_v20, %v3225_v45 }
 0x125   :  { %v5420_v32 = vld [vmem:[%s10272_s0 + $0xd1] sm:$0x8]   ;;  %v3174_v18 = vsel %vm9_vm1, %v5419_v28, %v3170_v37  ;;  %1254 = vst.msk [vmem:[#allocation0] ss:$8 sm:$0xf] %vm1253_vm15, %v8401_v57   ;;  %3230 = vrot.lane.b32.xlu1 %v3229_v29, %s5858_s25  ;;  %v8983_v29 = vpop.permute.xlu1 %1934  }
 0x126   :  { %v5421_v39 = vld [vmem:[%s10272_s0 + $0x110] sm:$0x10]   ;;  %v3178_v47 = vsel %vm13_vm2, %v5420_v32, %v3174_v18  ;;  %1255 = vst.msk [vmem:[#allocation0] ss:$8 sm:$0xf0] %vm1253_vm15, %v8401_v57   ;;  %vm1901_vm15 = vcmask 638560  }
 0x127   :  { %v5422_v53 = vld [vmem:[%s10272_s0 + $0x14f] sm:$0x20]   ;;  %v3182_v57 = vsel %vm17_vm3, %v5421_v39, %v3178_v47  ;;  %v5445_v26 = vld [vmem:[%s10272_s0 + $0x30f] sm:$0x10]   ;;  %v5458_v24 = vld [vmem:[%s10272_s0 + $0x251] sm:$0x2]  }
 0x128   :  { %v5423_v40 = vld [vmem:[%s10272_s0 + $0x18e] sm:$0x40]   ;;  %v5446_v62 = vld [vmem:[%s10272_s0 + $0x34e] sm:$0x20]   ;;  %v3186_v8 = vsel %vm21_vm4, %v5422_v53, %v3182_v57  ;;  %v3289_v61 = vsel %vm17_vm3, %v5445_v26, %v3285_v4  ;;  %v3349_v31 = vsel %vm5_vm0, %v5458_v24, %v5457_v23  ;;  %v5459_v25 = vld [vmem:[%s10272_s0 + $0x290] sm:$0x4]  }
 0x129   :  { %v5424_v46 = vld [vmem:[%s10272_s0 + $0x1cd] sm:$0x80]   ;;  %v5447_v59 = vld [vmem:[%s10272_s0 + $0x38d] sm:$0x40]   ;;  %v3190_v3 = vsel %vm25_vm5, %v5423_v40, %v3186_v8  ;;  %v3293_v17 = vsel %vm21_vm4, %v5446_v62, %v3289_v61  ;;  %v5460_v33 = vld [vmem:[%s10272_s0 + $0x2cf] sm:$0x8]   ;;  %v3353_v34 = vsel %vm9_vm1, %v5459_v25, %v3349_v31  ;;  %v9044_v23 = vpop.permute.xlu1 %2006  }
 0x12a   :  { %v5448_v55 = vld [vmem:[%s10272_s0 + $0x3cc] sm:$0x80]   ;;  %v3194_v15 = vsel %vm29_vm6, %v5424_v46, %v3190_v3  ;;  %v3297_v20 = vsel %vm25_vm5, %v5447_v59, %v3293_v17  ;;  %v5461_v28 = vld [vmem:[%s10272_s0 + $0x30e] sm:$0x10]   ;;  %v3357_v40 = vsel %vm13_vm2, %v5460_v33, %v3353_v34  ;;  %v5473_v63 = vld [vmem:[%s10272_s0 + $0x211] sm:$0x1]  }
 0x12b   :  { %v5433_v2 = vld [vmem:[%s10272_s0 + $0x13] sm:$0x1]   ;;  %3195 = vrot.lane.b32.xlu0 %v3194_v15, %s5858_s25  ;;  %1362 = vst.msk [vmem:[#allocation0 + $0x40] ss:$8 sm:$0xf] %vm1325_vm7, %v8434_v5   ;;  %v3361_v45 = vsel %vm17_vm3, %v5461_v28, %v3357_v40 }
 0x12c   :  { %v5434_v6 = vld [vmem:[%s10272_s0 + $0x52] sm:$0x2]   ;;  %1364 = vst.msk [vmem:[#allocation0 + $0x40] ss:$8 sm:$0xf0] %vm1325_vm7, %v8434_v5   ;;  %v8946_v5 = vpop.permute.xlu0 %1827  }
 0x12d   :  { %v3242_v48 = vsel %vm5_vm0, %v5434_v6, %v5433_v2  ;;  %v5435_v9 = vld [vmem:[%s10272_s0 + $0x91] sm:$0x4]   ;;  %1326 = vst.msk [vmem:[#allocation0] ss:$8 sm:$0xf] %vm1325_vm7, %v8474_v10  }
 0x12e   :  { %v5436_v21 = vld [vmem:[%s10272_s0 + $0xd0] sm:$0x8]   ;;  %v3246_v1 = vsel %vm9_vm1, %v5435_v9, %v3242_v48  ;;  %1327 = vst.msk [vmem:[#allocation0] ss:$8 sm:$0xf0] %vm1325_vm7, %v8474_v10   ;;  %v3301_v10 = vsel %vm29_vm6, %v5448_v55, %v3297_v20  ;;  %vm1973_vm7 = vcmask 622160  }
 0x12f   :  { %v5437_v13 = vld [vmem:[%s10272_s0 + $0x10f] sm:$0x10]   ;;  %v3250_v19 = vsel %vm13_vm2, %v5436_v21, %v3246_v1  ;;  %v5462_v36 = vld [vmem:[%s10272_s0 + $0x34d] sm:$0x20]   ;;  %3302 = vrot.lane.b32.xlu1 %v3301_v10, %s5859_s30  ;;  %v5474_v55 = vld [vmem:[%s10272_s0 + $0x250] sm:$0x2]  }
 0x130   :  { %v5438_v12 = vld [vmem:[%s10272_s0 + $0x14e] sm:$0x20]   ;;  %v3254_v11 = vsel %vm17_vm3, %v5437_v13, %v3250_v19  ;;  %v5463_v37 = vld [vmem:[%s10272_s0 + $0x38c] sm:$0x40]   ;;  %v3365_v57 = vsel %vm21_vm4, %v5462_v36, %v3361_v45  ;;  %v5475_v2 = vld [vmem:[%s10272_s0 + $0x28f] sm:$0x4]   ;;  %v3421_v6 = vsel %vm5_vm0, %v5474_v55, %v5473_v63  ;;  %v9020_v9 = vpop.permute.xlu0 %1899   ;;  %v9118_v55 = vpop.permute.xlu1 %2078  }
 0x131   :  { %v5439_v58 = vld [vmem:[%s10272_s0 + $0x18d] sm:$0x40]   ;;  %v3258_v32 = vsel %vm21_vm4, %v5438_v12, %v3254_v11  ;;  %v5464_v39 = vld [vmem:[%s10272_s0 + $0x3cb] sm:$0x80]   ;;  %v3369_v59 = vsel %vm25_vm5, %v5463_v37, %v3365_v57  ;;  %v5476_v3 = vld [vmem:[%s10272_s0 + $0x2ce] sm:$0x8]   ;;  %v3425_v13 = vsel %vm9_vm1, %v5475_v2, %v3421_v6 }
 0x132   :  { %v5440_v16 = vld [vmem:[%s10272_s0 + $0x1cc] sm:$0x80]   ;;  %v3262_v53 = vsel %vm25_vm5, %v5439_v58, %v3258_v32  ;;  %v5449_v43 = vld [vmem:[%s10272_s0 + $0x12] sm:$0x1]   ;;  %v5477_v4 = vld [vmem:[%s10272_s0 + $0x30d] sm:$0x10]   ;;  %v3429_v58 = vsel %vm13_vm2, %v5476_v3, %v3425_v13 }
 0x133   :  { %v5450_v18 = vld [vmem:[%s10272_s0 + $0x51] sm:$0x2]   ;;  %v3266_v44 = vsel %vm29_vm6, %v5440_v16, %v3262_v53  ;;  %1434 = vst.msk [vmem:[#allocation0 + $0x40] ss:$8 sm:$0xf] %vm1397_vm8, %v8500_v42   ;;  %v3433_v20 = vsel %vm17_vm3, %v5477_v4, %v3429_v58 }
 0x134   :  { %v5451_v46 = vld [vmem:[%s10272_s0 + $0x90] sm:$0x4]   ;;  %v3314_v47 = vsel %vm5_vm0, %v5450_v18, %v5449_v43  ;;  %3267 = vrot.lane.b32.xlu0 %v3266_v44, %s5859_s30  ;;  %1436 = vst.msk [vmem:[#allocation0 + $0x40] ss:$8 sm:$0xf0] %vm1397_vm8, %v8500_v42   ;;  %v3373_v42 = vsel %vm29_vm6, %v5464_v39, %v3369_v59  ;;  %s5860_s30 = smov 36  }
 0x135   :  { %v5452_v49 = vld [vmem:[%s10272_s0 + $0xcf] sm:$0x8]   ;;  %v3318_v56 = vsel %vm9_vm1, %v5451_v46, %v3314_v47  ;;  %1398 = vst.msk [vmem:[#allocation0] ss:$8 sm:$0xf] %vm1397_vm8, %v8538_v0   ;;  %3374 = vrot.lane.b32.xlu1 %v3373_v42, %s5860_s30 }
 0x136   :  { %v5453_v51 = vld [vmem:[%s10272_s0 + $0x10e] sm:$0x10]   ;;  %v3322_v8 = vsel %vm13_vm2, %v5452_v49, %v3318_v56  ;;  %1399 = vst.msk [vmem:[#allocation0] ss:$8 sm:$0xf0] %vm1397_vm8, %v8538_v0   ;;  %vm2045_vm8 = vcmask 605760  }
 0x137   :  { %v5454_v52 = vld [vmem:[%s10272_s0 + $0x14d] sm:$0x20]   ;;  %v3326_v0 = vsel %vm17_vm3, %v5453_v51, %v3322_v8  ;;  %v5478_v48 = vld [vmem:[%s10272_s0 + $0x34c] sm:$0x20]   ;;  %v5489_v34 = vld [vmem:[%s10272_s0 + $0x210] sm:$0x1]  }
 0x138   :  { %v5455_v26 = vld [vmem:[%s10272_s0 + $0x18c] sm:$0x40]   ;;  %v3330_v21 = vsel %vm21_vm4, %v5454_v52, %v3326_v0  ;;  %v5479_v15 = vld [vmem:[%s10272_s0 + $0x38b] sm:$0x40]   ;;  %v3437_v28 = vsel %vm21_vm4, %v5478_v48, %v3433_v20  ;;  %v5490_v39 = vld [vmem:[%s10272_s0 + $0x24f] sm:$0x2]  }
 0x139   :  { %v5456_v62 = vld [vmem:[%s10272_s0 + $0x1cb] sm:$0x80]   ;;  %v5480_v61 = vld [vmem:[%s10272_s0 + $0x3ca] sm:$0x80]   ;;  %v3334_v12 = vsel %vm25_vm5, %v5455_v26, %v3330_v21  ;;  %v3441_v36 = vsel %vm25_vm5, %v5479_v15, %v3437_v28  ;;  %v5491_v53 = vld [vmem:[%s10272_s0 + $0x28e] sm:$0x4]   ;;  %v3493_v18 = vsel %vm5_vm0, %v5490_v39, %v5489_v34  ;;  %v9181_v34 = vpop.permute.xlu1 %2150  }
 0x13a   :  { %v5465_v1 = vld [vmem:[%s10272_s0 + $0x11] sm:$0x1]   ;;  %v3338_v24 = vsel %vm29_vm6, %v5456_v62, %v3334_v12  ;;  %v5492_v40 = vld [vmem:[%s10272_s0 + $0x2cd] sm:$0x8]   ;;  %v3497_v49 = vsel %vm9_vm1, %v5491_v53, %v3493_v18  ;;  %v5505_v13 = vld [vmem:[%s10272_s0 + $0x20f] sm:$0x1]  }
 0x13b   :  { %v5466_v16 = vld [vmem:[%s10272_s0 + $0x50] sm:$0x2]   ;;  %3339 = vrot.lane.b32.xlu0 %v3338_v24, %s5860_s30  ;;  %1506 = vst.msk [vmem:[#allocation0 + $0x40] ss:$8 sm:$0xf] %vm1469_vm9, %v8571_v38   ;;  %v3501_v26 = vsel %vm13_vm2, %v5492_v40, %v3497_v49  ;;  %s5874_s30 = smov 8  }
 0x13c   :  { %v5467_v17 = vld [vmem:[%s10272_s0 + $0x8f] sm:$0x4]   ;;  %v3386_v11 = vsel %vm5_vm0, %v5466_v16, %v5465_v1  ;;  %1508 = vst.msk [vmem:[#allocation0 + $0x40] ss:$8 sm:$0xf0] %vm1469_vm9, %v8571_v38   ;;  %v9081_v38 = vpop.permute.xlu0 %1971  }
 0x13d   :  { %v5468_v19 = vld [vmem:[%s10272_s0 + $0xce] sm:$0x8]   ;;  %v3390_v10 = vsel %vm9_vm1, %v5467_v17, %v3386_v11  ;;  %1470 = vst.msk [vmem:[#allocation0] ss:$8 sm:$0xf] %vm1469_vm9, %v8611_v30  }
 0x13e   :  { %v5469_v31 = vld [vmem:[%s10272_s0 + $0x10d] sm:$0x10]   ;;  %v3394_v37 = vsel %vm13_vm2, %v5468_v19, %v3390_v10  ;;  %1471 = vst.msk [vmem:[#allocation0] ss:$8 sm:$0xf0] %vm1469_vm9, %v8611_v30   ;;  %v3445_v30 = vsel %vm29_vm6, %v5480_v61, %v3441_v36  ;;  %vm2117_vm9 = vcmask 589360  }
 0x13f   :  { %v5470_v25 = vld [vmem:[%s10272_s0 + $0x14c] sm:$0x20]   ;;  %v3398_v43 = vsel %vm17_vm3, %v5469_v31, %v3394_v37  ;;  %v5493_v46 = vld [vmem:[%s10272_s0 + $0x30c] sm:$0x10]   ;;  %3446 = vrot.lane.b32.xlu1 %v3445_v30, %s5861_s7  ;;  %v5506_v15 = vld [vmem:[%s10272_s0 + $0x24e] sm:$0x2]  }
 0x140   :  { %v5471_v33 = vld [vmem:[%s10272_s0 + $0x18b] sm:$0x40]   ;;  %v5494_v44 = vld [vmem:[%s10272_s0 + $0x34b] sm:$0x20]   ;;  %v3402_v47 = vsel %vm21_vm4, %v5470_v25, %v3398_v43  ;;  %v3505_v42 = vsel %vm17_vm3, %v5493_v46, %v3501_v26  ;;  %v3565_v12 = vsel %vm5_vm0, %v5506_v15, %v5505_v13  ;;  %v5507_v58 = vld [vmem:[%s10272_s0 + $0x28d] sm:$0x4]  }
 0x141   :  { %v5472_v32 = vld [vmem:[%s10272_s0 + $0x1ca] sm:$0x80]   ;;  %v5495_v45 = vld [vmem:[%s10272_s0 + $0x38a] sm:$0x40]   ;;  %v3406_v56 = vsel %vm25_vm5, %v5471_v33, %v3402_v47  ;;  %v3509_v48 = vsel %vm21_vm4, %v5494_v44, %v3505_v42  ;;  %v5508_v16 = vld [vmem:[%s10272_s0 + $0x2cc] sm:$0x8]   ;;  %v3569_v24 = vsel %vm9_vm1, %v5507_v58, %v3565_v12 }
 0x142   :  { %v5496_v51 = vld [vmem:[%s10272_s0 + $0x3c9] sm:$0x80]   ;;  %v3410_v2 = vsel %vm29_vm6, %v5472_v32, %v3406_v56  ;;  %v3513_v61 = vsel %vm25_vm5, %v5495_v45, %v3509_v48  ;;  %v5509_v17 = vld [vmem:[%s10272_s0 + $0x30b] sm:$0x10]   ;;  %v3573_v33 = vsel %vm13_vm2, %v5508_v16, %v3569_v24  ;;  %v5521_v49 = vld [vmem:[%s10272_s0 + $0x20e] sm:$0x1]  }
 0x143   :  { %v5481_v52 = vld [vmem:[%s10272_s0 + $0x10] sm:$0x1]   ;;  %3411 = vrot.lane.b32.xlu0 %v3410_v2, %s5861_s7  ;;  %1578 = vst.msk [vmem:[#allocation0 + $0x40] ss:$8 sm:$0xf] %vm1541_vm10, %v8636_v54   ;;  %v3577_v37 = vsel %vm17_vm3, %v5509_v17, %v3573_v33  ;;  %s5876_s7 = smov 4  }
 0x144   :  { %v5482_v57 = vld [vmem:[%s10272_s0 + $0x4f] sm:$0x2]   ;;  %1580 = vst.msk [vmem:[#allocation0 + $0x40] ss:$8 sm:$0xf0] %vm1541_vm10, %v8636_v54   ;;  %v9156_v54 = vpop.permute.xlu0 %2043  }
 0x145   :  { %v3458_v62 = vsel %vm5_vm0, %v5482_v57, %v5481_v52  ;;  %v5483_v59 = vld [vmem:[%s10272_s0 + $0x8e] sm:$0x4]   ;;  %1542 = vst.msk [vmem:[#allocation0] ss:$8 sm:$0xf] %vm1541_vm10, %v8673_v7  }
 0x146   :  { %v5484_v8 = vld [vmem:[%s10272_s0 + $0xcd] sm:$0x8]   ;;  %v3462_v0 = vsel %vm9_vm1, %v5483_v59, %v3458_v62  ;;  %1543 = vst.msk [vmem:[#allocation0] ss:$8 sm:$0xf0] %vm1541_vm10, %v8673_v7   ;;  %v3517_v7 = vsel %vm29_vm6, %v5496_v51, %v3513_v61  ;;  %vm2189_vm10 = vcmask 572960  }
 0x147   :  { %v5485_v63 = vld [vmem:[%s10272_s0 + $0x10c] sm:$0x10]   ;;  %v3466_v21 = vsel %vm13_vm2, %v5484_v8, %v3462_v0  ;;  %v5510_v20 = vld [vmem:[%s10272_s0 + $0x34a] sm:$0x20]   ;;  %3518 = vrot.lane.b32.xlu1 %v3517_v7, %s5862_s14  ;;  %v5522_v51 = vld [vmem:[%s10272_s0 + $0x24d] sm:$0x2]  }
 0x148   :  { %v5486_v6 = vld [vmem:[%s10272_s0 + $0x14b] sm:$0x20]   ;;  %v3470_v1 = vsel %vm17_vm3, %v5485_v63, %v3466_v21  ;;  %v5511_v11 = vld [vmem:[%s10272_s0 + $0x389] sm:$0x40]   ;;  %v3581_v43 = vsel %vm21_vm4, %v5510_v20, %v3577_v37  ;;  %v5523_v52 = vld [vmem:[%s10272_s0 + $0x28c] sm:$0x4]   ;;  %v3637_v56 = vsel %vm5_vm0, %v5522_v51, %v5521_v49 }
 0x149   :  { %v5487_v3 = vld [vmem:[%s10272_s0 + $0x18a] sm:$0x40]   ;;  %v3474_v19 = vsel %vm21_vm4, %v5486_v6, %v3470_v1  ;;  %v5512_v31 = vld [vmem:[%s10272_s0 + $0x3c8] sm:$0x80]   ;;  %v3585_v45 = vsel %vm25_vm5, %v5511_v11, %v3581_v43  ;;  %v5524_v26 = vld [vmem:[%s10272_s0 + $0x2cb] sm:$0x8]   ;;  %v3641_v63 = vsel %vm9_vm1, %v5523_v52, %v3637_v56 }
 0x14a   :  { %v5488_v4 = vld [vmem:[%s10272_s0 + $0x1c9] sm:$0x80]   ;;  %v3478_v25 = vsel %vm25_vm5, %v5487_v3, %v3474_v19  ;;  %v5497_v28 = vld [vmem:[%s10272_s0 + $0xf] sm:$0x1]   ;;  %v5525_v62 = vld [vmem:[%s10272_s0 + $0x30a] sm:$0x10]   ;;  %v3645_v3 = vsel %vm13_vm2, %v5524_v26, %v3641_v63 }
 0x14b   :  { %v5498_v10 = vld [vmem:[%s10272_s0 + $0x4e] sm:$0x2]   ;;  %v3482_v36 = vsel %vm29_vm6, %v5488_v4, %v3478_v25  ;;  %1650 = vst.msk [vmem:[#allocation0 + $0x40] ss:$8 sm:$0xf] %vm1613_vm11, %v8710_v27   ;;  %v3649_v15 = vsel %vm17_vm3, %v5525_v62, %v3645_v3 }
 0x14c   :  { %v5499_v32 = vld [vmem:[%s10272_s0 + $0x8d] sm:$0x4]   ;;  %v3530_v39 = vsel %vm5_vm0, %v5498_v10, %v5497_v28  ;;  %3483 = vrot.lane.b32.xlu0 %v3482_v36, %s5862_s14  ;;  %1652 = vst.msk [vmem:[#allocation0 + $0x40] ss:$8 sm:$0xf0] %vm1613_vm11, %v8710_v27   ;;  %v9218_v27 = vpop.permute.xlu0 %2115   ;;  %s5863_s14 = smov 30  }
 0x14d   :  { %v5500_v53 = vld [vmem:[%s10272_s0 + $0xcc] sm:$0x8]   ;;  %v3534_v18 = vsel %vm9_vm1, %v5499_v32, %v3530_v39  ;;  %1614 = vst.msk [vmem:[#allocation0] ss:$8 sm:$0xf] %vm1613_vm11, %v8748_v50  }
 0x14e   :  { %v5501_v40 = vld [vmem:[%s10272_s0 + $0x10b] sm:$0x10]   ;;  %v3538_v47 = vsel %vm13_vm2, %v5500_v53, %v3534_v18  ;;  %1615 = vst.msk [vmem:[#allocation0] ss:$8 sm:$0xf0] %vm1613_vm11, %v8748_v50   ;;  %v3589_v50 = vsel %vm29_vm6, %v5512_v31, %v3585_v45  ;;  %vm2261_vm11 = vcmask 556560  }
 0x14f   :  { %v5502_v30 = vld [vmem:[%s10272_s0 + $0x14a] sm:$0x20]   ;;  %v3542_v57 = vsel %vm17_vm3, %v5501_v40, %v3538_v47  ;;  %v5526_v59 = vld [vmem:[%s10272_s0 + $0x349] sm:$0x20]   ;;  %3590 = vrot.lane.b32.xlu1 %v3589_v50, %s5863_s14  ;;  %v5537_v19 = vld [vmem:[%s10272_s0 + $0x20d] sm:$0x1]  }
 0x150   :  { %v5503_v46 = vld [vmem:[%s10272_s0 + $0x189] sm:$0x40]   ;;  %v3546_v8 = vsel %vm21_vm4, %v5502_v30, %v3542_v57  ;;  %v5527_v2 = vld [vmem:[%s10272_s0 + $0x388] sm:$0x40]   ;;  %v3653_v16 = vsel %vm21_vm4, %v5526_v59, %v3649_v15  ;;  %v5538_v11 = vld [vmem:[%s10272_s0 + $0x24c] sm:$0x2]   ;;  %v9326_v49 = vpop.permute.xlu0 %2187  }
 0x151   :  { %v5504_v44 = vld [vmem:[%s10272_s0 + $0x1c8] sm:$0x80]   ;;  %v5528_v42 = vld [vmem:[%s10272_s0 + $0x3c7] sm:$0x80]   ;;  %v3550_v6 = vsel %vm25_vm5, %v5503_v46, %v3546_v8  ;;  %v3657_v24 = vsel %vm25_vm5, %v5527_v2, %v3653_v16  ;;  %v5539_v31 = vld [vmem:[%s10272_s0 + $0x28b] sm:$0x4]   ;;  %v3709_v28 = vsel %vm5_vm0, %v5538_v11, %v5537_v19 }
 0x152   :  { %v5513_v0 = vld [vmem:[%s10272_s0 + $0xe] sm:$0x1]   ;;  %v3554_v13 = vsel %vm29_vm6, %v5504_v44, %v3550_v6  ;;  %v5540_v25 = vld [vmem:[%s10272_s0 + $0x2ca] sm:$0x8]   ;;  %v3713_v39 = vsel %vm9_vm1, %v5539_v31, %v3709_v28  ;;  %v5553_v8 = vld [vmem:[%s10272_s0 + $0x20c] sm:$0x1]  }
 0x153   :  { %v5514_v4 = vld [vmem:[%s10272_s0 + $0x4d] sm:$0x2]   ;;  %3555 = vrot.lane.b32.xlu0 %v3554_v13, %s5863_s14  ;;  %1722 = vst.msk [vmem:[#allocation0 + $0x40] ss:$8 sm:$0xf] %vm1685_vm12, %v8773_v35   ;;  %v3717_v18 = vsel %vm13_vm2, %v5540_v25, %v3713_v39 }
 0x154   :  { %v5515_v48 = vld [vmem:[%s10272_s0 + $0x8c] sm:$0x4]   ;;  %v3602_v61 = vsel %vm5_vm0, %v5514_v4, %v5513_v0  ;;  %1724 = vst.msk [vmem:[#allocation0 + $0x40] ss:$8 sm:$0xf0] %vm1685_vm12, %v8773_v35   ;;  %v9289_v35 = vpop.permute.xlu1 %2222  }
 0x155   :  { %v5516_v21 = vld [vmem:[%s10272_s0 + $0xcb] sm:$0x8]   ;;  %v3606_v17 = vsel %vm9_vm1, %v5515_v48, %v3602_v61  ;;  %1686 = vst.msk [vmem:[#allocation0] ss:$8 sm:$0xf] %vm1685_vm12, %v8810_v22  }
 0x156   :  { %v5517_v1 = vld [vmem:[%s10272_s0 + $0x10a] sm:$0x10]   ;;  %v3610_v20 = vsel %vm13_vm2, %v5516_v21, %v3606_v17  ;;  %1687 = vst.msk [vmem:[#allocation0] ss:$8 sm:$0xf0] %vm1685_vm12, %v8810_v22   ;;  %v3661_v22 = vsel %vm29_vm6, %v5528_v42, %v3657_v24  ;;  %vm2333_vm12 = vcmask 540160  }
 0x157   :  { %v5518_v12 = vld [vmem:[%s10272_s0 + $0x149] sm:$0x20]   ;;  %v3614_v33 = vsel %vm17_vm3, %v5517_v1, %v3610_v20  ;;  %v5541_v10 = vld [vmem:[%s10272_s0 + $0x309] sm:$0x10]   ;;  %3662 = vrot.lane.b32.xlu1 %v3661_v22, %s5864_s20  ;;  %v5554_v63 = vld [vmem:[%s10272_s0 + $0x24b] sm:$0x2]  }
 0x158   :  { %v5519_v58 = vld [vmem:[%s10272_s0 + $0x188] sm:$0x40]   ;;  %v5542_v32 = vld [vmem:[%s10272_s0 + $0x348] sm:$0x20]   ;;  %v3618_v37 = vsel %vm21_vm4, %v5518_v12, %v3614_v33  ;;  %v3721_v52 = vsel %vm17_vm3, %v5541_v10, %v3717_v18  ;;  %v3781_v0 = vsel %vm5_vm0, %v5554_v63, %v5553_v8  ;;  %v5555_v6 = vld [vmem:[%s10272_s0 + $0x28a] sm:$0x4]   ;;  %v9387_v17 = vpop.permute.xlu1 %2294  }
 0x159   :  { %v5520_v7 = vld [vmem:[%s10272_s0 + $0x1c7] sm:$0x80]   ;;  %v5543_v36 = vld [vmem:[%s10272_s0 + $0x387] sm:$0x40]   ;;  %v3622_v43 = vsel %vm25_vm5, %v5519_v58, %v3618_v37  ;;  %v3725_v62 = vsel %vm21_vm4, %v5542_v32, %v3721_v52  ;;  %v5556_v3 = vld [vmem:[%s10272_s0 + $0x2c9] sm:$0x8]   ;;  %v3785_v48 = vsel %vm9_vm1, %v5555_v6, %v3781_v0 }
 0x15a   :  { %v5544_v53 = vld [vmem:[%s10272_s0 + $0x3c6] sm:$0x80]   ;;  %v3626_v51 = vsel %vm29_vm6, %v5520_v7, %v3622_v43  ;;  %v3729_v2 = vsel %vm25_vm5, %v5543_v36, %v3725_v62  ;;  %v5557_v4 = vld [vmem:[%s10272_s0 + $0x308] sm:$0x10]   ;;  %v3789_v1 = vsel %vm13_vm2, %v5556_v3, %v3785_v48  ;;  %v5569_v36 = vld [vmem:[%s10272_s0 + $0x20b] sm:$0x1]  }
 0x15b   :  { %v5529_v40 = vld [vmem:[%s10272_s0 + $0xd] sm:$0x1]   ;;  %3627 = vrot.lane.b32.xlu0 %v3626_v51, %s5864_s20  ;;  %1794 = vst.msk [vmem:[#allocation0 + $0x40] ss:$8 sm:$0xf] %vm1757_vm13, %v8846_v41   ;;  %v3793_v19 = vsel %vm17_vm3, %v5557_v4, %v3789_v1 }
 0x15c   :  { %v5530_v30 = vld [vmem:[%s10272_s0 + $0x4c] sm:$0x2]   ;;  %1796 = vst.msk [vmem:[#allocation0 + $0x40] ss:$8 sm:$0xf0] %vm1757_vm13, %v8846_v41   ;;  %v3733_v41 = vsel %vm29_vm6, %v5544_v53, %v3729_v2  ;;  %v9460_v62 = vpop.permute.xlu1 %2366  }
 0x15d   :  { %v3674_v46 = vsel %vm5_vm0, %v5530_v30, %v5529_v40  ;;  %v5531_v44 = vld [vmem:[%s10272_s0 + $0x8b] sm:$0x4]   ;;  %1758 = vst.msk [vmem:[#allocation0] ss:$8 sm:$0xf] %vm1757_vm13, %v8883_v60   ;;  %3734 = vrot.lane.b32.xlu1 %v3733_v41, %s5865_s26 }
 0x15e   :  { %v5532_v45 = vld [vmem:[%s10272_s0 + $0xca] sm:$0x8]   ;;  %v3678_v50 = vsel %vm9_vm1, %v5531_v44, %v3674_v46  ;;  %1759 = vst.msk [vmem:[#allocation0] ss:$8 sm:$0xf0] %vm1757_vm13, %v8883_v60   ;;  %vm2405_vm13 = vcmask 523760  }
 0x15f   :  { %v5533_v47 = vld [vmem:[%s10272_s0 + $0x109] sm:$0x10]   ;;  %v3682_v59 = vsel %vm13_vm2, %v5532_v45, %v3678_v50  ;;  %v5558_v21 = vld [vmem:[%s10272_s0 + $0x347] sm:$0x20]   ;;  %v5570_v37 = vld [vmem:[%s10272_s0 + $0x24a] sm:$0x2]  }
 0x160   :  { %v5534_v57 = vld [vmem:[%s10272_s0 + $0x148] sm:$0x20]   ;;  %v3686_v42 = vsel %vm17_vm3, %v5533_v47, %v3682_v59  ;;  %v5559_v13 = vld [vmem:[%s10272_s0 + $0x386] sm:$0x40]   ;;  %v3797_v25 = vsel %vm21_vm4, %v5558_v21, %v3793_v19  ;;  %v5571_v39 = vld [vmem:[%s10272_s0 + $0x289] sm:$0x4]   ;;  %v3853_v40 = vsel %vm5_vm0, %v5570_v37, %v5569_v36 }
 0x161   :  { %v5535_v56 = vld [vmem:[%s10272_s0 + $0x187] sm:$0x40]   ;;  %v3690_v60 = vsel %vm21_vm4, %v5534_v57, %v3686_v42  ;;  %v5560_v15 = vld [vmem:[%s10272_s0 + $0x3c5] sm:$0x80]   ;;  %v3801_v10 = vsel %vm25_vm5, %v5559_v13, %v3797_v25  ;;  %v5572_v30 = vld [vmem:[%s10272_s0 + $0x2c8] sm:$0x8]   ;;  %v3857_v44 = vsel %vm9_vm1, %v5571_v39, %v3853_v40 }
 0x162   :  { %v5536_v26 = vld [vmem:[%s10272_s0 + $0x1c6] sm:$0x80]   ;;  %v3694_v61 = vsel %vm25_vm5, %v5535_v56, %v3690_v60  ;;  %v5545_v12 = vld [vmem:[%s10272_s0 + $0xc] sm:$0x1]   ;;  %v5573_v43 = vld [vmem:[%s10272_s0 + $0x307] sm:$0x10]   ;;  %v3861_v50 = vsel %vm13_vm2, %v5572_v30, %v3857_v44 }
 0x163   :  { %v5546_v58 = vld [vmem:[%s10272_s0 + $0x4b] sm:$0x2]   ;;  %v3698_v7 = vsel %vm29_vm6, %v5536_v26, %v3694_v61  ;;  %1866 = vst.msk [vmem:[#allocation0 + $0x40] ss:$8 sm:$0xf] %vm1829_vm14, %v8908_v14   ;;  %v3865_v8 = vsel %vm17_vm3, %v5573_v43, %v3861_v50 }
 0x164   :  { %v5547_v16 = vld [vmem:[%s10272_s0 + $0x8a] sm:$0x4]   ;;  %v3746_v24 = vsel %vm5_vm0, %v5546_v58, %v5545_v12  ;;  %3699 = vrot.lane.b32.xlu0 %v3698_v7, %s5865_s26  ;;  %1868 = vst.msk [vmem:[#allocation0 + $0x40] ss:$8 sm:$0xf0] %vm1829_vm14, %v8908_v14   ;;  %v9424_v14 = vpop.permute.xlu0 %2259   ;;  %s5866_s26 = smov 24  }
 0x165   :  { %v5548_v20 = vld [vmem:[%s10272_s0 + $0xc9] sm:$0x8]   ;;  %v3750_v22 = vsel %vm9_vm1, %v5547_v16, %v3746_v24  ;;  %1830 = vst.msk [vmem:[#allocation0] ss:$8 sm:$0xf] %vm1829_vm14, %v8946_v5  }
 0x166   :  { %v5549_v11 = vld [vmem:[%s10272_s0 + $0x108] sm:$0x10]   ;;  %v3754_v32 = vsel %vm13_vm2, %v5548_v20, %v3750_v22  ;;  %1831 = vst.msk [vmem:[#allocation0] ss:$8 sm:$0xf0] %vm1829_vm14, %v8946_v5   ;;  %v3805_v5 = vsel %vm29_vm6, %v5560_v15, %v3801_v10  ;;  %vm2477_vm14 = vcmask 507360  }
 0x167   :  { %v5550_v31 = vld [vmem:[%s10272_s0 + $0x147] sm:$0x20]   ;;  %v3758_v53 = vsel %vm17_vm3, %v5549_v11, %v3754_v32  ;;  %v5574_v18 = vld [vmem:[%s10272_s0 + $0x346] sm:$0x20]   ;;  %3806 = vrot.lane.b32.xlu1 %v3805_v5, %s5866_s26  ;;  %v5585_v41 = vld [vmem:[%s10272_s0 + $0x20a] sm:$0x1]   ;;  %v9534_v32 = vpop.permute.xlu1 %2438  }
 0x168   :  { %v5551_v33 = vld [vmem:[%s10272_s0 + $0x186] sm:$0x40]   ;;  %v3762_v46 = vsel %vm21_vm4, %v5550_v31, %v3758_v53  ;;  %v5575_v45 = vld [vmem:[%s10272_s0 + $0x385] sm:$0x40]   ;;  %v3869_v6 = vsel %vm21_vm4, %v5574_v18, %v3865_v8  ;;  %v5586_v21 = vld [vmem:[%s10272_s0 + $0x249] sm:$0x2]  }
 0x169   :  { %v5552_v28 = vld [vmem:[%s10272_s0 + $0x1c5] sm:$0x80]   ;;  %v5576_v47 = vld [vmem:[%s10272_s0 + $0x3c4] sm:$0x80]   ;;  %v3766_v52 = vsel %vm25_vm5, %v5551_v33, %v3762_v46  ;;  %v3873_v60 = vsel %vm25_vm5, %v5575_v45, %v3869_v6  ;;  %v5587_v13 = vld [vmem:[%s10272_s0 + $0x288] sm:$0x4]   ;;  %v3925_v1 = vsel %vm5_vm0, %v5586_v21, %v5585_v41 }
 0x16a   :  { %v5561_v51 = vld [vmem:[%s10272_s0 + $0xb] sm:$0x1]   ;;  %v3770_v59 = vsel %vm29_vm6, %v5552_v28, %v3766_v52  ;;  %v5588_v15 = vld [vmem:[%s10272_s0 + $0x2c7] sm:$0x8]   ;;  %v3929_v19 = vsel %vm9_vm1, %v5587_v13, %v3925_v1  ;;  %v5601_v18 = vld [vmem:[%s10272_s0 + $0x209] sm:$0x1]  }
 0x16b   :  { %v5562_v57 = vld [vmem:[%s10272_s0 + $0x4a] sm:$0x2]   ;;  %3771 = vrot.lane.b32.xlu0 %v3770_v59, %s5866_s26  ;;  %1938 = vst.msk [vmem:[#allocation0 + $0x40] ss:$8 sm:$0xf] %vm1901_vm15, %v8983_v29   ;;  %v3933_v25 = vsel %vm13_vm2, %v5588_v15, %v3929_v19 }
 0x16c   :  { %v5563_v56 = vld [vmem:[%s10272_s0 + $0x89] sm:$0x4]   ;;  %v3818_v63 = vsel %vm5_vm0, %v5562_v57, %v5561_v51  ;;  %1940 = vst.msk [vmem:[#allocation0 + $0x40] ss:$8 sm:$0xf0] %vm1901_vm15, %v8983_v29   ;;  %v9497_v29 = vpop.permute.xlu0 %2331  }
 0x16d   :  { %v5564_v26 = vld [vmem:[%s10272_s0 + $0xc8] sm:$0x8]   ;;  %v3822_v3 = vsel %vm9_vm1, %v5563_v56, %v3818_v63  ;;  %1902 = vst.msk [vmem:[#allocation0] ss:$8 sm:$0xf] %vm1901_vm15, %v9020_v9  }
 0x16e   :  { %v5565_v2 = vld [vmem:[%s10272_s0 + $0x107] sm:$0x10]   ;;  %v3826_v48 = vsel %vm13_vm2, %v5564_v26, %v3822_v3  ;;  %1903 = vst.msk [vmem:[#allocation0] ss:$8 sm:$0xf0] %vm1901_vm15, %v9020_v9   ;;  %v3877_v9 = vsel %vm29_vm6, %v5576_v47, %v3873_v60  ;;  %v9597_v3 = vpop.permute.xlu1 %2510   ;;  %vm2549_vm15 = vcmask 490960  }
 0x16f   :  { %v5566_v42 = vld [vmem:[%s10272_s0 + $0x146] sm:$0x20]   ;;  %v3830_v61 = vsel %vm17_vm3, %v5565_v2, %v3826_v48  ;;  %v5589_v12 = vld [vmem:[%s10272_s0 + $0x306] sm:$0x10]   ;;  %3878 = vrot.lane.b32.xlu1 %v3877_v9, %s5867_s2  ;;  %v5602_v46 = vld [vmem:[%s10272_s0 + $0x248] sm:$0x2]  }
 0x170   :  { %v5567_v0 = vld [vmem:[%s10272_s0 + $0x185] sm:$0x40]   ;;  %v5590_v58 = vld [vmem:[%s10272_s0 + $0x345] sm:$0x20]   ;;  %v3834_v7 = vsel %vm21_vm4, %v5566_v42, %v3830_v61  ;;  %v3937_v37 = vsel %vm17_vm3, %v5589_v12, %v3933_v25  ;;  %v9556_v44 = vpop.permute.xlu0 %2403   ;;  %v3997_v51 = vsel %vm5_vm0, %v5602_v46, %v5601_v18  ;;  %v5603_v52 = vld [vmem:[%s10272_s0 + $0x287] sm:$0x4]  }
 0x171   :  { %v5568_v4 = vld [vmem:[%s10272_s0 + $0x1c4] sm:$0x80]   ;;  %v5591_v16 = vld [vmem:[%s10272_s0 + $0x384] sm:$0x40]   ;;  %v3838_v31 = vsel %vm25_vm5, %v5567_v0, %v3834_v7  ;;  %v3941_v30 = vsel %vm21_vm4, %v5590_v58, %v3937_v37  ;;  %v5604_v50 = vld [vmem:[%s10272_s0 + $0x2c6] sm:$0x8]   ;;  %v4001_v56 = vsel %vm9_vm1, %v5603_v52, %v3997_v51 }
 0x172   :  { %v5592_v24 = vld [vmem:[%s10272_s0 + $0x3c3] sm:$0x80]   ;;  %v3842_v36 = vsel %vm29_vm6, %v5568_v4, %v3838_v31  ;;  %v3945_v45 = vsel %vm25_vm5, %v5591_v16, %v3941_v30  ;;  %v5605_v57 = vld [vmem:[%s10272_s0 + $0x305] sm:$0x10]   ;;  %v4005_v2 = vsel %vm13_vm2, %v5604_v50, %v4001_v56  ;;  %v5617_v16 = vld [vmem:[%s10272_s0 + $0x208] sm:$0x1]   ;;  %v9670_v30 = vpop.permute.xlu1 %2582  }
 0x173   :  { %v5577_v20 = vld [vmem:[%s10272_s0 + $0xa] sm:$0x1]   ;;  %3843 = vrot.lane.b32.xlu0 %v3842_v36, %s5867_s2  ;;  %2010 = vst.msk [vmem:[#allocation0 + $0x40] ss:$8 sm:$0xf] %vm1973_vm7, %v9044_v23   ;;  %v4009_v41 = vsel %vm17_vm3, %v5605_v57, %v4005_v2 }
 0x174   :  { %v5578_v11 = vld [vmem:[%s10272_s0 + $0x49] sm:$0x2]   ;;  %2012 = vst.msk [vmem:[#allocation0 + $0x40] ss:$8 sm:$0xf0] %vm1973_vm7, %v9044_v23   ;;  %v3949_v23 = vsel %vm29_vm6, %v5592_v24, %v3945_v45 }
 0x175   :  { %v3890_v22 = vsel %vm5_vm0, %v5578_v11, %v5577_v20  ;;  %v5579_v33 = vld [vmem:[%s10272_s0 + $0x88] sm:$0x4]   ;;  %1974 = vst.msk [vmem:[#allocation0] ss:$8 sm:$0xf] %vm1973_vm7, %v9081_v38   ;;  %3950 = vrot.lane.b32.xlu1 %v3949_v23, %s5868_s8 }
 0x176   :  { %v5580_v28 = vld [vmem:[%s10272_s0 + $0xc7] sm:$0x8]   ;;  %v3894_v39 = vsel %vm9_vm1, %v5579_v33, %v3890_v22  ;;  %1975 = vst.msk [vmem:[#allocation0] ss:$8 sm:$0xf0] %vm1973_vm7, %v9081_v38   ;;  %vm3125_vm7 = vcmask 359760  }
 0x177   :  { %v5581_v10 = vld [vmem:[%s10272_s0 + $0x106] sm:$0x10]   ;;  %v3898_v43 = vsel %vm13_vm2, %v5580_v28, %v3894_v39  ;;  %v5606_v26 = vld [vmem:[%s10272_s0 + $0x344] sm:$0x20]   ;;  %v5618_v7 = vld [vmem:[%s10272_s0 + $0x247] sm:$0x2]  }
 0x178   :  { %v5582_v5 = vld [vmem:[%s10272_s0 + $0x145] sm:$0x20]   ;;  %v3902_v47 = vsel %vm17_vm3, %v5581_v10, %v3898_v43  ;;  %v5607_v59 = vld [vmem:[%s10272_s0 + $0x383] sm:$0x40]   ;;  %v4013_v15 = vsel %vm21_vm4, %v5606_v26, %v4009_v41  ;;  %v5619_v19 = vld [vmem:[%s10272_s0 + $0x286] sm:$0x4]   ;;  %v4069_v20 = vsel %vm5_vm0, %v5618_v7, %v5617_v16 }
 0x179   :  { %v5583_v53 = vld [vmem:[%s10272_s0 + $0x184] sm:$0x40]   ;;  %v3906_v38 = vsel %vm21_vm4, %v5582_v5, %v3902_v47  ;;  %v5608_v8 = vld [vmem:[%s10272_s0 + $0x3c2] sm:$0x80]   ;;  %v4017_v12 = vsel %vm25_vm5, %v5607_v59, %v4013_v15  ;;  %v5620_v11 = vld [vmem:[%s10272_s0 + $0x2c5] sm:$0x8]   ;;  %v4073_v33 = vsel %vm9_vm1, %v5619_v19, %v4069_v20 }
 0x17a   :  { %v5584_v40 = vld [vmem:[%s10272_s0 + $0x1c3] sm:$0x80]   ;;  %v3910_v63 = vsel %vm25_vm5, %v5583_v53, %v3906_v38  ;;  %v5593_v42 = vld [vmem:[%s10272_s0 + $0x9] sm:$0x1]   ;;  %v5621_v31 = vld [vmem:[%s10272_s0 + $0x304] sm:$0x10]   ;;  %v4077_v39 = vsel %vm13_vm2, %v5620_v11, %v4073_v33 }
 0x17b   :  { %v5594_v0 = vld [vmem:[%s10272_s0 + $0x48] sm:$0x2]   ;;  %v3914_v4 = vsel %vm29_vm6, %v5584_v40, %v3910_v63  ;;  %2082 = vst.msk [vmem:[#allocation0 + $0x40] ss:$8 sm:$0xf] %vm2045_vm8, %v9118_v55   ;;  %v4081_v18 = vsel %vm17_vm3, %v5621_v31, %v4077_v39 }
 0x17c   :  { %v5595_v6 = vld [vmem:[%s10272_s0 + $0x87] sm:$0x4]   ;;  %v3962_v60 = vsel %vm5_vm0, %v5594_v0, %v5593_v42  ;;  %3915 = vrot.lane.b32.xlu0 %v3914_v4, %s5868_s8  ;;  %2084 = vst.msk [vmem:[#allocation0 + $0x40] ss:$8 sm:$0xf0] %vm2045_vm8, %v9118_v55   ;;  %v9634_v55 = vpop.permute.xlu0 %2475   ;;  %s5869_s8 = smov 18  }
 0x17d   :  { %v5596_v48 = vld [vmem:[%s10272_s0 + $0xc6] sm:$0x8]   ;;  %v3966_v9 = vsel %vm9_vm1, %v5595_v6, %v3962_v60  ;;  %2046 = vst.msk [vmem:[#allocation0] ss:$8 sm:$0xf] %vm2045_vm8, %v9156_v54  }
 0x17e   :  { %v5597_v21 = vld [vmem:[%s10272_s0 + $0x105] sm:$0x10]   ;;  %v3970_v58 = vsel %vm13_vm2, %v5596_v48, %v3966_v9  ;;  %2047 = vst.msk [vmem:[#allocation0] ss:$8 sm:$0xf0] %vm2045_vm8, %v9156_v54   ;;  %v4021_v54 = vsel %vm29_vm6, %v5608_v8, %v4017_v12  ;;  %vm3197_vm8 = vcmask 343360  }
 0x17f   :  { %v5598_v13 = vld [vmem:[%s10272_s0 + $0x144] sm:$0x20]   ;;  %v3974_v24 = vsel %vm17_vm3, %v5597_v21, %v3970_v58  ;;  %v5622_v25 = vld [vmem:[%s10272_s0 + $0x343] sm:$0x20]   ;;  %4022 = vrot.lane.b32.xlu1 %v4021_v54, %s5869_s8  ;;  %v5633_v23 = vld [vmem:[%s10272_s0 + $0x207] sm:$0x1]   ;;  %v9744_v58 = vpop.permute.xlu1 %2654  }
 0x180   :  { %v5599_v61 = vld [vmem:[%s10272_s0 + $0x183] sm:$0x40]   ;;  %v3978_v22 = vsel %vm21_vm4, %v5598_v13, %v3974_v24  ;;  %v5623_v28 = vld [vmem:[%s10272_s0 + $0x382] sm:$0x40]   ;;  %v4085_v52 = vsel %vm21_vm4, %v5622_v25, %v4081_v18  ;;  %v5634_v26 = vld [vmem:[%s10272_s0 + $0x246] sm:$0x2]  }
 0x181   :  { %v5600_v1 = vld [vmem:[%s10272_s0 + $0x1c2] sm:$0x80]   ;;  %v5624_v10 = vld [vmem:[%s10272_s0 + $0x3c1] sm:$0x80]   ;;  %v3982_v37 = vsel %vm25_vm5, %v5599_v61, %v3978_v22  ;;  %v4089_v38 = vsel %vm25_vm5, %v5623_v28, %v4085_v52  ;;  %v5635_v59 = vld [vmem:[%s10272_s0 + $0x285] sm:$0x4]   ;;  %v4141_v2 = vsel %vm5_vm0, %v5634_v26, %v5633_v23 }
 0x182   :  { %v5609_v36 = vld [vmem:[%s10272_s0 + $0x8] sm:$0x1]   ;;  %v3986_v43 = vsel %vm29_vm6, %v5600_v1, %v3982_v37  ;;  %v5636_v8 = vld [vmem:[%s10272_s0 + $0x2c4] sm:$0x8]   ;;  %v4145_v41 = vsel %vm9_vm1, %v5635_v59, %v4141_v2  ;;  %v5649_v25 = vld [vmem:[%s10272_s0 + $0x206] sm:$0x1]  }
 0x183   :  { %v5610_v5 = vld [vmem:[%s10272_s0 + $0x47] sm:$0x2]   ;;  %3987 = vrot.lane.b32.xlu0 %v3986_v43, %s5869_s8  ;;  %2154 = vst.msk [vmem:[#allocation0 + $0x40] ss:$8 sm:$0xf] %vm2117_vm9, %v9181_v34   ;;  %v4149_v15 = vsel %vm13_vm2, %v5636_v8, %v4145_v41 }
 0x184   :  { %v5611_v53 = vld [vmem:[%s10272_s0 + $0x86] sm:$0x4]   ;;  %v4034_v46 = vsel %vm5_vm0, %v5610_v5, %v5609_v36  ;;  %2156 = vst.msk [vmem:[#allocation0 + $0x40] ss:$8 sm:$0xf0] %vm2117_vm9, %v9181_v34   ;;  %v9707_v34 = vpop.permute.xlu0 %2547  }
 0x185   :  { %v5612_v40 = vld [vmem:[%s10272_s0 + $0xc5] sm:$0x8]   ;;  %v4038_v50 = vsel %vm9_vm1, %v5611_v53, %v4034_v46  ;;  %2118 = vst.msk [vmem:[#allocation0] ss:$8 sm:$0xf] %vm2117_vm9, %v9218_v27  }
 0x186   :  { %v5613_v45 = vld [vmem:[%s10272_s0 + $0x104] sm:$0x10]   ;;  %v4042_v56 = vsel %vm13_vm2, %v5612_v40, %v4038_v50  ;;  %2119 = vst.msk [vmem:[#allocation0] ss:$8 sm:$0xf0] %vm2117_vm9, %v9218_v27   ;;  %v4093_v27 = vsel %vm29_vm6, %v5624_v10, %v4089_v38  ;;  %v9807_v50 = vpop.permute.xlu1 %2726   ;;  %vm3269_vm9 = vcmask 326960  }
 0x187   :  { %v5614_v47 = vld [vmem:[%s10272_s0 + $0x143] sm:$0x20]   ;;  %v4046_v63 = vsel %vm17_vm3, %v5613_v45, %v4042_v56  ;;  %v5637_v42 = vld [vmem:[%s10272_s0 + $0x303] sm:$0x10]   ;;  %4094 = vrot.lane.b32.xlu1 %v4093_v27, %s5870_s15  ;;  %v5650_v22 = vld [vmem:[%s10272_s0 + $0x245] sm:$0x2]  }
 0x188   :  { %v5615_v51 = vld [vmem:[%s10272_s0 + $0x182] sm:$0x40]   ;;  %v5638_v0 = vld [vmem:[%s10272_s0 + $0x342] sm:$0x20]   ;;  %v4050_v4 = vsel %vm21_vm4, %v5614_v47, %v4046_v63  ;;  %v4153_v7 = vsel %vm17_vm3, %v5637_v42, %v4149_v15  ;;  %v9766_v33 = vpop.permute.xlu0 %2619   ;;  %v4213_v36 = vsel %vm5_vm0, %v5650_v22, %v5649_v25  ;;  %v5651_v37 = vld [vmem:[%s10272_s0 + $0x284] sm:$0x4]  }
 0x189   :  { %v5616_v57 = vld [vmem:[%s10272_s0 + $0x1c1] sm:$0x80]   ;;  %v5639_v6 = vld [vmem:[%s10272_s0 + $0x381] sm:$0x40]   ;;  %v4054_v13 = vsel %vm25_vm5, %v5615_v51, %v4050_v4  ;;  %v4157_v11 = vsel %vm21_vm4, %v5638_v0, %v4153_v7  ;;  %v5652_v39 = vld [vmem:[%s10272_s0 + $0x2c3] sm:$0x8]   ;;  %v4217_v53 = vsel %vm9_vm1, %v5651_v37, %v4213_v36 }
 0x18a   :  { %v5640_v60 = vld [vmem:[%s10272_s0 + $0x3c0] sm:$0x80]   ;;  %v4058_v16 = vsel %vm29_vm6, %v5616_v57, %v4054_v13  ;;  %v4161_v28 = vsel %vm25_vm5, %v5639_v6, %v4157_v11  ;;  %v5653_v5 = vld [vmem:[%s10272_s0 + $0x302] sm:$0x10]   ;;  %v4221_v45 = vsel %vm13_vm2, %v5652_v39, %v4217_v53  ;;  %v5665_v6 = vld [vmem:[%s10272_s0 + $0x205] sm:$0x1]   ;;  %v9880_v11 = vpop.permute.xlu1 %2798  }
 0x18b   :  { %v5625_v48 = vld [vmem:[%s10272_s0 + $0x7] sm:$0x1]   ;;  %4059 = vrot.lane.b32.xlu0 %v4058_v16, %s5870_s15  ;;  %2226 = vst.msk [vmem:[#allocation0 + $0x40] ss:$8 sm:$0xf] %vm2189_vm10, %v9289_v35   ;;  %v4225_v23 = vsel %vm17_vm3, %v5653_v5, %v4221_v45 }
 0x18c   :  { %v5626_v21 = vld [vmem:[%s10272_s0 + $0x46] sm:$0x2]   ;;  %2228 = vst.msk [vmem:[#allocation0 + $0x40] ss:$8 sm:$0xf0] %vm2189_vm10, %v9289_v35   ;;  %v4165_v35 = vsel %vm29_vm6, %v5640_v60, %v4161_v28 }
 0x18d   :  { %v4106_v9 = vsel %vm5_vm0, %v5626_v21, %v5625_v48  ;;  %v5627_v61 = vld [vmem:[%s10272_s0 + $0x85] sm:$0x4]   ;;  %2190 = vst.msk [vmem:[#allocation0] ss:$8 sm:$0xf] %vm2189_vm10, %v9326_v49   ;;  %4166 = vrot.lane.b32.xlu1 %v4165_v35, %s5871_s21 }
 0x18e   :  { %v5628_v1 = vld [vmem:[%s10272_s0 + $0xc4] sm:$0x8]   ;;  %v4110_v19 = vsel %vm9_vm1, %v5627_v61, %v4106_v9  ;;  %2191 = vst.msk [vmem:[#allocation0] ss:$8 sm:$0xf0] %vm2189_vm10, %v9326_v49   ;;  %vm3341_vm10 = vcmask 310560  }
 0x18f   :  { %v5629_v12 = vld [vmem:[%s10272_s0 + $0x103] sm:$0x10]   ;;  %v4114_v31 = vsel %vm13_vm2, %v5628_v1, %v4110_v19  ;;  %v5654_v40 = vld [vmem:[%s10272_s0 + $0x341] sm:$0x20]   ;;  %v5666_v4 = vld [vmem:[%s10272_s0 + $0x244] sm:$0x2]  }
 0x190   :  { %v5630_v54 = vld [vmem:[%s10272_s0 + $0x142] sm:$0x20]   ;;  %v4118_v10 = vsel %vm17_vm3, %v5629_v12, %v4114_v31  ;;  %v5655_v43 = vld [vmem:[%s10272_s0 + $0x380] sm:$0x40]   ;;  %v4229_v8 = vsel %vm21_vm4, %v5654_v40, %v4225_v23  ;;  %v5667_v41 = vld [vmem:[%s10272_s0 + $0x283] sm:$0x4]   ;;  %v4285_v48 = vsel %vm5_vm0, %v5666_v4, %v5665_v6 }
 0x191   :  { %v5631_v24 = vld [vmem:[%s10272_s0 + $0x181] sm:$0x40]   ;;  %v4122_v49 = vsel %vm21_vm4, %v5630_v54, %v4118_v10  ;;  %v5656_v18 = vld [vmem:[%s10272_s0 + $0x3bf] sm:$0x80]   ;;  %v4233_v42 = vsel %vm25_vm5, %v5655_v43, %v4229_v8  ;;  %v5668_v21 = vld [vmem:[%s10272_s0 + $0x2c2] sm:$0x8]   ;;  %v4289_v61 = vsel %vm9_vm1, %v5667_v41, %v4285_v48 }
 0x192   :  { %v5632_v20 = vld [vmem:[%s10272_s0 + $0x1c0] sm:$0x80]   ;;  %v4126_v46 = vsel %vm25_vm5, %v5631_v24, %v4122_v49  ;;  %v5641_v47 = vld [vmem:[%s10272_s0 + $0x6] sm:$0x1]   ;;  %v5669_v13 = vld [vmem:[%s10272_s0 + $0x301] sm:$0x10]   ;;  %v4293_v19 = vsel %vm13_vm2, %v5668_v21, %v4289_v61 }
 0x193   :  { %v5642_v51 = vld [vmem:[%s10272_s0 + $0x45] sm:$0x2]   ;;  %v4130_v57 = vsel %vm29_vm6, %v5632_v20, %v4126_v46  ;;  %2298 = vst.msk [vmem:[#allocation0 + $0x40] ss:$8 sm:$0xf] %vm2261_vm11, %v9387_v17   ;;  %v4297_v25 = vsel %vm17_vm3, %v5669_v13, %v4293_v19 }
 0x194   :  { %v5643_v52 = vld [vmem:[%s10272_s0 + $0x84] sm:$0x4]   ;;  %v4178_v38 = vsel %vm5_vm0, %v5642_v51, %v5641_v47  ;;  %4131 = vrot.lane.b32.xlu0 %v4130_v57, %s5871_s21  ;;  %2300 = vst.msk [vmem:[#allocation0 + $0x40] ss:$8 sm:$0xf0] %vm2261_vm11, %v9387_v17   ;;  %v9844_v17 = vpop.permute.xlu0 %2691   ;;  %s5872_s21 = smov 12  }
 0x195   :  { %v5644_v56 = vld [vmem:[%s10272_s0 + $0xc3] sm:$0x8]   ;;  %v4182_v27 = vsel %vm9_vm1, %v5643_v52, %v4178_v38  ;;  %2262 = vst.msk [vmem:[#allocation0] ss:$8 sm:$0xf] %vm2261_vm11, %v9424_v14  }
 0x196   :  { %v5645_v26 = vld [vmem:[%s10272_s0 + $0x102] sm:$0x10]   ;;  %v4186_v0 = vsel %vm13_vm2, %v5644_v56, %v4182_v27  ;;  %2263 = vst.msk [vmem:[#allocation0] ss:$8 sm:$0xf0] %vm2261_vm11, %v9424_v14   ;;  %v4237_v14 = vsel %vm29_vm6, %v5656_v18, %v4233_v42  ;;  %vm3413_vm11 = vcmask 294160  }
 0x197   :  { %v5646_v59 = vld [vmem:[%s10272_s0 + $0x141] sm:$0x20]   ;;  %v4190_v60 = vsel %vm17_vm3, %v5645_v26, %v4186_v0  ;;  %v5670_v15 = vld [vmem:[%s10272_s0 + $0x340] sm:$0x20]   ;;  %4238 = vrot.lane.b32.xlu1 %v4237_v14, %s5872_s21  ;;  %v5681_v35 = vld [vmem:[%s10272_s0 + $0x204] sm:$0x1]   ;;  %v9954_v0 = vpop.permute.xlu1 %2870  }
 0x198   :  { %v5647_v63 = vld [vmem:[%s10272_s0 + $0x180] sm:$0x40]   ;;  %v4194_v9 = vsel %vm21_vm4, %v5646_v59, %v4190_v60  ;;  %v5671_v1 = vld [vmem:[%s10272_s0 + $0x37f] sm:$0x40]   ;;  %v4301_v37 = vsel %vm21_vm4, %v5670_v15, %v4297_v25  ;;  %v5682_v40 = vld [vmem:[%s10272_s0 + $0x243] sm:$0x2]  }
 0x199   :  { %v5648_v2 = vld [vmem:[%s10272_s0 + $0x1bf] sm:$0x80]   ;;  %v5672_v12 = vld [vmem:[%s10272_s0 + $0x3be] sm:$0x80]   ;;  %v4198_v7 = vsel %vm25_vm5, %v5647_v63, %v4194_v9  ;;  %v4305_v49 = vsel %vm25_vm5, %v5671_v1, %v4301_v37  ;;  %v5683_v43 = vld [vmem:[%s10272_s0 + $0x282] sm:$0x4]   ;;  %v4357_v45 = vsel %vm5_vm0, %v5682_v40, %v5681_v35 }
 0x19a   :  { %v5657_v16 = vld [vmem:[%s10272_s0 + $0x5] sm:$0x1]   ;;  %v4202_v31 = vsel %vm29_vm6, %v5648_v2, %v4198_v7  ;;  %v5684_v18 = vld [vmem:[%s10272_s0 + $0x2c1] sm:$0x8]   ;;  %v4361_v23 = vsel %vm9_vm1, %v5683_v43, %v4357_v45  ;;  %v5697_v15 = vld [vmem:[%s10272_s0 + $0x203] sm:$0x1]  }
 0x19b   :  { %v5658_v54 = vld [vmem:[%s10272_s0 + $0x44] sm:$0x2]   ;;  %4203 = vrot.lane.b32.xlu0 %v4202_v31, %s5872_s21  ;;  %2370 = vst.msk [vmem:[#allocation0 + $0x40] ss:$8 sm:$0xf] %vm2333_vm12, %v9460_v62   ;;  %v4365_v8 = vsel %vm13_vm2, %v5684_v18, %v4361_v23  ;;  %v10014_v37 = vpop.permute.xlu1 %2942  }
 0x19c   :  { %v5659_v24 = vld [vmem:[%s10272_s0 + $0x83] sm:$0x4]   ;;  %v4250_v22 = vsel %vm5_vm0, %v5658_v54, %v5657_v16  ;;  %2372 = vst.msk [vmem:[#allocation0 + $0x40] ss:$8 sm:$0xf0] %vm2333_vm12, %v9460_v62   ;;  %v9917_v62 = vpop.permute.xlu0 %2763  }
 0x19d   :  { %v5660_v20 = vld [vmem:[%s10272_s0 + $0xc2] sm:$0x8]   ;;  %v4254_v39 = vsel %vm9_vm1, %v5659_v24, %v4250_v22  ;;  %2334 = vst.msk [vmem:[#allocation0] ss:$8 sm:$0xf] %vm2333_vm12, %v9497_v29  }
 0x19e   :  { %v5661_v28 = vld [vmem:[%s10272_s0 + $0x101] sm:$0x10]   ;;  %v4258_v53 = vsel %vm13_vm2, %v5660_v20, %v4254_v39  ;;  %2335 = vst.msk [vmem:[#allocation0] ss:$8 sm:$0xf0] %vm2333_vm12, %v9497_v29   ;;  %v4309_v29 = vsel %vm29_vm6, %v5672_v12, %v4305_v49  ;;  %vm3485_vm12 = vcmask 277760  }
 0x19f   :  { %v5662_v10 = vld [vmem:[%s10272_s0 + $0x140] sm:$0x20]   ;;  %v4262_v46 = vsel %vm17_vm3, %v5661_v28, %v4258_v53  ;;  %v5685_v47 = vld [vmem:[%s10272_s0 + $0x300] sm:$0x10]   ;;  %4310 = vrot.lane.b32.xlu1 %v4309_v29, %s5873_s27  ;;  %v5698_v9 = vld [vmem:[%s10272_s0 + $0x242] sm:$0x2]  }
 0x1a0   :  { %v5663_v36 = vld [vmem:[%s10272_s0 + $0x17f] sm:$0x40]   ;;  %v5686_v51 = vld [vmem:[%s10272_s0 + $0x33f] sm:$0x20]   ;;  %v4266_v57 = vsel %vm21_vm4, %v5662_v10, %v4262_v46  ;;  %v4369_v4 = vsel %vm17_vm3, %v5685_v47, %v4365_v8  ;;  %v9976_v61 = vpop.permute.xlu0 %2835   ;;  %v4429_v16 = vsel %vm5_vm0, %v5698_v9, %v5697_v15  ;;  %v5699_v7 = vld [vmem:[%s10272_s0 + $0x281] sm:$0x4]  }
 0x1a1   :  { %v5664_v5 = vld [vmem:[%s10272_s0 + $0x1be] sm:$0x80]   ;;  %v5687_v52 = vld [vmem:[%s10272_s0 + $0x37e] sm:$0x40]   ;;  %v4270_v59 = vsel %vm25_vm5, %v5663_v36, %v4266_v57  ;;  %v4373_v21 = vsel %vm21_vm4, %v5686_v51, %v4369_v4  ;;  %v5700_v19 = vld [vmem:[%s10272_s0 + $0x2c0] sm:$0x8]   ;;  %v4433_v24 = vsel %vm9_vm1, %v5699_v7, %v4429_v16 }
 0x1a2   :  { %v5688_v38 = vld [vmem:[%s10272_s0 + $0x3bd] sm:$0x80]   ;;  %v4274_v6 = vsel %vm29_vm6, %v5664_v5, %v4270_v59  ;;  %v4377_v1 = vsel %vm25_vm5, %v5687_v52, %v4373_v21  ;;  %v5701_v54 = vld [vmem:[%s10272_s0 + $0x2ff] sm:$0x10]   ;;  %v4437_v22 = vsel %vm13_vm2, %v5700_v19, %v4433_v24  ;;  %v5713_v51 = vld [vmem:[%s10272_s0 + $0x202] sm:$0x1]  }
 0x1a3   :  { %v5673_v56 = vld [vmem:[%s10272_s0 + $0x4] sm:$0x1]   ;;  %4275 = vrot.lane.b32.xlu0 %v4274_v6, %s5873_s27  ;;  %2442 = vst.msk [vmem:[#allocation0 + $0x40] ss:$8 sm:$0xf] %vm2405_vm13, %v9534_v32   ;;  %v4441_v5 = vsel %vm17_vm3, %v5701_v54, %v4437_v22 }
 0x1a4   :  { %v5674_v26 = vld [vmem:[%s10272_s0 + $0x43] sm:$0x2]   ;;  %2444 = vst.msk [vmem:[#allocation0 + $0x40] ss:$8 sm:$0xf0] %vm2405_vm13, %v9534_v32   ;;  %v4381_v32 = vsel %vm29_vm6, %v5688_v38, %v4377_v1 }
 0x1a5   :  { %v4322_v27 = vsel %vm5_vm0, %v5674_v26, %v5673_v56  ;;  %v5675_v63 = vld [vmem:[%s10272_s0 + $0x82] sm:$0x4]   ;;  %2406 = vst.msk [vmem:[#allocation0] ss:$8 sm:$0xf] %vm2405_vm13, %v9556_v44   ;;  %4382 = vrot.lane.b32.xlu1 %v4381_v32, %s5874_s30 }
 0x1a6   :  { %v5676_v2 = vld [vmem:[%s10272_s0 + $0xc1] sm:$0x8]   ;;  %v4326_v41 = vsel %vm9_vm1, %v5675_v63, %v4322_v27  ;;  %2407 = vst.msk [vmem:[#allocation0] ss:$8 sm:$0xf0] %vm2405_vm13, %v9556_v44   ;;  %vm3557_vm13 = vcmask 261360  }
 0x1a7   :  { %v5677_v42 = vld [vmem:[%s10272_s0 + $0x100] sm:$0x10]   ;;  %v4330_v13 = vsel %vm13_vm2, %v5676_v2, %v4326_v41  ;;  %v5702_v20 = vld [vmem:[%s10272_s0 + $0x33e] sm:$0x20]   ;;  %v5714_v52 = vld [vmem:[%s10272_s0 + $0x241] sm:$0x2]  }
 0x1a8   :  { %v5678_v14 = vld [vmem:[%s10272_s0 + $0x13f] sm:$0x20]   ;;  %v4334_v12 = vsel %vm17_vm3, %v5677_v42, %v4330_v13  ;;  %v5703_v31 = vld [vmem:[%s10272_s0 + $0x37d] sm:$0x40]   ;;  %v4445_v43 = vsel %vm21_vm4, %v5702_v20, %v4441_v5  ;;  %v5715_v57 = vld [vmem:[%s10272_s0 + $0x280] sm:$0x4]   ;;  %v4501_v56 = vsel %vm5_vm0, %v5714_v52, %v5713_v51 }
 0x1a9   :  { %v5679_v60 = vld [vmem:[%s10272_s0 + $0x17e] sm:$0x40]   ;;  %v4338_v44 = vsel %vm21_vm4, %v5678_v14, %v4334_v12  ;;  %v5689_v28 = vld [vmem:[%s10272_s0 + $0x3] sm:$0x1]   ;;  %v4449_v45 = vsel %vm25_vm5, %v5703_v31, %v4445_v43  ;;  %v5716_v26 = vld [vmem:[%s10272_s0 + $0x2bf] sm:$0x8]   ;;  %v4505_v27 = vsel %vm9_vm1, %v5715_v57, %v4501_v56 }
 0x1aa   :  { %v5680_v48 = vld [vmem:[%s10272_s0 + $0x1bd] sm:$0x80]   ;;  %v4342_v25 = vsel %vm25_vm5, %v5679_v60, %v4338_v44  ;;  %v5690_v10 = vld [vmem:[%s10272_s0 + $0x42] sm:$0x2]   ;;  %v5717_v59 = vld [vmem:[%s10272_s0 + $0x2fe] sm:$0x10]   ;;  %v4509_v4 = vsel %vm13_vm2, %v5716_v26, %v4505_v27 }
 0x1ab   :  { %v5691_v36 = vld [vmem:[%s10272_s0 + $0x81] sm:$0x4]   ;;  %v4346_v39 = vsel %vm29_vm6, %v5680_v48, %v4342_v25  ;;  %v4394_v49 = vsel %vm5_vm0, %v5690_v10, %v5689_v28  ;;  %2514 = vst.msk [vmem:[#allocation0 + $0x40] ss:$8 sm:$0xf] %vm2477_vm14, %v9597_v3   ;;  %v10087_v48 = vpop.permute.xlu1 %3014   ;;  %v4513_v13 = vsel %vm17_vm3, %v5717_v59, %v4509_v4 }
 0x1ac   :  { %v5704_v35 = vld [vmem:[%s10272_s0 + $0x3bc] sm:$0x80]   ;;  %4347 = vrot.lane.b32.xlu0 %v4346_v39, %s5874_s30  ;;  %v4398_v18 = vsel %vm9_vm1, %v5691_v36, %v4394_v49  ;;  %2516 = vst.msk [vmem:[#allocation0 + $0x40] ss:$8 sm:$0xf0] %vm2477_vm14, %v9597_v3   ;;  %v10051_v3 = vpop.permute.xlu0 %2907   ;;  %s5875_s30 = smov 6  }
 0x1ad   :  { %v5692_v53 = vld [vmem:[%s10272_s0 + $0xc0] sm:$0x8]   ;;  %2478 = vst.msk [vmem:[#allocation0] ss:$8 sm:$0xf] %vm2477_vm14, %v9634_v55  }
 0x1ae   :  { %v5693_v40 = vld [vmem:[%s10272_s0 + $0xff] sm:$0x10]   ;;  %v4402_v47 = vsel %vm13_vm2, %v5692_v53, %v4398_v18  ;;  %2479 = vst.msk [vmem:[#allocation0] ss:$8 sm:$0xf0] %vm2477_vm14, %v9634_v55   ;;  %v4453_v55 = vsel %vm29_vm6, %v5704_v35, %v4449_v45  ;;  %vm3629_vm14 = vcmask 244960  }
 0x1af   :  { %v5694_v29 = vld [vmem:[%s10272_s0 + $0x13e] sm:$0x20]   ;;  %v4406_v23 = vsel %vm17_vm3, %v5693_v40, %v4402_v47  ;;  %4454 = vrot.lane.b32.xlu1 %v4453_v55, %s5875_s30  ;;  %v5718_v63 = vld [vmem:[%s10272_s0 + $0x33d] sm:$0x20]   ;;  %v5729_v54 = vld [vmem:[%s10272_s0 + $0x201] sm:$0x1]   ;;  %v3087_v47 = vpop.permute.xlu1 %3086  }
 0x1b0   :  { %v5695_v46 = vld [vmem:[%s10272_s0 + $0x17d] sm:$0x40]   ;;  %v4410_v8 = vsel %vm21_vm4, %v5694_v29, %v4406_v23  ;;  %v5719_v2 = vld [vmem:[%s10272_s0 + $0x37c] sm:$0x40]   ;;  %v4517_v16 = vsel %vm21_vm4, %v5718_v63, %v4513_v13  ;;  %v5730_v24 = vld [vmem:[%s10272_s0 + $0x240] sm:$0x2]  }
 0x1b1   :  { %v5696_v38 = vld [vmem:[%s10272_s0 + $0x1bc] sm:$0x80]   ;;  %v5705_v42 = vld [vmem:[%s10272_s0 + $0x2] sm:$0x1]   ;;  %v4414_v6 = vsel %vm25_vm5, %v5695_v46, %v4410_v8  ;;  %v4521_v32 = vsel %vm25_vm5, %v5719_v2, %v4517_v16  ;;  %v5731_v20 = vld [vmem:[%s10272_s0 + $0x27f] sm:$0x4]   ;;  %v4573_v28 = vsel %vm5_vm0, %v5730_v24, %v5729_v54 }
 0x1b2   :  { %v5706_v41 = vld [vmem:[%s10272_s0 + $0x41] sm:$0x2]   ;;  %v4418_v21 = vsel %vm29_vm6, %v5696_v38, %v4414_v6  ;;  %v5732_v31 = vld [vmem:[%s10272_s0 + $0x2be] sm:$0x8]   ;;  %v4577_v5 = vsel %vm9_vm1, %v5731_v20, %v4573_v28 }
 0x1b3   :  { %v5707_v14 = vld [vmem:[%s10272_s0 + $0x80] sm:$0x4]   ;;  %v4466_v9 = vsel %vm5_vm0, %v5706_v41, %v5705_v42  ;;  %4419 = vrot.lane.b32.xlu0 %v4418_v21, %s5875_s30  ;;  %2586 = vst.msk [vmem:[#allocation0 + $0x40] ss:$8 sm:$0xf] %vm2549_vm15, %v9670_v30   ;;  %v4581_v43 = vsel %vm13_vm2, %v5732_v31, %v4577_v5 }
 0x1b4   :  { %v5708_v60 = vld [vmem:[%s10272_s0 + $0xbf] sm:$0x8]   ;;  %v4470_v7 = vsel %vm9_vm1, %v5707_v14, %v4466_v9  ;;  %2588 = vst.msk [vmem:[#allocation0 + $0x40] ss:$8 sm:$0xf0] %vm2549_vm15, %v9670_v30   ;;  %v10124_v30 = vpop.permute.xlu0 %2979  }
 0x1b5   :  { %v5720_v15 = vld [vmem:[%s10272_s0 + $0x3bb] sm:$0x80]   ;;  %v4474_v44 = vsel %vm13_vm2, %v5708_v60, %v4470_v7  ;;  %2550 = vst.msk [vmem:[#allocation0] ss:$8 sm:$0xf] %vm2549_vm15, %v9707_v34  }
 0x1b6   :  { %v5709_v1 = vld [vmem:[%s10272_s0 + $0xfe] sm:$0x10]   ;;  %2551 = vst.msk [vmem:[#allocation0] ss:$8 sm:$0xf0] %vm2549_vm15, %v9707_v34   ;;  %v4525_v34 = vsel %vm29_vm6, %v5720_v15, %v4521_v32  ;;  %vm3701_vm15 = vcmask 228560  }
 0x1b7   :  { %v5710_v12 = vld [vmem:[%s10272_s0 + $0x13d] sm:$0x20]   ;;  %v4478_v25 = vsel %vm17_vm3, %v5709_v1, %v4474_v44  ;;  %v5733_v10 = vld [vmem:[%s10272_s0 + $0x2fd] sm:$0x10]   ;;  %4526 = vrot.lane.b32.xlu1 %v4525_v34, %s5876_s7 }
 0x1b8   :  { %v5711_v19 = vld [vmem:[%s10272_s0 + $0x17c] sm:$0x40]   ;;  %v5734_v36 = vld [vmem:[%s10272_s0 + $0x33c] sm:$0x20]   ;;  %v4482_v39 = vsel %vm21_vm4, %v5710_v12, %v4478_v25  ;;  %v4585_v52 = vsel %vm17_vm3, %v5733_v10, %v4581_v43  ;;  %v3052_v59 = vpop.permute.xlu0 %3051  }
 0x1b9   :  { %v5712_v22 = vld [vmem:[%s10272_s0 + $0x1bb] sm:$0x80]   ;;  %v5735_v35 = vld [vmem:[%s10272_s0 + $0x37b] sm:$0x40]   ;;  %v4486_v40 = vsel %vm25_vm5, %v5711_v19, %v4482_v39  ;;  %v4589_v38 = vsel %vm21_vm4, %v5734_v36, %v4585_v52 }
 0x1ba   :  { %v5721_v49 = vld [vmem:[%s10272_s0 + $0x1] sm:$0x1]   ;;  %v4490_v51 = vsel %vm29_vm6, %v5712_v22, %v4486_v40  ;;  %v4593_v8 = vsel %vm25_vm5, %v5735_v35, %v4589_v38 }
 0x1bb   :  { %v5722_v53 = vld [vmem:[%s10272_s0 + $0x40] sm:$0x2]   ;;  %4491 = vrot.lane.b32.xlu0 %v4490_v51, %s5876_s7 }
 0x1bc   :  { %v4538_v18 = vsel %vm5_vm0, %v5722_v53, %v5721_v49  ;;  %v5723_v29 = vld [vmem:[%s10272_s0 + $0x7f] sm:$0x4]   ;;  %vm2621_vm0 = vcmask 474560  }
 0x1bd   :  { %v5724_v46 = vld [vmem:[%s10272_s0 + $0xbe] sm:$0x8]   ;;  %v4542_v55 = vsel %vm9_vm1, %v5723_v29, %v4538_v18  ;;  %vm2693_vm1 = vcmask 458160   ;;  %2658 = vst.msk [vmem:[#allocation0 + $0x40] ss:$8 sm:$0xf] %vm2621_vm0, %v9744_v58  }
 0x1be   :  { %v5725_v45 = vld [vmem:[%s10272_s0 + $0xfd] sm:$0x10]   ;;  %v4546_v56 = vsel %vm13_vm2, %v5724_v46, %v4542_v55  ;;  %2660 = vst.msk [vmem:[#allocation0 + $0x40] ss:$8 sm:$0xf0] %vm2621_vm0, %v9744_v58   ;;  %vm2765_vm2 = vcmask 441760  }
 0x1bf   :  { %v5736_v57 = vld [vmem:[%s10272_s0 + $0x3ba] sm:$0x80]   ;;  %v4550_v27 = vsel %vm17_vm3, %v5725_v45, %v4546_v56  ;;  %2622 = vst.msk [vmem:[#allocation0] ss:$8 sm:$0xf] %vm2621_vm0, %v9766_v33   ;;  %vm2837_vm3 = vcmask 425360  }
 0x1c0   :  { %v5726_v23 = vld [vmem:[%s10272_s0 + $0x13c] sm:$0x20]   ;;  %2623 = vst.msk [vmem:[#allocation0] ss:$8 sm:$0xf0] %vm2621_vm0, %v9766_v33   ;;  %v4597_v58 = vsel %vm29_vm6, %v5736_v57, %v4593_v8  ;;  %vm3773_vm0 = vcmask 212160  }
 0x1c1   :  { %v5727_v26 = vld [vmem:[%s10272_s0 + $0x17b] sm:$0x40]   ;;  %v4554_v33 = vsel %vm21_vm4, %v5726_v23, %v4550_v27  ;;  %2730 = vst.msk [vmem:[#allocation0 + $0x40] ss:$8 sm:$0xf] %vm2693_vm1, %v9807_v50   ;;  %vm2909_vm4 = vcmask 408960  }
 0x1c2   :  { %v5728_v63 = vld [vmem:[%s10272_s0 + $0x1ba] sm:$0x80]   ;;  %2732 = vst.msk [vmem:[#allocation0 + $0x40] ss:$8 sm:$0xf0] %vm2693_vm1, %v9807_v50   ;;  %s5877_s0 = smov 2   ;;  %v4558_v50 = vsel %vm25_vm5, %v5727_v26, %v4554_v33 }
 0x1c3   :  { %2694 = vst.msk [vmem:[#allocation0] ss:$8 sm:$0xf] %vm2693_vm1, %v9844_v17   ;;  %2695 = vst.msk [vmem:[#allocation0] ss:$8 sm:$0xf0] %vm2693_vm1, %v9844_v17   ;;  %4598 = vrot.lane.b32.xlu1 %v4597_v58, %s5877_s0  ;;  %v3159_v17 = vpop.permute.xlu1 %3158  }
 0x1c4   :  { %2802 = vst.msk [vmem:[#allocation0 + $0x40] ss:$8 sm:$0xf] %vm2765_vm2, %v9880_v11   ;;  %2804 = vst.msk [vmem:[#allocation0 + $0x40] ss:$8 sm:$0xf0] %vm2765_vm2, %v9880_v11   ;;  %v4562_v11 = vsel %vm29_vm6, %v5728_v63, %v4558_v50 }
 0x1c5   :  { %2766 = vst.msk [vmem:[#allocation0] ss:$8 sm:$0xf] %vm2765_vm2, %v9917_v62   ;;  %2767 = vst.msk [vmem:[#allocation0] ss:$8 sm:$0xf0] %vm2765_vm2, %v9917_v62   ;;  %4563 = vrot.lane.b32.xlu0 %v4562_v11, %s5877_s0  ;;  %v3124_v62 = vpop.permute.xlu0 %3123  }
 0x1c6   :  { %vm2981_vm5 = vcmask 392560   ;;  %2874 = vst.msk [vmem:[#allocation0 + $0x40] ss:$8 sm:$0xf] %vm2837_vm3, %v9954_v0   ;;  %vm3053_vm6 = vcmask 376160   ;;  %vm3845_vm1 = vcmask 195760  }
 0x1c7   :  { %2876 = vst.msk [vmem:[#allocation0 + $0x40] ss:$8 sm:$0xf0] %vm2837_vm3, %v9954_v0   ;;  %2838 = vst.msk [vmem:[#allocation0] ss:$8 sm:$0xf] %vm2837_vm3, %v9976_v61   ;;  %v3231_v0 = vpop.permute.xlu1 %3230  }
 0x1c8   :  { %2839 = vst.msk [vmem:[#allocation0] ss:$8 sm:$0xf0] %vm2837_vm3, %v9976_v61   ;;  %vm3917_vm2 = vcmask 179360   ;;  %vm3989_vm3 = vcmask 162960  }
 0x1c9   :  { %2946 = vst.msk [vmem:[#allocation0 + $0x40] ss:$8 sm:$0xf] %vm2909_vm4, %v10014_v37   ;;  %2948 = vst.msk [vmem:[#allocation0 + $0x40] ss:$8 sm:$0xf0] %vm2909_vm4, %v10014_v37   ;;  %v3196_v61 = vpop.permute.xlu0 %3195  }
 0x1ca   :  { %2910 = vst.msk [vmem:[#allocation0] ss:$8 sm:$0xf] %vm2909_vm4, %v10051_v3   ;;  %2911 = vst.msk [vmem:[#allocation0] ss:$8 sm:$0xf0] %vm2909_vm4, %v10051_v3  }
 0x1cb   :  { %3018 = vst.msk [vmem:[#allocation0 + $0x40] ss:$8 sm:$0xf] %vm2981_vm5, %v10087_v48   ;;  %3020 = vst.msk [vmem:[#allocation0 + $0x40] ss:$8 sm:$0xf0] %vm2981_vm5, %v10087_v48   ;;  %v3303_v37 = vpop.permute.xlu1 %3302  }
 0x1cc   :  { %2982 = vst.msk [vmem:[#allocation0] ss:$8 sm:$0xf] %vm2981_vm5, %v10124_v30   ;;  %2983 = vst.msk [vmem:[#allocation0] ss:$8 sm:$0xf0] %vm2981_vm5, %v10124_v30  }
 0x1cd   :  { %3090 = vst.msk [vmem:[#allocation0 + $0x40] ss:$8 sm:$0xf] %vm3053_vm6, %v3087_v47   ;;  %3092 = vst.msk [vmem:[#allocation0 + $0x40] ss:$8 sm:$0xf0] %vm3053_vm6, %v3087_v47   ;;  %v3268_v3 = vpop.permute.xlu0 %3267  }
 0x1ce   :  { %3054 = vst.msk [vmem:[#allocation0] ss:$8 sm:$0xf] %vm3053_vm6, %v3052_v59   ;;  %3055 = vst.msk [vmem:[#allocation0] ss:$8 sm:$0xf0] %vm3053_vm6, %v3052_v59  }
 0x1cf   :  { %3162 = vst.msk [vmem:[#allocation0 + $0x40] ss:$8 sm:$0xf] %vm3125_vm7, %v3159_v17   ;;  %3164 = vst.msk [vmem:[#allocation0 + $0x40] ss:$8 sm:$0xf0] %vm3125_vm7, %v3159_v17   ;;  %v3375_v2 = vpop.permute.xlu1 %3374  }
 0x1d0   :  { %3126 = vst.msk [vmem:[#allocation0] ss:$8 sm:$0xf] %vm3125_vm7, %v3124_v62   ;;  %3127 = vst.msk [vmem:[#allocation0] ss:$8 sm:$0xf0] %vm3125_vm7, %v3124_v62  }
 0x1d1   :  { %3234 = vst.msk [vmem:[#allocation0 + $0x40] ss:$8 sm:$0xf] %vm3197_vm8, %v3231_v0   ;;  %3236 = vst.msk [vmem:[#allocation0 + $0x40] ss:$8 sm:$0xf0] %vm3197_vm8, %v3231_v0   ;;  %v3340_v42 = vpop.permute.xlu0 %3339  }
 0x1d2   :  { %3198 = vst.msk [vmem:[#allocation0] ss:$8 sm:$0xf] %vm3197_vm8, %v3196_v61   ;;  %3199 = vst.msk [vmem:[#allocation0] ss:$8 sm:$0xf0] %vm3197_vm8, %v3196_v61  }
 0x1d3   :  { %3306 = vst.msk [vmem:[#allocation0 + $0x40] ss:$8 sm:$0xf] %vm3269_vm9, %v3303_v37   ;;  %3308 = vst.msk [vmem:[#allocation0 + $0x40] ss:$8 sm:$0xf0] %vm3269_vm9, %v3303_v37   ;;  %v3447_v6 = vpop.permute.xlu1 %3446  }
 0x1d4   :  { %3270 = vst.msk [vmem:[#allocation0] ss:$8 sm:$0xf] %vm3269_vm9, %v3268_v3   ;;  %3271 = vst.msk [vmem:[#allocation0] ss:$8 sm:$0xf0] %vm3269_vm9, %v3268_v3  }
 0x1d5   :  { %3378 = vst.msk [vmem:[#allocation0 + $0x40] ss:$8 sm:$0xf] %vm3341_vm10, %v3375_v2   ;;  %3380 = vst.msk [vmem:[#allocation0 + $0x40] ss:$8 sm:$0xf0] %vm3341_vm10, %v3375_v2   ;;  %v3412_v4 = vpop.permute.xlu0 %3411  }
 0x1d6   :  { %3342 = vst.msk [vmem:[#allocation0] ss:$8 sm:$0xf] %vm3341_vm10, %v3340_v42   ;;  %3343 = vst.msk [vmem:[#allocation0] ss:$8 sm:$0xf0] %vm3341_vm10, %v3340_v42  }
 0x1d7   :  { %3450 = vst.msk [vmem:[#allocation0 + $0x40] ss:$8 sm:$0xf] %vm3413_vm11, %v3447_v6   ;;  %3452 = vst.msk [vmem:[#allocation0 + $0x40] ss:$8 sm:$0xf0] %vm3413_vm11, %v3447_v6   ;;  %v3519_v41 = vpop.permute.xlu1 %3518  }
 0x1d8   :  { %3414 = vst.msk [vmem:[#allocation0] ss:$8 sm:$0xf] %vm3413_vm11, %v3412_v4   ;;  %3415 = vst.msk [vmem:[#allocation0] ss:$8 sm:$0xf0] %vm3413_vm11, %v3412_v4  }
 0x1d9   :  { %3522 = vst.msk [vmem:[#allocation0 + $0x40] ss:$8 sm:$0xf] %vm3485_vm12, %v3519_v41   ;;  %3524 = vst.msk [vmem:[#allocation0 + $0x40] ss:$8 sm:$0xf0] %vm3485_vm12, %v3519_v41   ;;  %v3484_v14 = vpop.permute.xlu0 %3483  }
 0x1da   :  { %3486 = vst.msk [vmem:[#allocation0] ss:$8 sm:$0xf] %vm3485_vm12, %v3484_v14   ;;  %3487 = vst.msk [vmem:[#allocation0] ss:$8 sm:$0xf0] %vm3485_vm12, %v3484_v14  }
 0x1db   :  { %v3591_v60 = vpop.permute.xlu1 %3590   ;;  %vm4061_vm4 = vcmask 146560   ;;  %vm4133_vm5 = vcmask 130160   ;;  %vm4205_vm6 = vcmask 113760   ;;  %vm4277_vm7 = vcmask 97360  }
 0x1dc   :  { %3594 = vst.msk [vmem:[#allocation0 + $0x40] ss:$8 sm:$0xf] %vm3557_vm13, %v3591_v60   ;;  %3596 = vst.msk [vmem:[#allocation0 + $0x40] ss:$8 sm:$0xf0] %vm3557_vm13, %v3591_v60  }
 0x1dd   :  { %v3556_v48 = vpop.permute.xlu0 %3555   ;;  %vm4349_vm8 = vcmask 80960   ;;  %vm4421_vm9 = vcmask 64560   ;;  %vm4493_vm10 = vcmask 48160   ;;  %vm4565_vm11 = vcmask 31760  }
 0x1de   :  { %3558 = vst.msk [vmem:[#allocation0] ss:$8 sm:$0xf] %vm3557_vm13, %v3556_v48   ;;  %3559 = vst.msk [vmem:[#allocation0] ss:$8 sm:$0xf0] %vm3557_vm13, %v3556_v48  }
 0x1df   :  { %v3663_v21 = vpop.permute.xlu1 %3662  }
 0x1e0   :  { %3666 = vst.msk [vmem:[#allocation0 + $0x40] ss:$8 sm:$0xf] %vm3629_vm14, %v3663_v21   ;;  %3668 = vst.msk [vmem:[#allocation0 + $0x40] ss:$8 sm:$0xf0] %vm3629_vm14, %v3663_v21  }
 0x1e1   :  { %v3628_v13 = vpop.permute.xlu0 %3627  }
 0x1e2   :  { %3630 = vst.msk [vmem:[#allocation0] ss:$8 sm:$0xf] %vm3629_vm14, %v3628_v13   ;;  %3631 = vst.msk [vmem:[#allocation0] ss:$8 sm:$0xf0] %vm3629_vm14, %v3628_v13  }
 0x1e3   :  { %v3735_v15 = vpop.permute.xlu1 %3734  }
 0x1e4   :  { %3738 = vst.msk [vmem:[#allocation0 + $0x40] ss:$8 sm:$0xf] %vm3701_vm15, %v3735_v15   ;;  %3740 = vst.msk [vmem:[#allocation0 + $0x40] ss:$8 sm:$0xf0] %vm3701_vm15, %v3735_v15  }
 0x1e5   :  { %v3700_v9 = vpop.permute.xlu0 %3699  }
 0x1e6   :  { %3702 = vst.msk [vmem:[#allocation0] ss:$8 sm:$0xf] %vm3701_vm15, %v3700_v9   ;;  %3703 = vst.msk [vmem:[#allocation0] ss:$8 sm:$0xf0] %vm3701_vm15, %v3700_v9  }
 0x1e7   :  { %v3807_v1 = vpop.permute.xlu1 %3806  }
 0x1e8   :  { %3810 = vst.msk [vmem:[#allocation0 + $0x40] ss:$8 sm:$0xf] %vm3773_vm0, %v3807_v1   ;;  %3812 = vst.msk [vmem:[#allocation0 + $0x40] ss:$8 sm:$0xf0] %vm3773_vm0, %v3807_v1  }
 0x1e9   :  { %v3772_v12 = vpop.permute.xlu0 %3771  }
 0x1ea   :  { %3774 = vst.msk [vmem:[#allocation0] ss:$8 sm:$0xf] %vm3773_vm0, %v3772_v12   ;;  %3775 = vst.msk [vmem:[#allocation0] ss:$8 sm:$0xf0] %vm3773_vm0, %v3772_v12  }
 0x1eb   :  { %v3879_v16 = vpop.permute.xlu1 %3878  }
 0x1ec   :  { %3882 = vst.msk [vmem:[#allocation0 + $0x40] ss:$8 sm:$0xf] %vm3845_vm1, %v3879_v16   ;;  %3884 = vst.msk [vmem:[#allocation0 + $0x40] ss:$8 sm:$0xf0] %vm3845_vm1, %v3879_v16  }
 0x1ed   :  { %v3844_v7 = vpop.permute.xlu0 %3843  }
 0x1ee   :  { %3846 = vst.msk [vmem:[#allocation0] ss:$8 sm:$0xf] %vm3845_vm1, %v3844_v7   ;;  %3847 = vst.msk [vmem:[#allocation0] ss:$8 sm:$0xf0] %vm3845_vm1, %v3844_v7  }
 0x1ef   :  { %v3951_v19 = vpop.permute.xlu1 %3950  }
 0x1f0   :  { %3954 = vst.msk [vmem:[#allocation0 + $0x40] ss:$8 sm:$0xf] %vm3917_vm2, %v3951_v19   ;;  %3956 = vst.msk [vmem:[#allocation0 + $0x40] ss:$8 sm:$0xf0] %vm3917_vm2, %v3951_v19  }
 0x1f1   :  { %v3916_v54 = vpop.permute.xlu0 %3915  }
 0x1f2   :  { %3918 = vst.msk [vmem:[#allocation0] ss:$8 sm:$0xf] %vm3917_vm2, %v3916_v54   ;;  %3919 = vst.msk [vmem:[#allocation0] ss:$8 sm:$0xf0] %vm3917_vm2, %v3916_v54  }
 0x1f3   :  { %v4023_v32 = vpop.permute.xlu1 %4022  }
 0x1f4   :  { %4026 = vst.msk [vmem:[#allocation0 + $0x40] ss:$8 sm:$0xf] %vm3989_vm3, %v4023_v32   ;;  %4028 = vst.msk [vmem:[#allocation0 + $0x40] ss:$8 sm:$0xf0] %vm3989_vm3, %v4023_v32  }
 0x1f5   :  { %v3988_v44 = vpop.permute.xlu0 %3987  }
 0x1f6   :  { %3990 = vst.msk [vmem:[#allocation0] ss:$8 sm:$0xf] %vm3989_vm3, %v3988_v44   ;;  %3991 = vst.msk [vmem:[#allocation0] ss:$8 sm:$0xf0] %vm3989_vm3, %v3988_v44  }
 0x1f9   :  { %v4095_v24 = vpop.permute.xlu1 %4094  }
 0x1fa   :  { %4098 = vst.msk [vmem:[#allocation0 + $0x40] ss:$8 sm:$0xf] %vm4061_vm4, %v4095_v24   ;;  %4100 = vst.msk [vmem:[#allocation0 + $0x40] ss:$8 sm:$0xf0] %vm4061_vm4, %v4095_v24  }
 0x1fd   :  { %v4060_v20 = vpop.permute.xlu0 %4059  }
 0x1fe   :  { %4062 = vst.msk [vmem:[#allocation0] ss:$8 sm:$0xf] %vm4061_vm4, %v4060_v20   ;;  %4063 = vst.msk [vmem:[#allocation0] ss:$8 sm:$0xf0] %vm4061_vm4, %v4060_v20  }
 0x1ff   :  { %v4167_v31 = vpop.permute.xlu1 %4166  }
 0x200   :  { %4170 = vst.msk [vmem:[#allocation0 + $0x40] ss:$8 sm:$0xf] %vm4133_vm5, %v4167_v31   ;;  %4172 = vst.msk [vmem:[#allocation0 + $0x40] ss:$8 sm:$0xf0] %vm4133_vm5, %v4167_v31  }
 0x206   :  { %v4132_v30 = vpop.permute.xlu0 %4131  }
 0x207   :  { %4134 = vst.msk [vmem:[#allocation0] ss:$8 sm:$0xf] %vm4133_vm5, %v4132_v30   ;;  %4135 = vst.msk [vmem:[#allocation0] ss:$8 sm:$0xf0] %vm4133_vm5, %v4132_v30  }
 0x209   :  { %v4239_v34 = vpop.permute.xlu1 %4238  }
 0x20a   :  { %4242 = vst.msk [vmem:[#allocation0 + $0x40] ss:$8 sm:$0xf] %vm4205_vm6, %v4239_v34   ;;  %4244 = vst.msk [vmem:[#allocation0 + $0x40] ss:$8 sm:$0xf0] %vm4205_vm6, %v4239_v34  }
 0x20d   :  { %v4204_v25 = vpop.permute.xlu0 %4203  }
 0x20e   :  { %4206 = vst.msk [vmem:[#allocation0] ss:$8 sm:$0xf] %vm4205_vm6, %v4204_v25   ;;  %4207 = vst.msk [vmem:[#allocation0] ss:$8 sm:$0xf0] %vm4205_vm6, %v4204_v25  }
 0x211   :  { %v4311_v22 = vpop.permute.xlu1 %4310  }
 0x212   :  { %4314 = vst.msk [vmem:[#allocation0 + $0x40] ss:$8 sm:$0xf] %vm4277_vm7, %v4311_v22   ;;  %4316 = vst.msk [vmem:[#allocation0 + $0x40] ss:$8 sm:$0xf0] %vm4277_vm7, %v4311_v22  }
 0x215   :  { %v4276_v28 = vpop.permute.xlu0 %4275  }
 0x216   :  { %4278 = vst.msk [vmem:[#allocation0] ss:$8 sm:$0xf] %vm4277_vm7, %v4276_v28   ;;  %4279 = vst.msk [vmem:[#allocation0] ss:$8 sm:$0xf0] %vm4277_vm7, %v4276_v28  }
 0x217   :  { %v4383_v10 = vpop.permute.xlu1 %4382  }
 0x218   :  { %4386 = vst.msk [vmem:[#allocation0 + $0x40] ss:$8 sm:$0xf] %vm4349_vm8, %v4383_v10   ;;  %4388 = vst.msk [vmem:[#allocation0 + $0x40] ss:$8 sm:$0xf0] %vm4349_vm8, %v4383_v10  }
 0x21e   :  { %v4348_v36 = vpop.permute.xlu0 %4347  }
 0x21f   :  { %4350 = vst.msk [vmem:[#allocation0] ss:$8 sm:$0xf] %vm4349_vm8, %v4348_v36   ;;  %4351 = vst.msk [vmem:[#allocation0] ss:$8 sm:$0xf0] %vm4349_vm8, %v4348_v36  }
 0x221   :  { %v4455_v39 = vpop.permute.xlu1 %4454  }
 0x222   :  { %4458 = vst.msk [vmem:[#allocation0 + $0x40] ss:$8 sm:$0xf] %vm4421_vm9, %v4455_v39   ;;  %4460 = vst.msk [vmem:[#allocation0 + $0x40] ss:$8 sm:$0xf0] %vm4421_vm9, %v4455_v39  }
 0x225   :  { %v4420_v5 = vpop.permute.xlu0 %4419  }
 0x226   :  { %4422 = vst.msk [vmem:[#allocation0] ss:$8 sm:$0xf] %vm4421_vm9, %v4420_v5   ;;  %4423 = vst.msk [vmem:[#allocation0] ss:$8 sm:$0xf0] %vm4421_vm9, %v4420_v5  }
 0x229   :  { %v4527_v35 = vpop.permute.xlu1 %4526  }
 0x22a   :  { %4530 = vst.msk [vmem:[#allocation0 + $0x40] ss:$8 sm:$0xf] %vm4493_vm10, %v4527_v35   ;;  %4532 = vst.msk [vmem:[#allocation0 + $0x40] ss:$8 sm:$0xf0] %vm4493_vm10, %v4527_v35  }
 0x22d   :  { %v4492_v49 = vpop.permute.xlu0 %4491  }
 0x22e   :  { %4494 = vst.msk [vmem:[#allocation0] ss:$8 sm:$0xf] %vm4493_vm10, %v4492_v49   ;;  %4495 = vst.msk [vmem:[#allocation0] ss:$8 sm:$0xf0] %vm4493_vm10, %v4492_v49  }
 0x235   :  { %v4599_v53 = vpop.permute.xlu1 %4598  }
 0x236   :  { %4602 = vst.msk [vmem:[#allocation0 + $0x40] ss:$8 sm:$0xf] %vm4565_vm11, %v4599_v53   ;;  %4604 = vst.msk [vmem:[#allocation0 + $0x40] ss:$8 sm:$0xf0] %vm4565_vm11, %v4599_v53  }
 0x237   :  { %v4564_v40 = vpop.permute.xlu0 %4563  }
 0x238   :  { %4566 = vst.msk [vmem:[#allocation0] ss:$8 sm:$0xf] %vm4565_vm11, %v4564_v40   ;;  %4567 = vst.msk [vmem:[#allocation0] ss:$8 sm:$0xf0] %vm4565_vm11, %v4564_v40  }
 0x23d   :  { %v4653_v43 = vld [vmem:[#allocation0 + $0x40] sm:$0x1]  ;;  %v4659_v18 = vld [vmem:[#allocation0 + $0x48] sm:$0x1]  ;;  %v4665_v29 = vld [vmem:[#allocation0 + $0x50] sm:$0x1] }
 0x23e   :  { %5744 = vst [vmem:[%s10273_s1 + $0x8] sm:$0x1] %v4653_v43  ;;  %5745 = vst [vmem:[%s10273_s1 + $0x9] sm:$0x1] %v4659_v18  ;;  %v4671_v46 = vld [vmem:[#allocation0 + $0x58] sm:$0x1] }
 0x23f   :  { %5746 = vst [vmem:[%s10273_s1 + $0xa] sm:$0x1] %v4665_v29  ;;  %v4677_v45 = vld [vmem:[#allocation0 + $0x60] sm:$0x1]  ;;  %v4683_v47 = vld [vmem:[#allocation0 + $0x68] sm:$0x1] }
 0x240   :  { %5747 = vst [vmem:[%s10273_s1 + $0xb] sm:$0x1] %v4671_v46  ;;  %5748 = vst [vmem:[%s10273_s1 + $0xc] sm:$0x1] %v4677_v45  ;;  %v4689_v51 = vld [vmem:[#allocation0 + $0x70] sm:$0x1] }
 0x241   :  { %5749 = vst [vmem:[%s10273_s1 + $0xd] sm:$0x1] %v4683_v47  ;;  %v4695_v52 = vld [vmem:[#allocation0 + $0x78] sm:$0x1]  ;;  %v4608_v57 = vld [vmem:[#allocation0] sm:$0x1] }
 0x242   :  { %5750 = vst [vmem:[%s10273_s1 + $0xe] sm:$0x1] %v4689_v51  ;;  %5751 = vst [vmem:[%s10273_s1 + $0xf] sm:$0x1] %v4695_v52  ;;  %v4612_v55 = vld [vmem:[#allocation0 + $0x8] sm:$0x1] }
 0x243   :  { %4610 = vst [vmem:[%s10273_s1] sm:$0x1] %v4608_v57  ;;  %v4617_v23 = vld [vmem:[#allocation0 + $0x10] sm:$0x1]  ;;  %v4623_v38 = vld [vmem:[#allocation0 + $0x18] sm:$0x1] }
 0x244   :  { %5737 = vst [vmem:[%s10273_s1 + $0x1] sm:$0x1] %v4612_v55  ;;  %5738 = vst [vmem:[%s10273_s1 + $0x2] sm:$0x1] %v4617_v23  ;;  %v4629_v56 = vld [vmem:[#allocation0 + $0x20] sm:$0x1] }
 0x245   :  { %5739 = vst [vmem:[%s10273_s1 + $0x3] sm:$0x1] %v4623_v38  ;;  %v4635_v26 = vld [vmem:[#allocation0 + $0x28] sm:$0x1]  ;;  %v4641_v59 = vld [vmem:[#allocation0 + $0x30] sm:$0x1] }
 0x246   :  { %5740 = vst [vmem:[%s10273_s1 + $0x4] sm:$0x1] %v4629_v56  ;;  %5741 = vst [vmem:[%s10273_s1 + $0x5] sm:$0x1] %v4635_v26  ;;  %v4647_v8 = vld [vmem:[#allocation0 + $0x38] sm:$0x1] }
 0x247   :  { %5742 = vst [vmem:[%s10273_s1 + $0x6] sm:$0x1] %v4641_v59  ;;  %5743 = vst [vmem:[%s10273_s1 + $0x7] sm:$0x1] %v4647_v8 }

// kernel: tile.23
= control target key start
LH: loop header
LB: loop body
LE: loop exit
PB: predicated region body
PF: predicated region fallthrough
CT: control target
= control target key end

     0   :  { %s28_s0 = inlined_call_operand.vmem [shape: f32[2], index: 0, kind: input, shape index: {}]   ;;  %s29_s1 = inlined_call_operand.vmem [shape: f32[16,2], index: 1, kind: output, shape index: {}]  }
   0x1   :  { %v4_v0 = vld [vmem:[%s28_s0] ss:$0 sm:$0xff] }
   0x2   :  { %5 = vst [vmem:[%s29_s1] sm:$0xff] %v4_v0  ;;  %8 = vst [vmem:[%s29_s1 + $0x8] sm:$0xff] %v4_v0 }

// kernel: tile.24
= control target key start
LH: loop header
LB: loop body
LE: loop exit
PB: predicated region body
PF: predicated region fallthrough
CT: control target
= control target key end

     0   :  { %s131_s10 = smov 30   ;;  %s132_s11 = smov 26   ;;  %vm3_vm0 = vcmask 15360   ;;  %vm9_vm1 = vcmask 261360   ;;  %vm15_vm2 = vcmask 244960   ;;  %vm21_vm3 = vcmask 228560   ;;  %s207_s0 = inlined_call_operand.vmem [shape: f32[16,2], index: 0, kind: input, shape index: {}]   ;;  %s208_s1 = inlined_call_operand.vmem [shape: f32[1,32], index: 1, kind: output, shape index: {}]  }
   0x1   :  { %v101_v0 = vld [vmem:[%s207_s0 + $0xf] sm:$0x1]   ;;  %v103_v1 = vld [vmem:[%s207_s0 + $0xd] sm:$0x1]   ;;  %v102_v2 = vld [vmem:[%s207_s0 + $0xe] sm:$0x1]  }
   0x2   :  { %7 = vrot.lane.b32.xlu0 %v101_v0, %s131_s10  ;;  %19 = vrot.lane.b32.xlu1 %v103_v1, %s132_s11  ;;  %v104_v3 = vld [vmem:[%s207_s0 + $0xc] sm:$0x1]   ;;  %s133_s16 = smov 28   ;;  %s134_s17 = smov 24   ;;  %v105_v4 = vld [vmem:[%s207_s0 + $0xb] sm:$0x1]  }
   0x3   :  { %v106_v5 = vld [vmem:[%s207_s0 + $0xa] sm:$0x1]   ;;  %v2_v6 = vld [vmem:[%s207_s0] sm:$0x1]   ;;  %s135_s24 = smov 22   ;;  %s136_s25 = smov 20  }
   0x4   :  { %4 = vst.msk [vmem:[#allocation0] sm:$0x1] %vm3_vm0, %v2_v6   ;;  %v107_v7 = vld [vmem:[%s207_s0 + $0x9] sm:$0x1]   ;;  %v108_v8 = vld [vmem:[%s207_s0 + $0x8] sm:$0x1]  }
   0x5   :  { %s137_s30 = smov 18   ;;  %s138_s2 = smov 16   ;;  %v109_v9 = vld [vmem:[%s207_s0 + $0x7] sm:$0x1]   ;;  %v110_v10 = vld [vmem:[%s207_s0 + $0x6] sm:$0x1]  }
   0x6   :  { %13 = vrot.lane.b32.xlu0 %v102_v2, %s133_s16  ;;  %25 = vrot.lane.b32.xlu1 %v104_v3, %s134_s17  ;;  %s139_s7 = smov 14   ;;  %s140_s8 = smov 12   ;;  %v111_v11 = vld [vmem:[%s207_s0 + $0x5] sm:$0x1]   ;;  %v112_v12 = vld [vmem:[%s207_s0 + $0x4] sm:$0x1]  }
   0x7   :  { %s141_s13 = smov 10   ;;  %s142_s14 = smov 8   ;;  %v113_v13 = vld [vmem:[%s207_s0 + $0x3] sm:$0x1]   ;;  %v114_v14 = vld [vmem:[%s207_s0 + $0x2] sm:$0x1]  }
   0x8   :  { %s143_s19 = smov 6   ;;  %s144_s20 = smov 4   ;;  %v115_v15 = vld [vmem:[%s207_s0 + $0x1] sm:$0x1]   ;;  %vm27_vm4 = vcmask 212160   ;;  %vm33_vm5 = vcmask 195760  }
   0x9   :  { %s145_s0 = smov 2   ;;  %vm39_vm6 = vcmask 179360   ;;  %vm45_vm7 = vcmask 162960   ;;  %vm51_vm8 = vcmask 146560   ;;  %vm57_vm9 = vcmask 130160  }
   0xa   :  { %31 = vrot.lane.b32.xlu0 %v105_v4, %s135_s24  ;;  %37 = vrot.lane.b32.xlu1 %v106_v5, %s136_s25  ;;  %vm63_vm10 = vcmask 113760   ;;  %vm69_vm11 = vcmask 97360   ;;  %vm75_vm12 = vcmask 80960   ;;  %vm81_vm13 = vcmask 64560  }
   0xb   :  { %vm87_vm14 = vcmask 48160   ;;  %vm93_vm15 = vcmask 31760  }
   0xe   :  { %43 = vrot.lane.b32.xlu0 %v107_v7, %s137_s30  ;;  %49 = vrot.lane.b32.xlu1 %v108_v8, %s138_s2 }
  0x12   :  { %55 = vrot.lane.b32.xlu0 %v109_v9, %s139_s7  ;;  %61 = vrot.lane.b32.xlu1 %v110_v10, %s140_s8 }
  0x16   :  { %67 = vrot.lane.b32.xlu0 %v111_v11, %s141_s13  ;;  %73 = vrot.lane.b32.xlu1 %v112_v12, %s142_s14 }
  0x1a   :  { %79 = vrot.lane.b32.xlu0 %v113_v13, %s143_s19  ;;  %85 = vrot.lane.b32.xlu1 %v114_v14, %s144_s20 }
  0x1e   :  { %91 = vrot.lane.b32.xlu0 %v115_v15, %s145_s0 }
  0x74   :  { %v8_v16 = vpop.permute.xlu0 %7   ;;  %v20_v17 = vpop.permute.xlu1 %19  }
  0x75   :  { %10 = vst.msk [vmem:[#allocation0] sm:$0x1] %vm9_vm1, %v8_v16  }
  0x78   :  { %v14_v18 = vpop.permute.xlu0 %13   ;;  %v26_v19 = vpop.permute.xlu1 %25  }
  0x79   :  { %16 = vst.msk [vmem:[#allocation0] sm:$0x1] %vm15_vm2, %v14_v18  }
  0x7a   :  { %22 = vst.msk [vmem:[#allocation0] sm:$0x1] %vm21_vm3, %v20_v17  }
  0x7b   :  { %28 = vst.msk [vmem:[#allocation0] sm:$0x1] %vm27_vm4, %v26_v19  }
  0x7c   :  { %v32_v20 = vpop.permute.xlu0 %31   ;;  %v38_v21 = vpop.permute.xlu1 %37  }
  0x7d   :  { %34 = vst.msk [vmem:[#allocation0] sm:$0x1] %vm33_vm5, %v32_v20  }
  0x7e   :  { %40 = vst.msk [vmem:[#allocation0] sm:$0x1] %vm39_vm6, %v38_v21  }
  0x80   :  { %v44_v22 = vpop.permute.xlu0 %43   ;;  %v50_v23 = vpop.permute.xlu1 %49  }
  0x81   :  { %46 = vst.msk [vmem:[#allocation0] sm:$0x1] %vm45_vm7, %v44_v22  }
  0x82   :  { %52 = vst.msk [vmem:[#allocation0] sm:$0x1] %vm51_vm8, %v50_v23  }
  0x84   :  { %v56_v24 = vpop.permute.xlu0 %55   ;;  %v62_v25 = vpop.permute.xlu1 %61  }
  0x85   :  { %58 = vst.msk [vmem:[#allocation0] sm:$0x1] %vm57_vm9, %v56_v24  }
  0x86   :  { %64 = vst.msk [vmem:[#allocation0] sm:$0x1] %vm63_vm10, %v62_v25  }
  0x88   :  { %v68_v26 = vpop.permute.xlu0 %67   ;;  %v74_v27 = vpop.permute.xlu1 %73  }
  0x89   :  { %70 = vst.msk [vmem:[#allocation0] sm:$0x1] %vm69_vm11, %v68_v26  }
  0x8a   :  { %76 = vst.msk [vmem:[#allocation0] sm:$0x1] %vm75_vm12, %v74_v27  }
  0x8c   :  { %v80_v28 = vpop.permute.xlu0 %79   ;;  %v86_v29 = vpop.permute.xlu1 %85  }
  0x8d   :  { %82 = vst.msk [vmem:[#allocation0] sm:$0x1] %vm81_vm13, %v80_v28  }
  0x8e   :  { %88 = vst.msk [vmem:[#allocation0] sm:$0x1] %vm87_vm14, %v86_v29  }
  0x90   :  { %v92_v30 = vpop.permute.xlu0 %91  }
  0x91   :  { %94 = vst.msk [vmem:[#allocation0] sm:$0x1] %vm93_vm15, %v92_v30  }
  0x98   :  { %v98_v31 = vld [vmem:[#allocation0] sm:$0x1] }
  0x99   :  { %100 = vst [vmem:[%s208_s1] sm:$0x1] %v98_v31 }

// kernel: fcn8_gb_forward.11
= control target key start
LH: loop header
LB: loop body
LE: loop exit
PB: predicated region body
PF: predicated region fallthrough
CT: control target
= control target key end

     0   :  { %v1107_v0 = vmov 0.0   ;;  %vm1108_vm0 = vmmov 0   ;;  %vm61_vm1 = vcmask 130048   ;;  %vm130_vm2 = vcmask 261120   ;;  %s1387_s1 = inlined_call_operand.vmem [shape: bf16[16,32], index: 1, kind: input, shape index: {}]   ;;  %s1388_s0 = inlined_call_operand.vmem [shape: bf16[2,16], index: 0, kind: input, shape index: {}]   ;;  %s1389_s3 = inlined_call_operand.vmem [shape: bf16[32,32], index: 3, kind: input, shape index: {}]   ;;  %s1390_s5 = inlined_call_operand.vmem [shape: bf16[32,8], index: 5, kind: input, shape index: {}]   ;;  %s1391_s2 = inlined_call_operand.vmem [shape: f32[1,32], index: 2, kind: input, shape index: {}]   ;;  %s1392_s8 = inlined_call_operand.vmem [shape: bf16[8,32], index: 8, kind: input, shape index: {}]   ;;  %s1393_s4 = inlined_call_operand.vmem [shape: f32[1,32], index: 4, kind: input, shape index: {}]   ;;  %s1394_s11 = inlined_call_operand.vmem [shape: bf16[32,2048], index: 11, kind: input, shape index: {}]   ;;  %s1395_s6 = inlined_call_operand.vmem [shape: f32[1,8], index: 6, kind: input, shape index: {}]   ;;  %s1396_s7 = inlined_call_operand.vmem [shape: f32[2,8], index: 7, kind: input, shape index: {}]   ;;  %s1397_s9 = inlined_call_operand.vmem [shape: f32[1,32], index: 9, kind: input, shape index: {}]   ;;  %s1398_s10 = inlined_call_operand.vmem [shape: f32[2,32], index: 10, kind: input, shape index: {}]   ;;  %s1399_s12 = inlined_call_operand.vmem [shape: f32[1,2048], index: 12, kind: input, shape index: {}]   ;;  %s1400_s13 = inlined_call_operand.vmem [shape: f32[2,2048], index: 13, kind: output, shape index: {}]  }
   0x1   :  { %1070 = vmatprep.subr.bf16.mxu0 %v1107_v0  ;;  %v1102_v1 = vld [vmem:[%s1387_s1] sm:$0xff]   ;;  %1072 = vmatprep.mubr.msk.bf16.mxu0 %vm1108_vm0, %v1107_v0  ;;  %v1104_v4 = vld [vmem:[%s1389_s3 + $0x8] sm:$0xff]   ;;  %vm257_vm3 = vcmask 1043456   ;;  %vm253_vm4 = vcmask 64512   ;;  %v306_v50 = vld [vmem:[%s1394_s11 + $0x10] sm:$0xff]  ;;  %v1109_v56 = vmov 0  }
   0x2   :  { %1076 = vmatprep.subr.bf16.mxu1 %v1107_v0  ;;  %1080 = vmatprep.mubr.msk.bf16.mxu1 %vm1108_vm0, %v1107_v0  ;;  %v45_v2 = vld [vmem:[%s1388_s0] sm:$0x1]  ;;  %v1106_v14 = vld [vmem:[%s1390_s5 + $0x8] sm:$0xff]   ;;  %v314_v51 = vld [vmem:[%s1394_s11 + $0x50] sm:$0xff] }
   0x3   :  { %1071 = vmatpush3.bf16.msra.mxu0 %v1102_v1  ;;  %v1103_v3 = vld [vmem:[%s1389_s3] sm:$0xff]   ;;  %v305_v27 = vld [vmem:[%s1394_s11 + $0x8] sm:$0xff]  ;;  %v307_v52 = vld [vmem:[%s1394_s11 + $0x18] sm:$0xff]  ;;  %v1024_v53 = vcombine.low %v306_v50, %v314_v51  ;;  %v1025_v54 = vcombine.high %v306_v50, %v314_v51 }
   0x4   :  { %1084 = vmatprep.subr.bf16.mxu0 %v1107_v0  ;;  %1077 = vmatpush3.bf16.msra.mxu1 %v1103_v3  ;;  %v1105_v5 = vld [vmem:[%s1390_s5] sm:$0xff]   ;;  %v313_v30 = vld [vmem:[%s1394_s11 + $0x48] sm:$0xff]  ;;  %v315_v55 = vld [vmem:[%s1394_s11 + $0x58] sm:$0xff] }
   0x5   :  { %1078 = vmatprep.subr.bf16.mxu1 %v1107_v0  ;;  %v1007_v6 = vld [vmem:[%s1391_s2] ss:$0 sm:$0xff]  ;;  %v1022_v31 = vcombine.low %v305_v27, %v313_v30  ;;  %v1023_v32 = vcombine.high %v305_v27, %v313_v30  ;;  %v321_v44 = vld [vmem:[%s1394_s11 + $0x88] sm:$0xff]  ;;  %v1026_v57 = vcombine.low %v307_v52, %v315_v55  ;;  %v1027_v58 = vcombine.high %v307_v52, %v315_v55  ;;  %v323_v3 = vld [vmem:[%s1394_s11 + $0x98] sm:$0xff] }
   0x6   :  { %1073 = vmatmul.mubr.msk.bf16.vlgmr.msra.gmra.mrb[0].mxu0 %vm61_vm1, %v45_v2  ;;  %v245_v15 = vld [vmem:[%s1392_s8] sm:$0xf]  ;;  %v329_v46 = vld [vmem:[%s1394_s11 + $0xc8] sm:$0xff]  ;;  %v330_v2 = vld [vmem:[%s1394_s11 + $0xd0] sm:$0xff] }
   0x7   :  { %1088 = vmatprep.mubr.msk.bf16.mxu0 %vm1108_vm0, %v1107_v0  ;;  %1085 = vmatpush3.bf16.msra.mxu0 %v1105_v5  ;;  %v259_v16 = vsel %vm257_vm3, %v245_v15, 0  ;;  %v1010_v17 = vld [vmem:[%s1393_s4] ss:$0 sm:$0xff]  ;;  %v1038_v48 = vcombine.low %v321_v44, %v329_v46  ;;  %v1039_v49 = vcombine.high %v321_v44, %v329_v46  ;;  %v318_v27 = vld [vmem:[%s1394_s11 + $0x70] sm:$0xff]  ;;  %v340_v44 = vlaneseq }
   0x8   :  { %1079 = vmatpush3.bf16.msra.mxu1 %v1104_v4  ;;  %1086 = vmatprep.subr.bf16.mxu0 %v1107_v0  ;;  %v304_v25 = vld [vmem:[%s1394_s11] sm:$0xff]  ;;  %v331_v4 = vld [vmem:[%s1394_s11 + $0xd8] sm:$0xff]  ;;  %v1110_v46 = vmov 1983009808  }
   0x9   :  { %1092 = vmatprep.subr.bf16.mxu1 %v1107_v0  ;;  %v312_v26 = vld [vmem:[%s1394_s11 + $0x40] sm:$0xff]  ;;  %v1042_v15 = vcombine.low %v323_v3, %v331_v4 }
   0xa   :  { %v1020_v28 = vcombine.low %v304_v25, %v312_v26  ;;  %v1021_v29 = vcombine.high %v304_v25, %v312_v26  ;;  %v1014_v33 = vld [vmem:[%s1395_s6] ss:$0 sm:$0xff]  ;;  %v310_v26 = vld [vmem:[%s1394_s11 + $0x30] sm:$0xff] }
   0xb   :  { %1087 = vmatpush3.bf16.msra.mxu0 %v1106_v14  ;;  %v242_v35 = vld [vmem:[%s1396_s7] sm:$0x3] }
   0xc   :  { %583 = vmatprep.subr.bf16.mxu0 %v1021_v29  ;;  %v320_v42 = vld [vmem:[%s1394_s11 + $0x80] sm:$0xff]  ;;  %v319_v29 = vld [vmem:[%s1394_s11 + $0x78] sm:$0xff] }
   0xd   :  { %v328_v43 = vld [vmem:[%s1394_s11 + $0xc0] sm:$0xff] }
   0xe   :  { %v1037_v45 = vcombine.high %v320_v42, %v328_v43  ;;  %v1036_v47 = vcombine.low %v320_v42, %v328_v43  ;;  %v1018_v59 = vld [vmem:[%s1397_s9] ss:$0 sm:$0xff] }
   0xf   :  { %v301_v61 = vld [vmem:[%s1398_s10] sm:$0x3] }
  0x10   :  { %v336_v50 = vld [vmem:[%s1399_s12] sm:$0xff] }
  0xd9   :  { %v99_v7 = vpop.f32.mrb[0].mxu0 }
  0xda   :  { %v100_v8 = vadd.f32 %v1007_v6, %v99_v7  ;;  %v1074_v9 = vpop.f32.mrb[1].mxu0 }
  0xdb   :  { %v102_v10 = vpop.f32.mrb[2].mxu0  ;;  %v1043_v9 = vcombine.high %v323_v3, %v331_v4 }
  0xdc   :  { %v105_v11 = vmax.f32 %v100_v8, 0.0  ;;  %v1075_v12 = vpop.f32.mrb[3].mxu0  ;;  %v308_v10 = vld [vmem:[%s1394_s11 + $0x20] sm:$0xff] }
  0xdd   :  { %v309_v12 = vld [vmem:[%s1394_s11 + $0x28] sm:$0xff] }
  0xde   :  { %v106_v13 = vpack.c.bf16 %v105_v11, %v105_v11  ;;  %v316_v11 = vld [vmem:[%s1394_s11 + $0x60] sm:$0xff] }
  0xe0   :  { %1081 = vmatmul.mubr.msk.bf16.vlgmr.msra.gmra.mrb[0].mxu1 %vm130_vm2, %v106_v13  ;;  %v317_v13 = vld [vmem:[%s1394_s11 + $0x68] sm:$0xff] }
  0xe1   :  { %1094 = vmatprep.mubr.msk.bf16.mxu1 %vm1108_vm0, %v1107_v0  ;;  %1093 = vmatpush3.bf16.msra.mxu1 %v259_v16  ;;  %v322_v0 = vld [vmem:[%s1394_s11 + $0x90] sm:$0xff]  ;;  %v1029_v16 = vcombine.high %v308_v10, %v316_v11 }
  0xe2   :  { %624 = vmatprep.subr.bf16.mxu1 %v1023_v32  ;;  %v1041_v8 = vcombine.high %v322_v0, %v330_v2  ;;  %v1040_v14 = vcombine.low %v322_v0, %v330_v2  ;;  %v1033_v32 = vcombine.high %v310_v26, %v318_v27 }
 0x1b3   :  { %v168_v18 = vpop.f32.mrb[0].mxu1 }
 0x1b4   :  { %v169_v19 = vadd.f32 %v1010_v17, %v168_v18  ;;  %v1082_v20 = vpop.f32.mrb[1].mxu1  ;;  %v1031_v17 = vcombine.high %v309_v12, %v317_v13  ;;  %v324_v18 = vld [vmem:[%s1394_s11 + $0xa0] sm:$0xff] }
 0x1b5   :  { %v171_v21 = vpop.f32.mrb[2].mxu1  ;;  %v325_v20 = vld [vmem:[%s1394_s11 + $0xa8] sm:$0xff] }
 0x1b6   :  { %v174_v22 = vmax.f32 %v169_v19, 0.0  ;;  %v1083_v23 = vpop.f32.mrb[3].mxu1  ;;  %v332_v19 = vld [vmem:[%s1394_s11 + $0xe0] sm:$0xff]  ;;  %v333_v21 = vld [vmem:[%s1394_s11 + $0xe8] sm:$0xff] }
 0x1b7   :  { %v1030_v23 = vcombine.low %v309_v12, %v317_v13  ;;  %v1047_v25 = vcombine.high %v325_v20, %v333_v21  ;;  %v1044_v30 = vcombine.low %v324_v18, %v332_v19 }
 0x1b8   :  { %v175_v24 = vpack.c.bf16 %v174_v22, %v174_v22  ;;  %v1028_v22 = vcombine.low %v308_v10, %v316_v11 }
 0x1ba   :  { %1089 = vmatmul.mubr.msk.bf16.vlgmr.msra.gmra.mrb[4].mxu0 %vm130_vm2, %v175_v24  ;;  %v1045_v24 = vcombine.high %v324_v18, %v332_v19 }
 0x1bb   :  { %584 = vmatpush1.bf16.msra.mxu0 %v1020_v28  ;;  %615 = vmatprep.mubr.bf16.mxu0 %v1109_v56  ;;  %v311_v28 = vld [vmem:[%s1394_s11 + $0x38] sm:$0xff] }
 0x1bc   :  { %585 = vmatprep.subr.bf16.mxu0 %v1037_v45  ;;  %v1348_v45 = vshrl.u32 %v340_v44, 7 }
 0x1be   :  { %v346_v51 = vsub.s32 1, %v1348_v45  ;;  %v354_v52 = vsub.s32 3, %v1348_v45  ;;  %v366_v2 = vsub.s32 6, %v1348_v45 }
 0x1bf   :  { %586 = vmatpush1.bf16.msra.mxu0 %v1036_v47  ;;  %v930_v47 = vunpack.c.l.s4 %v1110_v46 }
 0x1c0   :  { %665 = vmatprep.subr.bf16.mxu0 %v1025_v54 }
 0x28d   :  { %v236_v34 = vpop.f32.mrb[4].mxu0 }
 0x28e   :  { %v237_v36 = vadd.f32 %v1014_v33, %v236_v34  ;;  %v1090_v37 = vpop.f32.mrb[5].mxu0  ;;  %v1035_v33 = vcombine.high %v311_v28, %v319_v29  ;;  %v326_v34 = vld [vmem:[%s1394_s11 + $0xb0] sm:$0xff] }
 0x28f   :  { %v239_v38 = vpop.f32.mrb[6].mxu0  ;;  %v335_v37 = vld [vmem:[%s1394_s11 + $0xf8] sm:$0xff] }
 0x290   :  { %v243_v39 = vadd.f32 %v242_v35, %v237_v36  ;;  %v1091_v40 = vpop.f32.mrb[7].mxu0  ;;  %v334_v35 = vld [vmem:[%s1394_s11 + $0xf0] sm:$0xff]  ;;  %v327_v36 = vld [vmem:[%s1394_s11 + $0xb8] sm:$0xff]  ;;  %v1032_v38 = vcombine.low %v310_v26, %v318_v27 }
 0x291   :  { %v1049_v40 = vcombine.high %v326_v34, %v334_v35  ;;  %v1048_v42 = vcombine.low %v326_v34, %v334_v35  ;;  %v1050_v43 = vcombine.low %v327_v36, %v335_v37 }
 0x292   :  { %v244_v41 = vpack.c.bf16 %v243_v39, %v243_v39  ;;  %v1034_v39 = vcombine.low %v311_v28, %v319_v29 }
 0x294   :  { %1095 = vmatmul.mubr.msk.bf16.vlgmr.msra.gmra.mrb[4].mxu1 %vm253_vm4, %v244_v41  ;;  %v1051_v41 = vcombine.high %v327_v36, %v335_v37 }
 0x295   :  { %625 = vmatpush1.bf16.msra.mxu1 %v1022_v31  ;;  %656 = vmatprep.mubr.bf16.mxu1 %v1109_v56  ;;  %v1046_v31 = vcombine.low %v325_v20, %v333_v21 }
 0x296   :  { %626 = vmatprep.subr.bf16.mxu1 %v1039_v49  ;;  %v350_v49 = vsub.s32 2, %v1348_v45 }
 0x298   :  { %v351_v55 = vrot.slane %v336_v50, %v350_v49 }
 0x299   :  { %627 = vmatpush1.bf16.msra.mxu1 %v1038_v48  ;;  %v342_v48 = vsub.s32 0, %v1348_v45 }
 0x29a   :  { %706 = vmatprep.subr.bf16.mxu1 %v1027_v58 }
 0x29b   :  { %v343_v54 = vrot.slane %v336_v50, %v342_v48 }
 0x367   :  { %v295_v60 = vpop.f32.mrb[4].mxu1 }
 0x368   :  { %v296_v62 = vadd.f32 %v1018_v59, %v295_v60  ;;  %v1096_v63 = vpop.f32.mrb[5].mxu1 }
 0x369   :  { %v298_v1 = vpop.f32.mrb[6].mxu1 }
 0x36a   :  { %v302_v5 = vadd.f32 %v301_v61, %v296_v62  ;;  %v1097_v6 = vpop.f32.mrb[7].mxu1  ;;  %v358_v1 = vsub.s32 4, %v1348_v45 }
 0x36c   :  { %v1276_v7 = vpack.c.bf16 %v302_v5, %v302_v5  ;;  %v359_v13 = vrot.slane %v336_v50, %v358_v1 }
 0x36e   :  { %1052 = vmatmul.mubr.msk.bf16.vlgmr.msra.gmra.mrb[8].mxu0 %vm130_vm2, %v1276_v7  ;;  %1053 = vmatmul.mubr.msk.bf16.vlgmr.msra.gmra.mrb[8].mxu1 %vm130_vm2, %v1276_v7 }
 0x36f   :  { %666 = vmatpush1.bf16.msra.mxu0 %v1024_v53  ;;  %707 = vmatpush1.bf16.msra.mxu1 %v1026_v57  ;;  %v931_v53 = vunpack.c.0.s8 %v930_v47  ;;  %v355_v57 = vrot.slane %v336_v50, %v354_v52 }
 0x370   :  { %667 = vmatprep.subr.bf16.mxu0 %v1041_v8  ;;  %708 = vmatprep.subr.bf16.mxu1 %v1043_v9  ;;  %v370_v8 = vsub.s32 7, %v1348_v45 }
 0x371   :  { %697 = vmatprep.mubr.bf16.mxu0 %v1109_v56  ;;  %738 = vmatprep.mubr.bf16.mxu1 %v1109_v56  ;;  %v1358_v60 = vsub.s32 %v931_v53, %v1348_v45 }
 0x372   :  { %v371_v18 = vrot.slane %v336_v50, %v370_v8 }
 0x373   :  { %668 = vmatpush1.bf16.msra.mxu0 %v1040_v14  ;;  %709 = vmatpush1.bf16.msra.mxu1 %v1042_v15  ;;  %v367_v14 = vrot.slane %v336_v50, %v366_v2 }
 0x374   :  { %747 = vmatprep.subr.bf16.mxu0 %v1029_v16  ;;  %788 = vmatprep.subr.bf16.mxu1 %v1031_v17 }
 0x376   :  { %1054 = vmatmul.mubr.msk.bf16.vlgmr.msra.gmra.mrb[12].mxu0 %vm130_vm2, %v1276_v7  ;;  %1055 = vmatmul.mubr.msk.bf16.vlgmr.msra.gmra.mrb[12].mxu1 %vm130_vm2, %v1276_v7 }
 0x377   :  { %748 = vmatpush1.bf16.msra.mxu0 %v1028_v22  ;;  %789 = vmatpush1.bf16.msra.mxu1 %v1030_v23 }
 0x378   :  { %749 = vmatprep.subr.bf16.mxu0 %v1045_v24  ;;  %790 = vmatprep.subr.bf16.mxu1 %v1047_v25 }
 0x379   :  { %779 = vmatprep.mubr.bf16.mxu0 %v1109_v56  ;;  %820 = vmatprep.mubr.bf16.mxu1 %v1109_v56 }
 0x37b   :  { %750 = vmatpush1.bf16.msra.mxu0 %v1044_v30  ;;  %791 = vmatpush1.bf16.msra.mxu1 %v1046_v31  ;;  %v337_v30 = vld [vmem:[%s1399_s12 + $0x8] sm:$0xff] }
 0x37c   :  { %829 = vmatprep.subr.bf16.mxu0 %v1033_v32  ;;  %870 = vmatprep.subr.bf16.mxu1 %v1035_v33  ;;  %v375_v35 = vrot.slane %v337_v30, %v342_v48  ;;  %v383_v36 = vrot.slane %v337_v30, %v350_v49 }
 0x37e   :  { %1056 = vmatmul.mubr.msk.bf16.vlgmr.msra.gmra.mrb[16].mxu0 %vm130_vm2, %v1276_v7  ;;  %1057 = vmatmul.mubr.msk.bf16.vlgmr.msra.gmra.mrb[16].mxu1 %vm130_vm2, %v1276_v7 }
 0x37f   :  { %830 = vmatpush1.bf16.msra.mxu0 %v1032_v38  ;;  %871 = vmatpush1.bf16.msra.mxu1 %v1034_v39  ;;  %v379_v39 = vrot.slane %v337_v30, %v346_v51 }
 0x380   :  { %831 = vmatprep.subr.bf16.mxu0 %v1049_v40  ;;  %872 = vmatprep.subr.bf16.mxu1 %v1051_v41  ;;  %v387_v40 = vrot.slane %v337_v30, %v354_v52  ;;  %v391_v52 = vrot.slane %v337_v30, %v358_v1 }
 0x381   :  { %861 = vmatprep.mubr.bf16.mxu0 %v1109_v56  ;;  %902 = vmatprep.mubr.bf16.mxu1 %v1109_v56  ;;  %v347_v56 = vrot.slane %v336_v50, %v346_v51 }
 0x383   :  { %832 = vmatpush1.bf16.msra.mxu0 %v1048_v42  ;;  %873 = vmatpush1.bf16.msra.mxu1 %v1050_v43 }
 0x386   :  { %1058 = vmatmul.mubr.msk.bf16.vlgmr.msra.gmra.mrb[20].mxu0 %vm130_vm2, %v1276_v7  ;;  %1059 = vmatmul.mubr.msk.bf16.vlgmr.msra.gmra.mrb[20].mxu1 %vm130_vm2, %v1276_v7  ;;  %v362_v7 = vsub.s32 5, %v1348_v45 }
 0x388   :  { %v363_v17 = vrot.slane %v336_v50, %v362_v7 }
 0x441   :  { %v617_v58 = vpop.f32.mrb[8].mxu0  ;;  %v658_v59 = vpop.f32.mrb[8].mxu1 }
 0x442   :  { %v618_v61 = vadd.f32 %v617_v58, %v343_v54  ;;  %v659_v62 = vadd.f32 %v658_v59, %v351_v55  ;;  %v619_v63 = vpop.f32.mrb[9].mxu0  ;;  %v660_v0 = vpop.f32.mrb[9].mxu1 }
 0x443   :  { %v620_v3 = vadd.f32 %v619_v63, %v347_v56  ;;  %v661_v4 = vadd.f32 %v660_v0, %v355_v57  ;;  %v621_v5 = vpop.f32.mrb[10].mxu0  ;;  %v662_v6 = vpop.f32.mrb[10].mxu1  ;;  %v399_v57 = vrot.slane %v337_v30, %v366_v2 }
 0x444   :  { %v622_v9 = vpop.f32.mrb[11].mxu0  ;;  %v663_v10 = vpop.f32.mrb[11].mxu1 }
 0x445   :  { %v927_v11 = vcombine.low %v618_v61, %v620_v3  ;;  %v928_v12 = vcombine.low %v659_v62, %v661_v4  ;;  %v395_v61 = vrot.slane %v337_v30, %v362_v7  ;;  %v403_v62 = vrot.slane %v337_v30, %v370_v8 }
 0x447   :  { %v935_v15 = vrot.slane %v927_v11, %v1358_v60  ;;  %v942_v16 = vrot.slane %v928_v12, %v1358_v60 }
 0x449   :  { %v943_v19 = vcombine.low %v935_v15, %v942_v16  ;;  %v699_v20 = vpop.f32.mrb[12].mxu0  ;;  %v740_v21 = vpop.f32.mrb[12].mxu1 }
 0x44a   :  { %v700_v22 = vadd.f32 %v699_v20, %v359_v13  ;;  %v741_v23 = vadd.f32 %v740_v21, %v367_v14  ;;  %v701_v24 = vpop.f32.mrb[13].mxu0  ;;  %v742_v25 = vpop.f32.mrb[13].mxu1 }
 0x44b   :  { %999 = vst [vmem:[%s1400_s13] sm:$0xff] %v943_v19  ;;  %v702_v26 = vadd.f32 %v701_v24, %v363_v17  ;;  %v743_v27 = vadd.f32 %v742_v25, %v371_v18  ;;  %v703_v28 = vpop.f32.mrb[14].mxu0  ;;  %v744_v29 = vpop.f32.mrb[14].mxu1 }
 0x44c   :  { %v704_v31 = vpop.f32.mrb[15].mxu0  ;;  %v745_v32 = vpop.f32.mrb[15].mxu1 }
 0x44d   :  { %v944_v33 = vcombine.low %v700_v22, %v702_v26  ;;  %v945_v34 = vcombine.low %v741_v23, %v743_v27 }
 0x44f   :  { %v952_v37 = vrot.slane %v944_v33, %v1358_v60  ;;  %v959_v38 = vrot.slane %v945_v34, %v1358_v60 }
 0x451   :  { %v960_v41 = vcombine.low %v952_v37, %v959_v38  ;;  %v781_v42 = vpop.f32.mrb[16].mxu0  ;;  %v822_v43 = vpop.f32.mrb[16].mxu1 }
 0x452   :  { %v782_v44 = vadd.f32 %v781_v42, %v375_v35  ;;  %v823_v45 = vadd.f32 %v822_v43, %v383_v36  ;;  %v783_v46 = vpop.f32.mrb[17].mxu0  ;;  %v824_v47 = vpop.f32.mrb[17].mxu1 }
 0x453   :  { %1000 = vst [vmem:[%s1400_s13 + $0x8] sm:$0xff] %v960_v41  ;;  %v784_v50 = vadd.f32 %v783_v46, %v379_v39  ;;  %v825_v48 = vadd.f32 %v824_v47, %v387_v40  ;;  %v785_v49 = vpop.f32.mrb[18].mxu0  ;;  %v826_v53 = vpop.f32.mrb[18].mxu1 }
 0x454   :  { %v786_v54 = vpop.f32.mrb[19].mxu0  ;;  %v827_v55 = vpop.f32.mrb[19].mxu1 }
 0x455   :  { %v961_v56 = vcombine.low %v782_v44, %v784_v50  ;;  %v962_v51 = vcombine.low %v823_v45, %v825_v48 }
 0x457   :  { %v969_v58 = vrot.slane %v961_v56, %v1358_v60  ;;  %v976_v59 = vrot.slane %v962_v51, %v1358_v60 }
 0x459   :  { %v977_v63 = vcombine.low %v969_v58, %v976_v59  ;;  %v863_v0 = vpop.f32.mrb[20].mxu0  ;;  %v904_v3 = vpop.f32.mrb[20].mxu1 }
 0x45a   :  { %v864_v4 = vadd.f32 %v863_v0, %v391_v52  ;;  %v905_v5 = vadd.f32 %v904_v3, %v399_v57  ;;  %v865_v6 = vpop.f32.mrb[21].mxu0  ;;  %v906_v9 = vpop.f32.mrb[21].mxu1 }
 0x45b   :  { %1001 = vst [vmem:[%s1400_s13 + $0x10] sm:$0xff] %v977_v63  ;;  %v866_v10 = vadd.f32 %v865_v6, %v395_v61  ;;  %v907_v1 = vadd.f32 %v906_v9, %v403_v62  ;;  %v867_v2 = vpop.f32.mrb[22].mxu0  ;;  %v908_v11 = vpop.f32.mrb[22].mxu1 }
 0x45c   :  { %v868_v12 = vpop.f32.mrb[23].mxu0  ;;  %v909_v13 = vpop.f32.mrb[23].mxu1 }
 0x45d   :  { %v978_v14 = vcombine.low %v864_v4, %v866_v10  ;;  %v979_v7 = vcombine.low %v905_v5, %v907_v1 }
 0x45f   :  { %v986_v8 = vrot.slane %v978_v14, %v1358_v60  ;;  %v993_v15 = vrot.slane %v979_v7, %v1358_v60 }
 0x461   :  { %v994_v16 = vcombine.low %v986_v8, %v993_v15 }
 0x463   :  { %1002 = vst [vmem:[%s1400_s13 + $0x18] sm:$0xff] %v994_v16 }

</bundles_post_ra>
